<compile_context>
chip_gen: v5e
topology: v5e:2x2
jax: 0.10.0
libtpu: 0.0.40
codegen_flags: <defaults>
</compile_context>

<pallas_src>
import jax
import jax.numpy as jnp
from jax.experimental import pallas as pl
from jax.experimental.pallas import tpu as pltpu

CHANNELS = [1024, 512, 256, 128, 64, 32, 16, 8, 1]
BN_EPS = 1e-5


def _make_head_kernel(ipb, hw, rows_out):
    """ipb: images per grid step, hw = H*W, rows_out = (H-1)*W."""
    w_shift = hw - rows_out  # == W, row offset of the second (2,1)-conv tap

    def kernel(x_ref,
               s0_ref, b0_ref, w1a_ref, w1b_ref,
               s1_ref, b1_ref, w2_ref,
               s2_ref, b2_ref, w3_ref,
               s3_ref, b3_ref, w4_ref,
               s4_ref, b4_ref, w5_ref,
               s5_ref, b5_ref, w6_ref,
               s6_ref, b6_ref, w7_ref,
               s7_ref, b7_ref, w8t_ref,
               o_ref):
        f32 = jnp.float32
        bf16 = jnp.bfloat16

        # BN0 + ReLU computed once per input row (both conv taps share it).
        a = jnp.maximum(x_ref[...] * s0_ref[...] + b0_ref[...], 0.0)

        # Build the two row-shifted taps as (ipb*rows_out, C) matrices.
        # Per-image static slices + sublane concat; all offsets/lengths are
        # multiples of 8 so no relayout is needed.
        if ipb > 1:
            a0 = jnp.concatenate([a[j, :rows_out, :] for j in range(ipb)], axis=0)
            a1 = jnp.concatenate([a[j, w_shift:, :] for j in range(ipb)], axis=0)
        else:
            a0 = a[0, :rows_out, :]
            a1 = a[0, w_shift:, :]

        # Conv2d(1024, 512, (2,1), bias=False) == sum of two channel matmuls.
        # bf16 inputs / bf16 weights, f32 accumulation on the MXU.
        h = (jnp.dot(a0.astype(bf16), w1a_ref[...], preferred_element_type=f32)
             + jnp.dot(a1.astype(bf16), w1b_ref[...], preferred_element_type=f32))

        # Chain of BN -> ReLU -> 1x1 conv (pure channel matmuls, no reshapes).
        for s_ref, b_ref, w_ref in ((s1_ref, b1_ref, w2_ref),
                                    (s2_ref, b2_ref, w3_ref),
                                    (s3_ref, b3_ref, w4_ref),
                                    (s4_ref, b4_ref, w5_ref),
                                    (s5_ref, b5_ref, w6_ref),
                                    (s6_ref, b6_ref, w7_ref)):
            h = jnp.maximum(h * s_ref[...] + b_ref[...], 0.0)
            h = jnp.dot(h.astype(bf16), w_ref[...], preferred_element_type=f32)

        # Final BN -> ReLU -> Conv2d(8, 1, 1) as a lane reduction, then sigmoid.
        # The reciprocal goes to the (otherwise idle) EUP slot.
        h = jnp.maximum(h * s7_ref[...] + b7_ref[...], 0.0)
        y = jnp.sum(h * w8t_ref[...], axis=-1, keepdims=True)
        o_ref[...] = pl.reciprocal(1.0 + jnp.exp(-y), approx=True)

    return kernel


def init_params(key):
    keys = iter(jax.random.split(key, 64))
    bn_scale, bn_shift = [], []
    for c in CHANNELS[:-1]:  # BN over 1024, 512, ..., 8
        gamma = 1.0 + 0.1 * jax.random.normal(next(keys), (c,), jnp.float32)
        beta = 0.1 * jax.random.normal(next(keys), (c,), jnp.float32)
        mean = 0.1 * jax.random.normal(next(keys), (c,), jnp.float32)
        var = 1.0 + jnp.abs(jax.random.normal(next(keys), (c,), jnp.float32))
        scale = gamma / jnp.sqrt(var + BN_EPS)
        shift = beta - mean * scale
        bn_scale.append(scale.reshape(1, c))        # f32 (VPU math)
        bn_shift.append(shift.reshape(1, c))        # f32

    cin, cout = CHANNELS[0], CHANNELS[1]
    # torch Conv2d weight (512, 1024, 2, 1): tap kh=0 / kh=1, stored transposed
    # as [in, out] (bf16) so the kernel can do row @ W directly on the MXU.
    w1a = (jax.random.normal(next(keys), (cin, cout), jnp.float32)
           / jnp.sqrt(2.0 * cin)).astype(jnp.bfloat16)
    w1b = (jax.random.normal(next(keys), (cin, cout), jnp.float32)
           / jnp.sqrt(2.0 * cin)).astype(jnp.bfloat16)

    ws = []
    for i in range(1, 7):  # 1x1 convs 512->256 ... 16->8, as [in, out], bf16
        ci, co = CHANNELS[i], CHANNELS[i + 1]
        ws.append((jax.random.normal(next(keys), (ci, co), jnp.float32)
                   / jnp.sqrt(1.0 * ci)).astype(jnp.bfloat16))
    # final Conv2d(8, 1, 1) stored as a (1, 8) f32 row for a VPU/XLU reduction.
    w8t = jax.random.normal(next(keys), (1, 8), jnp.float32) / jnp.sqrt(8.0)

    return {"bn_scale": bn_scale, "bn_shift": bn_shift,
            "w1a": w1a, "w1b": w1b, "ws": ws, "w8t": w8t}


def _flatten_params(params):
    plist = [params["bn_scale"][0], params["bn_shift"][0],
             params["w1a"], params["w1b"]]
    for i in range(6):
        plist += [params["bn_scale"][i + 1], params["bn_shift"][i + 1],
                  params["ws"][i]]
    plist += [params["bn_scale"][7], params["bn_shift"][7], params["w8t"]]
    return plist


def cnn_head(feat, params):
    """feat: NCHW float32 feature map with C == 1024 (densenet121 features)."""
    N, C, H, W = feat.shape
    assert C == CHANNELS[0]
    hw = H * W
    rows_out = (H - 1) * W

    # Single NHWC transpose; no duplicated/shifted activation copies in HBM.
    act = jnp.transpose(feat, (0, 2, 3, 1)).reshape(N, hw, C)

    # Images per grid step: aim for ~512 matmul rows per step to fill the MXU
    # M-dimension and amortize per-step overhead (block row counts stay
    # multiples of 8 for the demo H, W).
    ipb = max(1, min(N, 512 // hw)) if hw < 512 else 1
    n_pad = ((N + ipb - 1) // ipb) * ipb
    if n_pad != N:
        act = jnp.pad(act, ((0, n_pad - N), (0, 0), (0, 0)))

    plist = _flatten_params(params)

    x_spec = pl.BlockSpec((ipb, hw, C), lambda i: (i, 0, 0))
    # Constant index_map -> params are DMA'd once and stay resident in VMEM.
    param_specs = [pl.BlockSpec(p.shape, lambda i: (0, 0)) for p in plist]
    out_spec = pl.BlockSpec((ipb * rows_out, 1), lambda i: (i, 0))

    out = pl.pallas_call(
        _make_head_kernel(ipb, hw, rows_out),
        out_shape=jax.ShapeDtypeStruct((n_pad * rows_out, 1), jnp.float32),
        grid_spec=pltpu.PrefetchScalarGridSpec(
            num_scalar_prefetch=0,
            grid=(n_pad // ipb,),
            in_specs=[x_spec] + param_specs,
            out_specs=out_spec,
        ),
        compiler_params=pltpu.CompilerParams(
            dimension_semantics=("parallel",),
            # ~6 MiB actually needed (bf16 weights + per-image activations);
            # keep the limit well under v7x's 64 MiB physical VMEM.
            vmem_limit_bytes=32 << 20,
        ),
    )(act, *plist)
    # Matches torch `.view(-1, 1)` on the (N, 1, H-1, W) conv output.
    return out[: N * rows_out]


def cnn_head_ref(feat, params):
    """Pure-JAX reference with the same bf16-weight / f32-accum math."""
    N, C, H, W = feat.shape
    hw = H * W
    rows_out = (H - 1) * W
    act = jnp.transpose(feat, (0, 2, 3, 1)).reshape(N, hw, C)
    a = jnp.maximum(act * params["bn_scale"][0] + params["bn_shift"][0], 0.0)
    a0 = a[:, :rows_out, :].reshape(-1, C).astype(jnp.bfloat16)
    a1 = a[:, W:, :].reshape(-1, C).astype(jnp.bfloat16)
    h = (jnp.dot(a0, params["w1a"], preferred_element_type=jnp.float32)
         + jnp.dot(a1, params["w1b"], preferred_element_type=jnp.float32))
    for i in range(6):
        h = jnp.maximum(h * params["bn_scale"][i + 1] + params["bn_shift"][i + 1], 0.0)
        h = jnp.dot(h.astype(jnp.bfloat16), params["ws"][i],
                    preferred_element_type=jnp.float32)
    h = jnp.maximum(h * params["bn_scale"][7] + params["bn_shift"][7], 0.0)
    y = jnp.sum(h * params["w8t"], axis=-1, keepdims=True)
    return jax.nn.sigmoid(y)


if __name__ == "__main__":
    key = jax.random.PRNGKey(0)
    pkey, fkey = jax.random.split(key)
    params = init_params(pkey)

    # Feature map the densenet121 backbone would produce for a 256x256 image:
    # (N=2, C=1024, H=8, W=8), NCHW.
    feat = jax.random.normal(fkey, (2, 1024, 8, 8), jnp.float32)

    out = jax.block_until_ready(cnn_head(feat, params))
    ref = cnn_head_ref(feat, params)

    assert out.shape == (2 * 7 * 8, 1), out.shape
    assert bool(jnp.all(jnp.isfinite(out)))
    assert bool(jnp.allclose(out, ref, atol=2e-2, rtol=2e-2))
    print("KERNEL_OK")
</pallas_src>

<mosaic_0001>
module attributes {stable_mosaic.version = 11 : i64} {
  func.func @kernel(%arg0: i32, %arg1: memref<2x64x1024xf32, #tpu.memory_space<vmem>>, %arg2: memref<1x1024xf32, #tpu.memory_space<vmem>>, %arg3: memref<1x1024xf32, #tpu.memory_space<vmem>>, %arg4: memref<1024x512xbf16, #tpu.memory_space<vmem>>, %arg5: memref<1024x512xbf16, #tpu.memory_space<vmem>>, %arg6: memref<1x512xf32, #tpu.memory_space<vmem>>, %arg7: memref<1x512xf32, #tpu.memory_space<vmem>>, %arg8: memref<512x256xbf16, #tpu.memory_space<vmem>>, %arg9: memref<1x256xf32, #tpu.memory_space<vmem>>, %arg10: memref<1x256xf32, #tpu.memory_space<vmem>>, %arg11: memref<256x128xbf16, #tpu.memory_space<vmem>>, %arg12: memref<1x128xf32, #tpu.memory_space<vmem>>, %arg13: memref<1x128xf32, #tpu.memory_space<vmem>>, %arg14: memref<128x64xbf16, #tpu.memory_space<vmem>>, %arg15: memref<1x64xf32, #tpu.memory_space<vmem>>, %arg16: memref<1x64xf32, #tpu.memory_space<vmem>>, %arg17: memref<64x32xbf16, #tpu.memory_space<vmem>>, %arg18: memref<1x32xf32, #tpu.memory_space<vmem>>, %arg19: memref<1x32xf32, #tpu.memory_space<vmem>>, %arg20: memref<32x16xbf16, #tpu.memory_space<vmem>>, %arg21: memref<1x16xf32, #tpu.memory_space<vmem>>, %arg22: memref<1x16xf32, #tpu.memory_space<vmem>>, %arg23: memref<16x8xbf16, #tpu.memory_space<vmem>>, %arg24: memref<1x8xf32, #tpu.memory_space<vmem>>, %arg25: memref<1x8xf32, #tpu.memory_space<vmem>>, %arg26: memref<1x8xf32, #tpu.memory_space<vmem>>, %arg27: memref<112x1xf32, #tpu.memory_space<vmem>>) attributes {dimension_semantics = [#tpu.dimension_semantics<parallel>], iteration_bounds = array<i64: 1>, scalar_prefetch = 0 : i64, scratch_operands = 0 : i64, tpu.core_type = #tpu.core_type<tc>, window_params = [{transform_indices = @transform_0, window_bounds = array<i64: 2, 64, 1024>}, {pipeline_mode = #tpu.pipeline_mode<synchronous>, transform_indices = @transform_1, window_bounds = array<i64: 1, 1024>}, {pipeline_mode = #tpu.pipeline_mode<synchronous>, transform_indices = @transform_2, window_bounds = array<i64: 1, 1024>}, {pipeline_mode = #tpu.pipeline_mode<synchronous>, transform_indices = @transform_3, window_bounds = array<i64: 1024, 512>}, {pipeline_mode = #tpu.pipeline_mode<synchronous>, transform_indices = @transform_4, window_bounds = array<i64: 1024, 512>}, {pipeline_mode = #tpu.pipeline_mode<synchronous>, transform_indices = @transform_5, window_bounds = array<i64: 1, 512>}, {pipeline_mode = #tpu.pipeline_mode<synchronous>, transform_indices = @transform_6, window_bounds = array<i64: 1, 512>}, {pipeline_mode = #tpu.pipeline_mode<synchronous>, transform_indices = @transform_7, window_bounds = array<i64: 512, 256>}, {pipeline_mode = #tpu.pipeline_mode<synchronous>, transform_indices = @transform_8, window_bounds = array<i64: 1, 256>}, {pipeline_mode = #tpu.pipeline_mode<synchronous>, transform_indices = @transform_9, window_bounds = array<i64: 1, 256>}, {pipeline_mode = #tpu.pipeline_mode<synchronous>, transform_indices = @transform_10, window_bounds = array<i64: 256, 128>}, {pipeline_mode = #tpu.pipeline_mode<synchronous>, transform_indices = @transform_11, window_bounds = array<i64: 1, 128>}, {pipeline_mode = #tpu.pipeline_mode<synchronous>, transform_indices = @transform_12, window_bounds = array<i64: 1, 128>}, {pipeline_mode = #tpu.pipeline_mode<synchronous>, transform_indices = @transform_13, window_bounds = array<i64: 128, 64>}, {pipeline_mode = #tpu.pipeline_mode<synchronous>, transform_indices = @transform_14, window_bounds = array<i64: 1, 64>}, {pipeline_mode = #tpu.pipeline_mode<synchronous>, transform_indices = @transform_15, window_bounds = array<i64: 1, 64>}, {pipeline_mode = #tpu.pipeline_mode<synchronous>, transform_indices = @transform_16, window_bounds = array<i64: 64, 32>}, {pipeline_mode = #tpu.pipeline_mode<synchronous>, transform_indices = @transform_17, window_bounds = array<i64: 1, 32>}, {pipeline_mode = #tpu.pipeline_mode<synchronous>, transform_indices = @transform_18, window_bounds = array<i64: 1, 32>}, {pipeline_mode = #tpu.pipeline_mode<synchronous>, transform_indices = @transform_19, window_bounds = array<i64: 32, 16>}, {pipeline_mode = #tpu.pipeline_mode<synchronous>, transform_indices = @transform_20, window_bounds = array<i64: 1, 16>}, {pipeline_mode = #tpu.pipeline_mode<synchronous>, transform_indices = @transform_21, window_bounds = array<i64: 1, 16>}, {pipeline_mode = #tpu.pipeline_mode<synchronous>, transform_indices = @transform_22, window_bounds = array<i64: 16, 8>}, {pipeline_mode = #tpu.pipeline_mode<synchronous>, transform_indices = @transform_23, window_bounds = array<i64: 1, 8>}, {pipeline_mode = #tpu.pipeline_mode<synchronous>, transform_indices = @transform_24, window_bounds = array<i64: 1, 8>}, {pipeline_mode = #tpu.pipeline_mode<synchronous>, transform_indices = @transform_25, window_bounds = array<i64: 1, 8>}, {transform_indices = @transform_26, window_bounds = array<i64: 112, 1>}]} {
    %c0 = arith.constant 0 : index
    %c0_0 = arith.constant 0 : index
    %c0_1 = arith.constant 0 : index
    %0 = vector.load %arg1[%c0, %c0_0, %c0_1] : memref<2x64x1024xf32, #tpu.memory_space<vmem>>, vector<2x64x1024xf32>
    %c0_2 = arith.constant 0 : index
    %c0_3 = arith.constant 0 : index
    %1 = vector.load %arg2[%c0_2, %c0_3] : memref<1x1024xf32, #tpu.memory_space<vmem>>, vector<1x1024xf32>
    %2 = vector.shape_cast %1 : vector<1x1024xf32> to vector<1x1x1024xf32>
    %3 = vector.broadcast %2 : vector<1x1x1024xf32> to vector<2x64x1024xf32>
    %4 = arith.mulf %0, %3 : vector<2x64x1024xf32>
    %c0_4 = arith.constant 0 : index
    %c0_5 = arith.constant 0 : index
    %5 = vector.load %arg3[%c0_4, %c0_5] : memref<1x1024xf32, #tpu.memory_space<vmem>>, vector<1x1024xf32>
    %6 = vector.shape_cast %5 : vector<1x1024xf32> to vector<1x1x1024xf32>
    %7 = vector.broadcast %6 : vector<1x1x1024xf32> to vector<2x64x1024xf32>
    %8 = arith.addf %4, %7 : vector<2x64x1024xf32>
    %cst = arith.constant 0.000000e+00 : f32
    %9 = vector.broadcast %cst : f32 to vector<2x64x1024xf32>
    %10 = arith.maximumf %8, %9 : vector<2x64x1024xf32>
    %11 = vector.extract_strided_slice %10 {offsets = [0, 0, 0], sizes = [1, 56, 1024], strides = [1, 1, 1]} : vector<2x64x1024xf32> to vector<1x56x1024xf32>
    %12 = vector.shape_cast %11 : vector<1x56x1024xf32> to vector<56x1024xf32>
    %13 = vector.extract_strided_slice %10 {offsets = [1, 0, 0], sizes = [1, 56, 1024], strides = [1, 1, 1]} : vector<2x64x1024xf32> to vector<1x56x1024xf32>
    %14 = vector.shape_cast %13 : vector<1x56x1024xf32> to vector<56x1024xf32>
    %15 = tpu.concatenate %12, %14 in 0 : vector<56x1024xf32>, vector<56x1024xf32> -> vector<112x1024xf32>
    %16 = vector.extract_strided_slice %10 {offsets = [0, 8, 0], sizes = [1, 56, 1024], strides = [1, 1, 1]} : vector<2x64x1024xf32> to vector<1x56x1024xf32>
    %17 = vector.shape_cast %16 : vector<1x56x1024xf32> to vector<56x1024xf32>
    %18 = vector.extract_strided_slice %10 {offsets = [1, 8, 0], sizes = [1, 56, 1024], strides = [1, 1, 1]} : vector<2x64x1024xf32> to vector<1x56x1024xf32>
    %19 = vector.shape_cast %18 : vector<1x56x1024xf32> to vector<56x1024xf32>
    %20 = tpu.concatenate %17, %19 in 0 : vector<56x1024xf32>, vector<56x1024xf32> -> vector<112x1024xf32>
    %21 = arith.truncf %15 : vector<112x1024xf32> to vector<112x1024xbf16>
    %c0_6 = arith.constant 0 : index
    %c0_7 = arith.constant 0 : index
    %22 = vector.load %arg4[%c0_6, %c0_7] : memref<1024x512xbf16, #tpu.memory_space<vmem>>, vector<1024x512xbf16>
    %cst_8 = arith.constant dense<0.000000e+00> : vector<112x512xf32>
    %23 = tpu.matmul %21, %22, %cst_8 {dimension_numbers = #tpu.dot_dimension_numbers<[1], [0], [0], [1], [0, 0, 1, 1], [], []>} : vector<112x1024xbf16>, vector<1024x512xbf16>, vector<112x512xf32> -> vector<112x512xf32>
    %24 = arith.truncf %20 : vector<112x1024xf32> to vector<112x1024xbf16>
    %c0_9 = arith.constant 0 : index
    %c0_10 = arith.constant 0 : index
    %25 = vector.load %arg5[%c0_9, %c0_10] : memref<1024x512xbf16, #tpu.memory_space<vmem>>, vector<1024x512xbf16>
    %cst_11 = arith.constant dense<0.000000e+00> : vector<112x512xf32>
    %26 = tpu.matmul %24, %25, %cst_11 {dimension_numbers = #tpu.dot_dimension_numbers<[1], [0], [0], [1], [0, 0, 1, 1], [], []>} : vector<112x1024xbf16>, vector<1024x512xbf16>, vector<112x512xf32> -> vector<112x512xf32>
    %27 = arith.addf %23, %26 : vector<112x512xf32>
    %c0_12 = arith.constant 0 : index
    %c0_13 = arith.constant 0 : index
    %28 = vector.load %arg6[%c0_12, %c0_13] : memref<1x512xf32, #tpu.memory_space<vmem>>, vector<1x512xf32>
    %29 = vector.broadcast %28 : vector<1x512xf32> to vector<112x512xf32>
    %30 = arith.mulf %27, %29 : vector<112x512xf32>
    %c0_14 = arith.constant 0 : index
    %c0_15 = arith.constant 0 : index
    %31 = vector.load %arg7[%c0_14, %c0_15] : memref<1x512xf32, #tpu.memory_space<vmem>>, vector<1x512xf32>
    %32 = vector.broadcast %31 : vector<1x512xf32> to vector<112x512xf32>
    %33 = arith.addf %30, %32 : vector<112x512xf32>
    %cst_16 = arith.constant 0.000000e+00 : f32
    %34 = vector.broadcast %cst_16 : f32 to vector<112x512xf32>
    %35 = arith.maximumf %33, %34 : vector<112x512xf32>
    %36 = arith.truncf %35 : vector<112x512xf32> to vector<112x512xbf16>
    %c0_17 = arith.constant 0 : index
    %c0_18 = arith.constant 0 : index
    %37 = vector.load %arg8[%c0_17, %c0_18] : memref<512x256xbf16, #tpu.memory_space<vmem>>, vector<512x256xbf16>
    %cst_19 = arith.constant dense<0.000000e+00> : vector<112x256xf32>
    %38 = tpu.matmul %36, %37, %cst_19 {dimension_numbers = #tpu.dot_dimension_numbers<[1], [0], [0], [1], [0, 0, 1, 1], [], []>} : vector<112x512xbf16>, vector<512x256xbf16>, vector<112x256xf32> -> vector<112x256xf32>
    %c0_20 = arith.constant 0 : index
    %c0_21 = arith.constant 0 : index
    %39 = vector.load %arg9[%c0_20, %c0_21] : memref<1x256xf32, #tpu.memory_space<vmem>>, vector<1x256xf32>
    %40 = vector.broadcast %39 : vector<1x256xf32> to vector<112x256xf32>
    %41 = arith.mulf %38, %40 : vector<112x256xf32>
    %c0_22 = arith.constant 0 : index
    %c0_23 = arith.constant 0 : index
    %42 = vector.load %arg10[%c0_22, %c0_23] : memref<1x256xf32, #tpu.memory_space<vmem>>, vector<1x256xf32>
    %43 = vector.broadcast %42 : vector<1x256xf32> to vector<112x256xf32>
    %44 = arith.addf %41, %43 : vector<112x256xf32>
    %cst_24 = arith.constant 0.000000e+00 : f32
    %45 = vector.broadcast %cst_24 : f32 to vector<112x256xf32>
    %46 = arith.maximumf %44, %45 : vector<112x256xf32>
    %47 = arith.truncf %46 : vector<112x256xf32> to vector<112x256xbf16>
    %c0_25 = arith.constant 0 : index
    %c0_26 = arith.constant 0 : index
    %48 = vector.load %arg11[%c0_25, %c0_26] : memref<256x128xbf16, #tpu.memory_space<vmem>>, vector<256x128xbf16>
    %cst_27 = arith.constant dense<0.000000e+00> : vector<112x128xf32>
    %49 = tpu.matmul %47, %48, %cst_27 {dimension_numbers = #tpu.dot_dimension_numbers<[1], [0], [0], [1], [0, 0, 1, 1], [], []>} : vector<112x256xbf16>, vector<256x128xbf16>, vector<112x128xf32> -> vector<112x128xf32>
    %c0_28 = arith.constant 0 : index
    %c0_29 = arith.constant 0 : index
    %50 = vector.load %arg12[%c0_28, %c0_29] : memref<1x128xf32, #tpu.memory_space<vmem>>, vector<1x128xf32>
    %51 = vector.broadcast %50 : vector<1x128xf32> to vector<112x128xf32>
    %52 = arith.mulf %49, %51 : vector<112x128xf32>
    %c0_30 = arith.constant 0 : index
    %c0_31 = arith.constant 0 : index
    %53 = vector.load %arg13[%c0_30, %c0_31] : memref<1x128xf32, #tpu.memory_space<vmem>>, vector<1x128xf32>
    %54 = vector.broadcast %53 : vector<1x128xf32> to vector<112x128xf32>
    %55 = arith.addf %52, %54 : vector<112x128xf32>
    %cst_32 = arith.constant 0.000000e+00 : f32
    %56 = vector.broadcast %cst_32 : f32 to vector<112x128xf32>
    %57 = arith.maximumf %55, %56 : vector<112x128xf32>
    %58 = arith.truncf %57 : vector<112x128xf32> to vector<112x128xbf16>
    %c0_33 = arith.constant 0 : index
    %c0_34 = arith.constant 0 : index
    %59 = vector.load %arg14[%c0_33, %c0_34] : memref<128x64xbf16, #tpu.memory_space<vmem>>, vector<128x64xbf16>
    %cst_35 = arith.constant dense<0.000000e+00> : vector<112x64xf32>
    %60 = tpu.matmul %58, %59, %cst_35 {dimension_numbers = #tpu.dot_dimension_numbers<[1], [0], [0], [1], [0, 0, 1, 1], [], []>} : vector<112x128xbf16>, vector<128x64xbf16>, vector<112x64xf32> -> vector<112x64xf32>
    %c0_36 = arith.constant 0 : index
    %c0_37 = arith.constant 0 : index
    %61 = vector.load %arg15[%c0_36, %c0_37] : memref<1x64xf32, #tpu.memory_space<vmem>>, vector<1x64xf32>
    %62 = vector.broadcast %61 : vector<1x64xf32> to vector<112x64xf32>
    %63 = arith.mulf %60, %62 : vector<112x64xf32>
    %c0_38 = arith.constant 0 : index
    %c0_39 = arith.constant 0 : index
    %64 = vector.load %arg16[%c0_38, %c0_39] : memref<1x64xf32, #tpu.memory_space<vmem>>, vector<1x64xf32>
    %65 = vector.broadcast %64 : vector<1x64xf32> to vector<112x64xf32>
    %66 = arith.addf %63, %65 : vector<112x64xf32>
    %cst_40 = arith.constant 0.000000e+00 : f32
    %67 = vector.broadcast %cst_40 : f32 to vector<112x64xf32>
    %68 = arith.maximumf %66, %67 : vector<112x64xf32>
    %69 = arith.truncf %68 : vector<112x64xf32> to vector<112x64xbf16>
    %c0_41 = arith.constant 0 : index
    %c0_42 = arith.constant 0 : index
    %70 = vector.load %arg17[%c0_41, %c0_42] : memref<64x32xbf16, #tpu.memory_space<vmem>>, vector<64x32xbf16>
    %cst_43 = arith.constant dense<0.000000e+00> : vector<112x32xf32>
    %71 = tpu.matmul %69, %70, %cst_43 {dimension_numbers = #tpu.dot_dimension_numbers<[1], [0], [0], [1], [0, 0, 1, 1], [], []>} : vector<112x64xbf16>, vector<64x32xbf16>, vector<112x32xf32> -> vector<112x32xf32>
    %c0_44 = arith.constant 0 : index
    %c0_45 = arith.constant 0 : index
    %72 = vector.load %arg18[%c0_44, %c0_45] : memref<1x32xf32, #tpu.memory_space<vmem>>, vector<1x32xf32>
    %73 = vector.broadcast %72 : vector<1x32xf32> to vector<112x32xf32>
    %74 = arith.mulf %71, %73 : vector<112x32xf32>
    %c0_46 = arith.constant 0 : index
    %c0_47 = arith.constant 0 : index
    %75 = vector.load %arg19[%c0_46, %c0_47] : memref<1x32xf32, #tpu.memory_space<vmem>>, vector<1x32xf32>
    %76 = vector.broadcast %75 : vector<1x32xf32> to vector<112x32xf32>
    %77 = arith.addf %74, %76 : vector<112x32xf32>
    %cst_48 = arith.constant 0.000000e+00 : f32
    %78 = vector.broadcast %cst_48 : f32 to vector<112x32xf32>
    %79 = arith.maximumf %77, %78 : vector<112x32xf32>
    %80 = arith.truncf %79 : vector<112x32xf32> to vector<112x32xbf16>
    %c0_49 = arith.constant 0 : index
    %c0_50 = arith.constant 0 : index
    %81 = vector.load %arg20[%c0_49, %c0_50] : memref<32x16xbf16, #tpu.memory_space<vmem>>, vector<32x16xbf16>
    %cst_51 = arith.constant dense<0.000000e+00> : vector<112x16xf32>
    %82 = tpu.matmul %80, %81, %cst_51 {dimension_numbers = #tpu.dot_dimension_numbers<[1], [0], [0], [1], [0, 0, 1, 1], [], []>} : vector<112x32xbf16>, vector<32x16xbf16>, vector<112x16xf32> -> vector<112x16xf32>
    %c0_52 = arith.constant 0 : index
    %c0_53 = arith.constant 0 : index
    %83 = vector.load %arg21[%c0_52, %c0_53] : memref<1x16xf32, #tpu.memory_space<vmem>>, vector<1x16xf32>
    %84 = vector.broadcast %83 : vector<1x16xf32> to vector<112x16xf32>
    %85 = arith.mulf %82, %84 : vector<112x16xf32>
    %c0_54 = arith.constant 0 : index
    %c0_55 = arith.constant 0 : index
    %86 = vector.load %arg22[%c0_54, %c0_55] : memref<1x16xf32, #tpu.memory_space<vmem>>, vector<1x16xf32>
    %87 = vector.broadcast %86 : vector<1x16xf32> to vector<112x16xf32>
    %88 = arith.addf %85, %87 : vector<112x16xf32>
    %cst_56 = arith.constant 0.000000e+00 : f32
    %89 = vector.broadcast %cst_56 : f32 to vector<112x16xf32>
    %90 = arith.maximumf %88, %89 : vector<112x16xf32>
    %91 = arith.truncf %90 : vector<112x16xf32> to vector<112x16xbf16>
    %c0_57 = arith.constant 0 : index
    %c0_58 = arith.constant 0 : index
    %92 = vector.load %arg23[%c0_57, %c0_58] : memref<16x8xbf16, #tpu.memory_space<vmem>>, vector<16x8xbf16>
    %cst_59 = arith.constant dense<0.000000e+00> : vector<112x8xf32>
    %93 = tpu.matmul %91, %92, %cst_59 {dimension_numbers = #tpu.dot_dimension_numbers<[1], [0], [0], [1], [0, 0, 1, 1], [], []>} : vector<112x16xbf16>, vector<16x8xbf16>, vector<112x8xf32> -> vector<112x8xf32>
    %c0_60 = arith.constant 0 : index
    %c0_61 = arith.constant 0 : index
    %94 = vector.load %arg24[%c0_60, %c0_61] : memref<1x8xf32, #tpu.memory_space<vmem>>, vector<1x8xf32>
    %95 = vector.broadcast %94 : vector<1x8xf32> to vector<112x8xf32>
    %96 = arith.mulf %93, %95 : vector<112x8xf32>
    %c0_62 = arith.constant 0 : index
    %c0_63 = arith.constant 0 : index
    %97 = vector.load %arg25[%c0_62, %c0_63] : memref<1x8xf32, #tpu.memory_space<vmem>>, vector<1x8xf32>
    %98 = vector.broadcast %97 : vector<1x8xf32> to vector<112x8xf32>
    %99 = arith.addf %96, %98 : vector<112x8xf32>
    %cst_64 = arith.constant 0.000000e+00 : f32
    %100 = vector.broadcast %cst_64 : f32 to vector<112x8xf32>
    %101 = arith.maximumf %99, %100 : vector<112x8xf32>
    %c0_65 = arith.constant 0 : index
    %c0_66 = arith.constant 0 : index
    %102 = vector.load %arg26[%c0_65, %c0_66] : memref<1x8xf32, #tpu.memory_space<vmem>>, vector<1x8xf32>
    %103 = vector.broadcast %102 : vector<1x8xf32> to vector<112x8xf32>
    %104 = arith.mulf %101, %103 : vector<112x8xf32>
    %cst_67 = arith.constant dense<0.000000e+00> : vector<112xf32>
    %105 = vector.multi_reduction <add>, %104, %cst_67 [1] : vector<112x8xf32> to vector<112xf32>
    %106 = vector.shape_cast %105 : vector<112xf32> to vector<112x1xf32>
    %cst_68 = arith.constant 0.000000e+00 : f32
    %107 = vector.broadcast %cst_68 : f32 to vector<112x1xf32>
    %108 = arith.subf %107, %106 : vector<112x1xf32>
    %109 = math.exp %108 : vector<112x1xf32>
    %cst_69 = arith.constant 1.000000e+00 : f32
    %110 = vector.broadcast %cst_69 : f32 to vector<112x1xf32>
    %111 = arith.addf %110, %109 : vector<112x1xf32>
    %112 = tpu.reciprocal %111 {approx = true} : vector<112x1xf32> -> vector<112x1xf32>
    %c0_70 = arith.constant 0 : index
    %c0_71 = arith.constant 0 : index
    %113 = vector.load %arg27[%c0_70, %c0_71] : memref<112x1xf32, #tpu.memory_space<vmem>>, vector<112x1xf32>
    tpu.vector_store %arg27[%c0_70, %c0_71], %112 {strides = array<i32>} : memref<112x1xf32, #tpu.memory_space<vmem>>, vector<112x1xf32>,
    return
  }
  func.func @transform_0(%arg0: i32) -> (i32, i32, i32) {
    %c0_i32 = arith.constant 0 : i32
    %c0_i32_0 = arith.constant 0 : i32
    %c0_i32_1 = arith.constant 0 : i32
    return %arg0, %c0_i32, %c0_i32_0 : i32, i32, i32
  }
  func.func @transform_1(%arg0: i32) -> (i32, i32) {
    %c0_i32 = arith.constant 0 : i32
    %c0_i32_0 = arith.constant 0 : i32
    %c0_i32_1 = arith.constant 0 : i32
    return %c0_i32, %c0_i32_0 : i32, i32
  }
  func.func @transform_2(%arg0: i32) -> (i32, i32) {
    %c0_i32 = arith.constant 0 : i32
    %c0_i32_0 = arith.constant 0 : i32
    %c0_i32_1 = arith.constant 0 : i32
    return %c0_i32, %c0_i32_0 : i32, i32
  }
  func.func @transform_3(%arg0: i32) -> (i32, i32) {
    %c0_i32 = arith.constant 0 : i32
    %c0_i32_0 = arith.constant 0 : i32
    %c0_i32_1 = arith.constant 0 : i32
    return %c0_i32, %c0_i32_0 : i32, i32
  }
  func.func @transform_4(%arg0: i32) -> (i32, i32) {
    %c0_i32 = arith.constant 0 : i32
    %c0_i32_0 = arith.constant 0 : i32
    %c0_i32_1 = arith.constant 0 : i32
    return %c0_i32, %c0_i32_0 : i32, i32
  }
  func.func @transform_5(%arg0: i32) -> (i32, i32) {
    %c0_i32 = arith.constant 0 : i32
    %c0_i32_0 = arith.constant 0 : i32
    %c0_i32_1 = arith.constant 0 : i32
    return %c0_i32, %c0_i32_0 : i32, i32
  }
  func.func @transform_6(%arg0: i32) -> (i32, i32) {
    %c0_i32 = arith.constant 0 : i32
    %c0_i32_0 = arith.constant 0 : i32
    %c0_i32_1 = arith.constant 0 : i32
    return %c0_i32, %c0_i32_0 : i32, i32
  }
  func.func @transform_7(%arg0: i32) -> (i32, i32) {
    %c0_i32 = arith.constant 0 : i32
    %c0_i32_0 = arith.constant 0 : i32
    %c0_i32_1 = arith.constant 0 : i32
    return %c0_i32, %c0_i32_0 : i32, i32
  }
  func.func @transform_8(%arg0: i32) -> (i32, i32) {
    %c0_i32 = arith.constant 0 : i32
    %c0_i32_0 = arith.constant 0 : i32
    %c0_i32_1 = arith.constant 0 : i32
    return %c0_i32, %c0_i32_0 : i32, i32
  }
  func.func @transform_9(%arg0: i32) -> (i32, i32) {
    %c0_i32 = arith.constant 0 : i32
    %c0_i32_0 = arith.constant 0 : i32
    %c0_i32_1 = arith.constant 0 : i32
    return %c0_i32, %c0_i32_0 : i32, i32
  }
  func.func @transform_10(%arg0: i32) -> (i32, i32) {
    %c0_i32 = arith.constant 0 : i32
    %c0_i32_0 = arith.constant 0 : i32
    %c0_i32_1 = arith.constant 0 : i32
    return %c0_i32, %c0_i32_0 : i32, i32
  }
  func.func @transform_11(%arg0: i32) -> (i32, i32) {
    %c0_i32 = arith.constant 0 : i32
    %c0_i32_0 = arith.constant 0 : i32
    %c0_i32_1 = arith.constant 0 : i32
    return %c0_i32, %c0_i32_0 : i32, i32
  }
  func.func @transform_12(%arg0: i32) -> (i32, i32) {
    %c0_i32 = arith.constant 0 : i32
    %c0_i32_0 = arith.constant 0 : i32
    %c0_i32_1 = arith.constant 0 : i32
    return %c0_i32, %c0_i32_0 : i32, i32
  }
  func.func @transform_13(%arg0: i32) -> (i32, i32) {
    %c0_i32 = arith.constant 0 : i32
    %c0_i32_0 = arith.constant 0 : i32
    %c0_i32_1 = arith.constant 0 : i32
    return %c0_i32, %c0_i32_0 : i32, i32
  }
  func.func @transform_14(%arg0: i32) -> (i32, i32) {
    %c0_i32 = arith.constant 0 : i32
    %c0_i32_0 = arith.constant 0 : i32
    %c0_i32_1 = arith.constant 0 : i32
    return %c0_i32, %c0_i32_0 : i32, i32
  }
  func.func @transform_15(%arg0: i32) -> (i32, i32) {
    %c0_i32 = arith.constant 0 : i32
    %c0_i32_0 = arith.constant 0 : i32
    %c0_i32_1 = arith.constant 0 : i32
    return %c0_i32, %c0_i32_0 : i32, i32
  }
  func.func @transform_16(%arg0: i32) -> (i32, i32) {
    %c0_i32 = arith.constant 0 : i32
    %c0_i32_0 = arith.constant 0 : i32
    %c0_i32_1 = arith.constant 0 : i32
    return %c0_i32, %c0_i32_0 : i32, i32
  }
  func.func @transform_17(%arg0: i32) -> (i32, i32) {
    %c0_i32 = arith.constant 0 : i32
    %c0_i32_0 = arith.constant 0 : i32
    %c0_i32_1 = arith.constant 0 : i32
    return %c0_i32, %c0_i32_0 : i32, i32
  }
  func.func @transform_18(%arg0: i32) -> (i32, i32) {
    %c0_i32 = arith.constant 0 : i32
    %c0_i32_0 = arith.constant 0 : i32
    %c0_i32_1 = arith.constant 0 : i32
    return %c0_i32, %c0_i32_0 : i32, i32
  }
  func.func @transform_19(%arg0: i32) -> (i32, i32) {
    %c0_i32 = arith.constant 0 : i32
    %c0_i32_0 = arith.constant 0 : i32
    %c0_i32_1 = arith.constant 0 : i32
    return %c0_i32, %c0_i32_0 : i32, i32
  }
  func.func @transform_20(%arg0: i32) -> (i32, i32) {
    %c0_i32 = arith.constant 0 : i32
    %c0_i32_0 = arith.constant 0 : i32
    %c0_i32_1 = arith.constant 0 : i32
    return %c0_i32, %c0_i32_0 : i32, i32
  }
  func.func @transform_21(%arg0: i32) -> (i32, i32) {
    %c0_i32 = arith.constant 0 : i32
    %c0_i32_0 = arith.constant 0 : i32
    %c0_i32_1 = arith.constant 0 : i32
    return %c0_i32, %c0_i32_0 : i32, i32
  }
  func.func @transform_22(%arg0: i32) -> (i32, i32) {
    %c0_i32 = arith.constant 0 : i32
    %c0_i32_0 = arith.constant 0 : i32
    %c0_i32_1 = arith.constant 0 : i32
    return %c0_i32, %c0_i32_0 : i32, i32
  }
  func.func @transform_23(%arg0: i32) -> (i32, i32) {
    %c0_i32 = arith.constant 0 : i32
    %c0_i32_0 = arith.constant 0 : i32
    %c0_i32_1 = arith.constant 0 : i32
    return %c0_i32, %c0_i32_0 : i32, i32
  }
  func.func @transform_24(%arg0: i32) -> (i32, i32) {
    %c0_i32 = arith.constant 0 : i32
    %c0_i32_0 = arith.constant 0 : i32
    %c0_i32_1 = arith.constant 0 : i32
    return %c0_i32, %c0_i32_0 : i32, i32
  }
  func.func @transform_25(%arg0: i32) -> (i32, i32) {
    %c0_i32 = arith.constant 0 : i32
    %c0_i32_0 = arith.constant 0 : i32
    %c0_i32_1 = arith.constant 0 : i32
    return %c0_i32, %c0_i32_0 : i32, i32
  }
  func.func @transform_26(%arg0: i32) -> (i32, i32) {
    %c0_i32 = arith.constant 0 : i32
    %c0_i32_0 = arith.constant 0 : i32
    return %arg0, %c0_i32 : i32, i32
  }
}

</mosaic_0001>

<bundles_post_ra>
// kernel: tpu_custom_call.1
= control target key start
LH: loop header
LB: loop body
LE: loop exit
PB: predicated region body
PF: predicated region fallthrough
CT: control target
= control target key end

     0   :  { %s15565_s0 = inlined_call_operand.hbm [shape: f32[2,64,1024], index: 0, kind: input, shape index: {}]   ;;  %s15566_s1 = inlined_call_operand.vmem [shape: f32[1,1024], index: 1, kind: input, shape index: {}]   ;;  %s15567_s2 = inlined_call_operand.vmem [shape: f32[1,1024], index: 2, kind: input, shape index: {}]   ;;  %s15568_s3 = inlined_call_operand.hbm [shape: bf16[1024,512], index: 3, kind: input, shape index: {}]   ;;  %s15569_s4 = inlined_call_operand.hbm [shape: bf16[1024,512], index: 4, kind: input, shape index: {}]   ;;  %s15570_s5 = inlined_call_operand.vmem [shape: f32[1,512], index: 5, kind: input, shape index: {}]   ;;  %s15571_s6 = inlined_call_operand.vmem [shape: f32[1,512], index: 6, kind: input, shape index: {}]   ;;  %s15572_s7 = inlined_call_operand.hbm [shape: bf16[512,256], index: 7, kind: input, shape index: {}]   ;;  %s15573_s8 = inlined_call_operand.vmem [shape: f32[1,256], index: 8, kind: input, shape index: {}]   ;;  %s15574_s9 = inlined_call_operand.vmem [shape: f32[1,256], index: 9, kind: input, shape index: {}]   ;;  %s15575_s10 = inlined_call_operand.hbm [shape: bf16[256,128], index: 10, kind: input, shape index: {}]   ;;  %s15576_s11 = inlined_call_operand.vmem [shape: f32[1,128], index: 11, kind: input, shape index: {}]   ;;  %s15577_s12 = inlined_call_operand.vmem [shape: f32[1,128], index: 12, kind: input, shape index: {}]   ;;  %s15578_s13 = inlined_call_operand.vmem [shape: bf16[128,64], index: 13, kind: input, shape index: {}]   ;;  %s15579_s14 = inlined_call_operand.vmem [shape: f32[1,64], index: 14, kind: input, shape index: {}]   ;;  %s15580_s15 = inlined_call_operand.vmem [shape: f32[1,64], index: 15, kind: input, shape index: {}]   ;;  %s15581_s16 = inlined_call_operand.vmem [shape: bf16[64,32], index: 16, kind: input, shape index: {}]   ;;  %s15582_s17 = inlined_call_operand.vmem [shape: f32[1,32], index: 17, kind: input, shape index: {}]   ;;  %s15583_s18 = inlined_call_operand.vmem [shape: f32[1,32], index: 18, kind: input, shape index: {}]   ;;  %s15584_s19 = inlined_call_operand.vmem [shape: bf16[32,16], index: 19, kind: input, shape index: {}]   ;;  %s15585_s20 = inlined_call_operand.vmem [shape: f32[1,16], index: 20, kind: input, shape index: {}]   ;;  %s15586_s21 = inlined_call_operand.vmem [shape: f32[1,16], index: 21, kind: input, shape index: {}]   ;;  %s15587_s22 = inlined_call_operand.vmem [shape: bf16[16,8], index: 22, kind: input, shape index: {}]   ;;  %s15588_s23 = inlined_call_operand.vmem [shape: f32[1,8], index: 23, kind: input, shape index: {}]   ;;  %s15589_s24 = inlined_call_operand.vmem [shape: f32[1,8], index: 24, kind: input, shape index: {}]   ;;  %s15590_s25 = inlined_call_operand.vmem [shape: f32[1,8], index: 25, kind: input, shape index: {}]   ;;  %s15591_s26 = inlined_call_operand.vmem [shape: f32[112,1], index: 26, kind: output, shape index: {}]  }
   0x1   :  { %15954 = sst [smem:[#allocation180_spill]] %s15565_s0 }
   0x2   :  { %15955 = sst [smem:[#allocation181_spill]] %s15566_s1 }
   0x3   :  { %15956 = sst [smem:[#allocation182_spill]] %s15567_s2 }
   0x4   :  { %15957 = sst [smem:[#allocation183_spill]] %s15568_s3 }
   0x5   :  { %15958 = sst [smem:[#allocation184_spill]] %s15569_s4 }
   0x6   :  { %15959 = sst [smem:[#allocation185_spill]] %s15570_s5 }
   0x7   :  { %15960 = sst [smem:[#allocation186_spill]] %s15571_s6 }
   0x8   :  { %15961 = sst [smem:[#allocation187_spill]] %s15572_s7 }
   0x9   :  { %15962 = sst [smem:[#allocation188_spill]] %s15573_s8 }
   0xa   :  { %15963 = sst [smem:[#allocation189_spill]] %s15574_s9 }
   0xb   :  { %15964 = sst [smem:[#allocation190_spill]] %s15575_s10 }
   0xc   :  { %15965 = sst [smem:[#allocation191_spill]] %s15585_s20 }
   0xd   :  { %15966 = sst [smem:[#allocation192_spill]] %s15586_s21 }
   0xe   :  { %15967 = sst [smem:[#allocation193_spill]] %s15588_s23 }
   0xf   :  { %15968 = sst [smem:[#allocation194_spill]] %s15589_s24 }
  0x10   :  { %15969 = sst [smem:[#allocation195_spill]] %s15590_s25 }
  0x11   :  { %15970 = sst [smem:[#allocation196_spill]] %s15591_s26 }
  0x12   :  { %31 = vsyncpa [#allocation3], 0 }
  0x13   :  { %32 = vsyncpa [#allocation5], 0  ;;  %s15971_s7 = sld [smem:[#allocation183_spill]] }
  0x19   :  { %s55_s28 = sshll.u32 %s15971_s7, 4  ;;  %s56_s28 = int_to_ptr.hbm [resolvable:$true] %s55_s28 }
  0x1a   :  { %33 = vsyncpa [#allocation8], 0  ;;  %s12066_s8 = smov [#allocation4]   ;;  %s15972_s9 = sld [smem:[#allocation187_spill]] }
  0x1b   :  { %s57_s4 = sshll.u32 %s12066_s8, 4  ;;  %s12067_s2 = smov 256   ;;  %s58_s4 = int_to_ptr.vmem [resolvable:$true] %s57_s4 }
  0x1c   :  { %s12068_s5 = smov 16   ;;  %s12069_s10 = smov [#allocation7]  }
  0x1d   :  { %63 = dma.hbm_to_vmem [thread:$0]  %s56_s28, 32768, %s58_s4, [#allocation5], %s12067_s2, %s12067_s2, %s12068_s5  }
  0x1e   :  { %s87_s6 = sshll.u32 %s12069_s10, 4  ;;  %s12070_s1 = smov 128   ;;  %s88_s6 = int_to_ptr.vmem [resolvable:$true] %s87_s6 }
  0x1f   :  { %s12071_s26 = smov 8   ;;  %s15973_s7 = sld [smem:[#allocation180_spill]] }
  0x20   :  { %s85_s30 = sshll.u32 %s15972_s9, 4  ;;  %s12072_s8 = smov [#allocation2]   ;;  %s86_s30 = int_to_ptr.hbm [resolvable:$true] %s85_s30 }
  0x21   :  { %93 = dma.hbm_to_vmem [thread:$0]  %s86_s30, 8192, %s88_s6, [#allocation8], %s12070_s1, %s12070_s1, %s12071_s26  }
  0x22   :  { %s40_s24 = sshll.u32 %s12072_s8, 4  ;;  %s15974_s9 = sld [smem:[#allocation184_spill]]  ;;  %s41_s24 = int_to_ptr.vmem [resolvable:$true] %s40_s24 }
  0x23   :  { %s12073_s28 = smov 1024   ;;  %s12074_s4 = smov 64  }
  0x24   :  { %s12075_s10 = smov [#allocation6]   ;;  %s15975_s30 = sld [smem:[#allocation190_spill]] }
  0x25   :  { %s38_s25 = sshll.u32 %s15973_s7, 4  ;;  %s70_s21 = sshll.u32 %s12075_s10, 4  ;;  %s39_s25 = int_to_ptr.hbm [resolvable:$true] %s38_s25  ;;  %s71_s21 = int_to_ptr.vmem [resolvable:$true] %s70_s21 }
  0x26   :  { %46 = dma.hbm_to_vmem [thread:$0]  %s39_s25, 16384, %s41_s24, [#allocation3], %s12073_s28, %s12073_s28, %s12074_s4  }
  0x27   :  { %s12076_s1 = smov [#allocation9]   ;;  %s12077_s3 = smov 4  }
  0x28   :  { %s68_s23 = sshll.u32 %s15974_s9, 4  ;;  %s104_s27 = sshll.u32 %s12076_s1, 4  ;;  %s69_s23 = int_to_ptr.hbm [resolvable:$true] %s68_s23  ;;  %s105_s27 = int_to_ptr.vmem [resolvable:$true] %s104_s27 }
  0x29   :  { %76 = dma.hbm_to_vmem [thread:$0]  %s69_s23, 32768, %s71_s21, [#allocation5], %s12067_s2, %s12067_s2, %s12068_s5  }
  0x2a   :  { %s102_s6 = sshll.u32 %s15975_s30, 4  ;;  %s103_s6 = int_to_ptr.hbm [resolvable:$true] %s102_s6 }
  0x2b   :  { %110 = dma.hbm_to_vmem [thread:$0]  %s103_s6, 2048, %s105_s27, [#allocation8], %s12074_s4, %s12074_s4, %s12077_s3  }
  0x2c   :  { %12060 = dma.done.wait [#allocation3], 16384  }
  0x2d   :  { %12061 = vsyncadd [#allocation3], 4294950912 }
  0x2e   :  { %12062 = dma.done.wait [#allocation5], 65536  }
  0x2f   :  { %12063 = vsyncadd [#allocation5], 4294901760 }
  0x30   :  { %12064 = dma.done.wait [#allocation8], 10240  }
  0x31   :  { %12065 = vsyncadd [#allocation8], 4294957056  ;;  %v8895_v0 = vld [vmem:[#allocation6 + $0xe0] sm:$0xf]  ;;  %v11516_v1 = vld [vmem:[#allocation6 + $0xec] sm:$0xf0] }
  0x32   :  { %v9023_v2 = vld [vmem:[#allocation6 + $0x1e0] sm:$0xf]  ;;  %v8896_v3 = vor.u32 %v11516_v1, %v8895_v0  ;;  %v11548_v4 = vld [vmem:[#allocation6 + $0x1ec] sm:$0xf0]  ;;  %s15976_s23 = sld [smem:[#allocation181_spill]]  ;;  %v171_v38 = vld [vmem:[#allocation2 + $0x48] sm:$0xff] }
  0x33   :  { %v8879_v5 = vld [vmem:[#allocation6 + $0xc0] sm:$0xf]  ;;  %v11512_v6 = vld [vmem:[#allocation6 + $0xcc] sm:$0xf0]  ;;  %v9024_v7 = vor.u32 %v11548_v4, %v9023_v2  ;;  %s15978_s2 = sld [smem:[#allocation182_spill]]  ;;  %v179_v42 = vld [vmem:[#allocation2 + $0x88] sm:$0xff] }
  0x34   :  { %v9007_v8 = vld [vmem:[#allocation6 + $0x1c0] sm:$0xf]  ;;  %v11544_v9 = vld [vmem:[#allocation6 + $0x1cc] sm:$0xf0]  ;;  %2614 = vmatpush.bf16.msra.mxu0 %v8896_v3  ;;  %11837 = vmatpush.bf16.msra.mxu2 %v8896_v3  ;;  %v8880_v10 = vor.u32 %v11512_v6, %v8879_v5  ;;  %v243_v47 = vld [vmem:[#allocation2 + $0x288] sm:$0xff]  ;;  %s16537_s28 = sld [smem:[#allocation185_spill]] }
  0x35   :  { %2658 = vmatpush.bf16.msra.mxu1 %v9024_v7  ;;  %11845 = vmatpush.bf16.msra.mxu3 %v9024_v7  ;;  %v9008_v11 = vor.u32 %v11544_v9, %v9007_v8  ;;  %v8863_v12 = vld [vmem:[#allocation6 + $0xa0] sm:$0xf]  ;;  %v11508_v13 = vld [vmem:[#allocation6 + $0xac] sm:$0xf0]  ;;  %v251_v54 = vld [vmem:[#allocation2 + $0x2c8] sm:$0xff]  ;;  %s16538_s26 = sld [smem:[#allocation186_spill]] }
  0x36   :  { %v8991_v14 = vld [vmem:[#allocation6 + $0x1a0] sm:$0xf]  ;;  %v11540_v15 = vld [vmem:[#allocation6 + $0x1ac] sm:$0xf0]  ;;  %v8864_v16 = vor.u32 %v11508_v13, %v8863_v12  ;;  %s16703_s29 = sld [smem:[#allocation188_spill]]  ;;  %vm8242_vm0 = vcmask 523264  }
  0x37   :  { %v8992_v17 = vor.u32 %v11540_v15, %v8991_v14  ;;  %v8847_v18 = vld [vmem:[#allocation6 + $0x80] sm:$0xf]  ;;  %v11504_v19 = vld [vmem:[#allocation6 + $0x8c] sm:$0xf0]  ;;  %vm8381_vm1 = vcmask 261120   ;;  %s16706_s8 = sld [smem:[#allocation192_spill]] }
  0x38   :  { %2615 = vmatpush.bf16.msra.mxu0 %v8880_v10  ;;  %11838 = vmatpush.bf16.msra.mxu2 %v8880_v10  ;;  %v8975_v20 = vld [vmem:[#allocation6 + $0x180] sm:$0xf]  ;;  %v11536_v21 = vld [vmem:[#allocation6 + $0x18c] sm:$0xf0]  ;;  %v8848_v22 = vor.u32 %v11504_v19, %v8847_v18  ;;  %vm8512_vm2 = vcmask 130048   ;;  %s16707_s9 = sld [smem:[#allocation193_spill]] }
  0x39   :  { %2659 = vmatpush.bf16.msra.mxu1 %v9008_v11  ;;  %11846 = vmatpush.bf16.msra.mxu3 %v9008_v11  ;;  %v12231_v23 = vld [vmem:[%s15976_s23] sm:$0xff]  ;;  %v8976_v24 = vor.u32 %v11536_v21, %v8975_v20  ;;  %v11500_v26 = vld [vmem:[#allocation6 + $0x6c] sm:$0xf0]  ;;  %s16709_s10 = sld [smem:[#allocation195_spill]]  ;;  %vm8646_vm3 = vcmask 64512   ;;  %vm8759_vm4 = vcmask 7168  }
  0x3a   :  { %v8831_v25 = vld [vmem:[#allocation6 + $0x60] sm:$0xf]  ;;  %v11532_v28 = vld [vmem:[#allocation6 + $0x16c] sm:$0xf0]  ;;  %v12234_v29 = vperm.slane %v12231_v23, 0  ;;  %v12242_v34 = vperm.slane %v12231_v23, 1 }
  0x3b   :  { %v8959_v27 = vld [vmem:[#allocation6 + $0x160] sm:$0xf]  ;;  %v8832_v35 = vor.u32 %v11500_v26, %v8831_v25  ;;  %v11496_v40 = vld [vmem:[#allocation6 + $0x4c] sm:$0xf0] }
  0x3c   :  { %2616 = vmatpush.bf16.msra.mxu0 %v8864_v16  ;;  %11839 = vmatpush.bf16.msra.mxu2 %v8864_v16  ;;  %15977 = vst [vmem:[#allocation13_spill] sm:$0xff] %v12234_v29  ;;  %v8815_v30 = vld [vmem:[#allocation6 + $0x40] sm:$0xf]  ;;  %v8960_v39 = vor.u32 %v11532_v28, %v8959_v27  ;;  %v11528_v43 = vld [vmem:[#allocation6 + $0x14c] sm:$0xf0]  ;;  %v317_v53 = vmul.f32 %v12242_v34, %v171_v38 }
  0x3d   :  { %2660 = vmatpush.bf16.msra.mxu1 %v8992_v17  ;;  %11847 = vmatpush.bf16.msra.mxu3 %v8992_v17  ;;  %v170_v31 = vld [vmem:[#allocation2 + $0x40] sm:$0xff]  ;;  %15979 = vst [vmem:[#allocation14_spill] sm:$0xff] %v12242_v34  ;;  %v11492_v49 = vld [vmem:[#allocation6 + $0x2c] sm:$0xf0]  ;;  %v8816_v55 = vor.u32 %v11496_v40, %v8815_v30  ;;  %v325_v56 = vmul.f32 %v12242_v34, %v179_v42  ;;  %v187_v40 = vld [vmem:[#allocation2 + $0xc8] sm:$0xff] }
  0x3e   :  { %v178_v32 = vld [vmem:[#allocation2 + $0x80] sm:$0xff]  ;;  %v316_v44 = vmul.f32 %v12234_v29, %v170_v31  ;;  %v389_v58 = vmul.f32 %v12242_v34, %v243_v47  ;;  %v11524_v61 = vld [vmem:[#allocation6 + $0x12c] sm:$0xf0]  ;;  %v397_v63 = vmul.f32 %v12242_v34, %v251_v54 }
  0x3f   :  { %v12239_v33 = vld [vmem:[%s15978_s2] sm:$0xff]  ;;  %v324_v50 = vmul.f32 %v12234_v29, %v178_v32  ;;  %v11488_v1 = vld [vmem:[#allocation6 + $0xc] sm:$0xf0] }
  0x40   :  { %2617 = vmatpush.bf16.msra.mxu0 %v8848_v22  ;;  %11840 = vmatpush.bf16.msra.mxu2 %v8848_v22  ;;  %v242_v36 = vld [vmem:[#allocation2 + $0x280] sm:$0xff]  ;;  %v12246_v45 = vperm.slane %v12239_v33, 0  ;;  %v12249_v46 = vperm.slane %v12239_v33, 1  ;;  %v11520_v11 = vld [vmem:[#allocation6 + $0x10c] sm:$0xf0] }
  0x41   :  { %v250_v37 = vld [vmem:[#allocation2 + $0x2c0] sm:$0xff]  ;;  %2661 = vmatpush.bf16.msra.mxu1 %v8976_v24  ;;  %11848 = vmatpush.bf16.msra.mxu3 %v8976_v24  ;;  %v388_v51 = vmul.f32 %v12234_v29, %v242_v36  ;;  %v11580_v14 = vld [vmem:[#allocation6 + $0x2ec] sm:$0xf0] }
  0x42   :  { %v8943_v41 = vld [vmem:[#allocation6 + $0x140] sm:$0xf]  ;;  %15980 = vst [vmem:[#allocation15_spill] sm:$0xff] %v12246_v45  ;;  %v396_v52 = vmul.f32 %v12234_v29, %v250_v37  ;;  %v12258_v62 = vadd.f32 %v12246_v45, %v316_v44  ;;  %v12262_v2 = vadd.f32 %v12246_v45, %v324_v50  ;;  %v12271_v5 = vadd.f32 %v12249_v46, %v317_v53  ;;  %v11612_v20 = vld [vmem:[#allocation6 + $0x3ec] sm:$0xf0]  ;;  %v259_v44 = vld [vmem:[#allocation2 + $0x308] sm:$0xff] }
  0x43   :  { %15981 = vst [vmem:[#allocation16_spill] sm:$0xff] %v12249_v46  ;;  %v8799_v48 = vld [vmem:[#allocation6 + $0x20] sm:$0xf]  ;;  %v8944_v57 = vor.u32 %v11528_v43, %v8943_v41  ;;  %v12265_v3 = vadd.f32 %v12246_v45, %v388_v51  ;;  %v12274_v6 = vadd.f32 %v12249_v46, %v325_v56  ;;  %v12277_v7 = vadd.f32 %v12249_v46, %v389_v58  ;;  %v11576_v30 = vld [vmem:[#allocation6 + $0x2cc] sm:$0xf0]  ;;  %v195_v43 = vld [vmem:[#allocation2 + $0x108] sm:$0xff] }
  0x44   :  { %2618 = vmatpush.bf16.msra.mxu0 %v8832_v35  ;;  %11841 = vmatpush.bf16.msra.mxu2 %v8832_v35  ;;  %v8800_v59 = vor.u32 %v11492_v49, %v8799_v48  ;;  %v8927_v60 = vld [vmem:[#allocation6 + $0x120] sm:$0xf]  ;;  %15982 = vst [vmem:[#allocation17_spill] sm:$0xff] %v12258_v62  ;;  %v12268_v4 = vadd.f32 %v12246_v45, %v396_v52  ;;  %v15612_v16 = vmax.f32 %v12258_v62, 0.0  ;;  %v15610_v17 = vmax.f32 %v12262_v2, 0.0  ;;  %v267_v49 = vld [vmem:[#allocation2 + $0x348] sm:$0xff] }
  0x45   :  { %2662 = vmatpush.bf16.msra.mxu1 %v8960_v39  ;;  %11849 = vmatpush.bf16.msra.mxu3 %v8960_v39  ;;  %v8783_v0 = vld [vmem:[#allocation6] sm:$0xf]  ;;  %15983 = vst [vmem:[#allocation18_spill] sm:$0xff] %v12262_v2  ;;  %v12280_v8 = vadd.f32 %v12249_v46, %v397_v63  ;;  %v8928_v9 = vor.u32 %v11524_v61, %v8927_v60  ;;  %v15602_v18 = vmax.f32 %v12265_v3, 0.0  ;;  %v15611_v21 = vmax.f32 %v12271_v5, 0.0 }
  0x46   :  { %15984 = vst [vmem:[#allocation19_spill] sm:$0xff] %v12265_v3  ;;  %v8911_v10 = vld [vmem:[#allocation6 + $0x100] sm:$0xf]  ;;  %v8784_v12 = vor.u32 %v11488_v1, %v8783_v0  ;;  %v15600_v19 = vmax.f32 %v12268_v4, 0.0  ;;  %v15606_v22 = vmax.f32 %v12274_v6, 0.0  ;;  %v15601_v24 = vmax.f32 %v12277_v7, 0.0 }
  0x47   :  { %15985 = vst [vmem:[#allocation20_spill] sm:$0xff] %v12268_v4  ;;  %v9151_v13 = vld [vmem:[#allocation6 + $0x2e0] sm:$0xf]  ;;  %v15597_v25 = vmax.f32 %v12280_v8, 0.0  ;;  %v8912_v27 = vor.u32 %v11520_v11, %v8911_v10  ;;  %v11608_v32 = vld [vmem:[#allocation6 + $0x3cc] sm:$0xf0]  ;;  %v12294_v41 = vpack.c.bf16 %v15610_v17, %v15612_v16  ;;  %v333_v60 = vmul.f32 %v12242_v34, %v187_v40 }
  0x48   :  { %15986 = vst [vmem:[#allocation21_spill] sm:$0xff] %v12271_v5  ;;  %2619 = vmatpush.bf16.msra.mxu0 %v8816_v55  ;;  %11842 = vmatpush.bf16.msra.mxu2 %v8816_v55  ;;  %v9279_v15 = vld [vmem:[#allocation6 + $0x3e0] sm:$0xf]  ;;  %v9152_v36 = vor.u32 %v11580_v14, %v9151_v13  ;;  %v12300_v42 = vpack.c.bf16 %v15600_v19, %v15602_v18  ;;  %v11572_v54 = vld [vmem:[#allocation6 + $0x2ac] sm:$0xf0] }
  0x49   :  { %15987 = vst [vmem:[#allocation22_spill] sm:$0xff] %v12274_v6  ;;  %2663 = vmatpush.bf16.msra.mxu1 %v8944_v57  ;;  %11850 = vmatpush.bf16.msra.mxu3 %v8944_v57  ;;  %v186_v26 = vld [vmem:[#allocation2 + $0xc0] sm:$0xff]  ;;  %v9280_v37 = vor.u32 %v11612_v20, %v9279_v15  ;;  %v12306_v47 = vpack.c.bf16 %v15606_v22, %v15611_v21  ;;  %v11604_v57 = vld [vmem:[#allocation6 + $0x3ac] sm:$0xf0] }
  0x4a   :  { %15988 = vst [vmem:[#allocation23_spill] sm:$0xff] %v12277_v7  ;;  %v9135_v28 = vld [vmem:[#allocation6 + $0x2c0] sm:$0xf]  ;;  %v12312_v48 = vpack.c.bf16 %v15597_v25, %v15601_v24  ;;  %v332_v50 = vmul.f32 %v12234_v29, %v186_v26  ;;  %v341_v61 = vmul.f32 %v12242_v34, %v195_v43  ;;  %v405_v63 = vmul.f32 %v12242_v34, %v259_v44  ;;  %v11568_v10 = vld [vmem:[#allocation6 + $0x28c] sm:$0xf0] }
  0x4b   :  { %15989 = vst [vmem:[#allocation24_spill] sm:$0xff] %v12280_v8  ;;  %v9263_v31 = vld [vmem:[#allocation6 + $0x3c0] sm:$0xf]  ;;  %v9136_v51 = vor.u32 %v11576_v30, %v9135_v28  ;;  %v413_v0 = vmul.f32 %v12242_v34, %v267_v49  ;;  %v11644_v20 = vld [vmem:[#allocation6 + $0x4ec] sm:$0xf0]  ;;  %v12339_v28 = vadd.f32 %v12249_v46, %v333_v60 }
  0x4c   :  { %2620 = vmatpush.bf16.msra.mxu0 %v8800_v59  ;;  %11843 = vmatpush.bf16.msra.mxu2 %v8800_v59  ;;  %v194_v35 = vld [vmem:[#allocation2 + $0x100] sm:$0xff]  ;;  %15990 = vst [vmem:[#allocation25_spill] sm:$0xff] %v12294_v41  ;;  %v9264_v52 = vor.u32 %v11608_v32, %v9263_v31  ;;  %v12327_v1 = vadd.f32 %v12246_v45, %v332_v50  ;;  %v11600_v30 = vld [vmem:[#allocation6 + $0x38c] sm:$0xf0] }
  0x4d   :  { %2664 = vmatpush.bf16.msra.mxu1 %v8928_v9  ;;  %11851 = vmatpush.bf16.msra.mxu3 %v8928_v9  ;;  %v258_v38 = vld [vmem:[#allocation2 + $0x300] sm:$0xff]  ;;  %15991 = vst [vmem:[#allocation26_spill] sm:$0xff] %v12306_v47  ;;  %v340_v55 = vmul.f32 %v12234_v29, %v194_v35  ;;  %v11676_v32 = vld [vmem:[#allocation6 + $0x5ec] sm:$0xf0]  ;;  %v12342_v35 = vadd.f32 %v12249_v46, %v341_v61 }
  0x4e   :  { %v266_v39 = vld [vmem:[#allocation2 + $0x340] sm:$0xff]  ;;  %v404_v58 = vmul.f32 %v12234_v29, %v258_v38  ;;  %15992 = vst [vmem:[#allocation27_spill] sm:$0xff] %v12327_v1  ;;  %v15609_v40 = vmax.f32 %v12327_v1, 0.0  ;;  %v11672_v50 = vld [vmem:[#allocation6 + $0x5cc] sm:$0xf0] }
  0x4f   :  { %v9119_v53 = vld [vmem:[#allocation6 + $0x2a0] sm:$0xf]  ;;  %v412_v59 = vmul.f32 %v12234_v29, %v266_v39  ;;  %v12330_v13 = vadd.f32 %v12246_v45, %v340_v55  ;;  %15996 = vst [vmem:[#allocation31_spill] sm:$0xff] %v12339_v28  ;;  %v11640_v39 = vld [vmem:[#allocation6 + $0x4cc] sm:$0xf0] }
  0x50   :  { %2621 = vmatpush.bf16.msra.mxu0 %v8784_v12  ;;  %11844 = vmatpush.bf16.msra.mxu2 %v8784_v12  ;;  %v9247_v56 = vld [vmem:[#allocation6 + $0x3a0] sm:$0xf]  ;;  %v9120_v11 = vor.u32 %v11572_v54, %v9119_v53  ;;  %v12333_v26 = vadd.f32 %v12246_v45, %v404_v58  ;;  %15997 = vst [vmem:[#allocation32_spill] sm:$0xff] %v12342_v35  ;;  %v11564_v54 = vld [vmem:[#allocation6 + $0x26c] sm:$0xf0] }
  0x51   :  { %2665 = vmatpush.bf16.msra.mxu1 %v8912_v27  ;;  %11852 = vmatpush.bf16.msra.mxu3 %v8912_v27  ;;  %v9103_v9 = vld [vmem:[#allocation6 + $0x280] sm:$0xf]  ;;  %v9248_v12 = vor.u32 %v11604_v57, %v9247_v56  ;;  %15993 = vst [vmem:[#allocation28_spill] sm:$0xff] %v12330_v13  ;;  %v12336_v27 = vadd.f32 %v12246_v45, %v412_v59  ;;  %v15605_v59 = vmax.f32 %v12339_v28, 0.0  ;;  %v11596_v60 = vld [vmem:[#allocation6 + $0x36c] sm:$0xf0] }
  0x52   :  { %v9231_v14 = vld [vmem:[#allocation6 + $0x380] sm:$0xf]  ;;  %15994 = vst [vmem:[#allocation29_spill] sm:$0xff] %v12333_v26  ;;  %v15599_v57 = vmax.f32 %v12333_v26, 0.0  ;;  %v11632_v22 = vld [vmem:[#allocation6 + $0x48c] sm:$0xf0] }
  0x53   :  { %2622 = vmatmul.bf16.vlgmr.msra.gmra.mxu0 %v12294_v41  ;;  %2642 = vmatmul.bf16.vlgmr.msra.gmra.mxu2 %v12300_v42  ;;  %v9407_v15 = vld [vmem:[#allocation6 + $0x4e0] sm:$0xf]  ;;  %15995 = vst [vmem:[#allocation30_spill] sm:$0xff] %v12336_v27  ;;  %v9232_v53 = vor.u32 %v11600_v30, %v9231_v14  ;;  %v15598_v58 = vmax.f32 %v12336_v27, 0.0  ;;  %v11560_v14 = vld [vmem:[#allocation6 + $0x24c] sm:$0xf0] }
  0x54   :  { %2702 = vmatpush.bf16.msrb.mxu2 %v9152_v36  ;;  %2666 = vmatmul.bf16.vlgmr.msra.gmra.mxu1 %v12306_v47  ;;  %v9535_v31 = vld [vmem:[#allocation6 + $0x5e0] sm:$0xf]  ;;  %v12345_v36 = vadd.f32 %v12249_v46, %v405_v63  ;;  %v9408_v44 = vor.u32 %v11644_v20, %v9407_v15  ;;  %v15603_v63 = vmax.f32 %v12342_v35, 0.0  ;;  %v11628_v17 = vld [vmem:[#allocation6 + $0x46c] sm:$0xf0] }
  0x55   :  { %2746 = vmatpush.bf16.msrb.mxu3 %v9280_v37  ;;  %v12348_v37 = vadd.f32 %v12249_v46, %v413_v0  ;;  %v9391_v38 = vld [vmem:[#allocation6 + $0x4c0] sm:$0xf]  ;;  %v9536_v56 = vor.u32 %v11676_v32, %v9535_v31  ;;  %v11660_v21 = vld [vmem:[#allocation6 + $0x56c] sm:$0xf0] }
  0x56   :  { %2686 = vmatmul.bf16.vlgmr.msra.gmra.mxu3 %v12312_v48  ;;  %15998 = vst [vmem:[#allocation33_spill] sm:$0xff] %v12345_v36  ;;  %v9087_v43 = vld [vmem:[#allocation6 + $0x260] sm:$0xf]  ;;  %2790 = vmatpush.bf16.msrb.mxu0 %v9408_v44  ;;  %v9392_v61 = vor.u32 %v11640_v39, %v9391_v38  ;;  %v15608_v0 = vmax.f32 %v12345_v36, 0.0  ;;  %v11636_v44 = vld [vmem:[#allocation6 + $0x4ac] sm:$0xf0] }
  0x57   :  { %15999 = vst [vmem:[#allocation34_spill] sm:$0xff] %v12348_v37  ;;  %v9519_v49 = vld [vmem:[#allocation6 + $0x5c0] sm:$0xf]  ;;  %2834 = vmatpush.bf16.msrb.mxu1 %v9536_v56  ;;  %v9088_v31 = vor.u32 %v11564_v54, %v9087_v43  ;;  %v11668_v39 = vld [vmem:[#allocation6 + $0x5ac] sm:$0xf0]  ;;  %v12375_v54 = vpack.c.bf16 %v15603_v63, %v15605_v59  ;;  %v203_v56 = vld [vmem:[#allocation2 + $0x148] sm:$0xff] }
  0x58   :  { %2703 = vmatpush.bf16.msrb.mxu2 %v9136_v51  ;;  %v15604_v51 = vmax.f32 %v12330_v13, 0.0  ;;  %v9215_v55 = vld [vmem:[#allocation6 + $0x360] sm:$0xf]  ;;  %v11724_v3 = vld [vmem:[#allocation6 + $0x76c] sm:$0xf0] }
  0x59   :  { %2747 = vmatpush.bf16.msrb.mxu3 %v9264_v52  ;;  %v9104_v52 = vor.u32 %v11568_v10, %v9103_v9  ;;  %v202_v9 = vld [vmem:[#allocation2 + $0x140] sm:$0xff]  ;;  %v9520_v10 = vor.u32 %v11672_v50, %v9519_v49  ;;  %v9216_v32 = vor.u32 %v11596_v60, %v9215_v55  ;;  %v12368_v49 = vpack.c.bf16 %v15598_v58, %v15599_v57  ;;  %v211_v60 = vld [vmem:[#allocation2 + $0x188] sm:$0xff]  ;;  %v11716_v28 = vld [vmem:[#allocation6 + $0x72c] sm:$0xf0] }
  0x5a   :  { %v210_v15 = vld [vmem:[#allocation2 + $0x180] sm:$0xff]  ;;  %v12362_v25 = vpack.c.bf16 %v15604_v51, %v15609_v40  ;;  %v348_v50 = vmul.f32 %v12234_v29, %v202_v9  ;;  %2791 = vmatpush.bf16.msrb.mxu0 %v9392_v61  ;;  %16001 = vst [vmem:[#allocation36_spill] sm:$0xff] %v12375_v54  ;;  %v275_v58 = vld [vmem:[#allocation2 + $0x388] sm:$0xff]  ;;  %v11680_v62 = vld [vmem:[#allocation6 + $0x60c] sm:$0xf0] }
  0x5b   :  { %v274_v20 = vld [vmem:[#allocation2 + $0x380] sm:$0xff]  ;;  %2835 = vmatpush.bf16.msrb.mxu1 %v9520_v10  ;;  %v356_v9 = vmul.f32 %v12234_v29, %v210_v15  ;;  %v283_v57 = vld [vmem:[#allocation2 + $0x3c8] sm:$0xff] }
  0x5c   :  { %2704 = vmatpush.bf16.msrb.mxu2 %v9120_v11  ;;  %v15607_v11 = vmax.f32 %v12348_v37, 0.0  ;;  %v9375_v30 = vld [vmem:[#allocation6 + $0x4a0] sm:$0xf]  ;;  %16000 = vst [vmem:[#allocation35_spill] sm:$0xff] %v12362_v25  ;;  %v420_v51 = vmul.f32 %v12234_v29, %v274_v20  ;;  %v12388_v10 = vadd.f32 %v12246_v45, %v348_v50  ;;  %v421_v20 = vmul.f32 %v12242_v34, %v275_v58  ;;  %v11552_v50 = vld [vmem:[#allocation6 + $0x20c] sm:$0xf0] }
  0x5d   :  { %2748 = vmatpush.bf16.msrb.mxu3 %v9248_v12  ;;  %v9071_v12 = vld [vmem:[#allocation6 + $0x240] sm:$0xf]  ;;  %v9376_v19 = vor.u32 %v11636_v44, %v9375_v30  ;;  %v349_v30 = vmul.f32 %v12242_v34, %v203_v56  ;;  %v429_v44 = vmul.f32 %v12242_v34, %v283_v57  ;;  %v11656_v37 = vld [vmem:[#allocation6 + $0x54c] sm:$0xf0] }
  0x5e   :  { %v9503_v38 = vld [vmem:[#allocation6 + $0x5a0] sm:$0xf]  ;;  %v12381_v55 = vpack.c.bf16 %v15607_v11, %v15608_v0  ;;  %v9072_v63 = vor.u32 %v11560_v14, %v9071_v12  ;;  %v11664_v0 = vld [vmem:[#allocation6 + $0x58c] sm:$0xf0]  ;;  %16002 = vst [vmem:[#allocation37_spill] sm:$0xff] %v12388_v10  ;;  %v357_v14 = vmul.f32 %v12242_v34, %v211_v60  ;;  %v12401_v58 = vadd.f32 %v12246_v45, %v420_v51 }
  0x5f   :  { %v9199_v43 = vld [vmem:[#allocation6 + $0x340] sm:$0xf]  ;;  %v9504_v24 = vor.u32 %v11668_v39, %v9503_v38  ;;  %v11588_v12 = vld [vmem:[#allocation6 + $0x32c] sm:$0xf0]  ;;  %v12398_v38 = vadd.f32 %v12246_v45, %v356_v9  ;;  %2792 = vmatpush.bf16.msrb.mxu0 %v9376_v19  ;;  %v12405_v16 = vadd.f32 %v12249_v46, %v349_v30 }
  0x60   :  { %2705 = vmatpush.bf16.msrb.mxu2 %v9104_v52  ;;  %v282_v52 = vld [vmem:[#allocation2 + $0x3c0] sm:$0xff]  ;;  %16004 = vst [vmem:[#allocation39_spill] sm:$0xff] %v12401_v58  ;;  %v11584_v19 = vld [vmem:[#allocation6 + $0x30c] sm:$0xf0] }
  0x61   :  { %2749 = vmatpush.bf16.msrb.mxu3 %v9232_v53  ;;  %v11592_v53 = vld [vmem:[#allocation6 + $0x34c] sm:$0xf0]  ;;  %v9055_v61 = vld [vmem:[#allocation6 + $0x220] sm:$0xf]  ;;  %v428_v15 = vmul.f32 %v12234_v29, %v282_v52  ;;  %16003 = vst [vmem:[#allocation38_spill] sm:$0xff] %v12398_v38  ;;  %2836 = vmatpush.bf16.msrb.mxu1 %v9504_v24 }
  0x62   :  { %v9359_v18 = vld [vmem:[#allocation6 + $0x480] sm:$0xf]  ;;  %v9200_v59 = vor.u32 %v11592_v53, %v9199_v43  ;;  %16005 = vst [vmem:[#allocation40_spill] sm:$0xff] %v12405_v16  ;;  %v11740_v51 = vld [vmem:[#allocation6 + $0x7ec] sm:$0xf0] }
  0x63   :  { %v9487_v11 = vld [vmem:[#allocation6 + $0x580] sm:$0xf]  ;;  %2627 = vmatmul.bf16.gmra.mxu0 %v12362_v25  ;;  %2647 = vmatmul.bf16.gmra.mxu2 %v12368_v49  ;;  %v9360_v52 = vor.u32 %v11632_v22, %v9359_v18  ;;  %v574_v57 = vadd.f32 %v12246_v45, %v428_v15  ;;  %v12408_v18 = vadd.f32 %v12249_v46, %v357_v14  ;;  %v11624_v14 = vld [vmem:[#allocation6 + $0x44c] sm:$0xf0] }
  0x64   :  { %2706 = vmatpush.bf16.msrb.mxu2 %v9088_v31  ;;  %v11556_v31 = vld [vmem:[#allocation6 + $0x22c] sm:$0xf0]  ;;  %2671 = vmatmul.bf16.gmra.mxu1 %v12375_v54  ;;  %v9039_v39 = vld [vmem:[#allocation6 + $0x200] sm:$0xf]  ;;  %v9488_v43 = vor.u32 %v11664_v0, %v9487_v11  ;;  %v12411_v22 = vadd.f32 %v12249_v46, %v421_v20  ;;  %v15621_v11 = vmax.f32 %v12405_v16, 0.0 }
  0x65   :  { %2750 = vmatpush.bf16.msrb.mxu3 %v9216_v32  ;;  %v9183_v32 = vld [vmem:[#allocation6 + $0x320] sm:$0xf]  ;;  %v9056_v56 = vor.u32 %v11556_v31, %v9055_v61  ;;  %16006 = vst [vmem:[#allocation41_spill] sm:$0xff] %v12408_v18  ;;  %v15620_v61 = vmax.f32 %v12398_v38, 0.0  ;;  %2793 = vmatpush.bf16.msrb.mxu0 %v9360_v52  ;;  %v702_v27 = vmax.f32 %v574_v57, 0.0  ;;  %v15618_v52 = vmax.f32 %v12408_v18, 0.0 }
  0x66   :  { %2691 = vmatmul.bf16.gmra.mxu3 %v12381_v55  ;;  %v9343_v53 = vld [vmem:[#allocation6 + $0x460] sm:$0xf]  ;;  %v9184_v40 = vor.u32 %v11588_v12, %v9183_v32  ;;  %16007 = vst [vmem:[#allocation42_spill] sm:$0xff] %v12411_v22  ;;  %2837 = vmatpush.bf16.msrb.mxu1 %v9488_v43  ;;  %v9040_v32 = vor.u32 %v11552_v50, %v9039_v39  ;;  %v11652_v57 = vld [vmem:[#allocation6 + $0x52c] sm:$0xf0] }
  0x67   :  { %v9471_v60 = vld [vmem:[#allocation6 + $0x560] sm:$0xf]  ;;  %v9344_v15 = vor.u32 %v11628_v17, %v9343_v53  ;;  %v15619_v17 = vmax.f32 %v12411_v22, 0.0  ;;  %v11720_v16 = vld [vmem:[#allocation6 + $0x74c] sm:$0xf0] }
  0x68   :  { %2707 = vmatpush.bf16.msrb.mxu2 %v9072_v63  ;;  %v9167_v9 = vld [vmem:[#allocation6 + $0x300] sm:$0xf]  ;;  %v11708_v63 = vld [vmem:[#allocation6 + $0x6ec] sm:$0xf0]  ;;  %v9472_v30 = vor.u32 %v11660_v21, %v9471_v60 }
  0x69   :  { %2751 = vmatpush.bf16.msrb.mxu3 %v9200_v59  ;;  %v9663_v24 = vld [vmem:[#allocation6 + $0x6e0] sm:$0xf]  ;;  %v575_v59 = vadd.f32 %v12249_v46, %v429_v44  ;;  %v9168_v12 = vor.u32 %v11584_v19, %v9167_v9  ;;  %v15617_v44 = vmax.f32 %v12401_v58, 0.0  ;;  %2794 = vmatpush.bf16.msrb.mxu0 %v9344_v15  ;;  %v16008_v9 = vmax.f32 %v12388_v10, 0.0  ;;  %v223_v10 = vld [vmem:[#allocation2 + $0x1e8] sm:$0xff] }
  0x6a   :  { %v9791_v0 = vld [vmem:[#allocation6 + $0x7e0] sm:$0xf]  ;;  %v9664_v36 = vor.u32 %v11708_v63, %v9663_v24  ;;  %2838 = vmatpush.bf16.msrb.mxu1 %v9472_v30  ;;  %v12431_v63 = vperm.slane %v12231_v23, 2  ;;  %v172_v30 = vld [vmem:[#allocation2 + $0x50] sm:$0xff] }
  0x6b   :  { %v9327_v31 = vld [vmem:[#allocation6 + $0x440] sm:$0xf]  ;;  %v9792_v8 = vor.u32 %v11740_v51, %v9791_v0  ;;  %v703_v21 = vmax.f32 %v575_v59, 0.0  ;;  %v12424_v19 = vpack.c.bf16 %v15620_v61, %v16008_v9  ;;  %v12428_v24 = vpack.c.bf16 %v702_v27, %v15617_v44  ;;  %v219_v59 = vld [vmem:[#allocation2 + $0x1c8] sm:$0xff]  ;;  %v11704_v0 = vld [vmem:[#allocation6 + $0x6cc] sm:$0xf0] }
  0x6c   :  { %2708 = vmatpush.bf16.msrb.mxu2 %v9056_v56  ;;  %v9455_v20 = vld [vmem:[#allocation6 + $0x540] sm:$0xf]  ;;  %v11620_v56 = vld [vmem:[#allocation6 + $0x42c] sm:$0xf0]  ;;  %16010 = vst [vmem:[#allocation44_spill] sm:$0xff] %v12431_v63  ;;  %v12437_v51 = vpack.c.bf16 %v15618_v52, %v15621_v11  ;;  %v235_v27 = vld [vmem:[#allocation2 + $0x248] sm:$0xff]  ;;  %v365_v11 = vmul.f32 %v12242_v34, %v219_v59 }
  0x6d   :  { %2752 = vmatpush.bf16.msrb.mxu3 %v9184_v40  ;;  %v218_v43 = vld [vmem:[#allocation2 + $0x1c0] sm:$0xff]  ;;  %v9328_v40 = vor.u32 %v11624_v14, %v9327_v31  ;;  %v9456_v39 = vor.u32 %v11656_v37, %v9455_v20  ;;  %16009 = vst [vmem:[#allocation43_spill] sm:$0xff] %v12424_v19  ;;  %v12441_v15 = vpack.c.bf16 %v703_v21, %v15619_v17  ;;  %v180_v31 = vld [vmem:[#allocation2 + $0x90] sm:$0xff] }
  0x6e   :  { %v234_v53 = vld [vmem:[#allocation2 + $0x240] sm:$0xff]  ;;  %16011 = vst [vmem:[#allocation45_spill] sm:$0xff] %v12437_v51  ;;  %v364_v9 = vmul.f32 %v12234_v29, %v218_v43  ;;  %v11616_v52 = vld [vmem:[#allocation6 + $0x40c] sm:$0xf0]  ;;  %v381_v43 = vmul.f32 %v12242_v34, %v235_v27  ;;  %v511_v4 = vadd.f32 %v12249_v46, %v365_v11 }
  0x6f   :  { %v9311_v50 = vld [vmem:[#allocation6 + $0x420] sm:$0xf]  ;;  %2795 = vmatpush.bf16.msrb.mxu0 %v9328_v40  ;;  %2839 = vmatpush.bf16.msrb.mxu1 %v9456_v39  ;;  %v380_v44 = vmul.f32 %v12234_v29, %v234_v53  ;;  %v11648_v17 = vld [vmem:[#allocation6 + $0x50c] sm:$0xf0]  ;;  %v318_v40 = vmul.f32 %v12431_v63, %v172_v30  ;;  %v326_v39 = vmul.f32 %v12431_v63, %v180_v31 }
  0x70   :  { %2709 = vmatpush.bf16.msrb.mxu2 %v9040_v32  ;;  %v9439_v60 = vld [vmem:[#allocation6 + $0x520] sm:$0xf]  ;;  %v12444_v32 = vperm.slane %v12231_v23, 3  ;;  %v11700_v31 = vld [vmem:[#allocation6 + $0x6ac] sm:$0xf0]  ;;  %v510_v22 = vadd.f32 %v12246_v45, %v364_v9 }
  0x71   :  { %2753 = vmatpush.bf16.msrb.mxu3 %v9168_v12  ;;  %v9647_v37 = vld [vmem:[#allocation6 + $0x6c0] sm:$0xf]  ;;  %v9312_v12 = vor.u32 %v11620_v56, %v9311_v50  ;;  %v9440_v14 = vor.u32 %v11652_v57, %v9439_v60  ;;  %v12454_v50 = vperm.slane %v12239_v33, 2  ;;  %v12462_v60 = vperm.slane %v12239_v33, 3 }
  0x72   :  { %16012 = vst [vmem:[#allocation46_spill] sm:$0xff] %v12444_v32  ;;  %v9295_v20 = vld [vmem:[#allocation6 + $0x400] sm:$0xf]  ;;  %v9648_v61 = vor.u32 %v11704_v0, %v9647_v37  ;;  %v11736_v0 = vld [vmem:[#allocation6 + $0x7cc] sm:$0xf0]  ;;  %v638_v11 = vmax.f32 %v510_v22, 0.0 }
  0x73   :  { %v9423_v21 = vld [vmem:[#allocation6 + $0x500] sm:$0xf]  ;;  %2632 = vmatmul.bf16.gmra.mxu0 %v12424_v19  ;;  %2652 = vmatmul.bf16.gmra.mxu2 %v12428_v24  ;;  %16013 = vst [vmem:[#allocation47_spill] sm:$0xff] %v12454_v50  ;;  %v9296_v59 = vor.u32 %v11616_v52, %v9295_v20  ;;  %v12473_v52 = vadd.f32 %v12454_v50, %v326_v39  ;;  %v188_v22 = vld [vmem:[#allocation2 + $0xd0] sm:$0xff] }
  0x74   :  { %2878 = vmatpush.bf16.msra.mxu2 %v9664_v36  ;;  %v173_v36 = vld [vmem:[#allocation2 + $0x58] sm:$0xff]  ;;  %2676 = vmatmul.bf16.gmra.mxu1 %v12437_v51  ;;  %16014 = vst [vmem:[#allocation48_spill] sm:$0xff] %v12462_v60  ;;  %v9775_v57 = vld [vmem:[#allocation6 + $0x7c0] sm:$0xf]  ;;  %v9424_v37 = vor.u32 %v11648_v17, %v9423_v21  ;;  %v12476_v17 = vadd.f32 %v12249_v46, %v381_v43 }
  0x75   :  { %2922 = vmatpush.bf16.msra.mxu3 %v9792_v8  ;;  %v181_v8 = vld [vmem:[#allocation2 + $0x98] sm:$0xff]  ;;  %v319_v53 = vmul.f32 %v12444_v32, %v173_v36  ;;  %2796 = vmatpush.bf16.msrb.mxu0 %v9312_v12  ;;  %v9631_v30 = vld [vmem:[#allocation6 + $0x6a0] sm:$0xf]  ;;  %v9776_v58 = vor.u32 %v11736_v0, %v9775_v57  ;;  %v11732_v36 = vld [vmem:[#allocation6 + $0x7ac] sm:$0xf0]  ;;  %v12470_v12 = vadd.f32 %v12454_v50, %v318_v40  ;;  %v15626_v21 = vmax.f32 %v12473_v52, 0.0 }
  0x76   :  { %2696 = vmatmul.bf16.gmra.mxu3 %v12441_v15  ;;  %v327_v56 = vmul.f32 %v12444_v32, %v181_v8  ;;  %2840 = vmatpush.bf16.msrb.mxu1 %v9440_v14  ;;  %v9632_v27 = vor.u32 %v11700_v31, %v9631_v30  ;;  %v9759_v26 = vld [vmem:[#allocation6 + $0x7a0] sm:$0xf]  ;;  %v12466_v8 = vadd.f32 %v12246_v45, %v380_v44  ;;  %v639_v40 = vmax.f32 %v511_v4, 0.0  ;;  %v189_v4 = vld [vmem:[#allocation2 + $0xd8] sm:$0xff]  ;;  %v11542_v45 = vld [vmem:[#allocation6 + $0x1c4] sm:$0xf] }
  0x77   :  { %16016 = vst [vmem:[#allocation50_spill] sm:$0xff] %v12470_v12  ;;  %v9760_v44 = vor.u32 %v11732_v36, %v9759_v26  ;;  %v15629_v9 = vmax.f32 %v12470_v12, 0.0  ;;  %v15630_v39 = vmax.f32 %v12476_v17, 0.0  ;;  %v12501_v57 = vperm.slane %v12231_v23, 4  ;;  %v174_v0 = vld [vmem:[#allocation2 + $0x60] sm:$0xff]  ;;  %v175_v36 = vld [vmem:[#allocation2 + $0x68] sm:$0xff] }
  0x78   :  { %2879 = vmatpush.bf16.msra.mxu2 %v9648_v61  ;;  %16015 = vst [vmem:[#allocation49_spill] sm:$0xff] %v12466_v8  ;;  %v12479_v61 = vadd.f32 %v12462_v60, %v319_v53  ;;  %v12482_v14 = vadd.f32 %v12462_v60, %v327_v56  ;;  %v15631_v20 = vmax.f32 %v12466_v8, 0.0  ;;  %v196_v56 = vld [vmem:[#allocation2 + $0x110] sm:$0xff]  ;;  %v182_v30 = vld [vmem:[#allocation2 + $0xa0] sm:$0xff]  ;;  %v12514_v31 = vperm.slane %v12231_v23, 5 }
  0x79   :  { %16017 = vst [vmem:[#allocation51_spill] sm:$0xff] %v12473_v52  ;;  %2923 = vmatpush.bf16.msra.mxu3 %v9776_v58  ;;  %2797 = vmatpush.bf16.msrb.mxu0 %v9296_v59  ;;  %v12498_v58 = vpack.c.bf16 %v15626_v21, %v15629_v9  ;;  %v12505_v59 = vpack.c.bf16 %v15630_v39, %v639_v40  ;;  %v12524_v23 = vperm.slane %v12239_v33, 4  ;;  %v12527_v9 = vperm.slane %v12239_v33, 5  ;;  %v9615_v39 = vld [vmem:[#allocation6 + $0x680] sm:$0xf] }
  0x7a   :  { %16018 = vst [vmem:[#allocation52_spill] sm:$0xff] %v12476_v17  ;;  %2841 = vmatpush.bf16.msrb.mxu1 %v9424_v37  ;;  %v15628_v43 = vmax.f32 %v12479_v61, 0.0  ;;  %v15627_v53 = vmax.f32 %v12482_v14, 0.0  ;;  %v12492_v26 = vpack.c.bf16 %v15631_v20, %v638_v11  ;;  %v334_v11 = vmul.f32 %v12431_v63, %v188_v22  ;;  %v9743_v20 = vld [vmem:[#allocation6 + $0x780] sm:$0xf] }
  0x7b   :  { %16019 = vst [vmem:[#allocation53_spill] sm:$0xff] %v12479_v61  ;;  %v342_v21 = vmul.f32 %v12431_v63, %v196_v56  ;;  %v335_v40 = vmul.f32 %v12444_v32, %v189_v4  ;;  %v321_v56 = vmul.f32 %v12514_v31, %v175_v36 }
  0x7c   :  { %16020 = vst [vmem:[#allocation54_spill] sm:$0xff] %v12482_v14  ;;  %2880 = vmatpush.bf16.msra.mxu2 %v9632_v27  ;;  %v12511_v37 = vpack.c.bf16 %v15627_v53, %v15628_v43  ;;  %v197_v27 = vld [vmem:[#allocation2 + $0x118] sm:$0xff]  ;;  %v320_v53 = vmul.f32 %v12501_v57, %v174_v0  ;;  %v328_v43 = vmul.f32 %v12501_v57, %v182_v30  ;;  %v11696_v0 = vld [vmem:[#allocation6 + $0x68c] sm:$0xf0] }
  0x7d   :  { %2924 = vmatpush.bf16.msra.mxu3 %v9760_v44  ;;  %16021 = vst [vmem:[#allocation55_spill] sm:$0xff] %v12492_v26  ;;  %v183_v44 = vld [vmem:[#allocation2 + $0xa8] sm:$0xff]  ;;  %v343_v22 = vmul.f32 %v12444_v32, %v197_v27  ;;  %v9616_v30 = vor.u32 %v11696_v0, %v9615_v39  ;;  %v11728_v14 = vld [vmem:[#allocation6 + $0x78c] sm:$0xf0]  ;;  %v12535_v61 = vadd.f32 %v12454_v50, %v334_v11 }
  0x7e   :  { %16022 = vst [vmem:[#allocation56_spill] sm:$0xff] %v12501_v57  ;;  %v329_v4 = vmul.f32 %v12514_v31, %v183_v44  ;;  %v9744_v52 = vor.u32 %v11728_v14, %v9743_v20  ;;  %v12538_v33 = vadd.f32 %v12454_v50, %v342_v21  ;;  %v12541_v12 = vadd.f32 %v12524_v23, %v320_v53  ;;  %v204_v0 = vld [vmem:[#allocation2 + $0x150] sm:$0xff] }
  0x7f   :  { %16023 = vst [vmem:[#allocation57_spill] sm:$0xff] %v12505_v59  ;;  %v12544_v27 = vadd.f32 %v12524_v23, %v328_v43  ;;  %v12547_v36 = vadd.f32 %v12462_v60, %v335_v40  ;;  %v12550_v39 = vadd.f32 %v12462_v60, %v343_v22  ;;  %v12553_v14 = vadd.f32 %v12527_v9, %v321_v56 }
  0x80   :  { %16024 = vst [vmem:[#allocation58_spill] sm:$0xff] %v12514_v31  ;;  %2881 = vmatpush.bf16.msra.mxu2 %v9616_v30  ;;  %v12556_v20 = vadd.f32 %v12527_v9, %v329_v4  ;;  %v15638_v21 = vmax.f32 %v12535_v61, 0.0  ;;  %v15637_v53 = vmax.f32 %v12538_v33, 0.0  ;;  %v15643_v43 = vmax.f32 %v12541_v12, 0.0  ;;  %v212_v30 = vld [vmem:[#allocation2 + $0x190] sm:$0xff] }
  0x81   :  { %16025 = vst [vmem:[#allocation59_spill] sm:$0xff] %v12524_v23  ;;  %2925 = vmatpush.bf16.msra.mxu3 %v9744_v52  ;;  %v15642_v44 = vmax.f32 %v12544_v27, 0.0  ;;  %v15647_v11 = vmax.f32 %v12547_v36, 0.0  ;;  %v15646_v40 = vmax.f32 %v12550_v39, 0.0  ;;  %v16035_v56 = vmax.f32 %v12553_v14, 0.0 }
  0x82   :  { %16026 = vst [vmem:[#allocation60_spill] sm:$0xff] %v12527_v9  ;;  %v12570_v52 = vpack.c.bf16 %v15637_v53, %v15638_v21  ;;  %v205_v21 = vld [vmem:[#allocation2 + $0x158] sm:$0xff]  ;;  %v350_v7 = vmul.f32 %v12431_v63, %v204_v0 }
  0x83   :  { %2637 = vmatmul.bf16.gmra.mxu0 %v12492_v26  ;;  %2710 = vmatmul.bf16.vlgmr.msrb.gmra.mxu2 %v12498_v58  ;;  %16027 = vst [vmem:[#allocation61_spill] sm:$0xff] %v12535_v61  ;;  %v12576_v4 = vpack.c.bf16 %v15642_v44, %v15643_v43  ;;  %v12582_v22 = vpack.c.bf16 %v15646_v40, %v15647_v11  ;;  %v190_v61 = vld [vmem:[#allocation2 + $0xe0] sm:$0xff]  ;;  %v191_v44 = vld [vmem:[#allocation2 + $0xe8] sm:$0xff] }
  0x84   :  { %2681 = vmatmul.bf16.gmra.mxu1 %v12505_v59  ;;  %16028 = vst [vmem:[#allocation62_spill] sm:$0xff] %v12538_v33  ;;  %v16036_v33 = vmax.f32 %v12556_v20, 0.0  ;;  %v199_v43 = vld [vmem:[#allocation2 + $0x128] sm:$0xff]  ;;  %v351_v40 = vmul.f32 %v12444_v32, %v205_v21  ;;  %v336_v11 = vmul.f32 %v12501_v57, %v190_v61  ;;  %v337_v0 = vmul.f32 %v12514_v31, %v191_v44 }
  0x85   :  { %16029 = vst [vmem:[#allocation63_spill] sm:$0xff] %v12541_v12  ;;  %v198_v12 = vld [vmem:[#allocation2 + $0x120] sm:$0xff]  ;;  %v12603_v61 = vadd.f32 %v12454_v50, %v350_v7 }
  0x86   :  { %2754 = vmatmul.bf16.vlgmr.msrb.gmra.mxu3 %v12511_v37  ;;  %16030 = vst [vmem:[#allocation64_spill] sm:$0xff] %v12544_v27  ;;  %v12588_v53 = vpack.c.bf16 %v16036_v33, %v16035_v56  ;;  %v213_v27 = vld [vmem:[#allocation2 + $0x198] sm:$0xff]  ;;  %v344_v33 = vmul.f32 %v12501_v57, %v198_v12  ;;  %v12609_v8 = vadd.f32 %v12524_v23, %v336_v11 }
  0x87   :  { %16031 = vst [vmem:[#allocation65_spill] sm:$0xff] %v12547_v36  ;;  %v358_v36 = vmul.f32 %v12431_v63, %v212_v30  ;;  %v359_v56 = vmul.f32 %v12444_v32, %v213_v27  ;;  %v345_v30 = vmul.f32 %v12514_v31, %v199_v43  ;;  %v12615_v43 = vadd.f32 %v12462_v60, %v351_v40 }
  0x88   :  { %16032 = vst [vmem:[#allocation66_spill] sm:$0xff] %v12550_v39  ;;  %v11692_v39 = vld [vmem:[#allocation6 + $0x66c] sm:$0xf0]  ;;  %v12612_v27 = vadd.f32 %v12524_v23, %v344_v33 }
  0x89   :  { %16033 = vst [vmem:[#allocation67_spill] sm:$0xff] %v12553_v14  ;;  %v9727_v14 = vld [vmem:[#allocation6 + $0x760] sm:$0xf]  ;;  %v12606_v12 = vadd.f32 %v12454_v50, %v358_v36  ;;  %v12624_v7 = vadd.f32 %v12527_v9, %v345_v30  ;;  %v15656_v36 = vmax.f32 %v12603_v61, 0.0  ;;  %v15665_v44 = vmax.f32 %v12615_v43, 0.0  ;;  %v220_v30 = vld [vmem:[#allocation2 + $0x1d0] sm:$0xff] }
  0x8a   :  { %16034 = vst [vmem:[#allocation68_spill] sm:$0xff] %v12556_v20  ;;  %v9599_v20 = vld [vmem:[#allocation6 + $0x660] sm:$0xf]  ;;  %v9728_v21 = vor.u32 %v11724_v3, %v9727_v14  ;;  %v12621_v3 = vadd.f32 %v12527_v9, %v337_v0  ;;  %v366_v18 = vmul.f32 %v12431_v63, %v220_v30 }
  0x8b   :  { %v9600_v17 = vor.u32 %v11692_v39, %v9599_v20  ;;  %16037 = vst [vmem:[#allocation69_spill] sm:$0xff] %v12603_v61  ;;  %v12618_v39 = vadd.f32 %v12462_v60, %v359_v56  ;;  %v15655_v14 = vmax.f32 %v12606_v12, 0.0  ;;  %v15661_v20 = vmax.f32 %v12609_v8, 0.0  ;;  %v214_v61 = vld [vmem:[#allocation2 + $0x1a0] sm:$0xff] }
  0x8c   :  { %16038 = vst [vmem:[#allocation70_spill] sm:$0xff] %v12606_v12  ;;  %2926 = vmatpush.bf16.msra.mxu3 %v9728_v21  ;;  %v236_v21 = vld [vmem:[#allocation2 + $0x250] sm:$0xff]  ;;  %v16045_v33 = vmax.f32 %v12621_v3, 0.0  ;;  %v16046_v12 = vmax.f32 %v12624_v7, 0.0 }
  0x8d   :  { %16039 = vst [vmem:[#allocation71_spill] sm:$0xff] %v12609_v8  ;;  %2882 = vmatpush.bf16.msra.mxu2 %v9600_v17  ;;  %v15660_v17 = vmax.f32 %v12612_v27, 0.0  ;;  %v15664_v11 = vmax.f32 %v12618_v39, 0.0  ;;  %v12638_v56 = vpack.c.bf16 %v15655_v14, %v15656_v36  ;;  %v221_v36 = vld [vmem:[#allocation2 + $0x1d8] sm:$0xff]  ;;  %v206_v8 = vld [vmem:[#allocation2 + $0x160] sm:$0xff] }
  0x8e   :  { %16040 = vst [vmem:[#allocation72_spill] sm:$0xff] %v12612_v27  ;;  %v12656_v14 = vpack.c.bf16 %v16046_v12, %v16045_v33  ;;  %v237_v27 = vld [vmem:[#allocation2 + $0x258] sm:$0xff]  ;;  %v360_v12 = vmul.f32 %v12501_v57, %v214_v61 }
  0x8f   :  { %16041 = vst [vmem:[#allocation73_spill] sm:$0xff] %v12615_v43  ;;  %v12644_v0 = vpack.c.bf16 %v15660_v17, %v15661_v20  ;;  %v12650_v40 = vpack.c.bf16 %v15664_v11, %v15665_v44  ;;  %v207_v17 = vld [vmem:[#allocation2 + $0x168] sm:$0xff]  ;;  %v382_v43 = vmul.f32 %v12431_v63, %v236_v21  ;;  %v367_v11 = vmul.f32 %v12444_v32, %v221_v36 }
  0x90   :  { %16042 = vst [vmem:[#allocation74_spill] sm:$0xff] %v12618_v39  ;;  %v215_v20 = vld [vmem:[#allocation2 + $0x1a8] sm:$0xff]  ;;  %v352_v44 = vmul.f32 %v12501_v57, %v206_v8  ;;  %v383_v33 = vmul.f32 %v12444_v32, %v237_v27  ;;  %v353_v30 = vmul.f32 %v12514_v31, %v207_v17  ;;  %v11688_v39 = vld [vmem:[#allocation6 + $0x64c] sm:$0xf0]  ;;  %v512_v8 = vadd.f32 %v12454_v50, %v366_v18 }
  0x91   :  { %16043 = vst [vmem:[#allocation75_spill] sm:$0xff] %v12621_v3  ;;  %v361_v21 = vmul.f32 %v12514_v31, %v215_v20  ;;  %v9711_v3 = vld [vmem:[#allocation6 + $0x740] sm:$0xf]  ;;  %v12672_v61 = vadd.f32 %v12454_v50, %v382_v43  ;;  %v12678_v27 = vadd.f32 %v12524_v23, %v360_v12  ;;  %v513_v20 = vadd.f32 %v12462_v60, %v367_v11 }
  0x92   :  { %16044 = vst [vmem:[#allocation76_spill] sm:$0xff] %v12624_v7  ;;  %v9583_v7 = vld [vmem:[#allocation6 + $0x640] sm:$0xf]  ;;  %v9712_v36 = vor.u32 %v11720_v16, %v9711_v3  ;;  %v12675_v35 = vadd.f32 %v12524_v23, %v352_v44  ;;  %v12682_v17 = vadd.f32 %v12462_v60, %v383_v33  ;;  %v640_v18 = vmax.f32 %v512_v8, 0.0 }
  0x93   :  { %2715 = vmatmul.bf16.gmra.mxu2 %v12570_v52  ;;  %2798 = vmatmul.bf16.vlgmr.msrb.gmra.mxu0 %v12576_v4  ;;  %v9584_v38 = vor.u32 %v11688_v39, %v9583_v7  ;;  %16047 = vst [vmem:[#allocation77_spill] sm:$0xff] %v12672_v61  ;;  %v12685_v39 = vadd.f32 %v12527_v9, %v353_v30  ;;  %v15672_v43 = vmax.f32 %v12672_v61, 0.0  ;;  %v15677_v7 = vmax.f32 %v12678_v27, 0.0  ;;  %v238_v61 = vld [vmem:[#allocation2 + $0x260] sm:$0xff] }
  0x94   :  { %2842 = vmatmul.bf16.vlgmr.msrb.gmra.mxu1 %v12588_v53  ;;  %16048 = vst [vmem:[#allocation78_spill] sm:$0xff] %v12675_v35  ;;  %v12688_v16 = vadd.f32 %v12527_v9, %v361_v21  ;;  %2927 = vmatpush.bf16.msra.mxu3 %v9712_v36  ;;  %v15678_v3 = vmax.f32 %v12675_v35, 0.0  ;;  %v15679_v44 = vmax.f32 %v12682_v17, 0.0  ;;  %v244_v21 = vld [vmem:[#allocation2 + $0x290] sm:$0xff]  ;;  %v253_v35 = vld [vmem:[#allocation2 + $0x2d8] sm:$0xff] }
  0x95   :  { %16049 = vst [vmem:[#allocation79_spill] sm:$0xff] %v12678_v27  ;;  %2883 = vmatpush.bf16.msra.mxu2 %v9584_v38  ;;  %v641_v38 = vmax.f32 %v513_v20, 0.0  ;;  %v15681_v11 = vmax.f32 %v12685_v39, 0.0  ;;  %v12698_v33 = vpack.c.bf16 %v15672_v43, %v640_v18  ;;  %v252_v36 = vld [vmem:[#allocation2 + $0x2d0] sm:$0xff]  ;;  %v245_v18 = vld [vmem:[#allocation2 + $0x298] sm:$0xff]  ;;  %v222_v43 = vld [vmem:[#allocation2 + $0x1e0] sm:$0xff] }
  0x96   :  { %2759 = vmatmul.bf16.gmra.mxu3 %v12582_v22  ;;  %16050 = vst [vmem:[#allocation80_spill] sm:$0xff] %v12682_v17  ;;  %v15680_v12 = vmax.f32 %v12688_v16, 0.0  ;;  %v12704_v30 = vpack.c.bf16 %v15677_v7, %v15678_v3  ;;  %v239_v27 = vld [vmem:[#allocation2 + $0x268] sm:$0xff]  ;;  %v390_v7 = vmul.f32 %v12431_v63, %v244_v21  ;;  %v398_v3 = vmul.f32 %v12431_v63, %v252_v36 }
  0x97   :  { %16051 = vst [vmem:[#allocation81_spill] sm:$0xff] %v12685_v39  ;;  %v12708_v8 = vpack.c.bf16 %v15679_v44, %v641_v38  ;;  %v391_v38 = vmul.f32 %v12444_v32, %v245_v18  ;;  %v368_v44 = vmul.f32 %v12501_v57, %v222_v43  ;;  %v369_v21 = vmul.f32 %v12514_v31, %v223_v10  ;;  %v11684_v39 = vld [vmem:[#allocation6 + $0x62c] sm:$0xf0] }
  0x98   :  { %16052 = vst [vmem:[#allocation82_spill] sm:$0xff] %v12688_v16  ;;  %v12714_v20 = vpack.c.bf16 %v15680_v12, %v15681_v11  ;;  %v384_v12 = vmul.f32 %v12501_v57, %v238_v61  ;;  %v399_v11 = vmul.f32 %v12444_v32, %v253_v35  ;;  %v385_v36 = vmul.f32 %v12514_v31, %v239_v27 }
  0x99   :  { %v12729_v16 = vadd.f32 %v12454_v50, %v390_v7  ;;  %v12732_v17 = vadd.f32 %v12454_v50, %v398_v3  ;;  %v514_v43 = vadd.f32 %v12524_v23, %v368_v44  ;;  %v12739_v18 = vadd.f32 %v12462_v60, %v391_v38  ;;  %v9567_v7 = vld [vmem:[#allocation6 + $0x620] sm:$0xf] }
  0x9a   :  { %v12736_v61 = vadd.f32 %v12524_v23, %v384_v12  ;;  %v12742_v35 = vadd.f32 %v12462_v60, %v399_v11  ;;  %v515_v10 = vadd.f32 %v12527_v9, %v369_v21  ;;  %v12746_v27 = vadd.f32 %v12527_v9, %v385_v36  ;;  %v9695_v44 = vld [vmem:[#allocation6 + $0x720] sm:$0xf] }
  0x9b   :  { %16053 = vst [vmem:[#allocation83_spill] sm:$0xff] %v12729_v16  ;;  %v9568_v3 = vor.u32 %v11684_v39, %v9567_v7  ;;  %v15693_v13 = vmax.f32 %v12729_v16, 0.0  ;;  %v15692_v12 = vmax.f32 %v12732_v17, 0.0  ;;  %v642_v6 = vmax.f32 %v514_v43, 0.0  ;;  %v260_v39 = vld [vmem:[#allocation2 + $0x310] sm:$0xff] }
  0x9c   :  { %16054 = vst [vmem:[#allocation84_spill] sm:$0xff] %v12732_v17  ;;  %v15694_v38 = vmax.f32 %v12736_v61, 0.0  ;;  %v9696_v11 = vor.u32 %v11716_v28, %v9695_v44  ;;  %v15701_v1 = vmax.f32 %v12739_v18, 0.0  ;;  %v15700_v21 = vmax.f32 %v12742_v35, 0.0  ;;  %v268_v7 = vld [vmem:[#allocation2 + $0x350] sm:$0xff]  ;;  %v261_v28 = vld [vmem:[#allocation2 + $0x318] sm:$0xff] }
  0x9d   :  { %16055 = vst [vmem:[#allocation85_spill] sm:$0xff] %v12736_v61  ;;  %2884 = vmatpush.bf16.msra.mxu2 %v9568_v3  ;;  %v643_v36 = vmax.f32 %v515_v10, 0.0  ;;  %v15699_v2 = vmax.f32 %v12746_v27, 0.0  ;;  %v12758_v5 = vpack.c.bf16 %v15692_v12, %v15693_v13  ;;  %v269_v3 = vld [vmem:[#allocation2 + $0x358] sm:$0xff]  ;;  %v254_v17 = vld [vmem:[#allocation2 + $0x2e0] sm:$0xff]  ;;  %v406_v12 = vmul.f32 %v12431_v63, %v260_v39 }
  0x9e   :  { %16056 = vst [vmem:[#allocation86_spill] sm:$0xff] %v12739_v18  ;;  %2928 = vmatpush.bf16.msra.mxu3 %v9696_v11  ;;  %v12762_v43 = vpack.c.bf16 %v15694_v38, %v642_v6  ;;  %v12768_v10 = vpack.c.bf16 %v15700_v21, %v15701_v1  ;;  %v246_v11 = vld [vmem:[#allocation2 + $0x2a0] sm:$0xff]  ;;  %v414_v13 = vmul.f32 %v12431_v63, %v268_v7  ;;  %v247_v6 = vld [vmem:[#allocation2 + $0x2a8] sm:$0xff]  ;;  %v9025_v1 = vld [vmem:[#allocation6 + $0x1f0] sm:$0xf0] }
  0x9f   :  { %16057 = vst [vmem:[#allocation87_spill] sm:$0xff] %v12742_v35  ;;  %v12772_v44 = vpack.c.bf16 %v15699_v2, %v643_v36  ;;  %v255_v38 = vld [vmem:[#allocation2 + $0x2e8] sm:$0xff]  ;;  %v407_v61 = vmul.f32 %v12444_v32, %v261_v28  ;;  %v415_v18 = vmul.f32 %v12444_v32, %v269_v3  ;;  %v11514_v16 = vld [vmem:[#allocation6 + $0xe4] sm:$0xf]  ;;  %v8897_v35 = vld [vmem:[#allocation6 + $0xf0] sm:$0xf0]  ;;  %v392_v36 = vmul.f32 %v12501_v57, %v246_v11 }
  0xa0   :  { %16058 = vst [vmem:[#allocation88_spill] sm:$0xff] %v12746_v27  ;;  %v400_v2 = vmul.f32 %v12501_v57, %v254_v17  ;;  %v8900_v21 = vor.u32 %v11514_v16, %v8897_v35  ;;  %v11546_v39 = vld [vmem:[#allocation6 + $0x1e4] sm:$0xf]  ;;  %v393_v7 = vmul.f32 %v12514_v31, %v247_v6  ;;  %v401_v28 = vmul.f32 %v12514_v31, %v255_v38  ;;  %v9551_v27 = vld [vmem:[#allocation6 + $0x600] sm:$0xf] }
  0xa1   :  { %16059 = vst [vmem:[#allocation89_spill] sm:$0xff] %v12758_v5  ;;  %v9028_v3 = vor.u32 %v11546_v39, %v9025_v1  ;;  %v12787_v46 = vadd.f32 %v12454_v50, %v406_v12  ;;  %v12790_v11 = vadd.f32 %v12454_v50, %v414_v13  ;;  %v9552_v17 = vor.u32 %v11680_v62, %v9551_v27  ;;  %v11510_v16 = vld [vmem:[#allocation6 + $0xc4] sm:$0xf]  ;;  %v8881_v35 = vld [vmem:[#allocation6 + $0xd0] sm:$0xf0] }
  0xa2   :  { %16060 = vst [vmem:[#allocation90_spill] sm:$0xff] %v12762_v43  ;;  %2966 = vmatpush.bf16.msra.mxu0 %v8900_v21  ;;  %v12793_v34 = vadd.f32 %v12462_v60, %v407_v61  ;;  %v12796_v38 = vadd.f32 %v12524_v23, %v392_v36  ;;  %v12799_v1 = vadd.f32 %v12524_v23, %v400_v2  ;;  %v9009_v6 = vld [vmem:[#allocation6 + $0x1d0] sm:$0xf0]  ;;  %v9679_v61 = vld [vmem:[#allocation6 + $0x700] sm:$0xf]  ;;  %v277_v2 = vld [vmem:[#allocation2 + $0x398] sm:$0xff] }
  0xa3   :  { %2720 = vmatmul.bf16.gmra.mxu2 %v12638_v56  ;;  %2803 = vmatmul.bf16.gmra.mxu0 %v12644_v0  ;;  %16061 = vst [vmem:[#allocation91_spill] sm:$0xff] %v12768_v10  ;;  %v8884_v12 = vor.u32 %v11510_v16, %v8881_v35  ;;  %v12802_v13 = vadd.f32 %v12462_v60, %v415_v18  ;;  %v11712_v21 = vld [vmem:[#allocation6 + $0x70c] sm:$0xf0]  ;;  %v8865_v16 = vld [vmem:[#allocation6 + $0xb0] sm:$0xf0] }
  0xa4   :  { %2847 = vmatmul.bf16.gmra.mxu1 %v12656_v14  ;;  %16062 = vst [vmem:[#allocation92_spill] sm:$0xff] %v12772_v44  ;;  %2885 = vmatpush.bf16.msra.mxu2 %v9552_v17  ;;  %v12805_v62 = vadd.f32 %v12527_v9, %v393_v7  ;;  %v12808_v27 = vadd.f32 %v12527_v9, %v401_v28  ;;  %v11506_v17 = vld [vmem:[#allocation6 + $0xa4] sm:$0xf]  ;;  %v8849_v36 = vld [vmem:[#allocation6 + $0x90] sm:$0xf0]  ;;  %v16071_v28 = vmax.f32 %v12787_v46, 0.0 }
  0xa5   :  { %16063 = vst [vmem:[#allocation93_spill] sm:$0xff] %v12787_v46  ;;  %3010 = vmatpush.bf16.msra.mxu1 %v9028_v3  ;;  %v9012_v39 = vor.u32 %v11542_v45, %v9009_v6  ;;  %v9680_v3 = vor.u32 %v11712_v21, %v9679_v61  ;;  %v11538_v18 = vld [vmem:[#allocation6 + $0x1a4] sm:$0xf]  ;;  %v8868_v29 = vor.u32 %v11506_v17, %v8865_v16  ;;  %v276_v21 = vld [vmem:[#allocation2 + $0x390] sm:$0xff]  ;;  %v16074_v16 = vmax.f32 %v12796_v38, 0.0 }
  0xa6   :  { %2764 = vmatmul.bf16.gmra.mxu3 %v12650_v40  ;;  %16064 = vst [vmem:[#allocation94_spill] sm:$0xff] %v12790_v11  ;;  %2967 = vmatpush.bf16.msra.mxu0 %v8884_v12  ;;  %v11502_v35 = vld [vmem:[#allocation6 + $0x84] sm:$0xf]  ;;  %v16075_v6 = vmax.f32 %v12799_v1, 0.0 }
  0xa7   :  { %16065 = vst [vmem:[#allocation95_spill] sm:$0xff] %v12793_v34  ;;  %2929 = vmatpush.bf16.msra.mxu3 %v9680_v3  ;;  %v11534_v7 = vld [vmem:[#allocation6 + $0x184] sm:$0xf]  ;;  %v16072_v3 = vmax.f32 %v12790_v11, 0.0  ;;  %v8852_v45 = vor.u32 %v11502_v35, %v8849_v36  ;;  %v422_v36 = vmul.f32 %v12431_v63, %v276_v21 }
  0xa8   :  { %16066 = vst [vmem:[#allocation96_spill] sm:$0xff] %v12796_v38  ;;  %v12828_v61 = vpack.c.bf16 %v16075_v6, %v16074_v16  ;;  %v263_v6 = vld [vmem:[#allocation2 + $0x328] sm:$0xff] }
  0xa9   :  { %16067 = vst [vmem:[#allocation97_spill] sm:$0xff] %v12799_v1  ;;  %3011 = vmatpush.bf16.msra.mxu1 %v9012_v39  ;;  %v284_v39 = vld [vmem:[#allocation2 + $0x3d0] sm:$0xff]  ;;  %v12822_v17 = vpack.c.bf16 %v16072_v3, %v16071_v28  ;;  %v16080_v28 = vmax.f32 %v12805_v62, 0.0  ;;  %v16081_v3 = vmax.f32 %v12808_v27, 0.0  ;;  %v270_v1 = vld [vmem:[#allocation2 + $0x360] sm:$0xff]  ;;  %v409_v21 = vmul.f32 %v12514_v31, %v263_v6 }
  0xaa   :  { %16068 = vst [vmem:[#allocation98_spill] sm:$0xff] %v12802_v13  ;;  %2968 = vmatpush.bf16.msra.mxu0 %v8868_v29  ;;  %v8977_v29 = vld [vmem:[#allocation6 + $0x190] sm:$0xf0]  ;;  %v430_v35 = vmul.f32 %v12431_v63, %v284_v39  ;;  %v11530_v39 = vld [vmem:[#allocation6 + $0x164] sm:$0xf] }
  0xab   :  { %16069 = vst [vmem:[#allocation99_spill] sm:$0xff] %v12805_v62  ;;  %v12840_v11 = vpack.c.bf16 %v16081_v3, %v16080_v28  ;;  %v8980_v16 = vor.u32 %v11534_v7, %v8977_v29  ;;  %v11498_v28 = vld [vmem:[#allocation6 + $0x64] sm:$0xf]  ;;  %v8833_v3 = vld [vmem:[#allocation6 + $0x70] sm:$0xf0]  ;;  %v416_v7 = vmul.f32 %v12501_v57, %v270_v1  ;;  %v12857_v29 = vadd.f32 %v12454_v50, %v422_v36 }
  0xac   :  { %16070 = vst [vmem:[#allocation100_spill] sm:$0xff] %v12808_v27  ;;  %v9153_v6 = vld [vmem:[#allocation6 + $0x2f0] sm:$0xf0] }
  0xad   :  { %16073 = vst [vmem:[#allocation101_spill] sm:$0xff] %v12822_v17  ;;  %v9281_v62 = vld [vmem:[#allocation6 + $0x3f0] sm:$0xf0] }
  0xae   :  { %16076 = vst [vmem:[#allocation102_spill] sm:$0xff] %v12828_v61  ;;  %2969 = vmatpush.bf16.msra.mxu0 %v8852_v45  ;;  %v8961_v45 = vld [vmem:[#allocation6 + $0x170] sm:$0xf0] }
  0xaf   :  { %16082 = vst [vmem:[#allocation104_spill] sm:$0xff] %v12840_v11 }
  0xb0   :  { %16083 = vst [vmem:[#allocation105_spill] sm:$0xff] %v12857_v29 }
  0xb3   :  { %2725 = vmatmul.bf16.gmra.mxu2 %v12698_v33  ;;  %2808 = vmatmul.bf16.gmra.mxu0 %v12704_v30 }
  0xb4   :  { %2852 = vmatmul.bf16.gmra.mxu1 %v12714_v20 }
  0xb6   :  { %2769 = vmatmul.bf16.gmra.mxu3 %v12708_v8 }
  0xc3   :  { %2730 = vmatmul.bf16.gmra.mxu2 %v12758_v5  ;;  %2813 = vmatmul.bf16.gmra.mxu0 %v12762_v43  ;;  %v16078_v43 = vmax.f32 %v12802_v13, 0.0  ;;  %v271_v5 = vld [vmem:[#allocation2 + $0x368] sm:$0xff] }
  0xc4   :  { %2857 = vmatmul.bf16.gmra.mxu1 %v12772_v44  ;;  %v8993_v44 = vld [vmem:[#allocation6 + $0x1b0] sm:$0xf0] }
  0xc5   :  { %v8996_v12 = vor.u32 %v11538_v18, %v8993_v44  ;;  %v285_v44 = vld [vmem:[#allocation2 + $0x3d8] sm:$0xff]  ;;  %v262_v18 = vld [vmem:[#allocation2 + $0x320] sm:$0xff] }
  0xc6   :  { %2774 = vmatmul.bf16.gmra.mxu3 %v12768_v10  ;;  %v16077_v10 = vmax.f32 %v12793_v34, 0.0  ;;  %v423_v34 = vmul.f32 %v12444_v32, %v277_v2  ;;  %v408_v27 = vmul.f32 %v12501_v57, %v262_v18  ;;  %v8836_v2 = vor.u32 %v11498_v28, %v8833_v3 }
  0xc7   :  { %3012 = vmatpush.bf16.msra.mxu1 %v8996_v12  ;;  %v8964_v18 = vor.u32 %v11530_v39, %v8961_v45  ;;  %v11526_v45 = vld [vmem:[#allocation6 + $0x144] sm:$0xf] }
  0xc8   :  { %v12834_v46 = vpack.c.bf16 %v16078_v43, %v16077_v10  ;;  %v431_v10 = vmul.f32 %v12444_v32, %v285_v44  ;;  %v11578_v44 = vld [vmem:[#allocation6 + $0x2e4] sm:$0xf]  ;;  %v12861_v1 = vadd.f32 %v12462_v60, %v423_v34  ;;  %2970 = vmatpush.bf16.msra.mxu0 %v8836_v2  ;;  %v8817_v32 = vld [vmem:[#allocation6 + $0x50] sm:$0xf0]  ;;  %v12865_v36 = vadd.f32 %v12524_v23, %v408_v27 }
  0xc9   :  { %v9156_v13 = vor.u32 %v11578_v44, %v9153_v6  ;;  %v12871_v34 = vadd.f32 %v12527_v9, %v409_v21 }
  0xca   :  { %16079 = vst [vmem:[#allocation103_spill] sm:$0xff] %v12834_v46  ;;  %v577_v3 = vadd.f32 %v12462_v60, %v431_v10  ;;  %v15738_v60 = vmax.f32 %v12857_v29, 0.0 }
  0xcb   :  { %3013 = vmatpush.bf16.msra.mxu1 %v8980_v16  ;;  %16084 = vst [vmem:[#allocation106_spill] sm:$0xff] %v12861_v1  ;;  %v11610_v16 = vld [vmem:[#allocation6 + $0x3e4] sm:$0xf]  ;;  %3054 = vmatpush.bf16.msrb.mxu2 %v9156_v13  ;;  %v8929_v13 = vld [vmem:[#allocation6 + $0x130] sm:$0xf0] }
  0xcc   :  { %16085 = vst [vmem:[#allocation107_spill] sm:$0xff] %v12865_v36  ;;  %v9284_v2 = vor.u32 %v11610_v16, %v9281_v62  ;;  %v11490_v62 = vld [vmem:[#allocation6 + $0x24] sm:$0xf]  ;;  %v8801_v16 = vld [vmem:[#allocation6 + $0x30] sm:$0xf0] }
  0xcd   :  { %16087 = vst [vmem:[#allocation109_spill] sm:$0xff] %v12871_v34 }
  0xce   :  { %3098 = vmatpush.bf16.msrb.mxu3 %v9284_v2  ;;  %v278_v2 = vld [vmem:[#allocation2 + $0x3a0] sm:$0xff] }
  0xcf   :  { %3014 = vmatpush.bf16.msra.mxu1 %v8964_v18 }
  0xd0   :  { %v2623_v12 = vpop.f32.mrf.mxu0 }
  0xd1   :  { %v2667_v38 = vpop.f32.mrf.mxu1 }
  0xd2   :  { %v12845_v43 = vadd.f32 %v2667_v38, %v2623_v12  ;;  %v417_v38 = vmul.f32 %v12514_v31, %v271_v5  ;;  %v576_v12 = vadd.f32 %v12454_v50, %v430_v35  ;;  %v11494_v5 = vld [vmem:[#allocation6 + $0x44] sm:$0xf]  ;;  %v12868_v35 = vadd.f32 %v12524_v23, %v416_v7  ;;  %v8945_v50 = vld [vmem:[#allocation6 + $0x150] sm:$0xf0] }
  0xd3   :  { %2735 = vmatmul.bf16.gmra.mxu2 %v12822_v17  ;;  %2818 = vmatmul.bf16.gmra.mxu0 %v12828_v61  ;;  %v8820_v18 = vor.u32 %v11494_v5, %v8817_v32  ;;  %v8948_v6 = vor.u32 %v11526_v45, %v8945_v50  ;;  %v8804_v50 = vor.u32 %v11490_v62, %v8801_v16  ;;  %v16091_v16 = vmax.f32 %v12865_v36, 0.0  ;;  %v287_v17 = vld [vmem:[#allocation2 + $0x3e8] sm:$0xff] }
  0xd4   :  { %2862 = vmatmul.bf16.gmra.mxu1 %v12840_v11  ;;  %16086 = vst [vmem:[#allocation108_spill] sm:$0xff] %v12868_v35  ;;  %v12876_v44 = vadd.f32 %v12527_v9, %v417_v38  ;;  %v704_v7 = vmax.f32 %v576_v12, 0.0  ;;  %v15739_v11 = vmax.f32 %v12861_v1, 0.0  ;;  %v15742_v32 = vmax.f32 %v12868_v35, 0.0  ;;  %v279_v12 = vld [vmem:[#allocation2 + $0x3a8] sm:$0xff] }
  0xd5   :  { %2971 = vmatpush.bf16.msra.mxu0 %v8820_v18  ;;  %3015 = vmatpush.bf16.msra.mxu1 %v8948_v6  ;;  %v8785_v6 = vld [vmem:[#allocation6 + $0x10] sm:$0xf0]  ;;  %v424_v61 = vmul.f32 %v12501_v57, %v278_v2 }
  0xd6   :  { %2779 = vmatmul.bf16.gmra.mxu3 %v12834_v46  ;;  %v2643_v28 = vpop.f32.mrf.mxu2  ;;  %16088 = vst [vmem:[#allocation110_spill] sm:$0xff] %v12876_v44  ;;  %v12888_v18 = vpack.c.bf16 %v704_v7, %v15738_v60  ;;  %v11932_v7 = vld [vmem:[%s15976_s23] sm:$0xff]  ;;  %v8913_v60 = vld [vmem:[#allocation6 + $0x110] sm:$0xf0]  ;;  %v16095_v1 = vmax.f32 %v12876_v44, 0.0 }
  0xd7   :  { %v12913_v36 = vperm.slane %v11932_v7, 7 }
  0xd8   :  { %v2625_v10 = vpop.f32.mrf.mxu0  ;;  %16089 = vst [vmem:[#allocation111_spill] sm:$0xff] %v12888_v18 }
  0xd9   :  { %v2687_v39 = vpop.f32.mrf.mxu3  ;;  %v2669_v27 = vpop.f32.mrf.mxu1  ;;  %2972 = vmatpush.bf16.msra.mxu0 %v8804_v50  ;;  %v12903_v50 = vperm.slane %v11932_v7, 6  ;;  %16097 = vst [vmem:[#allocation116_spill] sm:$0xff] %v12913_v36 }
  0xda   :  { %v12873_v63 = vadd.f32 %v2687_v39, %v2643_v28  ;;  %v12880_v21 = vadd.f32 %v2669_v27, %v2625_v10  ;;  %v11522_v28 = vld [vmem:[#allocation6 + $0x124] sm:$0xf]  ;;  %v705_v39 = vmax.f32 %v577_v3, 0.0 }
  0xdb   :  { %v8932_v45 = vor.u32 %v11522_v28, %v8929_v13  ;;  %v11486_v3 = vld [vmem:[#allocation6 + $0x4] sm:$0xf]  ;;  %v12898_v28 = vpack.c.bf16 %v15742_v32, %v16091_v16  ;;  %16093 = vst [vmem:[#allocation114_spill] sm:$0xff] %v12903_v50  ;;  %v176_v16 = vld [vmem:[#allocation2 + $0x70] sm:$0xff] }
  0xdc   :  { %v11518_v27 = vld [vmem:[#allocation6 + $0x104] sm:$0xf]  ;;  %v12892_v62 = vpack.c.bf16 %v705_v39, %v15739_v11  ;;  %v16094_v11 = vmax.f32 %v12871_v34, 0.0  ;;  %v184_v32 = vld [vmem:[#allocation2 + $0xb0] sm:$0xff]  ;;  %v425_v34 = vmul.f32 %v12514_v31, %v279_v12 }
  0xdd   :  { %3016 = vmatpush.bf16.msra.mxu1 %v8932_v45  ;;  %16092 = vst [vmem:[#allocation113_spill] sm:$0xff] %v12898_v28  ;;  %v286_v13 = vld [vmem:[#allocation2 + $0x3e0] sm:$0xff]  ;;  %v8788_v45 = vor.u32 %v11486_v3, %v8785_v6  ;;  %v8916_v29 = vor.u32 %v11518_v27, %v8913_v60  ;;  %v177_v3 = vld [vmem:[#allocation2 + $0x78] sm:$0xff]  ;;  %v322_v60 = vmul.f32 %v12903_v50, %v176_v16 }
  0xde   :  { %v2645_v10 = vpop.f32.mrf.mxu2  ;;  %16090 = vst [vmem:[#allocation112_spill] sm:$0xff] %v12892_v62  ;;  %v12911_v35 = vpack.c.bf16 %v16095_v1, %v16094_v11  ;;  %v185_v6 = vld [vmem:[#allocation2 + $0xb8] sm:$0xff]  ;;  %v11574_v11 = vld [vmem:[#allocation6 + $0x2c4] sm:$0xf]  ;;  %v9137_v1 = vld [vmem:[#allocation6 + $0x2d0] sm:$0xf0]  ;;  %v330_v2 = vmul.f32 %v12903_v50, %v184_v32  ;;  %v323_v12 = vmul.f32 %v12913_v36, %v177_v3 }
  0xdf   :  { %2973 = vmatpush.bf16.msra.mxu0 %v8788_v45  ;;  %v331_v7 = vmul.f32 %v12913_v36, %v185_v6  ;;  %v11606_v32 = vld [vmem:[#allocation6 + $0x3c4] sm:$0xf] }
  0xe0   :  { %v2628_v39 = vpop.f32.mrf.mxu0  ;;  %16096 = vst [vmem:[#allocation115_spill] sm:$0xff] %v12911_v35 }
  0xe1   :  { %v2689_v38 = vpop.f32.mrf.mxu3  ;;  %v2672_v46 = vpop.f32.mrf.mxu1  ;;  %3017 = vmatpush.bf16.msra.mxu1 %v8916_v29  ;;  %v433_v29 = vmul.f32 %v12514_v31, %v287_v17 }
  0xe2   :  { %v12905_v5 = vadd.f32 %v2689_v38, %v2645_v10  ;;  %v12916_v38 = vadd.f32 %v2672_v46, %v2628_v39  ;;  %v432_v10 = vmul.f32 %v12501_v57, %v286_v13  ;;  %v11933_v46 = vld [vmem:[%s15978_s2] sm:$0xff]  ;;  %v9140_v13 = vor.u32 %v11574_v11, %v9137_v1  ;;  %v9265_v39 = vld [vmem:[#allocation6 + $0x3d0] sm:$0xf0]  ;;  %s16705_s2 = sld [smem:[#allocation191_spill]] }
  0xe3   :  { %2740 = vmatmul.bf16.gmra.mxu2 %v12888_v18  ;;  %2823 = vmatmul.bf16.gmra.mxu0 %v12898_v28  ;;  %v12927_v27 = vperm.slane %v11933_v46, 6  ;;  %v12934_v45 = vperm.slane %v11933_v46, 7  ;;  %v9268_v16 = vor.u32 %v11606_v32, %v9265_v39  ;;  %v12937_v57 = vadd.f32 %v12524_v23, %v424_v61  ;;  %v11598_v28 = vld [vmem:[#allocation6 + $0x384] sm:$0xf] }
  0xe4   :  { %2867 = vmatmul.bf16.gmra.mxu1 %v12911_v35  ;;  %3055 = vmatpush.bf16.msrb.mxu2 %v9140_v13  ;;  %v578_v1 = vadd.f32 %v12524_v23, %v432_v10  ;;  %v12941_v35 = vadd.f32 %v12527_v9, %v425_v34  ;;  %v579_v13 = vadd.f32 %v12527_v9, %v433_v29 }
  0xe5   :  { %16098 = vst [vmem:[#allocation117_spill] sm:$0xff] %v12927_v27  ;;  %v12944_v17 = vadd.f32 %v12927_v27, %v322_v60  ;;  %v12947_v3 = vadd.f32 %v12927_v27, %v330_v2  ;;  %3099 = vmatpush.bf16.msrb.mxu3 %v9268_v16  ;;  %v12953_v61 = vadd.f32 %v12934_v45, %v323_v12  ;;  %v15762_v60 = vmax.f32 %v12937_v57, 0.0 }
  0xe6   :  { %2784 = vmatmul.bf16.gmra.mxu3 %v12892_v62  ;;  %16099 = vst [vmem:[#allocation118_spill] sm:$0xff] %v12934_v45  ;;  %v2648_v44 = vpop.f32.mrf.mxu2  ;;  %v12956_v10 = vadd.f32 %v12934_v45, %v331_v7  ;;  %v706_v39 = vmax.f32 %v578_v1, 0.0 }
  0xe7   :  { %16100 = vst [vmem:[#allocation119_spill] sm:$0xff] %v12937_v57  ;;  %v15768_v2 = vmax.f32 %v12944_v17, 0.0  ;;  %v16110_v12 = vmax.f32 %v12953_v61, 0.0 }
  0xe8   :  { %16101 = vst [vmem:[#allocation120_spill] sm:$0xff] %v12941_v35  ;;  %v2630_v46 = vpop.f32.mrf.mxu0  ;;  %v16111_v23 = vmax.f32 %v12956_v10, 0.0 }
  0xe9   :  { %v2692_v11 = vpop.f32.mrf.mxu3  ;;  %16102 = vst [vmem:[#allocation121_spill] sm:$0xff] %v12944_v17  ;;  %v2674_v34 = vpop.f32.mrf.mxu1  ;;  %v193_v17 = vld [vmem:[#allocation2 + $0xf8] sm:$0xff] }
  0xea   :  { %16103 = vst [vmem:[#allocation122_spill] sm:$0xff] %v12947_v3  ;;  %v12949_v6 = vadd.f32 %v2692_v11, %v2648_v44  ;;  %v12958_v32 = vadd.f32 %v2674_v34, %v2630_v46  ;;  %v15767_v44 = vmax.f32 %v12947_v3, 0.0  ;;  %v707_v11 = vmax.f32 %v579_v13, 0.0  ;;  %v201_v3 = vld [vmem:[#allocation2 + $0x138] sm:$0xff] }
  0xeb   :  { %16104 = vst [vmem:[#allocation123_spill] sm:$0xff] %v12953_v61  ;;  %v12968_v46 = vpack.c.bf16 %v706_v39, %v15762_v60  ;;  %v16108_v13 = vmax.f32 %v12941_v35, 0.0  ;;  %v12986_v57 = vpack.c.bf16 %v16111_v23, %v16110_v12  ;;  %v192_v39 = vld [vmem:[#allocation2 + $0xf0] sm:$0xff]  ;;  %v11602_v23 = vld [vmem:[#allocation6 + $0x3a4] sm:$0xf] }
  0xec   :  { %16105 = vst [vmem:[#allocation124_spill] sm:$0xff] %v12956_v10  ;;  %v12974_v1 = vpack.c.bf16 %v15767_v44, %v15768_v2  ;;  %v200_v60 = vld [vmem:[#allocation2 + $0x130] sm:$0xff]  ;;  %v11570_v44 = vld [vmem:[#allocation6 + $0x2a4] sm:$0xf]  ;;  %v339_v10 = vmul.f32 %v12913_v36, %v193_v17 }
  0xed   :  { %16106 = vst [vmem:[#allocation125_spill] sm:$0xff] %v12968_v46  ;;  %v12980_v29 = vpack.c.bf16 %v707_v11, %v16108_v13  ;;  %v9121_v2 = vld [vmem:[#allocation6 + $0x2b0] sm:$0xf0]  ;;  %v338_v11 = vmul.f32 %v12903_v50, %v192_v39  ;;  %v346_v13 = vmul.f32 %v12903_v50, %v200_v60 }
  0xee   :  { %v2650_v9 = vpop.f32.mrf.mxu2  ;;  %16107 = vst [vmem:[#allocation126_spill] sm:$0xff] %v12974_v1  ;;  %v9249_v12 = vld [vmem:[#allocation6 + $0x3b0] sm:$0xf0] }
  0xef   :  { %16109 = vst [vmem:[#allocation127_spill] sm:$0xff] %v12980_v29  ;;  %v12999_v35 = vadd.f32 %v12927_v27, %v338_v11  ;;  %v13002_v60 = vadd.f32 %v12927_v27, %v346_v13 }
  0xf0   :  { %v2633_v16 = vpop.f32.mrf.mxu0  ;;  %16112 = vst [vmem:[#allocation128_spill] sm:$0xff] %v12986_v57 }
  0xf1   :  { %v2694_v7 = vpop.f32.mrf.mxu3  ;;  %v2677_v31 = vpop.f32.mrf.mxu1  ;;  %16113 = vst [vmem:[#allocation129_spill] sm:$0xff] %v12999_v35  ;;  %v15787_v11 = vmax.f32 %v13002_v60, 0.0 }
  0xf2   :  { %v12976_v34 = vadd.f32 %v2694_v7, %v2650_v9  ;;  %v12988_v9 = vadd.f32 %v2677_v31, %v2633_v16  ;;  %v9124_v7 = vor.u32 %v11570_v44, %v9121_v2  ;;  %v347_v31 = vmul.f32 %v12913_v36, %v201_v3  ;;  %16114 = vst [vmem:[#allocation130_spill] sm:$0xff] %v13002_v60 }
  0xf3   :  { %2828 = vmatmul.bf16.gmra.mxu0 %v12968_v46  ;;  %2886 = vmatmul.bf16.vlgmr.msra.gmra.mxu2 %v12974_v1  ;;  %v9252_v16 = vor.u32 %v11602_v23, %v9249_v12  ;;  %v15788_v23 = vmax.f32 %v12999_v35, 0.0  ;;  %v11566_v12 = vld [vmem:[#allocation6 + $0x284] sm:$0xf]  ;;  %v9233_v35 = vld [vmem:[#allocation6 + $0x390] sm:$0xf0] }
  0xf4   :  { %2872 = vmatmul.bf16.gmra.mxu1 %v12980_v29  ;;  %3056 = vmatpush.bf16.msrb.mxu2 %v9124_v7  ;;  %v13010_v17 = vadd.f32 %v12934_v45, %v347_v31  ;;  %v208_v31 = vld [vmem:[#allocation2 + $0x170] sm:$0xff] }
  0xf5   :  { %3100 = vmatpush.bf16.msrb.mxu3 %v9252_v16  ;;  %v9105_v16 = vld [vmem:[#allocation6 + $0x290] sm:$0xf0] }
  0xf6   :  { %2930 = vmatmul.bf16.vlgmr.msra.gmra.mxu3 %v12986_v57  ;;  %v2653_v2 = vpop.f32.mrf.mxu2  ;;  %v13007_v57 = vadd.f32 %v12934_v45, %v339_v10  ;;  %16116 = vst [vmem:[#allocation132_spill] sm:$0xff] %v13010_v17 }
  0xf8   :  { %v2635_v61 = vpop.f32.mrf.mxu0  ;;  %16115 = vst [vmem:[#allocation131_spill] sm:$0xff] %v13007_v57  ;;  %v15790_v13 = vmax.f32 %v13007_v57, 0.0  ;;  %v9089_v57 = vld [vmem:[#allocation6 + $0x270] sm:$0xf0] }
  0xf9   :  { %v2697_v44 = vpop.f32.mrf.mxu3  ;;  %v2679_v3 = vpop.f32.mrf.mxu1 }
  0xfa   :  { %v13004_v39 = vadd.f32 %v2697_v44, %v2653_v2  ;;  %v13012_v7 = vadd.f32 %v2679_v3, %v2635_v61  ;;  %v15789_v2 = vmax.f32 %v13010_v17, 0.0  ;;  %v9108_v44 = vor.u32 %v11566_v12, %v9105_v16  ;;  %v216_v3 = vld [vmem:[#allocation2 + $0x1b0] sm:$0xff]  ;;  %v209_v12 = vld [vmem:[#allocation2 + $0x178] sm:$0xff] }
  0xfb   :  { %v13022_v61 = vpack.c.bf16 %v15787_v11, %v15788_v23  ;;  %v354_v11 = vmul.f32 %v12903_v50, %v208_v31  ;;  %v362_v23 = vmul.f32 %v12903_v50, %v216_v3 }
  0xfc   :  { %3057 = vmatpush.bf16.msrb.mxu2 %v9108_v44  ;;  %v13030_v62 = vpack.c.bf16 %v15789_v2, %v15790_v13  ;;  %v217_v44 = vld [vmem:[#allocation2 + $0x1b8] sm:$0xff] }
  0xfd   :  { %16117 = vst [vmem:[#allocation133_spill] sm:$0xff] %v13022_v61  ;;  %v363_v2 = vmul.f32 %v12913_v36, %v217_v44  ;;  %v13046_v31 = vadd.f32 %v12927_v27, %v362_v23  ;;  %v11562_v23 = vld [vmem:[#allocation6 + $0x264] sm:$0xf] }
  0xfe   :  { %v2655_v29 = vpop.f32.mrf.mxu2  ;;  %16118 = vst [vmem:[#allocation134_spill] sm:$0xff] %v13030_v62 }
  0xff   :  { %16120 = vst [vmem:[#allocation136_spill] sm:$0xff] %v13046_v31  ;;  %v13053_v17 = vadd.f32 %v12934_v45, %v363_v2  ;;  %v15803_v60 = vmax.f32 %v13046_v31, 0.0 }
 0x100   :  { %v2638_v46 = vpop.f32.mrf.mxu0 }
 0x101   :  { %v2699_v10 = vpop.f32.mrf.mxu3  ;;  %v2682_v16 = vpop.f32.mrf.mxu1  ;;  %16122 = vst [vmem:[#allocation138_spill] sm:$0xff] %v13053_v17 }
 0x102   :  { %v13024_v1 = vadd.f32 %v2699_v10, %v2655_v29  ;;  %v13032_v18 = vadd.f32 %v2682_v16, %v2638_v46  ;;  %v9236_v29 = vor.u32 %v11598_v28, %v9233_v35  ;;  %v355_v10 = vmul.f32 %v12913_v36, %v209_v12 }
 0x103   :  { %2891 = vmatmul.bf16.gmra.mxu2 %v13022_v61  ;;  %2974 = vmatmul.bf16.vlgmr.msra.gmra.mxu0 %v12294_v41  ;;  %v13043_v16 = vadd.f32 %v12927_v27, %v354_v11  ;;  %v240_v61 = vld [vmem:[#allocation2 + $0x270] sm:$0xff] }
 0x104   :  { %3018 = vmatmul.bf16.vlgmr.msra.gmra.mxu1 %v12306_v47  ;;  %3101 = vmatpush.bf16.msrb.mxu3 %v9236_v29  ;;  %v13050_v13 = vadd.f32 %v12934_v45, %v355_v10  ;;  %v11594_v47 = vld [vmem:[#allocation6 + $0x364] sm:$0xf]  ;;  %v9092_v10 = vor.u32 %v11562_v23, %v9089_v57  ;;  %v16125_v57 = vmax.f32 %v13053_v17, 0.0 }
 0x105   :  { %16119 = vst [vmem:[#allocation135_spill] sm:$0xff] %v13043_v16  ;;  %v15804_v11 = vmax.f32 %v13043_v16, 0.0 }
 0x106   :  { %2935 = vmatmul.bf16.gmra.mxu3 %v13030_v62  ;;  %v2711_v46 = vpop.f32.mrf.mxu2  ;;  %16121 = vst [vmem:[#allocation137_spill] sm:$0xff] %v13050_v13  ;;  %v9217_v62 = vld [vmem:[#allocation6 + $0x370] sm:$0xf0]  ;;  %3058 = vmatpush.bf16.msrb.mxu2 %v9092_v10  ;;  %v225_v10 = vld [vmem:[#allocation2 + $0x1f8] sm:$0xff] }
 0x107   :  { %v2712_v35 = vadd.f32 %v2711_v46, %v12845_v43  ;;  %v9220_v41 = vor.u32 %v11594_v47, %v9217_v62  ;;  %v16124_v46 = vmax.f32 %v13050_v13, 0.0 }
 0x108   :  { %v2640_v3 = vpop.f32.mrf.mxu0 }
 0x109   :  { %v2755_v28 = vpop.f32.mrf.mxu3  ;;  %v2684_v44 = vpop.f32.mrf.mxu1  ;;  %3102 = vmatpush.bf16.msrb.mxu3 %v9220_v41  ;;  %v13072_v47 = vpack.c.bf16 %v16125_v57, %v16124_v46  ;;  %v371_v41 = vmul.f32 %v12913_v36, %v225_v10 }
 0x10a   :  { %v2756_v12 = vadd.f32 %v2755_v28, %v2712_v35  ;;  %v13055_v29 = vadd.f32 %v2684_v44, %v2640_v3  ;;  %v13066_v3 = vpack.c.bf16 %v15803_v60, %v15804_v11  ;;  %v224_v44 = vld [vmem:[#allocation2 + $0x1f0] sm:$0xff]  ;;  %v386_v60 = vmul.f32 %v12903_v50, %v240_v61 }
 0x10b   :  { %16126 = vst [vmem:[#allocation140_spill] sm:$0xff] %v13072_v47  ;;  %v370_v16 = vmul.f32 %v12903_v50, %v224_v44  ;;  %v517_v57 = vadd.f32 %v12934_v45, %v371_v41 }
 0x10c   :  { %16123 = vst [vmem:[#allocation139_spill] sm:$0xff] %v13066_v3 }
 0x10d   :  { %v516_v46 = vadd.f32 %v12927_v27, %v370_v16  ;;  %v11558_v16 = vld [vmem:[#allocation6 + $0x244] sm:$0xf] }
 0x10e   :  { %v2713_v2 = vpop.f32.mrf.mxu2 }
 0x10f   :  { %v2714_v35 = vadd.f32 %v2713_v2, %v12880_v21  ;;  %v241_v2 = vld [vmem:[#allocation2 + $0x278] sm:$0xff]  ;;  %v644_v31 = vmax.f32 %v516_v46, 0.0 }
 0x110   :  { %v2799_v43 = vpop.f32.mrf.mxu0 }
 0x111   :  { %v2757_v28 = vpop.f32.mrf.mxu3  ;;  %v2800_v23 = vadd.f32 %v2799_v43, %v2756_v12  ;;  %v2843_v21 = vpop.f32.mrf.mxu1  ;;  %v387_v12 = vmul.f32 %v12913_v36, %v241_v2 }
 0x112   :  { %v2758_v62 = vadd.f32 %v2757_v28, %v2714_v35  ;;  %v13086_v35 = vadd.f32 %v12927_v27, %v386_v60  ;;  %v9073_v60 = vld [vmem:[#allocation6 + $0x250] sm:$0xf0] }
 0x113   :  { %v13076_v11 = vadd.f32 %v2843_v21, %v2800_v23  ;;  %2896 = vmatmul.bf16.gmra.mxu2 %v13066_v3  ;;  %2979 = vmatmul.bf16.gmra.mxu0 %v12362_v25  ;;  %v13091_v23 = vadd.f32 %v12934_v45, %v387_v12  ;;  %v9201_v25 = vld [vmem:[#allocation6 + $0x350] sm:$0xf0] }
 0x114   :  { %3023 = vmatmul.bf16.gmra.mxu1 %v12375_v54  ;;  %16127 = vst [vmem:[#allocation141_spill] sm:$0xff] %v13086_v35  ;;  %v15817_v2 = vmax.f32 %v13086_v35, 0.0  ;;  %v11590_v54 = vld [vmem:[#allocation6 + $0x344] sm:$0xf] }
 0x115   :  { %16128 = vst [vmem:[#allocation142_spill] sm:$0xff] %v13091_v23  ;;  %v9204_v41 = vor.u32 %v11590_v54, %v9201_v25  ;;  %v249_v54 = vld [vmem:[#allocation2 + $0x2b8] sm:$0xff] }
 0x116   :  { %2940 = vmatmul.bf16.gmra.mxu3 %v13072_v47  ;;  %v2716_v43 = vpop.f32.mrf.mxu2  ;;  %v645_v47 = vmax.f32 %v517_v57, 0.0  ;;  %v13100_v46 = vpack.c.bf16 %v15817_v2, %v644_v31  ;;  %v11586_v2 = vld [vmem:[#allocation6 + $0x324] sm:$0xf] }
 0x117   :  { %v2717_v61 = vadd.f32 %v2716_v43, %v12916_v38  ;;  %v15816_v38 = vmax.f32 %v13091_v23, 0.0  ;;  %v9076_v43 = vor.u32 %v11558_v16, %v9073_v60  ;;  %3103 = vmatpush.bf16.msrb.mxu3 %v9204_v41  ;;  %v257_v16 = vld [vmem:[#allocation2 + $0x2f8] sm:$0xff]  ;;  %v9185_v23 = vld [vmem:[#allocation6 + $0x330] sm:$0xf0] }
 0x118   :  { %v2801_v44 = vpop.f32.mrf.mxu0  ;;  %16129 = vst [vmem:[#allocation143_spill] sm:$0xff] %v13100_v46 }
 0x119   :  { %v2760_v28 = vpop.f32.mrf.mxu3  ;;  %v2802_v17 = vadd.f32 %v2801_v44, %v2758_v62  ;;  %v2845_v10 = vpop.f32.mrf.mxu1  ;;  %3059 = vmatpush.bf16.msrb.mxu2 %v9076_v43  ;;  %v256_v44 = vld [vmem:[#allocation2 + $0x2f0] sm:$0xff] }
 0x11a   :  { %v2761_v21 = vadd.f32 %v2760_v28, %v2717_v61  ;;  %v13104_v61 = vpack.c.bf16 %v15816_v38, %v645_v47  ;;  %v248_v28 = vld [vmem:[#allocation2 + $0x2b0] sm:$0xff]  ;;  %v402_v31 = vmul.f32 %v12903_v50, %v256_v44  ;;  %v403_v47 = vmul.f32 %v12913_v36, %v257_v16  ;;  %v11554_v16 = vld [vmem:[#allocation6 + $0x224] sm:$0xf] }
 0x11b   :  { %v13094_v13 = vadd.f32 %v2845_v10, %v2802_v17  ;;  %v9057_v38 = vld [vmem:[#allocation6 + $0x230] sm:$0xf0] }
 0x11c   :  { %16130 = vst [vmem:[#allocation144_spill] sm:$0xff] %v13104_v61  ;;  %v13127_v44 = vadd.f32 %v12934_v45, %v403_v47  ;;  %v9188_v47 = vor.u32 %v11586_v2, %v9185_v23  ;;  %v272_v23 = vld [vmem:[#allocation2 + $0x370] sm:$0xff] }
 0x11e   :  { %v2718_v3 = vpop.f32.mrf.mxu2  ;;  %16134 = vst [vmem:[#allocation148_spill] sm:$0xff] %v13127_v44  ;;  %v15824_v35 = vmax.f32 %v13127_v44, 0.0  ;;  %3104 = vmatpush.bf16.msrb.mxu3 %v9188_v47  ;;  %v273_v47 = vld [vmem:[#allocation2 + $0x378] sm:$0xff]  ;;  %v9537_v44 = vld [vmem:[#allocation6 + $0x5f0] sm:$0xf0] }
 0x11f   :  { %v2719_v12 = vadd.f32 %v2718_v3, %v12958_v32  ;;  %v394_v32 = vmul.f32 %v12903_v50, %v248_v28  ;;  %v395_v3 = vmul.f32 %v12913_v36, %v249_v54 }
 0x120   :  { %v2804_v17 = vpop.f32.mrf.mxu0 }
 0x121   :  { %v2762_v62 = vpop.f32.mrf.mxu3  ;;  %v2805_v10 = vadd.f32 %v2804_v17, %v2761_v21  ;;  %v2848_v25 = vpop.f32.mrf.mxu1  ;;  %v13124_v28 = vadd.f32 %v12934_v45, %v395_v3 }
 0x122   :  { %v2763_v57 = vadd.f32 %v2762_v62, %v2719_v12  ;;  %v13118_v12 = vadd.f32 %v12927_v27, %v394_v32  ;;  %v13121_v62 = vadd.f32 %v12927_v27, %v402_v31 }
 0x123   :  { %v13106_v60 = vadd.f32 %v2848_v25, %v2805_v10  ;;  %2901 = vmatmul.bf16.gmra.mxu2 %v13100_v46  ;;  %2984 = vmatmul.bf16.gmra.mxu0 %v12424_v19  ;;  %16133 = vst [vmem:[#allocation147_spill] sm:$0xff] %v13124_v28  ;;  %v15825_v3 = vmax.f32 %v13124_v28, 0.0  ;;  %v11638_v28 = vld [vmem:[#allocation6 + $0x4c4] sm:$0xf] }
 0x124   :  { %3028 = vmatmul.bf16.gmra.mxu1 %v12437_v51  ;;  %16131 = vst [vmem:[#allocation145_spill] sm:$0xff] %v13118_v12  ;;  %v15823_v32 = vmax.f32 %v13118_v12, 0.0  ;;  %v15822_v31 = vmax.f32 %v13121_v62, 0.0  ;;  %v11642_v12 = vld [vmem:[#allocation6 + $0x4e4] sm:$0xf] }
 0x125   :  { %16132 = vst [vmem:[#allocation146_spill] sm:$0xff] %v13121_v62  ;;  %v9409_v62 = vld [vmem:[#allocation6 + $0x4f0] sm:$0xf0] }
 0x126   :  { %2945 = vmatmul.bf16.gmra.mxu3 %v13104_v61  ;;  %v2721_v21 = vpop.f32.mrf.mxu2  ;;  %v9505_v61 = vld [vmem:[#allocation6 + $0x5b0] sm:$0xf0] }
 0x127   :  { %v2722_v43 = vadd.f32 %v2721_v21, %v12988_v9  ;;  %v9060_v9 = vor.u32 %v11554_v16, %v9057_v38  ;;  %v13140_v38 = vpack.c.bf16 %v15822_v31, %v15823_v32  ;;  %v418_v32 = vmul.f32 %v12903_v50, %v272_v23  ;;  %v9393_v23 = vld [vmem:[#allocation6 + $0x4d0] sm:$0xf0] }
 0x128   :  { %v2806_v17 = vpop.f32.mrf.mxu0 }
 0x129   :  { %v2765_v41 = vpop.f32.mrf.mxu3  ;;  %v2807_v25 = vadd.f32 %v2806_v17, %v2763_v57  ;;  %v2850_v54 = vpop.f32.mrf.mxu1  ;;  %3060 = vmatpush.bf16.msrb.mxu2 %v9060_v9  ;;  %16135 = vst [vmem:[#allocation149_spill] sm:$0xff] %v13140_v38  ;;  %v264_v17 = vld [vmem:[#allocation2 + $0x330] sm:$0xff] }
 0x12a   :  { %v2766_v10 = vadd.f32 %v2765_v41, %v2722_v43 }
 0x12b   :  { %v13129_v21 = vadd.f32 %v2850_v54, %v2807_v25  ;;  %v13146_v54 = vpack.c.bf16 %v15824_v35, %v15825_v3  ;;  %v9412_v35 = vor.u32 %v11642_v12, %v9409_v62  ;;  %v11674_v3 = vld [vmem:[#allocation6 + $0x5e4] sm:$0xf] }
 0x12c   :  { %v11670_v12 = vld [vmem:[#allocation6 + $0x5c4] sm:$0xf] }
 0x12d   :  { %16136 = vst [vmem:[#allocation150_spill] sm:$0xff] %v13146_v54  ;;  %3142 = vmatpush.bf16.msrb.mxu0 %v9412_v35 }
 0x12e   :  { %v2723_v43 = vpop.f32.mrf.mxu2 }
 0x12f   :  { %v2724_v57 = vadd.f32 %v2723_v43, %v13012_v7  ;;  %v265_v7 = vld [vmem:[#allocation2 + $0x338] sm:$0xff]  ;;  %v410_v43 = vmul.f32 %v12903_v50, %v264_v17  ;;  %v11550_v17 = vld [vmem:[#allocation6 + $0x204] sm:$0xf] }
 0x130   :  { %v2809_v25 = vpop.f32.mrf.mxu0 }
 0x131   :  { %v2767_v41 = vpop.f32.mrf.mxu3  ;;  %v2810_v16 = vadd.f32 %v2809_v25, %v2766_v10  ;;  %v2853_v9 = vpop.f32.mrf.mxu1  ;;  %v411_v10 = vmul.f32 %v12913_v36, %v265_v7  ;;  %v9041_v25 = vld [vmem:[#allocation6 + $0x210] sm:$0xf0]  ;;  %v13163_v7 = vadd.f32 %v12927_v27, %v418_v32  ;;  %v11634_v32 = vld [vmem:[#allocation6 + $0x4a4] sm:$0xf] }
 0x132   :  { %v2768_v2 = vadd.f32 %v2767_v41, %v2724_v57  ;;  %v419_v57 = vmul.f32 %v12913_v36, %v273_v47  ;;  %v9540_v41 = vor.u32 %v11674_v3, %v9537_v44  ;;  %v9396_v44 = vor.u32 %v11638_v28, %v9393_v23  ;;  %v9521_v3 = vld [vmem:[#allocation6 + $0x5d0] sm:$0xf0]  ;;  %v11666_v28 = vld [vmem:[#allocation6 + $0x5a4] sm:$0xf] }
 0x133   :  { %v13149_v31 = vadd.f32 %v2853_v9, %v2810_v16  ;;  %2906 = vmatmul.bf16.gmra.mxu2 %v13140_v38  ;;  %2989 = vmatmul.bf16.gmra.mxu0 %v12492_v26  ;;  %v9044_v16 = vor.u32 %v11550_v17, %v9041_v25  ;;  %16138 = vst [vmem:[#allocation152_spill] sm:$0xff] %v13163_v7  ;;  %v15841_v51 = vmax.f32 %v13163_v7, 0.0 }
 0x134   :  { %3033 = vmatmul.bf16.gmra.mxu1 %v12505_v59  ;;  %v13166_v35 = vadd.f32 %v12934_v45, %v411_v10  ;;  %v9524_v17 = vor.u32 %v11670_v12, %v9521_v3  ;;  %v11582_v59 = vld [vmem:[#allocation6 + $0x304] sm:$0xf]  ;;  %3143 = vmatpush.bf16.msrb.mxu0 %v9396_v44  ;;  %v9508_v12 = vor.u32 %v11666_v28, %v9505_v61  ;;  %v9361_v44 = vld [vmem:[#allocation6 + $0x490] sm:$0xf0] }
 0x135   :  { %3186 = vmatpush.bf16.msrb.mxu1 %v9540_v41  ;;  %3061 = vmatpush.bf16.msrb.mxu2 %v9044_v16  ;;  %v13169_v41 = vadd.f32 %v12934_v45, %v419_v57  ;;  %v9377_v16 = vld [vmem:[#allocation6 + $0x4b0] sm:$0xf0]  ;;  %v11662_v3 = vld [vmem:[#allocation6 + $0x584] sm:$0xf] }
 0x136   :  { %2950 = vmatmul.bf16.gmra.mxu3 %v13146_v54  ;;  %v2726_v9 = vpop.f32.mrf.mxu2  ;;  %v13160_v54 = vadd.f32 %v12927_v27, %v410_v43  ;;  %16139 = vst [vmem:[#allocation153_spill] sm:$0xff] %v13166_v35  ;;  %v9169_v43 = vld [vmem:[#allocation6 + $0x310] sm:$0xf0]  ;;  %v9380_v57 = vor.u32 %v11634_v32, %v9377_v16 }
 0x137   :  { %v2727_v62 = vadd.f32 %v2726_v9, %v13032_v18  ;;  %16140 = vst [vmem:[#allocation154_spill] sm:$0xff] %v13169_v41  ;;  %v9172_v38 = vor.u32 %v11582_v59, %v9169_v43  ;;  %v9489_v32 = vld [vmem:[#allocation6 + $0x590] sm:$0xf0] }
 0x138   :  { %16137 = vst [vmem:[#allocation151_spill] sm:$0xff] %v13160_v54  ;;  %v2811_v47 = vpop.f32.mrf.mxu0  ;;  %v15842_v10 = vmax.f32 %v13160_v54, 0.0  ;;  %3144 = vmatpush.bf16.msrb.mxu0 %v9380_v57  ;;  %v288_v16 = vld [vmem:[#allocation2 + $0x3f0] sm:$0xff]  ;;  %v9492_v28 = vor.u32 %v11662_v3, %v9489_v32  ;;  %v289_v54 = vld [vmem:[#allocation2 + $0x3f8] sm:$0xff] }
 0x139   :  { %v2770_v26 = vpop.f32.mrf.mxu3  ;;  %v2812_v18 = vadd.f32 %v2811_v47, %v2768_v2  ;;  %v2855_v9 = vpop.f32.mrf.mxu1  ;;  %3187 = vmatpush.bf16.msrb.mxu1 %v9524_v17  ;;  %v15844_v2 = vmax.f32 %v13169_v41, 0.0  ;;  %3105 = vmatpush.bf16.msrb.mxu3 %v9172_v38  ;;  %v434_v3 = vmul.f32 %v12903_v50, %v288_v16  ;;  %v9665_v32 = vld [vmem:[#allocation6 + $0x6f0] sm:$0xf0] }
 0x13a   :  { %v2771_v25 = vadd.f32 %v2770_v26, %v2727_v62  ;;  %v15845_v26 = vmax.f32 %v13166_v35, 0.0  ;;  %v11630_v62 = vld [vmem:[#allocation6 + $0x484] sm:$0xf] }
 0x13b   :  { %v13171_v23 = vadd.f32 %v2855_v9, %v2812_v18  ;;  %v13182_v18 = vpack.c.bf16 %v15841_v51, %v15842_v10  ;;  %v280_v9 = vld [vmem:[#allocation2 + $0x3b0] sm:$0xff]  ;;  %v9364_v43 = vor.u32 %v11630_v62, %v9361_v44  ;;  %v11626_v62 = vld [vmem:[#allocation6 + $0x464] sm:$0xf] }
 0x13c   :  { %v13188_v61 = vpack.c.bf16 %v15844_v2, %v15845_v26  ;;  %v426_v51 = vmul.f32 %v12903_v50, %v280_v9  ;;  %v9345_v44 = vld [vmem:[#allocation6 + $0x470] sm:$0xf0]  ;;  %v11658_v10 = vld [vmem:[#allocation6 + $0x564] sm:$0xf]  ;;  %v435_v9 = vmul.f32 %v12913_v36, %v289_v54  ;;  %v580_v54 = vadd.f32 %v12927_v27, %v434_v3 }
 0x13d   :  { %3188 = vmatpush.bf16.msrb.mxu1 %v9508_v12  ;;  %3145 = vmatpush.bf16.msrb.mxu0 %v9364_v43  ;;  %v11706_v43 = vld [vmem:[#allocation6 + $0x6e4] sm:$0xf] }
 0x13e   :  { %v2728_v59 = vpop.f32.mrf.mxu2  ;;  %v11654_v26 = vld [vmem:[#allocation6 + $0x544] sm:$0xf] }
 0x13f   :  { %v2729_v47 = vadd.f32 %v2728_v59, %v13055_v29  ;;  %v281_v59 = vld [vmem:[#allocation2 + $0x3b8] sm:$0xff] }
 0x140   :  { %v2814_v38 = vpop.f32.mrf.mxu0 }
 0x141   :  { %v2772_v17 = vpop.f32.mrf.mxu3  ;;  %v2815_v57 = vadd.f32 %v2814_v38, %v2771_v25  ;;  %v2858_v12 = vpop.f32.mrf.mxu1  ;;  %3189 = vmatpush.bf16.msrb.mxu1 %v9492_v28  ;;  %v9473_v25 = vld [vmem:[#allocation6 + $0x570] sm:$0xf0]  ;;  %v11738_v28 = vld [vmem:[#allocation6 + $0x7e4] sm:$0xf] }
 0x142   :  { %v2773_v29 = vadd.f32 %v2772_v17, %v2729_v47  ;;  %v9348_v47 = vor.u32 %v11626_v62, %v9345_v44  ;;  %v427_v17 = vmul.f32 %v12913_v36, %v281_v59  ;;  %v9476_v38 = vor.u32 %v11658_v10, %v9473_v25  ;;  %v11622_v62 = vld [vmem:[#allocation6 + $0x444] sm:$0xf]  ;;  %v9329_v44 = vld [vmem:[#allocation6 + $0x450] sm:$0xf0] }
 0x143   :  { %v13191_v7 = vadd.f32 %v2858_v12, %v2815_v57  ;;  %2911 = vmatmul.bf16.gmra.mxu2 %v13182_v18  ;;  %2994 = vmatmul.bf16.gmra.mxu0 %v12300_v42  ;;  %v9668_v57 = vor.u32 %v11706_v43, %v9665_v32  ;;  %v9793_v12 = vld [vmem:[#allocation6 + $0x7f0] sm:$0xf0]  ;;  %v13202_v59 = vadd.f32 %v12927_v27, %v426_v51  ;;  %v11618_v51 = vld [vmem:[#allocation6 + $0x424] sm:$0xf] }
 0x144   :  { %3038 = vmatmul.bf16.gmra.mxu1 %v12312_v48  ;;  %3146 = vmatpush.bf16.msrb.mxu0 %v9348_v47  ;;  %v9796_v16 = vor.u32 %v11738_v28, %v9793_v12  ;;  %v9332_v10 = vor.u32 %v11622_v62, %v9329_v44  ;;  %v9457_v25 = vld [vmem:[#allocation6 + $0x550] sm:$0xf0]  ;;  %v13206_v47 = vadd.f32 %v12934_v45, %v427_v17  ;;  %v11650_v36 = vld [vmem:[#allocation6 + $0x524] sm:$0xf]  ;;  %v708_v62 = vmax.f32 %v580_v54, 0.0 }
 0x145   :  { %3190 = vmatpush.bf16.msrb.mxu1 %v9476_v38  ;;  %16141 = vst [vmem:[#allocation155_spill] sm:$0xff] %v13202_v59  ;;  %3230 = vmatpush.bf16.msra.mxu2 %v9668_v57  ;;  %v581_v32 = vadd.f32 %v12934_v45, %v435_v9  ;;  %v9460_v38 = vor.u32 %v11654_v26, %v9457_v25  ;;  %v15853_v57 = vmax.f32 %v13202_v59, 0.0  ;;  %v9441_v17 = vld [vmem:[#allocation6 + $0x530] sm:$0xf0]  ;;  %v9015_v59 = vld [vmem:[#allocation6 + $0x1c8] sm:$0xf] }
 0x146   :  { %2955 = vmatmul.bf16.gmra.mxu3 %v13188_v61  ;;  %v2731_v2 = vpop.f32.mrf.mxu2  ;;  %16142 = vst [vmem:[#allocation156_spill] sm:$0xff] %v13206_v47  ;;  %v15852_v27 = vmax.f32 %v13206_v47, 0.0  ;;  %v9297_v26 = vld [vmem:[#allocation6 + $0x410] sm:$0xf0]  ;;  %v11517_v47 = vld [vmem:[#allocation6 + $0xf4] sm:$0xf0] }
 0x147   :  { %v2732_v41 = vadd.f32 %v2731_v2, %v12873_v63  ;;  %3274 = vmatpush.bf16.msra.mxu3 %v9796_v16  ;;  %v9313_v2 = vld [vmem:[#allocation6 + $0x430] sm:$0xf0]  ;;  %v709_v9 = vmax.f32 %v581_v32, 0.0  ;;  %v9444_v16 = vor.u32 %v11650_v36, %v9441_v17 }
 0x148   :  { %v2816_v43 = vpop.f32.mrf.mxu0  ;;  %3147 = vmatpush.bf16.msrb.mxu0 %v9332_v10  ;;  %v9316_v44 = vor.u32 %v11618_v51, %v9313_v2 }
 0x149   :  { %v2775_v35 = vpop.f32.mrf.mxu3  ;;  %v2817_v12 = vadd.f32 %v2816_v43, %v2773_v29  ;;  %v2860_v63 = vpop.f32.mrf.mxu1  ;;  %3191 = vmatpush.bf16.msrb.mxu1 %v9460_v38  ;;  %v11646_v29 = vld [vmem:[#allocation6 + $0x504] sm:$0xf]  ;;  %v13216_v43 = vpack.c.bf16 %v708_v62, %v15853_v57  ;;  %v9425_v38 = vld [vmem:[#allocation6 + $0x510] sm:$0xf0]  ;;  %v13220_v32 = vpack.c.bf16 %v709_v9, %v15852_v27  ;;  %v8903_v57 = vld [vmem:[#allocation6 + $0xe8] sm:$0xf] }
 0x14a   :  { %v2776_v28 = vadd.f32 %v2775_v35, %v2732_v41  ;;  %v11614_v41 = vld [vmem:[#allocation6 + $0x404] sm:$0xf]  ;;  %v9428_v36 = vor.u32 %v11646_v29, %v9425_v38  ;;  %v9649_v62 = vld [vmem:[#allocation6 + $0x6d0] sm:$0xf0] }
 0x14b   :  { %v13209_v3 = vadd.f32 %v2860_v63, %v2817_v12  ;;  %v9300_v54 = vor.u32 %v11614_v41, %v9297_v26  ;;  %v11734_v9 = vld [vmem:[#allocation6 + $0x7c4] sm:$0xf] }
 0x14c   :  { %3148 = vmatpush.bf16.msrb.mxu0 %v9316_v44 }
 0x14d   :  { %3192 = vmatpush.bf16.msrb.mxu1 %v9444_v16  ;;  %v9777_v16 = vld [vmem:[#allocation6 + $0x7d0] sm:$0xf0] }
 0x14e   :  { %v2733_v35 = vpop.f32.mrf.mxu2 }
 0x14f   :  { %v2734_v10 = vadd.f32 %v2733_v35, %v12905_v5  ;;  %v11702_v5 = vld [vmem:[#allocation6 + $0x6c4] sm:$0xf]  ;;  %v9780_v35 = vor.u32 %v11734_v9, %v9777_v16 }
 0x150   :  { %v2819_v12 = vpop.f32.mrf.mxu0  ;;  %3149 = vmatpush.bf16.msrb.mxu0 %v9300_v54  ;;  %v9652_v17 = vor.u32 %v11702_v5, %v9649_v62  ;;  %v11698_v16 = vld [vmem:[#allocation6 + $0x6a4] sm:$0xf] }
 0x151   :  { %v2777_v25 = vpop.f32.mrf.mxu3  ;;  %v2820_v51 = vadd.f32 %v2819_v12, %v2776_v28  ;;  %v2863_v2 = vpop.f32.mrf.mxu1  ;;  %3193 = vmatpush.bf16.msrb.mxu1 %v9428_v36  ;;  %3275 = vmatpush.bf16.msra.mxu3 %v9780_v35 }
 0x152   :  { %v2778_v63 = vadd.f32 %v2777_v25, %v2734_v10  ;;  %3231 = vmatpush.bf16.msra.mxu2 %v9652_v17  ;;  %v9633_v17 = vld [vmem:[#allocation6 + $0x6b0] sm:$0xf0] }
 0x153   :  { %v13222_v44 = vadd.f32 %v2863_v2, %v2820_v51  ;;  %2916 = vmatmul.bf16.gmra.mxu2 %v13216_v43  ;;  %2999 = vmatmul.bf16.gmra.mxu0 %v12368_v49  ;;  %v9636_v27 = vor.u32 %v11698_v16, %v9633_v17 }
 0x154   :  { %3043 = vmatmul.bf16.gmra.mxu1 %v12381_v55 }
 0x156   :  { %2960 = vmatmul.bf16.gmra.mxu3 %v13220_v32  ;;  %v2736_v28 = vpop.f32.mrf.mxu2  ;;  %3232 = vmatpush.bf16.msra.mxu2 %v9636_v27 }
 0x157   :  { %v2737_v41 = vadd.f32 %v2736_v28, %v12949_v6  ;;  %v11730_v6 = vld [vmem:[#allocation6 + $0x7a4] sm:$0xf]  ;;  %v9761_v28 = vld [vmem:[#allocation6 + $0x7b0] sm:$0xf0] }
 0x158   :  { %v2821_v29 = vpop.f32.mrf.mxu0 }
 0x159   :  { %v2780_v26 = vpop.f32.mrf.mxu3  ;;  %v2822_v25 = vadd.f32 %v2821_v29, %v2778_v63  ;;  %v2865_v54 = vpop.f32.mrf.mxu1  ;;  %v9764_v63 = vor.u32 %v11730_v6, %v9761_v28 }
 0x15a   :  { %v2781_v10 = vadd.f32 %v2780_v26, %v2737_v41 }
 0x15b   :  { %v13229_v38 = vadd.f32 %v2865_v54, %v2822_v25  ;;  %3276 = vmatpush.bf16.msra.mxu3 %v9764_v63  ;;  %v9745_v63 = vld [vmem:[#allocation6 + $0x790] sm:$0xf0] }
 0x15e   :  { %v2738_v12 = vpop.f32.mrf.mxu2 }
 0x15f   :  { %v2739_v36 = vadd.f32 %v2738_v12, %v12976_v34  ;;  %v11694_v12 = vld [vmem:[#allocation6 + $0x684] sm:$0xf] }
 0x160   :  { %v2824_v2 = vpop.f32.mrf.mxu0 }
 0x161   :  { %v2782_v51 = vpop.f32.mrf.mxu3  ;;  %v2825_v62 = vadd.f32 %v2824_v2, %v2781_v10  ;;  %v2868_v9 = vpop.f32.mrf.mxu1 }
 0x162   :  { %v2783_v5 = vadd.f32 %v2782_v51, %v2739_v36  ;;  %v9617_v36 = vld [vmem:[#allocation6 + $0x690] sm:$0xf0] }
 0x163   :  { %v13232_v35 = vadd.f32 %v2868_v9, %v2825_v62  ;;  %3004 = vmatmul.bf16.gmra.mxu0 %v12428_v24  ;;  %3062 = vmatmul.bf16.vlgmr.msrb.gmra.mxu2 %v12498_v58  ;;  %v9620_v2 = vor.u32 %v11694_v12, %v9617_v36  ;;  %v11690_v12 = vld [vmem:[#allocation6 + $0x664] sm:$0xf]  ;;  %v9601_v36 = vld [vmem:[#allocation6 + $0x670] sm:$0xf0] }
 0x164   :  { %3048 = vmatmul.bf16.gmra.mxu1 %v12441_v15 }
 0x165   :  { %3233 = vmatpush.bf16.msra.mxu2 %v9620_v2  ;;  %v11722_v2 = vld [vmem:[#allocation6 + $0x764] sm:$0xf] }
 0x166   :  { %3106 = vmatmul.bf16.vlgmr.msrb.gmra.mxu3 %v12511_v37  ;;  %v2741_v34 = vpop.f32.mrf.mxu2 }
 0x167   :  { %v2742_v41 = vadd.f32 %v2741_v34, %v13004_v39  ;;  %v11726_v39 = vld [vmem:[#allocation6 + $0x784] sm:$0xf] }
 0x168   :  { %v2826_v29 = vpop.f32.mrf.mxu0  ;;  %v9748_v34 = vor.u32 %v11726_v39, %v9745_v63 }
 0x169   :  { %v2785_v26 = vpop.f32.mrf.mxu3  ;;  %v2827_v25 = vadd.f32 %v2826_v29, %v2783_v5  ;;  %v2870_v54 = vpop.f32.mrf.mxu1 }
 0x16a   :  { %v2786_v10 = vadd.f32 %v2785_v26, %v2742_v41  ;;  %3277 = vmatpush.bf16.msra.mxu3 %v9748_v34 }
 0x16b   :  { %v13239_v51 = vadd.f32 %v2870_v54, %v2827_v25 }
 0x16e   :  { %v2743_v62 = vpop.f32.mrf.mxu2 }
 0x16f   :  { %v2744_v9 = vadd.f32 %v2743_v62, %v13024_v1 }
 0x170   :  { %v2829_v27 = vpop.f32.mrf.mxu0 }
 0x171   :  { %v2787_v16 = vpop.f32.mrf.mxu3  ;;  %v2830_v6 = vadd.f32 %v2829_v27, %v2786_v10  ;;  %v2873_v28 = vpop.f32.mrf.mxu1 }
 0x172   :  { %v2788_v17 = vadd.f32 %v2787_v16, %v2744_v9  ;;  %v9604_v9 = vor.u32 %v11690_v12, %v9601_v36  ;;  %v9729_v16 = vld [vmem:[#allocation6 + $0x770] sm:$0xf0]  ;;  %v11686_v12 = vld [vmem:[#allocation6 + $0x644] sm:$0xf] }
 0x173   :  { %v13242_v41 = vadd.f32 %v2873_v28, %v2830_v6  ;;  %3067 = vmatmul.bf16.gmra.mxu2 %v12570_v52  ;;  %3150 = vmatmul.bf16.vlgmr.msrb.gmra.mxu0 %v12576_v4  ;;  %v9732_v27 = vor.u32 %v11722_v2, %v9729_v16  ;;  %v9585_v36 = vld [vmem:[#allocation6 + $0x650] sm:$0xf0]  ;;  %v11718_v2 = vld [vmem:[#allocation6 + $0x744] sm:$0xf] }
 0x174   :  { %3194 = vmatmul.bf16.vlgmr.msrb.gmra.mxu1 %v12588_v53  ;;  %3234 = vmatpush.bf16.msra.mxu2 %v9604_v9  ;;  %v9588_v9 = vor.u32 %v11686_v12, %v9585_v36  ;;  %v9713_v16 = vld [vmem:[#allocation6 + $0x750] sm:$0xf0]  ;;  %v11682_v36 = vld [vmem:[#allocation6 + $0x624] sm:$0xf] }
 0x175   :  { %3278 = vmatpush.bf16.msra.mxu3 %v9732_v27  ;;  %v9716_v27 = vor.u32 %v11718_v2, %v9713_v16  ;;  %v9569_v2 = vld [vmem:[#allocation6 + $0x630] sm:$0xf0] }
 0x176   :  { %3111 = vmatmul.bf16.gmra.mxu3 %v12582_v22  ;;  %v2887_v1 = vpop.f32.mrf.mxu2  ;;  %v9572_v16 = vor.u32 %v11682_v36, %v9569_v2  ;;  %v16150_v36 = vld [vmem:[#allocation90_spill] sm:$0xff]  ;;  %v8904_v2 = vor.u32 %v11517_v47, %v8903_v57  ;;  %v11545_v57 = vld [vmem:[#allocation6 + $0x1d4] sm:$0xf0] }
 0x177   :  { %v2888_v5 = vadd.f32 %v2887_v1, %v13076_v11 }
 0x178   :  { %v2831_v29 = vpop.f32.mrf.mxu0  ;;  %3235 = vmatpush.bf16.msra.mxu2 %v9588_v9  ;;  %3318 = vmatpush.bf16.msra.mxu0 %v8904_v2 }
 0x179   :  { %v2931_v26 = vpop.f32.mrf.mxu3  ;;  %v2832_v25 = vadd.f32 %v2831_v29, %v2788_v17  ;;  %v2875_v54 = vpop.f32.mrf.mxu1  ;;  %3279 = vmatpush.bf16.msra.mxu3 %v9716_v27  ;;  %v11714_v27 = vld [vmem:[#allocation6 + $0x724] sm:$0xf] }
 0x17a   :  { %v13249_v10 = vadd.f32 %v2931_v26, %v2888_v5 }
 0x17b   :  { %v13251_v62 = vadd.f32 %v2875_v54, %v2832_v25 }
 0x17c   :  { %16143 = vst [vmem:[#allocation157_spill] sm:$0xff] %v13249_v10  ;;  %3236 = vmatpush.bf16.msra.mxu2 %v9572_v16  ;;  %v11549_v16 = vld [vmem:[#allocation6 + $0x1f4] sm:$0xf0] }
 0x17e   :  { %v2889_v6 = vpop.f32.mrf.mxu2 }
 0x17f   :  { %v2890_v28 = vadd.f32 %v2889_v6, %v13094_v13 }
 0x180   :  { %v2975_v39 = vpop.f32.mrf.mxu0 }
 0x181   :  { %v2933_v11 = vpop.f32.mrf.mxu3  ;;  %v3019_v34 = vpop.f32.mrf.mxu1 }
 0x182   :  { %v13254_v63 = vadd.f32 %v2933_v11, %v2890_v28  ;;  %v13256_v17 = vadd.f32 %v3019_v34, %v2975_v39 }
 0x183   :  { %3072 = vmatmul.bf16.gmra.mxu2 %v12638_v56  ;;  %3155 = vmatmul.bf16.gmra.mxu0 %v12644_v0 }
 0x184   :  { %16144 = vst [vmem:[#allocation158_spill] sm:$0xff] %v13254_v63  ;;  %3199 = vmatmul.bf16.gmra.mxu1 %v12656_v14  ;;  %v8999_v63 = vld [vmem:[#allocation6 + $0x1a8] sm:$0xf] }
 0x186   :  { %3116 = vmatmul.bf16.gmra.mxu3 %v12650_v40  ;;  %v2892_v1 = vpop.f32.mrf.mxu2 }
 0x187   :  { %v2893_v5 = vadd.f32 %v2892_v1, %v13106_v60 }
 0x188   :  { %v2977_v13 = vpop.f32.mrf.mxu0 }
 0x189   :  { %v2936_v26 = vpop.f32.mrf.mxu3  ;;  %v3021_v25 = vpop.f32.mrf.mxu1 }
 0x18a   :  { %v13263_v29 = vadd.f32 %v2936_v26, %v2893_v5  ;;  %v13265_v54 = vadd.f32 %v3021_v25, %v2977_v13 }
 0x18c   :  { %16145 = vst [vmem:[#allocation159_spill] sm:$0xff] %v13263_v29  ;;  %v9681_v29 = vld [vmem:[#allocation6 + $0x710] sm:$0xf0] }
 0x18e   :  { %v2894_v6 = vpop.f32.mrf.mxu2 }
 0x18f   :  { %v2895_v28 = vadd.f32 %v2894_v6, %v13129_v21  ;;  %v9697_v6 = vld [vmem:[#allocation6 + $0x730] sm:$0xf0] }
 0x190   :  { %v2980_v60 = vpop.f32.mrf.mxu0 }
 0x191   :  { %v2938_v11 = vpop.f32.mrf.mxu3  ;;  %v3024_v34 = vpop.f32.mrf.mxu1 }
 0x192   :  { %v13268_v39 = vadd.f32 %v2938_v11, %v2895_v28  ;;  %v13270_v1 = vadd.f32 %v3024_v34, %v2980_v60  ;;  %v9700_v28 = vor.u32 %v11714_v27, %v9697_v6  ;;  %v16151_v27 = vld [vmem:[#allocation91_spill] sm:$0xff]  ;;  %v16152_v6 = vld [vmem:[#allocation92_spill] sm:$0xff] }
 0x193   :  { %3077 = vmatmul.bf16.gmra.mxu2 %v12698_v33  ;;  %3160 = vmatmul.bf16.gmra.mxu0 %v12704_v30 }
 0x194   :  { %16146 = vst [vmem:[#allocation160_spill] sm:$0xff] %v13268_v39  ;;  %3204 = vmatmul.bf16.gmra.mxu1 %v12714_v20  ;;  %3280 = vmatpush.bf16.msra.mxu3 %v9700_v28  ;;  %v11678_v28 = vld [vmem:[#allocation6 + $0x604] sm:$0xf] }
 0x196   :  { %3121 = vmatmul.bf16.gmra.mxu3 %v12708_v8  ;;  %v2897_v5 = vpop.f32.mrf.mxu2 }
 0x197   :  { %v2898_v26 = vadd.f32 %v2897_v5, %v13149_v31 }
 0x198   :  { %v2982_v21 = vpop.f32.mrf.mxu0 }
 0x199   :  { %v2941_v13 = vpop.f32.mrf.mxu3  ;;  %v3026_v12 = vpop.f32.mrf.mxu1 }
 0x19a   :  { %v13277_v25 = vadd.f32 %v2941_v13, %v2898_v26  ;;  %v13279_v9 = vadd.f32 %v3026_v12, %v2982_v21  ;;  %v9031_v21 = vld [vmem:[#allocation6 + $0x1e8] sm:$0xf]  ;;  %v16149_v12 = vld [vmem:[#allocation89_spill] sm:$0xff] }
 0x19c   :  { %16147 = vst [vmem:[#allocation161_spill] sm:$0xff] %v13277_v25  ;;  %v9016_v25 = vor.u32 %v11545_v57, %v9015_v59  ;;  %v8983_v59 = vld [vmem:[#allocation6 + $0x188] sm:$0xf]  ;;  %v11537_v57 = vld [vmem:[#allocation6 + $0x194] sm:$0xf0] }
 0x19e   :  { %v2899_v11 = vpop.f32.mrf.mxu2 }
 0x19f   :  { %v2900_v60 = vadd.f32 %v2899_v11, %v13171_v23  ;;  %v9032_v23 = vor.u32 %v11549_v16, %v9031_v21  ;;  %v9553_v11 = vld [vmem:[#allocation6 + $0x610] sm:$0xf0]  ;;  %v11710_v16 = vld [vmem:[#allocation6 + $0x704] sm:$0xf] }
 0x1a0   :  { %v2985_v31 = vpop.f32.mrf.mxu0 }
 0x1a1   :  { %v2943_v34 = vpop.f32.mrf.mxu3  ;;  %v3029_v26 = vpop.f32.mrf.mxu1  ;;  %3362 = vmatpush.bf16.msra.mxu1 %v9032_v23  ;;  %v9684_v23 = vor.u32 %v11710_v16, %v9681_v29 }
 0x1a2   :  { %v13282_v5 = vadd.f32 %v2943_v34, %v2900_v60  ;;  %v13284_v13 = vadd.f32 %v3029_v26, %v2985_v31  ;;  %v9556_v60 = vor.u32 %v11678_v28, %v9553_v11  ;;  %v8887_v31 = vld [vmem:[#allocation6 + $0xc8] sm:$0xf]  ;;  %v11513_v26 = vld [vmem:[#allocation6 + $0xd4] sm:$0xf0] }
 0x1a3   :  { %3082 = vmatmul.bf16.gmra.mxu2 %v16149_v12  ;;  %3165 = vmatmul.bf16.gmra.mxu0 %v16150_v36  ;;  %v8888_v47 = vor.u32 %v11513_v26, %v8887_v31  ;;  %v8871_v28 = vld [vmem:[#allocation6 + $0xa8] sm:$0xf]  ;;  %v11509_v11 = vld [vmem:[#allocation6 + $0xb4] sm:$0xf0] }
 0x1a4   :  { %16148 = vst [vmem:[#allocation162_spill] sm:$0xff] %v13282_v5  ;;  %3209 = vmatmul.bf16.gmra.mxu1 %v16152_v6  ;;  %3237 = vmatpush.bf16.msra.mxu2 %v9556_v60 }
 0x1a5   :  { %3319 = vmatpush.bf16.msra.mxu0 %v8888_v47  ;;  %3363 = vmatpush.bf16.msra.mxu1 %v9016_v25  ;;  %v8984_v25 = vor.u32 %v11537_v57, %v8983_v59  ;;  %v11581_v59 = vld [vmem:[#allocation6 + $0x2f4] sm:$0xf0] }
 0x1a6   :  { %3126 = vmatmul.bf16.gmra.mxu3 %v16151_v27  ;;  %v2902_v34 = vpop.f32.mrf.mxu2  ;;  %v11613_v57 = vld [vmem:[#allocation6 + $0x3f4] sm:$0xf0] }
 0x1a7   :  { %v2903_v45 = vadd.f32 %v2902_v34, %v13191_v7  ;;  %v8872_v7 = vor.u32 %v11509_v11, %v8871_v28  ;;  %v11541_v34 = vld [vmem:[#allocation6 + $0x1b4] sm:$0xf0]  ;;  %3281 = vmatpush.bf16.msra.mxu3 %v9684_v23  ;;  %v8967_v11 = vld [vmem:[#allocation6 + $0x168] sm:$0xf] }
 0x1a8   :  { %v2987_v5 = vpop.f32.mrf.mxu0  ;;  %v9000_v60 = vor.u32 %v11541_v34, %v8999_v63  ;;  %v8839_v63 = vld [vmem:[#allocation6 + $0x68] sm:$0xf]  ;;  %v11501_v23 = vld [vmem:[#allocation6 + $0x74] sm:$0xf0] }
 0x1a9   :  { %v2946_v50 = vpop.f32.mrf.mxu3  ;;  %v3031_v21 = vpop.f32.mrf.mxu1  ;;  %3320 = vmatpush.bf16.msra.mxu0 %v8872_v7  ;;  %v16155_v7 = vld [vmem:[#allocation101_spill] sm:$0xff]  ;;  %v16156_v34 = vld [vmem:[#allocation102_spill] sm:$0xff] }
 0x1aa   :  { %v13291_v39 = vadd.f32 %v2946_v50, %v2903_v45  ;;  %v13293_v2 = vadd.f32 %v3031_v21, %v2987_v5  ;;  %3364 = vmatpush.bf16.msra.mxu1 %v9000_v60  ;;  %v8855_v50 = vld [vmem:[#allocation6 + $0x88] sm:$0xf]  ;;  %v11505_v45 = vld [vmem:[#allocation6 + $0x94] sm:$0xf0] }
 0x1ab   :  { %v8856_v5 = vor.u32 %v11505_v45, %v8855_v50  ;;  %v11533_v60 = vld [vmem:[#allocation6 + $0x174] sm:$0xf0]  ;;  %v9159_v45 = vld [vmem:[#allocation6 + $0x2e8] sm:$0xf] }
 0x1ac   :  { %16153 = vst [vmem:[#allocation89_spill] sm:$0xff] %v13291_v39  ;;  %v16158_v50 = vld [vmem:[#allocation104_spill] sm:$0xff]  ;;  %v8951_v39 = vld [vmem:[#allocation6 + $0x148] sm:$0xf] }
 0x1ad   :  { %3321 = vmatpush.bf16.msra.mxu0 %v8856_v5  ;;  %v9160_v5 = vor.u32 %v11581_v59, %v9159_v45  ;;  %v8807_v45 = vld [vmem:[#allocation6 + $0x28] sm:$0xf]  ;;  %v11493_v59 = vld [vmem:[#allocation6 + $0x34] sm:$0xf0] }
 0x1ae   :  { %v2904_v31 = vpop.f32.mrf.mxu2  ;;  %3365 = vmatpush.bf16.msra.mxu1 %v8984_v25 }
 0x1af   :  { %v2905_v26 = vadd.f32 %v2904_v31, %v13209_v3  ;;  %v8840_v3 = vor.u32 %v11501_v23, %v8839_v63  ;;  %v16157_v31 = vld [vmem:[#allocation103_spill] sm:$0xff]  ;;  %3406 = vmatpush.bf16.msrb.mxu2 %v9160_v5 }
 0x1b0   :  { %v2990_v29 = vpop.f32.mrf.mxu0 }
 0x1b1   :  { %v2948_v47 = vpop.f32.mrf.mxu3  ;;  %v3034_v16 = vpop.f32.mrf.mxu1  ;;  %3322 = vmatpush.bf16.msra.mxu0 %v8840_v3 }
 0x1b2   :  { %v13296_v21 = vadd.f32 %v2948_v47, %v2905_v26  ;;  %v13298_v28 = vadd.f32 %v3034_v16, %v2990_v29  ;;  %v8968_v26 = vor.u32 %v11533_v60, %v8967_v11  ;;  %v9287_v47 = vld [vmem:[#allocation6 + $0x3e8] sm:$0xf] }
 0x1b3   :  { %3087 = vmatmul.bf16.gmra.mxu2 %v16155_v7  ;;  %3170 = vmatmul.bf16.gmra.mxu0 %v16156_v34  ;;  %v9288_v25 = vor.u32 %v11613_v57, %v9287_v47  ;;  %v8823_v16 = vld [vmem:[#allocation6 + $0x48] sm:$0xf]  ;;  %v8808_v47 = vor.u32 %v11493_v59, %v8807_v45  ;;  %v11525_v57 = vld [vmem:[#allocation6 + $0x134] sm:$0xf0] }
 0x1b4   :  { %16154 = vst [vmem:[#allocation90_spill] sm:$0xff] %v13296_v21  ;;  %3214 = vmatmul.bf16.gmra.mxu1 %v16158_v50  ;;  %v11497_v21 = vld [vmem:[#allocation6 + $0x54] sm:$0xf0]  ;;  %v9143_v45 = vld [vmem:[#allocation6 + $0x2c8] sm:$0xf] }
 0x1b5   :  { %3366 = vmatpush.bf16.msra.mxu1 %v8968_v26  ;;  %v8824_v10 = vor.u32 %v11497_v21, %v8823_v16  ;;  %3450 = vmatpush.bf16.msrb.mxu3 %v9288_v25  ;;  %v8935_v26 = vld [vmem:[#allocation6 + $0x128] sm:$0xf]  ;;  %v11577_v59 = vld [vmem:[#allocation6 + $0x2d4] sm:$0xf0] }
 0x1b6   :  { %3131 = vmatmul.bf16.gmra.mxu3 %v16157_v31  ;;  %v2907_v29 = vpop.f32.mrf.mxu2  ;;  %v11529_v31 = vld [vmem:[#allocation6 + $0x154] sm:$0xf0]  ;;  %v8791_v21 = vld [vmem:[#allocation6 + $0x8] sm:$0xf] }
 0x1b7   :  { %v2908_v63 = vadd.f32 %v2907_v29, %v13222_v44  ;;  %v8952_v34 = vor.u32 %v11529_v31, %v8951_v39  ;;  %3323 = vmatpush.bf16.msra.mxu0 %v8824_v10  ;;  %v8936_v44 = vor.u32 %v11525_v57, %v8935_v26  ;;  %v11489_v29 = vld [vmem:[#allocation6 + $0x14] sm:$0xf0]  ;;  %v8919_v25 = vld [vmem:[#allocation6 + $0x108] sm:$0xf]  ;;  %v16161_v26 = vld [vmem:[#allocation111_spill] sm:$0xff]  ;;  %v9144_v57 = vor.u32 %v11577_v59, %v9143_v45 }
 0x1b8   :  { %v2992_v50 = vpop.f32.mrf.mxu0  ;;  %v8792_v16 = vor.u32 %v11489_v29, %v8791_v21  ;;  %v11521_v10 = vld [vmem:[#allocation6 + $0x114] sm:$0xf0] }
 0x1b9   :  { %v2951_v23 = vpop.f32.mrf.mxu3  ;;  %v3036_v60 = vpop.f32.mrf.mxu1  ;;  %3367 = vmatpush.bf16.msra.mxu1 %v8952_v34  ;;  %v11609_v21 = vld [vmem:[#allocation6 + $0x3d4] sm:$0xf0]  ;;  %3407 = vmatpush.bf16.msrb.mxu2 %v9144_v57 }
 0x1ba   :  { %v13305_v11 = vadd.f32 %v2951_v23, %v2908_v63  ;;  %v13307_v3 = vadd.f32 %v3036_v60, %v2992_v50  ;;  %v8920_v63 = vor.u32 %v11521_v10, %v8919_v25 }
 0x1bb   :  { %3324 = vmatpush.bf16.msra.mxu0 %v8808_v47  ;;  %v16162_v47 = vld [vmem:[#allocation113_spill] sm:$0xff] }
 0x1bc   :  { %16159 = vst [vmem:[#allocation91_spill] sm:$0xff] %v13305_v11 }
 0x1bd   :  { %3368 = vmatpush.bf16.msra.mxu1 %v8936_v44  ;;  %v16164_v44 = vld [vmem:[#allocation115_spill] sm:$0xff] }
 0x1be   :  { %v2909_v5 = vpop.f32.mrf.mxu2 }
 0x1bf   :  { %v2910_v39 = vadd.f32 %v2909_v5, %v13229_v38  ;;  %3325 = vmatpush.bf16.msra.mxu0 %v8792_v16  ;;  %v16163_v38 = vld [vmem:[#allocation112_spill] sm:$0xff]  ;;  %v9271_v5 = vld [vmem:[#allocation6 + $0x3c8] sm:$0xf] }
 0x1c0   :  { %v2995_v50 = vpop.f32.mrf.mxu0  ;;  %v9272_v29 = vor.u32 %v11609_v21, %v9271_v5  ;;  %v9127_v5 = vld [vmem:[#allocation6 + $0x2a8] sm:$0xf]  ;;  %v11573_v21 = vld [vmem:[#allocation6 + $0x2b4] sm:$0xf0] }
 0x1c1   :  { %v2953_v31 = vpop.f32.mrf.mxu3  ;;  %v3039_v23 = vpop.f32.mrf.mxu1  ;;  %3369 = vmatpush.bf16.msra.mxu1 %v8920_v63 }
 0x1c2   :  { %v13310_v34 = vadd.f32 %v2953_v31, %v2910_v39  ;;  %v13312_v60 = vadd.f32 %v3039_v23, %v2995_v50  ;;  %3451 = vmatpush.bf16.msrb.mxu3 %v9272_v29  ;;  %v16167_v29 = vld [vmem:[#allocation125_spill] sm:$0xff] }
 0x1c3   :  { %3092 = vmatmul.bf16.gmra.mxu2 %v16161_v26  ;;  %3175 = vmatmul.bf16.gmra.mxu0 %v16162_v47 }
 0x1c4   :  { %16160 = vst [vmem:[#allocation92_spill] sm:$0xff] %v13310_v34  ;;  %3219 = vmatmul.bf16.gmra.mxu1 %v16164_v44 }
 0x1c6   :  { %3136 = vmatmul.bf16.gmra.mxu3 %v16163_v38  ;;  %v2912_v25 = vpop.f32.mrf.mxu2 }
 0x1c7   :  { %v2913_v39 = vadd.f32 %v2912_v25, %v13232_v35  ;;  %v9128_v35 = vor.u32 %v11573_v21, %v9127_v5  ;;  %v16168_v25 = vld [vmem:[#allocation126_spill] sm:$0xff] }
 0x1c8   :  { %v2997_v16 = vpop.f32.mrf.mxu0 }
 0x1c9   :  { %v2956_v31 = vpop.f32.mrf.mxu3  ;;  %v3041_v50 = vpop.f32.mrf.mxu1  ;;  %3408 = vmatpush.bf16.msrb.mxu2 %v9128_v35 }
 0x1ca   :  { %v13319_v10 = vadd.f32 %v2956_v31, %v2913_v39  ;;  %v13321_v63 = vadd.f32 %v3041_v50, %v2997_v16  ;;  %v9255_v39 = vld [vmem:[#allocation6 + $0x3a8] sm:$0xf]  ;;  %v11605_v31 = vld [vmem:[#allocation6 + $0x3b4] sm:$0xf0]  ;;  %v16169_v16 = vld [vmem:[#allocation127_spill] sm:$0xff] }
 0x1cb   :  { %v16170_v50 = vld [vmem:[#allocation128_spill] sm:$0xff] }
 0x1cc   :  { %16165 = vst [vmem:[#allocation101_spill] sm:$0xff] %v13319_v10  ;;  %v11569_v10 = vld [vmem:[#allocation6 + $0x294] sm:$0xf0] }
 0x1ce   :  { %v2914_v23 = vpop.f32.mrf.mxu2 }
 0x1cf   :  { %v2915_v45 = vadd.f32 %v2914_v23, %v13239_v51  ;;  %v9256_v51 = vor.u32 %v11605_v31, %v9255_v39 }
 0x1d0   :  { %v3000_v34 = vpop.f32.mrf.mxu0 }
 0x1d1   :  { %v2958_v59 = vpop.f32.mrf.mxu3  ;;  %v3044_v57 = vpop.f32.mrf.mxu1  ;;  %3452 = vmatpush.bf16.msrb.mxu3 %v9256_v51 }
 0x1d2   :  { %v13324_v11 = vadd.f32 %v2958_v59, %v2915_v45  ;;  %v13326_v44 = vadd.f32 %v3044_v57, %v3000_v34 }
 0x1d3   :  { %3180 = vmatmul.bf16.gmra.mxu0 %v16167_v29  ;;  %3238 = vmatmul.bf16.vlgmr.msra.gmra.mxu2 %v16168_v25 }
 0x1d4   :  { %16166 = vst [vmem:[#allocation163_spill] sm:$0xff] %v13324_v11  ;;  %3224 = vmatmul.bf16.gmra.mxu1 %v16169_v16  ;;  %v9111_v11 = vld [vmem:[#allocation6 + $0x288] sm:$0xf] }
 0x1d5   :  { %v9112_v25 = vor.u32 %v11569_v10, %v9111_v11  ;;  %v16176_v11 = vld [vmem:[#allocation26_spill] sm:$0xff] }
 0x1d6   :  { %3282 = vmatmul.bf16.vlgmr.msra.gmra.mxu3 %v16170_v50  ;;  %v2917_v23 = vpop.f32.mrf.mxu2 }
 0x1d7   :  { %v2918_v45 = vadd.f32 %v2917_v23, %v13242_v41  ;;  %3409 = vmatpush.bf16.msrb.mxu2 %v9112_v25  ;;  %v9239_v41 = vld [vmem:[#allocation6 + $0x388] sm:$0xf]  ;;  %v11601_v23 = vld [vmem:[#allocation6 + $0x394] sm:$0xf0] }
 0x1d8   :  { %v3002_v34 = vpop.f32.mrf.mxu0 }
 0x1d9   :  { %v2961_v59 = vpop.f32.mrf.mxu3  ;;  %v3046_v5 = vpop.f32.mrf.mxu1 }
 0x1da   :  { %v13333_v57 = vadd.f32 %v2961_v59, %v2918_v45  ;;  %v13335_v21 = vadd.f32 %v3046_v5, %v3002_v34  ;;  %v9240_v45 = vor.u32 %v11601_v23, %v9239_v41  ;;  %v16173_v59 = vld [vmem:[#allocation133_spill] sm:$0xff]  ;;  %v16175_v5 = vld [vmem:[#allocation134_spill] sm:$0xff] }
 0x1db   :  { %v16174_v34 = vld [vmem:[#allocation25_spill] sm:$0xff]  ;;  %v9223_v41 = vld [vmem:[#allocation6 + $0x368] sm:$0xf] }
 0x1dc   :  { %16171 = vst [vmem:[#allocation164_spill] sm:$0xff] %v13333_v57  ;;  %3453 = vmatpush.bf16.msrb.mxu3 %v9240_v45  ;;  %v11597_v57 = vld [vmem:[#allocation6 + $0x374] sm:$0xf0] }
 0x1de   :  { %v2919_v29 = vpop.f32.mrf.mxu2 }
 0x1df   :  { %v2920_v50 = vadd.f32 %v2919_v29, %v13251_v62 }
 0x1e0   :  { %v3005_v35 = vpop.f32.mrf.mxu0 }
 0x1e1   :  { %v2963_v39 = vpop.f32.mrf.mxu3  ;;  %v3049_v51 = vpop.f32.mrf.mxu1 }
 0x1e2   :  { %v13338_v31 = vadd.f32 %v2963_v39, %v2920_v50  ;;  %v13340_v16 = vadd.f32 %v3049_v51, %v3005_v35  ;;  %v9095_v35 = vld [vmem:[#allocation6 + $0x268] sm:$0xf]  ;;  %v11565_v51 = vld [vmem:[#allocation6 + $0x274] sm:$0xf0] }
 0x1e3   :  { %3243 = vmatmul.bf16.gmra.mxu2 %v16173_v59  ;;  %3326 = vmatmul.bf16.vlgmr.msra.gmra.mxu0 %v16174_v34  ;;  %v9096_v23 = vor.u32 %v11565_v51, %v9095_v35  ;;  %v9224_v34 = vor.u32 %v11597_v57, %v9223_v41  ;;  %v16180_v35 = vld [vmem:[#allocation36_spill] sm:$0xff] }
 0x1e4   :  { %16172 = vst [vmem:[#allocation165_spill] sm:$0xff] %v13338_v31  ;;  %3370 = vmatmul.bf16.vlgmr.msra.gmra.mxu1 %v16176_v11 }
 0x1e5   :  { %3410 = vmatpush.bf16.msrb.mxu2 %v9096_v23  ;;  %3454 = vmatpush.bf16.msrb.mxu3 %v9224_v34  ;;  %v9207_v23 = vld [vmem:[#allocation6 + $0x348] sm:$0xf] }
 0x1e6   :  { %3287 = vmatmul.bf16.gmra.mxu3 %v16175_v5  ;;  %v3063_v62 = vpop.f32.mrf.mxu2 }
 0x1e7   :  { %v3064_v10 = vadd.f32 %v3063_v62, %v13256_v17 }
 0x1e8   :  { %v3007_v25 = vpop.f32.mrf.mxu0 }
 0x1e9   :  { %v3107_v29 = vpop.f32.mrf.mxu3  ;;  %v3051_v39 = vpop.f32.mrf.mxu1 }
 0x1ea   :  { %v3108_v50 = vadd.f32 %v3107_v29, %v3064_v10  ;;  %v13347_v31 = vadd.f32 %v3051_v39, %v3007_v25  ;;  %v16177_v29 = vld [vmem:[#allocation139_spill] sm:$0xff]  ;;  %v16179_v39 = vld [vmem:[#allocation140_spill] sm:$0xff] }
 0x1eb   :  { %v16178_v25 = vld [vmem:[#allocation35_spill] sm:$0xff] }
 0x1ee   :  { %v3065_v59 = vpop.f32.mrf.mxu2 }
 0x1ef   :  { %v3066_v11 = vadd.f32 %v3065_v59, %v13265_v54 }
 0x1f0   :  { %v3151_v5 = vpop.f32.mrf.mxu0 }
 0x1f1   :  { %v3109_v45 = vpop.f32.mrf.mxu3  ;;  %v3152_v62 = vadd.f32 %v3151_v5, %v3108_v50  ;;  %v3195_v38 = vpop.f32.mrf.mxu1  ;;  %v11561_v50 = vld [vmem:[#allocation6 + $0x254] sm:$0xf0] }
 0x1f2   :  { %v3110_v17 = vadd.f32 %v3109_v45, %v3066_v11 }
 0x1f3   :  { %v13350_v10 = vadd.f32 %v3195_v38, %v3152_v62  ;;  %3248 = vmatmul.bf16.gmra.mxu2 %v16177_v29  ;;  %3331 = vmatmul.bf16.gmra.mxu0 %v16178_v25  ;;  %v9079_v38 = vld [vmem:[#allocation6 + $0x248] sm:$0xf]  ;;  %v11593_v62 = vld [vmem:[#allocation6 + $0x354] sm:$0xf0] }
 0x1f4   :  { %3375 = vmatmul.bf16.gmra.mxu1 %v16180_v35  ;;  %v9080_v45 = vor.u32 %v11561_v50, %v9079_v38  ;;  %v9208_v25 = vor.u32 %v11593_v62, %v9207_v23  ;;  %v9191_v23 = vld [vmem:[#allocation6 + $0x328] sm:$0xf] }
 0x1f6   :  { %3292 = vmatmul.bf16.gmra.mxu3 %v16179_v39  ;;  %v3068_v57 = vpop.f32.mrf.mxu2  ;;  %3411 = vmatpush.bf16.msrb.mxu2 %v9080_v45  ;;  %v11589_v45 = vld [vmem:[#allocation6 + $0x334] sm:$0xf0] }
 0x1f7   :  { %v3069_v51 = vadd.f32 %v3068_v57, %v13270_v1  ;;  %3455 = vmatpush.bf16.msrb.mxu3 %v9208_v25  ;;  %v9192_v62 = vor.u32 %v11589_v45, %v9191_v23  ;;  %v16186_v23 = vld [vmem:[#allocation57_spill] sm:$0xff]  ;;  %v9047_v45 = vld [vmem:[#allocation6 + $0x208] sm:$0xf] }
 0x1f8   :  { %v3153_v59 = vpop.f32.mrf.mxu0 }
 0x1f9   :  { %v3112_v54 = vpop.f32.mrf.mxu3  ;;  %v3154_v41 = vadd.f32 %v3153_v59, %v3110_v17  ;;  %v3197_v11 = vpop.f32.mrf.mxu1  ;;  %v16182_v59 = vld [vmem:[#allocation45_spill] sm:$0xff] }
 0x1fa   :  { %v3113_v34 = vadd.f32 %v3112_v54, %v3069_v51  ;;  %v16181_v54 = vld [vmem:[#allocation144_spill] sm:$0xff] }
 0x1fb   :  { %v13357_v5 = vadd.f32 %v3197_v11, %v3154_v41  ;;  %3456 = vmatpush.bf16.msrb.mxu3 %v9192_v62 }
 0x1fe   :  { %v3070_v29 = vpop.f32.mrf.mxu2 }
 0x1ff   :  { %v3071_v35 = vadd.f32 %v3070_v29, %v13279_v9 }
 0x200   :  { %v3156_v1 = vpop.f32.mrf.mxu0 }
 0x201   :  { %v3114_v39 = vpop.f32.mrf.mxu3  ;;  %v3157_v47 = vadd.f32 %v3156_v1, %v3113_v34  ;;  %v3200_v51 = vpop.f32.mrf.mxu1  ;;  %v11557_v34 = vld [vmem:[#allocation6 + $0x234] sm:$0xf0] }
 0x202   :  { %v3115_v57 = vadd.f32 %v3114_v39, %v3071_v35  ;;  %v9063_v35 = vld [vmem:[#allocation6 + $0x228] sm:$0xf] }
 0x203   :  { %v13360_v17 = vadd.f32 %v3200_v51, %v3157_v47  ;;  %3253 = vmatmul.bf16.gmra.mxu2 %v13100_v46  ;;  %3336 = vmatmul.bf16.gmra.mxu0 %v12424_v19  ;;  %v9064_v47 = vor.u32 %v11557_v34, %v9063_v35  ;;  %v11677_v34 = vld [vmem:[#allocation6 + $0x5f4] sm:$0xf0] }
 0x204   :  { %3380 = vmatmul.bf16.gmra.mxu1 %v16182_v59  ;;  %v11585_v46 = vld [vmem:[#allocation6 + $0x314] sm:$0xf0] }
 0x205   :  { %3412 = vmatpush.bf16.msrb.mxu2 %v9064_v47  ;;  %v16185_v47 = vld [vmem:[#allocation150_spill] sm:$0xff] }
 0x206   :  { %3297 = vmatmul.bf16.gmra.mxu3 %v16181_v54  ;;  %v3073_v41 = vpop.f32.mrf.mxu2 }
 0x207   :  { %v3074_v11 = vadd.f32 %v3073_v41, %v13284_v13 }
 0x208   :  { %v3158_v29 = vpop.f32.mrf.mxu0 }
 0x209   :  { %v3117_v9 = vpop.f32.mrf.mxu3  ;;  %v3159_v38 = vadd.f32 %v3158_v29, %v3115_v57  ;;  %v3202_v39 = vpop.f32.mrf.mxu1  ;;  %v9415_v57 = vld [vmem:[#allocation6 + $0x4e8] sm:$0xf] }
 0x20a   :  { %v3118_v25 = vadd.f32 %v3117_v9, %v3074_v11  ;;  %v11645_v9 = vld [vmem:[#allocation6 + $0x4f4] sm:$0xf0]  ;;  %v9543_v29 = vld [vmem:[#allocation6 + $0x5e8] sm:$0xf] }
 0x20b   :  { %v13367_v50 = vadd.f32 %v3202_v39, %v3159_v38  ;;  %v16183_v38 = vld [vmem:[#allocation149_spill] sm:$0xff]  ;;  %v16184_v39 = vld [vmem:[#allocation55_spill] sm:$0xff]  ;;  %v9416_v35 = vor.u32 %v11645_v9, %v9415_v57  ;;  %v11673_v9 = vld [vmem:[#allocation6 + $0x5d4] sm:$0xf0] }
 0x20d   :  { %3494 = vmatpush.bf16.msrb.mxu0 %v9416_v35 }
 0x20e   :  { %v3075_v1 = vpop.f32.mrf.mxu2 }
 0x20f   :  { %v3076_v51 = vadd.f32 %v3075_v1, %v13293_v2  ;;  %v9544_v2 = vor.u32 %v11677_v34, %v9543_v29  ;;  %v9399_v1 = vld [vmem:[#allocation6 + $0x4c8] sm:$0xf] }
 0x210   :  { %v3161_v13 = vpop.f32.mrf.mxu0  ;;  %v9175_v34 = vld [vmem:[#allocation6 + $0x308] sm:$0xf] }
 0x211   :  { %v3119_v59 = vpop.f32.mrf.mxu3  ;;  %v3162_v54 = vadd.f32 %v3161_v13, %v3118_v25  ;;  %v3205_v11 = vpop.f32.mrf.mxu1  ;;  %3538 = vmatpush.bf16.msrb.mxu1 %v9544_v2  ;;  %v9176_v35 = vor.u32 %v11585_v46, %v9175_v34  ;;  %v9383_v2 = vld [vmem:[#allocation6 + $0x4a8] sm:$0xf] }
 0x212   :  { %v3120_v41 = vadd.f32 %v3119_v59, %v3076_v51  ;;  %v11553_v59 = vld [vmem:[#allocation6 + $0x214] sm:$0xf0]  ;;  %v9527_v51 = vld [vmem:[#allocation6 + $0x5c8] sm:$0xf] }
 0x213   :  { %v13370_v19 = vadd.f32 %v3205_v11, %v3162_v54  ;;  %3258 = vmatmul.bf16.gmra.mxu2 %v16183_v38  ;;  %3341 = vmatmul.bf16.gmra.mxu0 %v16184_v39  ;;  %v9048_v25 = vor.u32 %v11553_v59, %v9047_v45  ;;  %v11641_v54 = vld [vmem:[#allocation6 + $0x4d4] sm:$0xf0]  ;;  %v9511_v59 = vld [vmem:[#allocation6 + $0x5a8] sm:$0xf] }
 0x214   :  { %3385 = vmatmul.bf16.gmra.mxu1 %v16186_v23  ;;  %v9400_v57 = vor.u32 %v11641_v54, %v9399_v1  ;;  %v11637_v45 = vld [vmem:[#allocation6 + $0x4b4] sm:$0xf0]  ;;  %3457 = vmatpush.bf16.msrb.mxu3 %v9176_v35  ;;  %v9367_v54 = vld [vmem:[#allocation6 + $0x488] sm:$0xf] }
 0x215   :  { %3413 = vmatpush.bf16.msrb.mxu2 %v9048_v25  ;;  %v9351_v34 = vld [vmem:[#allocation6 + $0x468] sm:$0xf]  ;;  %v11629_v35 = vld [vmem:[#allocation6 + $0x474] sm:$0xf0] }
 0x216   :  { %3302 = vmatmul.bf16.gmra.mxu3 %v16185_v47  ;;  %v3078_v62 = vpop.f32.mrf.mxu2  ;;  %v9528_v47 = vor.u32 %v11673_v9, %v9527_v51  ;;  %3495 = vmatpush.bf16.msrb.mxu0 %v9400_v57 }
 0x217   :  { %v3079_v13 = vadd.f32 %v3078_v62, %v13298_v28  ;;  %v9384_v28 = vor.u32 %v11637_v45, %v9383_v2  ;;  %v11669_v62 = vld [vmem:[#allocation6 + $0x5b4] sm:$0xf0]  ;;  %v9479_v2 = vld [vmem:[#allocation6 + $0x568] sm:$0xf] }
 0x218   :  { %v3163_v39 = vpop.f32.mrf.mxu0  ;;  %3539 = vmatpush.bf16.msrb.mxu1 %v9528_v47  ;;  %v9512_v25 = vor.u32 %v11669_v62, %v9511_v59  ;;  %v11665_v47 = vld [vmem:[#allocation6 + $0x594] sm:$0xf0] }
 0x219   :  { %v3122_v11 = vpop.f32.mrf.mxu3  ;;  %v3164_v23 = vadd.f32 %v3163_v39, %v3120_v41  ;;  %v3207_v29 = vpop.f32.mrf.mxu1  ;;  %v11633_v41 = vld [vmem:[#allocation6 + $0x494] sm:$0xf0]  ;;  %v9495_v39 = vld [vmem:[#allocation6 + $0x588] sm:$0xf] }
 0x21a   :  { %v3123_v38 = vadd.f32 %v3122_v11, %v3079_v13  ;;  %3496 = vmatpush.bf16.msrb.mxu0 %v9384_v28  ;;  %v9368_v46 = vor.u32 %v11633_v41, %v9367_v54  ;;  %v9496_v57 = vor.u32 %v11665_v47, %v9495_v39  ;;  %v11661_v59 = vld [vmem:[#allocation6 + $0x574] sm:$0xf0]  ;;  %v9671_v28 = vld [vmem:[#allocation6 + $0x6e8] sm:$0xf] }
 0x21b   :  { %v13377_v26 = vadd.f32 %v3207_v29, %v3164_v23  ;;  %v9480_v62 = vor.u32 %v11661_v59, %v9479_v2  ;;  %v11741_v54 = vld [vmem:[#allocation6 + $0x7f4] sm:$0xf0] }
 0x21c   :  { %3540 = vmatpush.bf16.msrb.mxu1 %v9512_v25  ;;  %v9799_v25 = vld [vmem:[#allocation6 + $0x7e8] sm:$0xf] }
 0x21d   :  { %v9800_v39 = vor.u32 %v11741_v54, %v9799_v25  ;;  %v11653_v54 = vld [vmem:[#allocation6 + $0x534] sm:$0xf0] }
 0x21e   :  { %v3080_v1 = vpop.f32.mrf.mxu2  ;;  %3497 = vmatpush.bf16.msrb.mxu0 %v9368_v46  ;;  %v9463_v46 = vld [vmem:[#allocation6 + $0x548] sm:$0xf] }
 0x21f   :  { %v3081_v51 = vadd.f32 %v3080_v1, %v13307_v3  ;;  %v9352_v3 = vor.u32 %v11629_v35, %v9351_v34  ;;  %3626 = vmatpush.bf16.msra.mxu3 %v9800_v39  ;;  %v9431_v39 = vld [vmem:[#allocation6 + $0x508] sm:$0xf] }
 0x220   :  { %v3166_v11 = vpop.f32.mrf.mxu0  ;;  %3541 = vmatpush.bf16.msrb.mxu1 %v9496_v57 }
 0x221   :  { %v3124_v13 = vpop.f32.mrf.mxu3  ;;  %v3167_v23 = vadd.f32 %v3166_v11, %v3123_v38  ;;  %v3210_v29 = vpop.f32.mrf.mxu1  ;;  %v11709_v38 = vld [vmem:[#allocation6 + $0x6f4] sm:$0xf0] }
 0x222   :  { %v3125_v9 = vadd.f32 %v3124_v13, %v3081_v51  ;;  %v9672_v1 = vor.u32 %v11709_v38, %v9671_v28  ;;  %3498 = vmatpush.bf16.msrb.mxu0 %v9352_v3  ;;  %v9335_v51 = vld [vmem:[#allocation6 + $0x448] sm:$0xf]  ;;  %v11625_v13 = vld [vmem:[#allocation6 + $0x454] sm:$0xf0] }
 0x223   :  { %v13380_v45 = vadd.f32 %v3210_v29, %v3167_v23  ;;  %3263 = vmatmul.bf16.gmra.mxu2 %v13182_v18  ;;  %3346 = vmatmul.bf16.gmra.mxu0 %v12300_v42  ;;  %v9336_v57 = vor.u32 %v11625_v13, %v9335_v51  ;;  %v11657_v23 = vld [vmem:[#allocation6 + $0x554] sm:$0xf0]  ;;  %v9319_v3 = vld [vmem:[#allocation6 + $0x428] sm:$0xf] }
 0x224   :  { %3390 = vmatmul.bf16.gmra.mxu1 %v12312_v48  ;;  %3582 = vmatpush.bf16.msra.mxu2 %v9672_v1  ;;  %v9464_v34 = vor.u32 %v11657_v23, %v9463_v46  ;;  %v11621_v28 = vld [vmem:[#allocation6 + $0x434] sm:$0xf0]  ;;  %v9447_v38 = vld [vmem:[#allocation6 + $0x528] sm:$0xf] }
 0x225   :  { %3542 = vmatpush.bf16.msrb.mxu1 %v9480_v62  ;;  %v9320_v25 = vor.u32 %v11621_v28, %v9319_v3  ;;  %v11617_v51 = vld [vmem:[#allocation6 + $0x414] sm:$0xf0]  ;;  %v9783_v28 = vld [vmem:[#allocation6 + $0x7c8] sm:$0xf] }
 0x226   :  { %3307 = vmatmul.bf16.gmra.mxu3 %v13188_v61  ;;  %v3083_v41 = vpop.f32.mrf.mxu2  ;;  %3499 = vmatpush.bf16.msrb.mxu0 %v9336_v57  ;;  %v11705_v3 = vld [vmem:[#allocation6 + $0x6d4] sm:$0xf0] }
 0x227   :  { %v3084_v47 = vadd.f32 %v3083_v41, %v13312_v60  ;;  %v9448_v60 = vor.u32 %v11653_v54, %v9447_v38  ;;  %v9303_v41 = vld [vmem:[#allocation6 + $0x408] sm:$0xf]  ;;  %v11737_v38 = vld [vmem:[#allocation6 + $0x7d4] sm:$0xf0] }
 0x228   :  { %v3168_v29 = vpop.f32.mrf.mxu0  ;;  %v9304_v46 = vor.u32 %v11617_v51, %v9303_v41 }
 0x229   :  { %v3127_v11 = vpop.f32.mrf.mxu3  ;;  %v3169_v2 = vadd.f32 %v3168_v29, %v3125_v9  ;;  %v3212_v59 = vpop.f32.mrf.mxu1  ;;  %3543 = vmatpush.bf16.msrb.mxu1 %v9464_v34 }
 0x22a   :  { %v3128_v35 = vadd.f32 %v3127_v11, %v3084_v47  ;;  %3500 = vmatpush.bf16.msrb.mxu0 %v9320_v25  ;;  %v11649_v47 = vld [vmem:[#allocation6 + $0x514] sm:$0xf0]  ;;  %v9784_v25 = vor.u32 %v11737_v38, %v9783_v28 }
 0x22b   :  { %v13387_v62 = vadd.f32 %v3212_v59, %v3169_v2  ;;  %v9432_v57 = vor.u32 %v11649_v47, %v9431_v39  ;;  %v9655_v59 = vld [vmem:[#allocation6 + $0x6c8] sm:$0xf]  ;;  %v11733_v28 = vld [vmem:[#allocation6 + $0x7b4] sm:$0xf0] }
 0x22c   :  { %3627 = vmatpush.bf16.msra.mxu3 %v9784_v25 }
 0x22d   :  { %3544 = vmatpush.bf16.msrb.mxu1 %v9448_v60 }
 0x22e   :  { %v3085_v1 = vpop.f32.mrf.mxu2  ;;  %3501 = vmatpush.bf16.msrb.mxu0 %v9304_v46 }
 0x22f   :  { %v3086_v13 = vadd.f32 %v3085_v1, %v13321_v63  ;;  %v9656_v63 = vor.u32 %v11705_v3, %v9655_v59  ;;  %v9639_v59 = vld [vmem:[#allocation6 + $0x6a8] sm:$0xf]  ;;  %v11701_v3 = vld [vmem:[#allocation6 + $0x6b4] sm:$0xf0] }
 0x230   :  { %v3171_v11 = vpop.f32.mrf.mxu0 }
 0x231   :  { %v3129_v9 = vpop.f32.mrf.mxu3  ;;  %v3172_v29 = vadd.f32 %v3171_v11, %v3128_v35  ;;  %v3215_v34 = vpop.f32.mrf.mxu1  ;;  %3545 = vmatpush.bf16.msrb.mxu1 %v9432_v57  ;;  %3583 = vmatpush.bf16.msra.mxu2 %v9656_v63  ;;  %v9640_v63 = vor.u32 %v11701_v3, %v9639_v59 }
 0x232   :  { %v3130_v23 = vadd.f32 %v3129_v9, %v3086_v13 }
 0x233   :  { %v13390_v2 = vadd.f32 %v3215_v34, %v3172_v29  ;;  %3268 = vmatmul.bf16.gmra.mxu2 %v13216_v43  ;;  %3351 = vmatmul.bf16.gmra.mxu0 %v12368_v49 }
 0x234   :  { %3395 = vmatmul.bf16.gmra.mxu1 %v12381_v55 }
 0x235   :  { %3584 = vmatpush.bf16.msra.mxu2 %v9640_v63 }
 0x236   :  { %3312 = vmatmul.bf16.gmra.mxu3 %v13220_v32  ;;  %v3088_v35 = vpop.f32.mrf.mxu2 }
 0x237   :  { %v3089_v54 = vadd.f32 %v3088_v35, %v13326_v44  ;;  %v9767_v44 = vld [vmem:[#allocation6 + $0x7a8] sm:$0xf] }
 0x238   :  { %v3173_v1 = vpop.f32.mrf.mxu0 }
 0x239   :  { %v3132_v60 = vpop.f32.mrf.mxu3  ;;  %v3174_v51 = vadd.f32 %v3173_v1, %v3130_v23  ;;  %v3217_v39 = vpop.f32.mrf.mxu1  ;;  %v9768_v23 = vor.u32 %v11733_v28, %v9767_v44  ;;  %v11729_v44 = vld [vmem:[#allocation6 + $0x794] sm:$0xf0] }
 0x23a   :  { %v3133_v41 = vadd.f32 %v3132_v60, %v3089_v54 }
 0x23b   :  { %v13397_v13 = vadd.f32 %v3217_v39, %v3174_v51  ;;  %3628 = vmatpush.bf16.msra.mxu3 %v9768_v23  ;;  %v9623_v51 = vld [vmem:[#allocation6 + $0x688] sm:$0xf]  ;;  %v11697_v39 = vld [vmem:[#allocation6 + $0x694] sm:$0xf0] }
 0x23e   :  { %v3090_v9 = vpop.f32.mrf.mxu2 }
 0x23f   :  { %v3091_v46 = vadd.f32 %v3090_v9, %v13335_v21 }
 0x240   :  { %v3176_v11 = vpop.f32.mrf.mxu0 }
 0x241   :  { %v3134_v47 = vpop.f32.mrf.mxu3  ;;  %v3177_v29 = vadd.f32 %v3176_v11, %v3133_v41  ;;  %v3220_v34 = vpop.f32.mrf.mxu1 }
 0x242   :  { %v3135_v57 = vadd.f32 %v3134_v47, %v3091_v46  ;;  %v9624_v46 = vor.u32 %v11697_v39, %v9623_v51  ;;  %v9735_v51 = vld [vmem:[#allocation6 + $0x768] sm:$0xf] }
 0x243   :  { %v13400_v38 = vadd.f32 %v3220_v34, %v3177_v29  ;;  %3356 = vmatmul.bf16.gmra.mxu0 %v12428_v24  ;;  %3414 = vmatmul.bf16.vlgmr.msrb.gmra.mxu2 %v12498_v58 }
 0x244   :  { %3400 = vmatmul.bf16.gmra.mxu1 %v12441_v15  ;;  %3585 = vmatpush.bf16.msra.mxu2 %v9624_v46 }
 0x246   :  { %3458 = vmatmul.bf16.vlgmr.msrb.gmra.mxu3 %v12511_v37  ;;  %v3093_v21 = vpop.f32.mrf.mxu2 }
 0x247   :  { %v3094_v25 = vadd.f32 %v3093_v21, %v13340_v16  ;;  %v9751_v16 = vld [vmem:[#allocation6 + $0x788] sm:$0xf] }
 0x248   :  { %v3178_v54 = vpop.f32.mrf.mxu0  ;;  %v9752_v28 = vor.u32 %v11729_v44, %v9751_v16 }
 0x249   :  { %v3137_v35 = vpop.f32.mrf.mxu3  ;;  %v3179_v1 = vadd.f32 %v3178_v54, %v3135_v57  ;;  %v3222_v41 = vpop.f32.mrf.mxu1 }
 0x24a   :  { %v3138_v60 = vadd.f32 %v3137_v35, %v3094_v25  ;;  %3629 = vmatpush.bf16.msra.mxu3 %v9752_v28 }
 0x24b   :  { %v13407_v9 = vadd.f32 %v3222_v41, %v3179_v1  ;;  %v9607_v1 = vld [vmem:[#allocation6 + $0x668] sm:$0xf]  ;;  %v11693_v41 = vld [vmem:[#allocation6 + $0x674] sm:$0xf0] }
 0x24c   :  { %v9608_v46 = vor.u32 %v11693_v41, %v9607_v1  ;;  %v9719_v1 = vld [vmem:[#allocation6 + $0x748] sm:$0xf] }
 0x24e   :  { %v3095_v47 = vpop.f32.mrf.mxu2  ;;  %3586 = vmatpush.bf16.msra.mxu2 %v9608_v46 }
 0x24f   :  { %v3096_v11 = vadd.f32 %v3095_v47, %v13347_v31  ;;  %v11725_v47 = vld [vmem:[#allocation6 + $0x774] sm:$0xf0] }
 0x250   :  { %v3181_v34 = vpop.f32.mrf.mxu0 }
 0x251   :  { %v3139_v29 = vpop.f32.mrf.mxu3  ;;  %v3182_v3 = vadd.f32 %v3181_v34, %v3138_v60  ;;  %v3225_v63 = vpop.f32.mrf.mxu1 }
 0x252   :  { %v3140_v59 = vadd.f32 %v3139_v29, %v3096_v11  ;;  %v9736_v11 = vor.u32 %v11725_v47, %v9735_v51  ;;  %v11721_v51 = vld [vmem:[#allocation6 + $0x754] sm:$0xf0] }
 0x253   :  { %v13410_v23 = vadd.f32 %v3225_v63, %v3182_v3  ;;  %3419 = vmatmul.bf16.gmra.mxu2 %v12570_v52  ;;  %3502 = vmatmul.bf16.vlgmr.msrb.gmra.mxu0 %v12576_v4  ;;  %v9720_v46 = vor.u32 %v11721_v51, %v9719_v1  ;;  %v11717_v51 = vld [vmem:[#allocation6 + $0x734] sm:$0xf0] }
 0x254   :  { %3546 = vmatmul.bf16.vlgmr.msrb.gmra.mxu1 %v12588_v53  ;;  %3630 = vmatpush.bf16.msra.mxu3 %v9736_v11 }
 0x256   :  { %3463 = vmatmul.bf16.gmra.mxu3 %v12582_v22  ;;  %v3239_v31 = vpop.f32.mrf.mxu2 }
 0x257   :  { %v3240_v57 = vadd.f32 %v3239_v31, %v13350_v10 }
 0x258   :  { %v3183_v25 = vpop.f32.mrf.mxu0  ;;  %3631 = vmatpush.bf16.msra.mxu3 %v9720_v46 }
 0x259   :  { %v3283_v21 = vpop.f32.mrf.mxu3  ;;  %v3184_v54 = vadd.f32 %v3183_v25, %v3140_v59  ;;  %v3227_v60 = vpop.f32.mrf.mxu1 }
 0x25a   :  { %v13417_v35 = vadd.f32 %v3283_v21, %v3240_v57 }
 0x25b   :  { %v13419_v39 = vadd.f32 %v3227_v60, %v3184_v54  ;;  %v9591_v54 = vld [vmem:[#allocation6 + $0x648] sm:$0xf]  ;;  %v11689_v60 = vld [vmem:[#allocation6 + $0x654] sm:$0xf0] }
 0x25c   :  { %16187 = vst [vmem:[#allocation166_spill] sm:$0xff] %v13417_v35  ;;  %v9592_v41 = vor.u32 %v11689_v60, %v9591_v54  ;;  %v11685_v54 = vld [vmem:[#allocation6 + $0x634] sm:$0xf0] }
 0x25e   :  { %v3241_v29 = vpop.f32.mrf.mxu2  ;;  %3587 = vmatpush.bf16.msra.mxu2 %v9592_v41  ;;  %v9703_v41 = vld [vmem:[#allocation6 + $0x728] sm:$0xf] }
 0x25f   :  { %v3242_v34 = vadd.f32 %v3241_v29, %v13357_v5  ;;  %v9704_v46 = vor.u32 %v11717_v51, %v9703_v41 }
 0x260   :  { %v3327_v3 = vpop.f32.mrf.mxu0 }
 0x261   :  { %v3285_v10 = vpop.f32.mrf.mxu3  ;;  %v3371_v16 = vpop.f32.mrf.mxu1  ;;  %3632 = vmatpush.bf16.msra.mxu3 %v9704_v46  ;;  %v11511_v46 = vld [vmem:[#allocation6 + $0xcc] sm:$0xf] }
 0x262   :  { %v13422_v63 = vadd.f32 %v3285_v10, %v3242_v34  ;;  %v13424_v59 = vadd.f32 %v3371_v16, %v3327_v3 }
 0x263   :  { %3424 = vmatmul.bf16.gmra.mxu2 %v12638_v56  ;;  %3507 = vmatmul.bf16.gmra.mxu0 %v12644_v0 }
 0x264   :  { %16188 = vst [vmem:[#allocation167_spill] sm:$0xff] %v13422_v63  ;;  %3551 = vmatmul.bf16.gmra.mxu1 %v12656_v14  ;;  %v8953_v63 = vld [vmem:[#allocation6 + $0x158] sm:$0xf0] }
 0x266   :  { %3468 = vmatmul.bf16.gmra.mxu3 %v12650_v40  ;;  %v3244_v44 = vpop.f32.mrf.mxu2 }
 0x267   :  { %v3245_v28 = vadd.f32 %v3244_v44, %v13360_v17 }
 0x268   :  { %v3329_v5 = vpop.f32.mrf.mxu0 }
 0x269   :  { %v3288_v31 = vpop.f32.mrf.mxu3  ;;  %v3373_v21 = vpop.f32.mrf.mxu1 }
 0x26a   :  { %v13431_v57 = vadd.f32 %v3288_v31, %v3245_v28  ;;  %v13433_v25 = vadd.f32 %v3373_v21, %v3329_v5  ;;  %v9575_v21 = vld [vmem:[#allocation6 + $0x628] sm:$0xf] }
 0x26b   :  { %v9576_v1 = vor.u32 %v11685_v54, %v9575_v21  ;;  %v9033_v21 = vld [vmem:[#allocation6 + $0x1f8] sm:$0xf0]  ;;  %v9559_v54 = vld [vmem:[#allocation6 + $0x608] sm:$0xf] }
 0x26c   :  { %16189 = vst [vmem:[#allocation168_spill] sm:$0xff] %v13431_v57  ;;  %v11539_v57 = vld [vmem:[#allocation6 + $0x1ac] sm:$0xf] }
 0x26d   :  { %3588 = vmatpush.bf16.msra.mxu2 %v9576_v1  ;;  %v11681_v1 = vld [vmem:[#allocation6 + $0x614] sm:$0xf0] }
 0x26e   :  { %v3246_v47 = vpop.f32.mrf.mxu2  ;;  %v9560_v41 = vor.u32 %v11681_v1, %v9559_v54  ;;  %v11507_v54 = vld [vmem:[#allocation6 + $0xac] sm:$0xf]  ;;  %v8873_v1 = vld [vmem:[#allocation6 + $0xb8] sm:$0xf0] }
 0x26f   :  { %v3247_v11 = vadd.f32 %v3246_v47, %v13367_v50 }
 0x270   :  { %v3332_v17 = vpop.f32.mrf.mxu0 }
 0x271   :  { %v3290_v29 = vpop.f32.mrf.mxu3  ;;  %v3376_v10 = vpop.f32.mrf.mxu1  ;;  %3589 = vmatpush.bf16.msra.mxu2 %v9560_v41 }
 0x272   :  { %v13436_v34 = vadd.f32 %v3290_v29, %v3247_v11  ;;  %v13438_v3 = vadd.f32 %v3376_v10, %v3332_v17 }
 0x273   :  { %3429 = vmatmul.bf16.gmra.mxu2 %v12698_v33  ;;  %3512 = vmatmul.bf16.gmra.mxu0 %v12704_v30 }
 0x274   :  { %16190 = vst [vmem:[#allocation169_spill] sm:$0xff] %v13436_v34  ;;  %3556 = vmatmul.bf16.gmra.mxu1 %v12714_v20  ;;  %v11713_v34 = vld [vmem:[#allocation6 + $0x714] sm:$0xf0] }
 0x276   :  { %3473 = vmatmul.bf16.gmra.mxu3 %v12708_v8  ;;  %v3249_v16 = vpop.f32.mrf.mxu2 }
 0x277   :  { %v3250_v44 = vadd.f32 %v3249_v16, %v13370_v19 }
 0x278   :  { %v3334_v50 = vpop.f32.mrf.mxu0 }
 0x279   :  { %v3293_v28 = vpop.f32.mrf.mxu3  ;;  %v3378_v5 = vpop.f32.mrf.mxu1 }
 0x27a   :  { %v13445_v31 = vadd.f32 %v3293_v28, %v3250_v44  ;;  %v13447_v60 = vadd.f32 %v3378_v5, %v3334_v50  ;;  %v11515_v44 = vld [vmem:[#allocation6 + $0xec] sm:$0xf]  ;;  %v8905_v28 = vld [vmem:[#allocation6 + $0xf8] sm:$0xf0] }
 0x27b   :  { %v11547_v50 = vld [vmem:[#allocation6 + $0x1ec] sm:$0xf]  ;;  %v8908_v5 = vor.u32 %v11515_v44, %v8905_v28  ;;  %v9017_v44 = vld [vmem:[#allocation6 + $0x1d8] sm:$0xf0] }
 0x27c   :  { %16191 = vst [vmem:[#allocation170_spill] sm:$0xff] %v13445_v31 }
 0x27d   :  { %3670 = vmatpush.bf16.msra.mxu0 %v8908_v5 }
 0x27e   :  { %v3251_v47 = vpop.f32.mrf.mxu2 }
 0x27f   :  { %v3252_v11 = vadd.f32 %v3251_v47, %v13377_v26  ;;  %v9036_v26 = vor.u32 %v11547_v50, %v9033_v21  ;;  %v8889_v47 = vld [vmem:[#allocation6 + $0xd8] sm:$0xf0]  ;;  %v9687_v21 = vld [vmem:[#allocation6 + $0x708] sm:$0xf] }
 0x280   :  { %v3337_v19 = vpop.f32.mrf.mxu0 }
 0x281   :  { %v3295_v29 = vpop.f32.mrf.mxu3  ;;  %v3381_v10 = vpop.f32.mrf.mxu1  ;;  %3714 = vmatpush.bf16.msra.mxu1 %v9036_v26  ;;  %v9688_v26 = vor.u32 %v11713_v34, %v9687_v21 }
 0x282   :  { %v13450_v17 = vadd.f32 %v3295_v29, %v3252_v11  ;;  %v13452_v16 = vadd.f32 %v3381_v10, %v3337_v19  ;;  %v11543_v11 = vld [vmem:[#allocation6 + $0x1cc] sm:$0xf]  ;;  %v8892_v10 = vor.u32 %v11511_v46, %v8889_v47 }
 0x283   :  { %3434 = vmatmul.bf16.gmra.mxu2 %v16149_v12  ;;  %3517 = vmatmul.bf16.gmra.mxu0 %v16150_v36  ;;  %v11503_v47 = vld [vmem:[#allocation6 + $0x8c] sm:$0xf] }
 0x284   :  { %16192 = vst [vmem:[#allocation171_spill] sm:$0xff] %v13450_v17  ;;  %3561 = vmatmul.bf16.gmra.mxu1 %v16152_v6  ;;  %v9020_v17 = vor.u32 %v11543_v11, %v9017_v44  ;;  %3671 = vmatpush.bf16.msra.mxu0 %v8892_v10  ;;  %v8857_v11 = vld [vmem:[#allocation6 + $0x98] sm:$0xf0] }
 0x285   :  { %3633 = vmatpush.bf16.msra.mxu3 %v9688_v26  ;;  %v8860_v44 = vor.u32 %v11503_v47, %v8857_v11  ;;  %v8841_v26 = vld [vmem:[#allocation6 + $0x78] sm:$0xf0]  ;;  %v11579_v47 = vld [vmem:[#allocation6 + $0x2ec] sm:$0xf] }
 0x286   :  { %3478 = vmatmul.bf16.gmra.mxu3 %v16151_v27  ;;  %v3254_v51 = vpop.f32.mrf.mxu2  ;;  %3715 = vmatpush.bf16.msra.mxu1 %v9020_v17  ;;  %v9161_v11 = vld [vmem:[#allocation6 + $0x2f8] sm:$0xf0] }
 0x287   :  { %v3255_v29 = vadd.f32 %v3254_v51, %v13380_v45  ;;  %v8876_v45 = vor.u32 %v11507_v54, %v8873_v1  ;;  %v9001_v51 = vld [vmem:[#allocation6 + $0x1b8] sm:$0xf0]  ;;  %v11531_v1 = vld [vmem:[#allocation6 + $0x16c] sm:$0xf] }
 0x288   :  { %v3339_v28 = vpop.f32.mrf.mxu0  ;;  %v9004_v41 = vor.u32 %v11539_v57, %v9001_v51  ;;  %v11499_v57 = vld [vmem:[#allocation6 + $0x6c] sm:$0xf]  ;;  %v8969_v51 = vld [vmem:[#allocation6 + $0x178] sm:$0xf0] }
 0x289   :  { %v3298_v19 = vpop.f32.mrf.mxu3  ;;  %v3383_v50 = vpop.f32.mrf.mxu1  ;;  %3672 = vmatpush.bf16.msra.mxu0 %v8876_v45  ;;  %v16195_v45 = vld [vmem:[#allocation102_spill] sm:$0xff] }
 0x28a   :  { %v13459_v31 = vadd.f32 %v3298_v19, %v3255_v29  ;;  %v13461_v5 = vadd.f32 %v3383_v50, %v3339_v28  ;;  %3716 = vmatpush.bf16.msra.mxu1 %v9004_v41  ;;  %v11535_v29 = vld [vmem:[#allocation6 + $0x18c] sm:$0xf]  ;;  %v8985_v28 = vld [vmem:[#allocation6 + $0x198] sm:$0xf0]  ;;  %v16196_v41 = vld [vmem:[#allocation103_spill] sm:$0xff] }
 0x28b   :  { %v8988_v17 = vor.u32 %v11535_v29, %v8985_v28  ;;  %v8972_v29 = vor.u32 %v11531_v1, %v8969_v51 }
 0x28c   :  { %16193 = vst [vmem:[#allocation172_spill] sm:$0xff] %v13459_v31 }
 0x28d   :  { %3673 = vmatpush.bf16.msra.mxu0 %v8860_v44  ;;  %v9289_v44 = vld [vmem:[#allocation6 + $0x3f8] sm:$0xf0] }
 0x28e   :  { %v3256_v46 = vpop.f32.mrf.mxu2  ;;  %3717 = vmatpush.bf16.msra.mxu1 %v8988_v17  ;;  %v11495_v17 = vld [vmem:[#allocation6 + $0x4c] sm:$0xf] }
 0x28f   :  { %v3257_v19 = vadd.f32 %v3256_v46, %v13387_v62  ;;  %v8844_v62 = vor.u32 %v11499_v57, %v8841_v26  ;;  %v16197_v46 = vld [vmem:[#allocation104_spill] sm:$0xff] }
 0x290   :  { %v3342_v34 = vpop.f32.mrf.mxu0 }
 0x291   :  { %v3300_v10 = vpop.f32.mrf.mxu3  ;;  %v3386_v21 = vpop.f32.mrf.mxu1  ;;  %3674 = vmatpush.bf16.msra.mxu0 %v8844_v62 }
 0x292   :  { %v13464_v50 = vadd.f32 %v3300_v10, %v3257_v19  ;;  %v13466_v54 = vadd.f32 %v3386_v21, %v3342_v34  ;;  %v11611_v19 = vld [vmem:[#allocation6 + $0x3ec] sm:$0xf]  ;;  %v9164_v10 = vor.u32 %v11579_v47, %v9161_v11  ;;  %3718 = vmatpush.bf16.msra.mxu1 %v8972_v29  ;;  %v8825_v21 = vld [vmem:[#allocation6 + $0x58] sm:$0xf0] }
 0x293   :  { %3439 = vmatmul.bf16.gmra.mxu2 %v16155_v7  ;;  %3522 = vmatmul.bf16.gmra.mxu0 %v16195_v45  ;;  %v9292_v34 = vor.u32 %v11611_v19, %v9289_v44  ;;  %v8828_v31 = vor.u32 %v11495_v17, %v8825_v21  ;;  %v11491_v47 = vld [vmem:[#allocation6 + $0x2c] sm:$0xf]  ;;  %v8809_v11 = vld [vmem:[#allocation6 + $0x38] sm:$0xf0] }
 0x294   :  { %16194 = vst [vmem:[#allocation173_spill] sm:$0xff] %v13464_v50  ;;  %3566 = vmatmul.bf16.gmra.mxu1 %v16197_v46  ;;  %v11527_v50 = vld [vmem:[#allocation6 + $0x14c] sm:$0xf]  ;;  %3758 = vmatpush.bf16.msrb.mxu2 %v9164_v10  ;;  %v8812_v19 = vor.u32 %v11491_v47, %v8809_v11  ;;  %v8937_v44 = vld [vmem:[#allocation6 + $0x138] sm:$0xf0] }
 0x295   :  { %3802 = vmatpush.bf16.msrb.mxu3 %v9292_v34  ;;  %v8956_v46 = vor.u32 %v11527_v50, %v8953_v63  ;;  %3675 = vmatpush.bf16.msra.mxu0 %v8828_v31  ;;  %v11523_v29 = vld [vmem:[#allocation6 + $0x12c] sm:$0xf]  ;;  %v8793_v17 = vld [vmem:[#allocation6 + $0x18] sm:$0xf0] }
 0x296   :  { %3483 = vmatmul.bf16.gmra.mxu3 %v16196_v41  ;;  %v3259_v28 = vpop.f32.mrf.mxu2  ;;  %v11519_v34 = vld [vmem:[#allocation6 + $0x10c] sm:$0xf]  ;;  %v8921_v31 = vld [vmem:[#allocation6 + $0x118] sm:$0xf0] }
 0x297   :  { %v3260_v57 = vadd.f32 %v3259_v28, %v13390_v2  ;;  %3719 = vmatpush.bf16.msra.mxu1 %v8956_v46  ;;  %v8940_v2 = vor.u32 %v11523_v29, %v8937_v44  ;;  %v11487_v28 = vld [vmem:[#allocation6 + $0xc] sm:$0xf]  ;;  %v9145_v11 = vld [vmem:[#allocation6 + $0x2d8] sm:$0xf0]  ;;  %v16200_v29 = vld [vmem:[#allocation111_spill] sm:$0xff] }
 0x298   :  { %v3344_v35 = vpop.f32.mrf.mxu0  ;;  %v8796_v21 = vor.u32 %v11487_v28, %v8793_v17  ;;  %v11575_v47 = vld [vmem:[#allocation6 + $0x2cc] sm:$0xf]  ;;  %v9273_v28 = vld [vmem:[#allocation6 + $0x3d8] sm:$0xf0] }
 0x299   :  { %v3303_v26 = vpop.f32.mrf.mxu3  ;;  %v3388_v51 = vpop.f32.mrf.mxu1  ;;  %3676 = vmatpush.bf16.msra.mxu0 %v8812_v19  ;;  %v16201_v19 = vld [vmem:[#allocation113_spill] sm:$0xff]  ;;  %v9148_v44 = vor.u32 %v11575_v47, %v9145_v11  ;;  %v9177_v41 = vld [vmem:[#allocation6 + $0x318] sm:$0xf0] }
 0x29a   :  { %v13473_v1 = vadd.f32 %v3303_v26, %v3260_v57  ;;  %v13475_v62 = vadd.f32 %v3388_v51, %v3344_v35  ;;  %v8924_v57 = vor.u32 %v11519_v34, %v8921_v31 }
 0x29b   :  { %3720 = vmatpush.bf16.msra.mxu1 %v8940_v2  ;;  %v16203_v2 = vld [vmem:[#allocation115_spill] sm:$0xff]  ;;  %3759 = vmatpush.bf16.msrb.mxu2 %v9148_v44 }
 0x29c   :  { %16198 = vst [vmem:[#allocation174_spill] sm:$0xff] %v13473_v1 }
 0x29d   :  { %3677 = vmatpush.bf16.msra.mxu0 %v8796_v21 }
 0x29e   :  { %v3261_v10 = vpop.f32.mrf.mxu2 }
 0x29f   :  { %v3262_v63 = vadd.f32 %v3261_v10, %v13397_v13  ;;  %3721 = vmatpush.bf16.msra.mxu1 %v8924_v57  ;;  %v16202_v13 = vld [vmem:[#allocation112_spill] sm:$0xff]  ;;  %v11607_v10 = vld [vmem:[#allocation6 + $0x3cc] sm:$0xf] }
 0x2a0   :  { %v3347_v35 = vpop.f32.mrf.mxu0  ;;  %v9276_v17 = vor.u32 %v11607_v10, %v9273_v28  ;;  %v11571_v10 = vld [vmem:[#allocation6 + $0x2ac] sm:$0xf]  ;;  %v9129_v28 = vld [vmem:[#allocation6 + $0x2b8] sm:$0xf0] }
 0x2a1   :  { %v3305_v50 = vpop.f32.mrf.mxu3  ;;  %v3391_v26 = vpop.f32.mrf.mxu1 }
 0x2a2   :  { %v13478_v46 = vadd.f32 %v3305_v50, %v3262_v63  ;;  %v13480_v51 = vadd.f32 %v3391_v26, %v3347_v35  ;;  %3803 = vmatpush.bf16.msrb.mxu3 %v9276_v17  ;;  %v16206_v17 = vld [vmem:[#allocation125_spill] sm:$0xff] }
 0x2a3   :  { %3444 = vmatmul.bf16.gmra.mxu2 %v16200_v29  ;;  %3527 = vmatmul.bf16.gmra.mxu0 %v16201_v19 }
 0x2a4   :  { %16199 = vst [vmem:[#allocation175_spill] sm:$0xff] %v13478_v46  ;;  %3571 = vmatmul.bf16.gmra.mxu1 %v16203_v2 }
 0x2a6   :  { %3488 = vmatmul.bf16.gmra.mxu3 %v16202_v13  ;;  %v3264_v34 = vpop.f32.mrf.mxu2 }
 0x2a7   :  { %v3265_v63 = vadd.f32 %v3264_v34, %v13400_v38  ;;  %v9132_v38 = vor.u32 %v11571_v10, %v9129_v28  ;;  %v16207_v34 = vld [vmem:[#allocation126_spill] sm:$0xff] }
 0x2a8   :  { %v3349_v21 = vpop.f32.mrf.mxu0 }
 0x2a9   :  { %v3308_v50 = vpop.f32.mrf.mxu3  ;;  %v3393_v35 = vpop.f32.mrf.mxu1  ;;  %3760 = vmatpush.bf16.msrb.mxu2 %v9132_v38 }
 0x2aa   :  { %v13487_v31 = vadd.f32 %v3308_v50, %v3265_v63  ;;  %v13489_v57 = vadd.f32 %v3393_v35, %v3349_v21  ;;  %v11603_v63 = vld [vmem:[#allocation6 + $0x3ac] sm:$0xf]  ;;  %v9257_v50 = vld [vmem:[#allocation6 + $0x3b8] sm:$0xf0]  ;;  %v16208_v21 = vld [vmem:[#allocation127_spill] sm:$0xff] }
 0x2ab   :  { %v16209_v35 = vld [vmem:[#allocation128_spill] sm:$0xff] }
 0x2ac   :  { %16204 = vst [vmem:[#allocation176_spill] sm:$0xff] %v13487_v31  ;;  %v9113_v31 = vld [vmem:[#allocation6 + $0x298] sm:$0xf0] }
 0x2ae   :  { %v3266_v26 = vpop.f32.mrf.mxu2 }
 0x2af   :  { %v3267_v47 = vadd.f32 %v3266_v26, %v13407_v9  ;;  %v9260_v9 = vor.u32 %v11603_v63, %v9257_v50 }
 0x2b0   :  { %v3352_v46 = vpop.f32.mrf.mxu0 }
 0x2b1   :  { %v3310_v11 = vpop.f32.mrf.mxu3  ;;  %v3396_v44 = vpop.f32.mrf.mxu1  ;;  %3804 = vmatpush.bf16.msrb.mxu3 %v9260_v9 }
 0x2b2   :  { %v13492_v1 = vadd.f32 %v3310_v11, %v3267_v47  ;;  %v13494_v2 = vadd.f32 %v3396_v44, %v3352_v46 }
 0x2b3   :  { %3532 = vmatmul.bf16.gmra.mxu0 %v16206_v17  ;;  %3590 = vmatmul.bf16.vlgmr.msra.gmra.mxu2 %v16207_v34 }
 0x2b4   :  { %16205 = vst [vmem:[#allocation177_spill] sm:$0xff] %v13492_v1  ;;  %3576 = vmatmul.bf16.gmra.mxu1 %v16208_v21  ;;  %v11567_v1 = vld [vmem:[#allocation6 + $0x28c] sm:$0xf] }
 0x2b5   :  { %v9116_v34 = vor.u32 %v11567_v1, %v9113_v31  ;;  %v16215_v1 = vld [vmem:[#allocation26_spill] sm:$0xff] }
 0x2b6   :  { %3634 = vmatmul.bf16.vlgmr.msra.gmra.mxu3 %v16209_v35  ;;  %v3269_v26 = vpop.f32.mrf.mxu2 }
 0x2b7   :  { %v3270_v47 = vadd.f32 %v3269_v26, %v13410_v23  ;;  %3761 = vmatpush.bf16.msrb.mxu2 %v9116_v34  ;;  %v11599_v23 = vld [vmem:[#allocation6 + $0x38c] sm:$0xf]  ;;  %v9241_v26 = vld [vmem:[#allocation6 + $0x398] sm:$0xf0] }
 0x2b8   :  { %v3354_v46 = vpop.f32.mrf.mxu0 }
 0x2b9   :  { %v3313_v11 = vpop.f32.mrf.mxu3  ;;  %v3398_v10 = vpop.f32.mrf.mxu1 }
 0x2ba   :  { %v13501_v44 = vadd.f32 %v3313_v11, %v3270_v47  ;;  %v13503_v28 = vadd.f32 %v3398_v10, %v3354_v46  ;;  %v9244_v47 = vor.u32 %v11599_v23, %v9241_v26  ;;  %v16212_v11 = vld [vmem:[#allocation133_spill] sm:$0xff]  ;;  %v16214_v10 = vld [vmem:[#allocation134_spill] sm:$0xff] }
 0x2bb   :  { %v16213_v46 = vld [vmem:[#allocation25_spill] sm:$0xff]  ;;  %v11595_v23 = vld [vmem:[#allocation6 + $0x36c] sm:$0xf] }
 0x2bc   :  { %16210 = vst [vmem:[#allocation178_spill] sm:$0xff] %v13501_v44  ;;  %3805 = vmatpush.bf16.msrb.mxu3 %v9244_v47  ;;  %v9225_v44 = vld [vmem:[#allocation6 + $0x378] sm:$0xf0] }
 0x2be   :  { %v3271_v17 = vpop.f32.mrf.mxu2 }
 0x2bf   :  { %v3272_v35 = vadd.f32 %v3271_v17, %v13419_v39 }
 0x2c0   :  { %v3357_v38 = vpop.f32.mrf.mxu0 }
 0x2c1   :  { %v3315_v63 = vpop.f32.mrf.mxu3  ;;  %v3401_v9 = vpop.f32.mrf.mxu1 }
 0x2c2   :  { %v13506_v50 = vadd.f32 %v3315_v63, %v3272_v35  ;;  %v13508_v21 = vadd.f32 %v3401_v9, %v3357_v38  ;;  %v11563_v38 = vld [vmem:[#allocation6 + $0x26c] sm:$0xf]  ;;  %v9097_v9 = vld [vmem:[#allocation6 + $0x278] sm:$0xf0] }
 0x2c3   :  { %3595 = vmatmul.bf16.gmra.mxu2 %v16212_v11  ;;  %3678 = vmatmul.bf16.vlgmr.msra.gmra.mxu0 %v16213_v46  ;;  %v9100_v26 = vor.u32 %v11563_v38, %v9097_v9  ;;  %v9228_v46 = vor.u32 %v11595_v23, %v9225_v44  ;;  %v16219_v38 = vld [vmem:[#allocation36_spill] sm:$0xff] }
 0x2c4   :  { %16211 = vst [vmem:[#allocation179_spill] sm:$0xff] %v13506_v50  ;;  %3722 = vmatmul.bf16.vlgmr.msra.gmra.mxu1 %v16215_v1 }
 0x2c5   :  { %3762 = vmatpush.bf16.msrb.mxu2 %v9100_v26  ;;  %3806 = vmatpush.bf16.msrb.mxu3 %v9228_v46 }
 0x2c6   :  { %3639 = vmatmul.bf16.gmra.mxu3 %v16214_v10  ;;  %v3415_v39 = vpop.f32.mrf.mxu2 }
 0x2c7   :  { %v3416_v31 = vadd.f32 %v3415_v39, %v13424_v59 }
 0x2c8   :  { %v3359_v34 = vpop.f32.mrf.mxu0 }
 0x2c9   :  { %v3459_v17 = vpop.f32.mrf.mxu3  ;;  %v3403_v63 = vpop.f32.mrf.mxu1 }
 0x2ca   :  { %v3460_v35 = vadd.f32 %v3459_v17, %v3416_v31  ;;  %v13515_v50 = vadd.f32 %v3403_v63, %v3359_v34  ;;  %v16216_v17 = vld [vmem:[#allocation139_spill] sm:$0xff]  ;;  %v16218_v63 = vld [vmem:[#allocation140_spill] sm:$0xff] }
 0x2cb   :  { %v16217_v34 = vld [vmem:[#allocation35_spill] sm:$0xff] }
 0x2ce   :  { %v3417_v11 = vpop.f32.mrf.mxu2 }
 0x2cf   :  { %v3418_v1 = vadd.f32 %v3417_v11, %v13433_v25 }
 0x2d0   :  { %v3503_v10 = vpop.f32.mrf.mxu0 }
 0x2d1   :  { %v3461_v47 = vpop.f32.mrf.mxu3  ;;  %v3504_v39 = vadd.f32 %v3503_v10, %v3460_v35  ;;  %v3547_v13 = vpop.f32.mrf.mxu1  ;;  %v9081_v35 = vld [vmem:[#allocation6 + $0x258] sm:$0xf0] }
 0x2d2   :  { %v3462_v59 = vadd.f32 %v3461_v47, %v3418_v1  ;;  %v11591_v1 = vld [vmem:[#allocation6 + $0x34c] sm:$0xf] }
 0x2d3   :  { %v13518_v31 = vadd.f32 %v3547_v13, %v3504_v39  ;;  %3600 = vmatmul.bf16.gmra.mxu2 %v16216_v17  ;;  %3683 = vmatmul.bf16.gmra.mxu0 %v16217_v34  ;;  %v11559_v13 = vld [vmem:[#allocation6 + $0x24c] sm:$0xf]  ;;  %v9209_v39 = vld [vmem:[#allocation6 + $0x358] sm:$0xf0] }
 0x2d4   :  { %3727 = vmatmul.bf16.gmra.mxu1 %v16219_v38  ;;  %v9084_v47 = vor.u32 %v11559_v13, %v9081_v35  ;;  %v9212_v34 = vor.u32 %v11591_v1, %v9209_v39  ;;  %v9065_v39 = vld [vmem:[#allocation6 + $0x238] sm:$0xf0] }
 0x2d6   :  { %3644 = vmatmul.bf16.gmra.mxu3 %v16218_v63  ;;  %v3420_v44 = vpop.f32.mrf.mxu2  ;;  %3763 = vmatpush.bf16.msrb.mxu2 %v9084_v47 }
 0x2d7   :  { %v3421_v9 = vadd.f32 %v3420_v44, %v13438_v3  ;;  %3807 = vmatpush.bf16.msrb.mxu3 %v9212_v34 }
 0x2d8   :  { %v3505_v11 = vpop.f32.mrf.mxu0 }
 0x2d9   :  { %v3464_v25 = vpop.f32.mrf.mxu3  ;;  %v3506_v26 = vadd.f32 %v3505_v11, %v3462_v59  ;;  %v3549_v46 = vpop.f32.mrf.mxu1  ;;  %v16221_v11 = vld [vmem:[#allocation43_spill] sm:$0xff] }
 0x2da   :  { %v3465_v23 = vadd.f32 %v3464_v25, %v3421_v9  ;;  %v16220_v25 = vld [vmem:[#allocation143_spill] sm:$0xff] }
 0x2db   :  { %v13525_v10 = vadd.f32 %v3549_v46, %v3506_v26  ;;  %v16222_v26 = vld [vmem:[#allocation144_spill] sm:$0xff]  ;;  %v16223_v46 = vld [vmem:[#allocation45_spill] sm:$0xff] }
 0x2de   :  { %v3422_v17 = vpop.f32.mrf.mxu2 }
 0x2df   :  { %v3423_v38 = vadd.f32 %v3422_v17, %v13447_v60 }
 0x2e0   :  { %v3508_v3 = vpop.f32.mrf.mxu0 }
 0x2e1   :  { %v3466_v63 = vpop.f32.mrf.mxu3  ;;  %v3509_v19 = vadd.f32 %v3508_v3, %v3465_v23  ;;  %v3552_v9 = vpop.f32.mrf.mxu1  ;;  %v11555_v23 = vld [vmem:[#allocation6 + $0x22c] sm:$0xf]  ;;  %v9193_v3 = vld [vmem:[#allocation6 + $0x338] sm:$0xf0] }
 0x2e2   :  { %v3467_v44 = vadd.f32 %v3466_v63, %v3423_v38  ;;  %v11587_v38 = vld [vmem:[#allocation6 + $0x32c] sm:$0xf] }
 0x2e3   :  { %v13528_v59 = vadd.f32 %v3552_v9, %v3509_v19  ;;  %3605 = vmatmul.bf16.gmra.mxu2 %v16220_v25  ;;  %3688 = vmatmul.bf16.gmra.mxu0 %v16221_v11  ;;  %v9068_v19 = vor.u32 %v11555_v23, %v9065_v39  ;;  %v9196_v9 = vor.u32 %v11587_v38, %v9193_v3  ;;  %v9545_v39 = vld [vmem:[#allocation6 + $0x5f8] sm:$0xf0]  ;;  %v16227_v38 = vld [vmem:[#allocation57_spill] sm:$0xff]  ;;  %v11551_v3 = vld [vmem:[#allocation6 + $0x20c] sm:$0xf] }
 0x2e4   :  { %3732 = vmatmul.bf16.gmra.mxu1 %v16223_v46 }
 0x2e5   :  { %3764 = vmatpush.bf16.msrb.mxu2 %v9068_v19  ;;  %3808 = vmatpush.bf16.msrb.mxu3 %v9196_v9  ;;  %v16226_v19 = vld [vmem:[#allocation150_spill] sm:$0xff] }
 0x2e6   :  { %3649 = vmatmul.bf16.gmra.mxu3 %v16222_v26  ;;  %v3425_v13 = vpop.f32.mrf.mxu2 }
 0x2e7   :  { %v3426_v35 = vadd.f32 %v3425_v13, %v13452_v16 }
 0x2e8   :  { %v3510_v17 = vpop.f32.mrf.mxu0 }
 0x2e9   :  { %v3469_v60 = vpop.f32.mrf.mxu3  ;;  %v3511_v47 = vadd.f32 %v3510_v17, %v3467_v44  ;;  %v3554_v63 = vpop.f32.mrf.mxu1  ;;  %v11643_v44 = vld [vmem:[#allocation6 + $0x4ec] sm:$0xf] }
 0x2ea   :  { %v3470_v1 = vadd.f32 %v3469_v60, %v3426_v35  ;;  %v9417_v60 = vld [vmem:[#allocation6 + $0x4f8] sm:$0xf0]  ;;  %v11675_v17 = vld [vmem:[#allocation6 + $0x5ec] sm:$0xf] }
 0x2eb   :  { %v13535_v34 = vadd.f32 %v3554_v63, %v3511_v47  ;;  %v16224_v47 = vld [vmem:[#allocation149_spill] sm:$0xff]  ;;  %v16225_v63 = vld [vmem:[#allocation55_spill] sm:$0xff]  ;;  %v9420_v23 = vor.u32 %v11643_v44, %v9417_v60  ;;  %v9529_v60 = vld [vmem:[#allocation6 + $0x5d8] sm:$0xf0] }
 0x2ed   :  { %3846 = vmatpush.bf16.msrb.mxu0 %v9420_v23 }
 0x2ee   :  { %v3427_v11 = vpop.f32.mrf.mxu2 }
 0x2ef   :  { %v3428_v46 = vadd.f32 %v3427_v11, %v13461_v5  ;;  %v9548_v5 = vor.u32 %v11675_v17, %v9545_v39  ;;  %v11639_v11 = vld [vmem:[#allocation6 + $0x4cc] sm:$0xf] }
 0x2f0   :  { %v3513_v16 = vpop.f32.mrf.mxu0  ;;  %v11583_v39 = vld [vmem:[#allocation6 + $0x30c] sm:$0xf] }
 0x2f1   :  { %v3471_v26 = vpop.f32.mrf.mxu3  ;;  %v3514_v25 = vadd.f32 %v3513_v16, %v3470_v1  ;;  %v3557_v35 = vpop.f32.mrf.mxu1  ;;  %3890 = vmatpush.bf16.msrb.mxu1 %v9548_v5  ;;  %v9180_v23 = vor.u32 %v11583_v39, %v9177_v41  ;;  %v11635_v5 = vld [vmem:[#allocation6 + $0x4ac] sm:$0xf] }
 0x2f2   :  { %v3472_v13 = vadd.f32 %v3471_v26, %v3428_v46  ;;  %v9049_v26 = vld [vmem:[#allocation6 + $0x218] sm:$0xf0]  ;;  %v11671_v46 = vld [vmem:[#allocation6 + $0x5cc] sm:$0xf] }
 0x2f3   :  { %v13538_v29 = vadd.f32 %v3557_v35, %v3514_v25  ;;  %3610 = vmatmul.bf16.gmra.mxu2 %v16224_v47  ;;  %3693 = vmatmul.bf16.gmra.mxu0 %v16225_v63  ;;  %v9052_v1 = vor.u32 %v11551_v3, %v9049_v26  ;;  %v9401_v25 = vld [vmem:[#allocation6 + $0x4d8] sm:$0xf0]  ;;  %v11667_v26 = vld [vmem:[#allocation6 + $0x5ac] sm:$0xf] }
 0x2f4   :  { %3737 = vmatmul.bf16.gmra.mxu1 %v16227_v38  ;;  %v9404_v44 = vor.u32 %v11639_v11, %v9401_v25  ;;  %v9385_v3 = vld [vmem:[#allocation6 + $0x4b8] sm:$0xf0]  ;;  %3809 = vmatpush.bf16.msrb.mxu3 %v9180_v23  ;;  %v11631_v25 = vld [vmem:[#allocation6 + $0x48c] sm:$0xf] }
 0x2f5   :  { %3765 = vmatpush.bf16.msrb.mxu2 %v9052_v1  ;;  %v11627_v39 = vld [vmem:[#allocation6 + $0x46c] sm:$0xf]  ;;  %v9353_v23 = vld [vmem:[#allocation6 + $0x478] sm:$0xf0] }
 0x2f6   :  { %3654 = vmatmul.bf16.gmra.mxu3 %v16226_v19  ;;  %v3430_v9 = vpop.f32.mrf.mxu2  ;;  %v9532_v19 = vor.u32 %v11671_v46, %v9529_v60  ;;  %3847 = vmatpush.bf16.msrb.mxu0 %v9404_v44  ;;  %v11663_v46 = vld [vmem:[#allocation6 + $0x58c] sm:$0xf] }
 0x2f7   :  { %v3431_v16 = vadd.f32 %v3430_v9, %v13466_v54  ;;  %v9388_v54 = vor.u32 %v11635_v5, %v9385_v3  ;;  %v9513_v9 = vld [vmem:[#allocation6 + $0x5b8] sm:$0xf0]  ;;  %v11659_v5 = vld [vmem:[#allocation6 + $0x56c] sm:$0xf] }
 0x2f8   :  { %v3515_v63 = vpop.f32.mrf.mxu0  ;;  %3891 = vmatpush.bf16.msrb.mxu1 %v9532_v19  ;;  %v9516_v1 = vor.u32 %v11667_v26, %v9513_v9  ;;  %v9497_v19 = vld [vmem:[#allocation6 + $0x598] sm:$0xf0] }
 0x2f9   :  { %v3474_v35 = vpop.f32.mrf.mxu3  ;;  %v3516_v38 = vadd.f32 %v3515_v63, %v3472_v13  ;;  %v3559_v17 = vpop.f32.mrf.mxu1  ;;  %v9369_v13 = vld [vmem:[#allocation6 + $0x498] sm:$0xf0]  ;;  %v9500_v60 = vor.u32 %v11663_v46, %v9497_v19 }
 0x2fa   :  { %v3475_v47 = vadd.f32 %v3474_v35, %v3431_v16  ;;  %3848 = vmatpush.bf16.msrb.mxu0 %v9388_v54  ;;  %v9372_v41 = vor.u32 %v11631_v25, %v9369_v13  ;;  %v9481_v26 = vld [vmem:[#allocation6 + $0x578] sm:$0xf0]  ;;  %v11707_v54 = vld [vmem:[#allocation6 + $0x6ec] sm:$0xf] }
 0x2fb   :  { %v13545_v45 = vadd.f32 %v3559_v17, %v3516_v38  ;;  %v9484_v9 = vor.u32 %v11659_v5, %v9481_v26  ;;  %v9801_v25 = vld [vmem:[#allocation6 + $0x7f8] sm:$0xf0]  ;;  %v11619_v5 = vld [vmem:[#allocation6 + $0x42c] sm:$0xf] }
 0x2fc   :  { %3892 = vmatpush.bf16.msrb.mxu1 %v9516_v1  ;;  %v11739_v1 = vld [vmem:[#allocation6 + $0x7ec] sm:$0xf] }
 0x2fd   :  { %v9804_v46 = vor.u32 %v11739_v1, %v9801_v25  ;;  %v11651_v26 = vld [vmem:[#allocation6 + $0x52c] sm:$0xf]  ;;  %v9305_v25 = vld [vmem:[#allocation6 + $0x418] sm:$0xf0] }
 0x2fe   :  { %v3432_v11 = vpop.f32.mrf.mxu2  ;;  %3849 = vmatpush.bf16.msrb.mxu0 %v9372_v41  ;;  %v11655_v41 = vld [vmem:[#allocation6 + $0x54c] sm:$0xf] }
 0x2ff   :  { %v3433_v16 = vadd.f32 %v3432_v11, %v13475_v62  ;;  %v9356_v62 = vor.u32 %v11627_v39, %v9353_v23  ;;  %3978 = vmatpush.bf16.msra.mxu3 %v9804_v46 }
 0x300   :  { %v3518_v44 = vpop.f32.mrf.mxu0  ;;  %3893 = vmatpush.bf16.msrb.mxu1 %v9500_v60  ;;  %v9465_v60 = vld [vmem:[#allocation6 + $0x558] sm:$0xf0] }
 0x301   :  { %v3476_v35 = vpop.f32.mrf.mxu3  ;;  %v3519_v38 = vadd.f32 %v3518_v44, %v3475_v47  ;;  %v3562_v17 = vpop.f32.mrf.mxu1  ;;  %v9673_v47 = vld [vmem:[#allocation6 + $0x6f8] sm:$0xf0] }
 0x302   :  { %v3477_v63 = vadd.f32 %v3476_v35, %v3433_v16  ;;  %v9676_v11 = vor.u32 %v11707_v54, %v9673_v47  ;;  %3850 = vmatpush.bf16.msrb.mxu0 %v9356_v62  ;;  %v11623_v16 = vld [vmem:[#allocation6 + $0x44c] sm:$0xf]  ;;  %v9337_v35 = vld [vmem:[#allocation6 + $0x458] sm:$0xf0] }
 0x303   :  { %v13548_v3 = vadd.f32 %v3562_v17, %v3519_v38  ;;  %3615 = vmatmul.bf16.gmra.mxu2 %v13182_v18  ;;  %3698 = vmatmul.bf16.gmra.mxu0 %v12300_v42  ;;  %v9340_v44 = vor.u32 %v11623_v16, %v9337_v35  ;;  %v9468_v38 = vor.u32 %v11655_v41, %v9465_v60  ;;  %v9321_v62 = vld [vmem:[#allocation6 + $0x438] sm:$0xf0] }
 0x304   :  { %3742 = vmatmul.bf16.gmra.mxu1 %v12312_v48  ;;  %3934 = vmatpush.bf16.msra.mxu2 %v9676_v11  ;;  %v9324_v47 = vor.u32 %v11619_v5, %v9321_v62  ;;  %v11615_v11 = vld [vmem:[#allocation6 + $0x40c] sm:$0xf]  ;;  %v9433_v35 = vld [vmem:[#allocation6 + $0x518] sm:$0xf0] }
 0x305   :  { %3894 = vmatpush.bf16.msrb.mxu1 %v9484_v9  ;;  %v9449_v9 = vld [vmem:[#allocation6 + $0x538] sm:$0xf0]  ;;  %v9308_v16 = vor.u32 %v11615_v11, %v9305_v25 }
 0x306   :  { %3659 = vmatmul.bf16.gmra.mxu3 %v13188_v61  ;;  %v3435_v13 = vpop.f32.mrf.mxu2  ;;  %3851 = vmatpush.bf16.msrb.mxu0 %v9340_v44  ;;  %v9785_v5 = vld [vmem:[#allocation6 + $0x7d8] sm:$0xf0] }
 0x307   :  { %v3436_v42 = vadd.f32 %v3435_v13, %v13480_v51  ;;  %v9452_v51 = vor.u32 %v11651_v26, %v9449_v9  ;;  %v11647_v13 = vld [vmem:[#allocation6 + $0x50c] sm:$0xf] }
 0x308   :  { %v3520_v48 = vpop.f32.mrf.mxu0 }
 0x309   :  { %v3479_v19 = vpop.f32.mrf.mxu3  ;;  %v3521_v39 = vadd.f32 %v3520_v48, %v3477_v63  ;;  %v3564_v23 = vpop.f32.mrf.mxu1  ;;  %3895 = vmatpush.bf16.msrb.mxu1 %v9468_v38  ;;  %v11703_v38 = vld [vmem:[#allocation6 + $0x6cc] sm:$0xf] }
 0x30a   :  { %v3480_v17 = vadd.f32 %v3479_v19, %v3436_v42  ;;  %3852 = vmatpush.bf16.msrb.mxu0 %v9324_v47  ;;  %v9436_v42 = vor.u32 %v11647_v13, %v9433_v35 }
 0x30b   :  { %v13555_v54 = vadd.f32 %v3564_v23, %v3521_v39  ;;  %v9657_v39 = vld [vmem:[#allocation6 + $0x6d8] sm:$0xf0]  ;;  %v11735_v23 = vld [vmem:[#allocation6 + $0x7cc] sm:$0xf] }
 0x30c   :  { %v9788_v62 = vor.u32 %v11735_v23, %v9785_v5 }
 0x30d   :  { %3896 = vmatpush.bf16.msrb.mxu1 %v9452_v51 }
 0x30e   :  { %v3437_v1 = vpop.f32.mrf.mxu2  ;;  %3853 = vmatpush.bf16.msrb.mxu0 %v9308_v16  ;;  %3979 = vmatpush.bf16.msra.mxu3 %v9788_v62 }
 0x30f   :  { %v3438_v46 = vadd.f32 %v3437_v1, %v13489_v57  ;;  %v9660_v57 = vor.u32 %v11703_v38, %v9657_v39 }
 0x310   :  { %v3523_v41 = vpop.f32.mrf.mxu0 }
 0x311   :  { %v3481_v63 = vpop.f32.mrf.mxu3  ;;  %v3524_v44 = vadd.f32 %v3523_v41, %v3480_v17  ;;  %v3567_v60 = vpop.f32.mrf.mxu1  ;;  %3897 = vmatpush.bf16.msrb.mxu1 %v9436_v42  ;;  %3935 = vmatpush.bf16.msra.mxu2 %v9660_v57  ;;  %v11699_v41 = vld [vmem:[#allocation6 + $0x6ac] sm:$0xf]  ;;  %v9641_v42 = vld [vmem:[#allocation6 + $0x6b8] sm:$0xf0] }
 0x312   :  { %v3482_v19 = vadd.f32 %v3481_v63, %v3438_v46 }
 0x313   :  { %v13558_v48 = vadd.f32 %v3567_v60, %v3524_v44  ;;  %3620 = vmatmul.bf16.gmra.mxu2 %v13216_v43  ;;  %3703 = vmatmul.bf16.gmra.mxu0 %v12368_v49  ;;  %v9644_v44 = vor.u32 %v11699_v41, %v9641_v42  ;;  %v9769_v60 = vld [vmem:[#allocation6 + $0x7b8] sm:$0xf0] }
 0x314   :  { %3747 = vmatmul.bf16.gmra.mxu1 %v12381_v55 }
 0x315   :  { %3936 = vmatpush.bf16.msra.mxu2 %v9644_v44 }
 0x316   :  { %3664 = vmatmul.bf16.gmra.mxu3 %v13220_v32  ;;  %v3440_v17 = vpop.f32.mrf.mxu2 }
 0x317   :  { %v3441_v26 = vadd.f32 %v3440_v17, %v13494_v2  ;;  %v11731_v2 = vld [vmem:[#allocation6 + $0x7ac] sm:$0xf] }
 0x318   :  { %v3525_v9 = vpop.f32.mrf.mxu0 }
 0x319   :  { %v3484_v47 = vpop.f32.mrf.mxu3  ;;  %v3526_v1 = vadd.f32 %v3525_v9, %v3482_v19  ;;  %v3569_v49 = vpop.f32.mrf.mxu1  ;;  %v9772_v19 = vor.u32 %v11731_v2, %v9769_v60  ;;  %v11691_v2 = vld [vmem:[#allocation6 + $0x66c] sm:$0xf]  ;;  %v9609_v60 = vld [vmem:[#allocation6 + $0x678] sm:$0xf0] }
 0x31a   :  { %v3485_v51 = vadd.f32 %v3484_v47, %v3441_v26  ;;  %v11695_v26 = vld [vmem:[#allocation6 + $0x68c] sm:$0xf]  ;;  %v9625_v47 = vld [vmem:[#allocation6 + $0x698] sm:$0xf0] }
 0x31b   :  { %v13565_v11 = vadd.f32 %v3569_v49, %v3526_v1  ;;  %3980 = vmatpush.bf16.msra.mxu3 %v9772_v19  ;;  %v11723_v19 = vld [vmem:[#allocation6 + $0x76c] sm:$0xf] }
 0x31e   :  { %v3442_v25 = vpop.f32.mrf.mxu2 }
 0x31f   :  { %v3443_v13 = vadd.f32 %v3442_v25, %v13503_v28 }
 0x320   :  { %v3528_v46 = vpop.f32.mrf.mxu0 }
 0x321   :  { %v3486_v55 = vpop.f32.mrf.mxu3  ;;  %v3529_v16 = vadd.f32 %v3528_v46, %v3485_v51  ;;  %v3572_v35 = vpop.f32.mrf.mxu1 }
 0x322   :  { %v3487_v63 = vadd.f32 %v3486_v55, %v3443_v13  ;;  %v9753_v13 = vld [vmem:[#allocation6 + $0x798] sm:$0xf0] }
 0x323   :  { %v13568_v38 = vadd.f32 %v3572_v35, %v3529_v16  ;;  %3708 = vmatmul.bf16.gmra.mxu0 %v12428_v24  ;;  %3766 = vmatmul.bf16.vlgmr.msrb.gmra.mxu2 %v12498_v58  ;;  %v9628_v58 = vor.u32 %v11695_v26, %v9625_v47 }
 0x324   :  { %3752 = vmatmul.bf16.gmra.mxu1 %v12441_v15 }
 0x325   :  { %3937 = vmatpush.bf16.msra.mxu2 %v9628_v58 }
 0x326   :  { %3810 = vmatmul.bf16.vlgmr.msrb.gmra.mxu3 %v12511_v37  ;;  %v3445_v28 = vpop.f32.mrf.mxu2 }
 0x327   :  { %v3446_v39 = vadd.f32 %v3445_v28, %v13508_v21  ;;  %v11727_v21 = vld [vmem:[#allocation6 + $0x78c] sm:$0xf]  ;;  %v9737_v28 = vld [vmem:[#allocation6 + $0x778] sm:$0xf0] }
 0x328   :  { %v3530_v23 = vpop.f32.mrf.mxu0  ;;  %v9756_v55 = vor.u32 %v11727_v21, %v9753_v13 }
 0x329   :  { %v3489_v57 = vpop.f32.mrf.mxu3  ;;  %v3531_v62 = vadd.f32 %v3530_v23, %v3487_v63  ;;  %v3574_v17 = vpop.f32.mrf.mxu1 }
 0x32a   :  { %v3490_v5 = vadd.f32 %v3489_v57, %v3446_v39  ;;  %3981 = vmatpush.bf16.msra.mxu3 %v9756_v55 }
 0x32b   :  { %v13575_v24 = vadd.f32 %v3574_v17, %v3531_v62 }
 0x32e   :  { %v3447_v9 = vpop.f32.mrf.mxu2 }
 0x32f   :  { %v3448_v15 = vadd.f32 %v3447_v9, %v13515_v50 }
 0x330   :  { %v3533_v51 = vpop.f32.mrf.mxu0 }
 0x331   :  { %v3491_v37 = vpop.f32.mrf.mxu3  ;;  %v3534_v49 = vadd.f32 %v3533_v51, %v3490_v5  ;;  %v3577_v25 = vpop.f32.mrf.mxu1  ;;  %v9593_v51 = vld [vmem:[#allocation6 + $0x658] sm:$0xf0] }
 0x332   :  { %v3492_v1 = vadd.f32 %v3491_v37, %v3448_v15  ;;  %v11687_v37 = vld [vmem:[#allocation6 + $0x64c] sm:$0xf] }
 0x333   :  { %v13578_v46 = vadd.f32 %v3577_v25, %v3534_v49  ;;  %3771 = vmatmul.bf16.gmra.mxu2 %v12570_v52  ;;  %3854 = vmatmul.bf16.vlgmr.msrb.gmra.mxu0 %v12576_v4  ;;  %v9612_v4 = vor.u32 %v11691_v2, %v9609_v60  ;;  %v9721_v49 = vld [vmem:[#allocation6 + $0x758] sm:$0xf0] }
 0x334   :  { %3898 = vmatmul.bf16.vlgmr.msrb.gmra.mxu1 %v12588_v53  ;;  %v9577_v2 = vld [vmem:[#allocation6 + $0x638] sm:$0xf0] }
 0x335   :  { %3938 = vmatpush.bf16.msra.mxu2 %v9612_v4  ;;  %v9705_v4 = vld [vmem:[#allocation6 + $0x738] sm:$0xf0] }
 0x336   :  { %3815 = vmatmul.bf16.gmra.mxu3 %v12582_v22  ;;  %v3591_v50 = vpop.f32.mrf.mxu2  ;;  %v9740_v22 = vor.u32 %v11723_v19, %v9737_v28 }
 0x337   :  { %v3592_v63 = vadd.f32 %v3591_v50, %v13518_v31 }
 0x338   :  { %v3535_v35 = vpop.f32.mrf.mxu0  ;;  %3982 = vmatpush.bf16.msra.mxu3 %v9740_v22 }
 0x339   :  { %v3635_v16 = vpop.f32.mrf.mxu3  ;;  %v3536_v42 = vadd.f32 %v3535_v35, %v3492_v1  ;;  %v3579_v44 = vpop.f32.mrf.mxu1  ;;  %v11719_v1 = vld [vmem:[#allocation6 + $0x74c] sm:$0xf] }
 0x33a   :  { %v13585_v41 = vadd.f32 %v3635_v16, %v3592_v63 }
 0x33b   :  { %v13587_v52 = vadd.f32 %v3579_v44, %v3536_v42  ;;  %v11683_v44 = vld [vmem:[#allocation6 + $0x62c] sm:$0xf] }
 0x33c   :  { %16228 = vst [vmem:[#allocation25_spill] sm:$0xff] %v13585_v41  ;;  %v9580_v19 = vor.u32 %v11683_v44, %v9577_v2 }
 0x33e   :  { %v3593_v53 = vpop.f32.mrf.mxu2 }
 0x33f   :  { %v3594_v39 = vadd.f32 %v3593_v53, %v13525_v10 }
 0x340   :  { %v3679_v57 = vpop.f32.mrf.mxu0 }
 0x341   :  { %v3637_v31 = vpop.f32.mrf.mxu3  ;;  %v3723_v5 = vpop.f32.mrf.mxu1 }
 0x342   :  { %v13590_v23 = vadd.f32 %v3637_v31, %v3594_v39  ;;  %v13592_v62 = vadd.f32 %v3723_v5, %v3679_v57  ;;  %v9919_v31 = vld [vmem:[#allocation4 + $0xe0] sm:$0xf]  ;;  %v11260_v57 = vld [vmem:[#allocation4 + $0xec] sm:$0xf0] }
 0x343   :  { %3776 = vmatmul.bf16.gmra.mxu2 %v12638_v56  ;;  %3859 = vmatmul.bf16.gmra.mxu0 %v12644_v0  ;;  %v9596_v56 = vor.u32 %v11687_v37, %v9593_v51  ;;  %v9724_v0 = vor.u32 %v11719_v1, %v9721_v49  ;;  %v10047_v5 = vld [vmem:[#allocation4 + $0x1e0] sm:$0xf]  ;;  %v11256_v1 = vld [vmem:[#allocation4 + $0xcc] sm:$0xf0] }
 0x344   :  { %16229 = vst [vmem:[#allocation26_spill] sm:$0xff] %v13590_v23  ;;  %3903 = vmatmul.bf16.gmra.mxu1 %v12656_v14  ;;  %v9903_v51 = vld [vmem:[#allocation4 + $0xc0] sm:$0xf] }
 0x345   :  { %3939 = vmatpush.bf16.msra.mxu2 %v9596_v56  ;;  %3983 = vmatpush.bf16.msra.mxu3 %v9724_v0  ;;  %v10031_v56 = vld [vmem:[#allocation4 + $0x1c0] sm:$0xf]  ;;  %v11288_v0 = vld [vmem:[#allocation4 + $0x1cc] sm:$0xf0] }
 0x346   :  { %3820 = vmatmul.bf16.gmra.mxu3 %v12650_v40  ;;  %v3596_v17 = vpop.f32.mrf.mxu2 }
 0x347   :  { %v3597_v26 = vadd.f32 %v3596_v17, %v13528_v59  ;;  %v9920_v17 = vor.u32 %v11260_v57, %v9919_v31 }
 0x348   :  { %v3681_v10 = vpop.f32.mrf.mxu0 }
 0x349   :  { %v3640_v47 = vpop.f32.mrf.mxu3  ;;  %v3725_v9 = vpop.f32.mrf.mxu1  ;;  %3940 = vmatpush.bf16.msra.mxu2 %v9580_v19  ;;  %5302 = vmatpush.bf16.msra.mxu0 %v9920_v17  ;;  %v9871_v19 = vld [vmem:[#allocation4 + $0x80] sm:$0xf] }
 0x34a   :  { %v13599_v58 = vadd.f32 %v3640_v47, %v3597_v26  ;;  %v13601_v15 = vadd.f32 %v3725_v9, %v3681_v10  ;;  %v11292_v26 = vld [vmem:[#allocation4 + $0x1ec] sm:$0xf0]  ;;  %v11679_v47 = vld [vmem:[#allocation6 + $0x60c] sm:$0xf]  ;;  %v9561_v10 = vld [vmem:[#allocation6 + $0x618] sm:$0xf0] }
 0x34b   :  { %v9564_v9 = vor.u32 %v11679_v47, %v9561_v10  ;;  %v9855_v17 = vld [vmem:[#allocation4 + $0x60] sm:$0xf]  ;;  %v16236_v47 = vld [vmem:[#allocation102_spill] sm:$0xff]  ;;  %v11276_v10 = vld [vmem:[#allocation4 + $0x16c] sm:$0xf0] }
 0x34c   :  { %16230 = vst [vmem:[#allocation35_spill] sm:$0xff] %v13599_v58  ;;  %v229_v58 = vld [vmem:[#allocation2 + $0x218] sm:$0xff] }
 0x34d   :  { %3941 = vmatpush.bf16.msra.mxu2 %v9564_v9  ;;  %v16237_v9 = vld [vmem:[#allocation103_spill] sm:$0xff] }
 0x34e   :  { %v3598_v40 = vpop.f32.mrf.mxu2 }
 0x34f   :  { %v3599_v14 = vadd.f32 %v3598_v40, %v13535_v34 }
 0x350   :  { %v3684_v59 = vpop.f32.mrf.mxu0 }
 0x351   :  { %v3642_v25 = vpop.f32.mrf.mxu3  ;;  %v3728_v13 = vpop.f32.mrf.mxu1 }
 0x352   :  { %v13604_v21 = vadd.f32 %v3642_v25, %v3599_v14  ;;  %v13606_v55 = vadd.f32 %v3728_v13, %v3684_v59  ;;  %v11711_v25 = vld [vmem:[#allocation6 + $0x70c] sm:$0xf]  ;;  %v9689_v59 = vld [vmem:[#allocation6 + $0x718] sm:$0xf0] }
 0x353   :  { %3781 = vmatmul.bf16.gmra.mxu2 %v12698_v33  ;;  %3864 = vmatmul.bf16.gmra.mxu0 %v12704_v30  ;;  %v11715_v33 = vld [vmem:[#allocation6 + $0x72c] sm:$0xf] }
 0x354   :  { %16231 = vst [vmem:[#allocation36_spill] sm:$0xff] %v13604_v21  ;;  %3908 = vmatmul.bf16.gmra.mxu1 %v12714_v20  ;;  %v9708_v30 = vor.u32 %v11715_v33, %v9705_v4  ;;  %v11248_v33 = vld [vmem:[#allocation4 + $0x8c] sm:$0xf0]  ;;  %v9999_v4 = vld [vmem:[#allocation4 + $0x180] sm:$0xf] }
 0x356   :  { %3825 = vmatmul.bf16.gmra.mxu3 %v12708_v8  ;;  %v3601_v50 = vpop.f32.mrf.mxu2 }
 0x357   :  { %v3602_v63 = vadd.f32 %v3601_v50, %v13538_v29  ;;  %3984 = vmatpush.bf16.msra.mxu3 %v9708_v30  ;;  %v9692_v50 = vor.u32 %v11711_v25, %v9689_v59 }
 0x358   :  { %v3686_v34 = vpop.f32.mrf.mxu0 }
 0x359   :  { %v3645_v16 = vpop.f32.mrf.mxu3  ;;  %v3730_v42 = vpop.f32.mrf.mxu1 }
 0x35a   :  { %v13613_v35 = vadd.f32 %v3645_v16, %v3602_v63  ;;  %v13615_v60 = vadd.f32 %v3730_v42, %v3686_v34  ;;  %v9887_v63 = vld [vmem:[#allocation4 + $0xa0] sm:$0xf]  ;;  %v11252_v16 = vld [vmem:[#allocation4 + $0xac] sm:$0xf0] }
 0x35b   :  { %v10015_v34 = vld [vmem:[#allocation4 + $0x1a0] sm:$0xf]  ;;  %v11284_v42 = vld [vmem:[#allocation4 + $0x1ac] sm:$0xf0]  ;;  %3985 = vmatpush.bf16.msra.mxu3 %v9692_v50 }
 0x35c   :  { %16232 = vst [vmem:[#allocation43_spill] sm:$0xff] %v13613_v35  ;;  %v10016_v44 = vor.u32 %v11284_v42, %v10015_v34 }
 0x35e   :  { %v3603_v8 = vpop.f32.mrf.mxu2 }
 0x35f   :  { %v3604_v20 = vadd.f32 %v3603_v8, %v13545_v45  ;;  %v10048_v45 = vor.u32 %v11292_v26, %v10047_v5  ;;  %v11244_v26 = vld [vmem:[#allocation4 + $0x6c] sm:$0xf0] }
 0x360   :  { %v3689_v29 = vpop.f32.mrf.mxu0 }
 0x361   :  { %v3647_v28 = vpop.f32.mrf.mxu3  ;;  %v3733_v53 = vpop.f32.mrf.mxu1  ;;  %5346 = vmatpush.bf16.msra.mxu1 %v10048_v45  ;;  %v9983_v45 = vld [vmem:[#allocation4 + $0x160] sm:$0xf] }
 0x362   :  { %v13618_v22 = vadd.f32 %v3647_v28, %v3604_v20  ;;  %v13620_v39 = vadd.f32 %v3733_v53, %v3689_v29  ;;  %v9872_v20 = vor.u32 %v11248_v33, %v9871_v19  ;;  %v11280_v28 = vld [vmem:[#allocation4 + $0x18c] sm:$0xf0]  ;;  %v9951_v33 = vld [vmem:[#allocation4 + $0x120] sm:$0xf] }
 0x363   :  { %3786 = vmatmul.bf16.gmra.mxu2 %v16149_v12  ;;  %3869 = vmatmul.bf16.gmra.mxu0 %v16150_v36  ;;  %v9904_v36 = vor.u32 %v11256_v1, %v9903_v51  ;;  %v10000_v53 = vor.u32 %v11280_v28, %v9999_v4  ;;  %v10175_v51 = vld [vmem:[#allocation4 + $0x2e0] sm:$0xf]  ;;  %v11324_v1 = vld [vmem:[#allocation4 + $0x2ec] sm:$0xf0] }
 0x364   :  { %16233 = vst [vmem:[#allocation45_spill] sm:$0xff] %v13618_v22  ;;  %3913 = vmatmul.bf16.gmra.mxu1 %v16152_v6  ;;  %v11236_v19 = vld [vmem:[#allocation4 + $0x2c] sm:$0xf0]  ;;  %v10767_v22 = vld [vmem:[#allocation4 + $0x780] sm:$0xf] }
 0x365   :  { %5303 = vmatpush.bf16.msra.mxu0 %v9904_v36  ;;  %v11356_v36 = vld [vmem:[#allocation4 + $0x3ec] sm:$0xf0] }
 0x366   :  { %3830 = vmatmul.bf16.gmra.mxu3 %v16151_v27  ;;  %v3606_v37 = vpop.f32.mrf.mxu2  ;;  %v10032_v27 = vor.u32 %v11288_v0, %v10031_v56  ;;  %v9984_v56 = vor.u32 %v11276_v10, %v9983_v45  ;;  %v11232_v28 = vld [vmem:[#allocation4 + $0xc] sm:$0xf0] }
 0x367   :  { %v3607_v12 = vadd.f32 %v3606_v37, %v13548_v3  ;;  %v9888_v3 = vor.u32 %v11252_v16, %v9887_v63  ;;  %v16238_v37 = vld [vmem:[#allocation104_spill] sm:$0xff]  ;;  %v11272_v63 = vld [vmem:[#allocation4 + $0x14c] sm:$0xf0] }
 0x368   :  { %v3691_v40 = vpop.f32.mrf.mxu0  ;;  %5347 = vmatpush.bf16.msra.mxu1 %v10032_v27  ;;  %v9839_v27 = vld [vmem:[#allocation4 + $0x40] sm:$0xf] }
 0x369   :  { %v3650_v49 = vpop.f32.mrf.mxu3  ;;  %v3735_v6 = vpop.f32.mrf.mxu1  ;;  %5304 = vmatpush.bf16.msra.mxu0 %v9888_v3 }
 0x36a   :  { %v13627_v14 = vadd.f32 %v3650_v49, %v3607_v12  ;;  %v13629_v13 = vadd.f32 %v3735_v6, %v3691_v40  ;;  %v10303_v12 = vld [vmem:[#allocation4 + $0x3e0] sm:$0xf]  ;;  %v10176_v49 = vor.u32 %v11324_v1, %v10175_v51  ;;  %v11320_v51 = vld [vmem:[#allocation4 + $0x2cc] sm:$0xf0] }
 0x36b   :  { %v10304_v40 = vor.u32 %v11356_v36, %v10303_v12  ;;  %v9967_v6 = vld [vmem:[#allocation4 + $0x140] sm:$0xf]  ;;  %v16241_v1 = vld [vmem:[#allocation111_spill] sm:$0xff] }
 0x36c   :  { %16234 = vst [vmem:[#allocation55_spill] sm:$0xff] %v13627_v14  ;;  %5348 = vmatpush.bf16.msra.mxu1 %v10016_v44  ;;  %5390 = vmatpush.bf16.msrb.mxu2 %v10176_v49  ;;  %v9968_v34 = vor.u32 %v11272_v63, %v9967_v6  ;;  %v16244_v49 = vld [vmem:[#allocation115_spill] sm:$0xff]  ;;  %v10287_v36 = vld [vmem:[#allocation4 + $0x3c0] sm:$0xf] }
 0x36d   :  { %5305 = vmatpush.bf16.msra.mxu0 %v9872_v20  ;;  %5434 = vmatpush.bf16.msrb.mxu3 %v10304_v40  ;;  %v9807_v20 = vld [vmem:[#allocation4] sm:$0xf] }
 0x36e   :  { %v3608_v2 = vpop.f32.mrf.mxu2 }
 0x36f   :  { %v3609_v30 = vadd.f32 %v3608_v2, %v13555_v54  ;;  %v9856_v54 = vor.u32 %v11244_v26, %v9855_v17  ;;  %v9823_v2 = vld [vmem:[#allocation4 + $0x20] sm:$0xf]  ;;  %v9808_v17 = vor.u32 %v11232_v28, %v9807_v20  ;;  %v11264_v26 = vld [vmem:[#allocation4 + $0x10c] sm:$0xf0] }
 0x370   :  { %v3694_v29 = vpop.f32.mrf.mxu0  ;;  %5349 = vmatpush.bf16.msra.mxu1 %v10000_v53  ;;  %v9824_v4 = vor.u32 %v11236_v19, %v9823_v2  ;;  %v162_v2 = vld [vmem:[#allocation2] sm:$0xff] }
 0x371   :  { %v3652_v8 = vpop.f32.mrf.mxu3  ;;  %v3738_v57 = vpop.f32.mrf.mxu1  ;;  %5306 = vmatpush.bf16.msra.mxu0 %v9856_v54  ;;  %v16247_v28 = vld [vmem:[#allocation13_spill] sm:$0xff] }
 0x372   :  { %v13632_v31 = vadd.f32 %v3652_v8, %v3609_v30  ;;  %v13634_v5 = vadd.f32 %v3738_v57, %v3694_v29  ;;  %v11268_v30 = vld [vmem:[#allocation4 + $0x12c] sm:$0xf0]  ;;  %v9935_v29 = vld [vmem:[#allocation4 + $0x100] sm:$0xf] }
 0x373   :  { %3791 = vmatmul.bf16.gmra.mxu2 %v16155_v7  ;;  %3874 = vmatmul.bf16.gmra.mxu0 %v16236_v47  ;;  %v11240_v7 = vld [vmem:[#allocation4 + $0x4c] sm:$0xf0]  ;;  %v9936_v47 = vor.u32 %v11264_v26, %v9935_v29  ;;  %v308_v29 = vmul.f32 %v16247_v28, %v162_v2  ;;  %v16250_v26 = vld [vmem:[#allocation14_spill] sm:$0xff]  ;;  %v16256_v2 = vld [vmem:[#allocation17_spill] sm:$0xff] }
 0x374   :  { %16235 = vst [vmem:[#allocation57_spill] sm:$0xff] %v13632_v31  ;;  %3918 = vmatmul.bf16.gmra.mxu1 %v16238_v37  ;;  %v9840_v50 = vor.u32 %v11240_v7, %v9839_v27  ;;  %v10159_v37 = vld [vmem:[#allocation4 + $0x2c0] sm:$0xf]  ;;  %v11440_v31 = vld [vmem:[#allocation4 + $0x68c] sm:$0xf0] }
 0x375   :  { %5350 = vmatpush.bf16.msra.mxu1 %v9984_v56  ;;  %v16242_v56 = vld [vmem:[#allocation113_spill] sm:$0xff]  ;;  %v10160_v12 = vor.u32 %v11320_v51, %v10159_v37 }
 0x376   :  { %3835 = vmatmul.bf16.gmra.mxu3 %v16237_v9  ;;  %v3611_v0 = vpop.f32.mrf.mxu2  ;;  %5307 = vmatpush.bf16.msra.mxu0 %v9840_v50 }
 0x377   :  { %v3612_v25 = vadd.f32 %v3611_v0, %v13558_v48  ;;  %v9952_v48 = vor.u32 %v11268_v30, %v9951_v33  ;;  %v11352_v0 = vld [vmem:[#allocation4 + $0x3cc] sm:$0xf0]  ;;  %5391 = vmatpush.bf16.msrb.mxu2 %v10160_v12  ;;  %v163_v33 = vld [vmem:[#allocation2 + $0x8] sm:$0xff] }
 0x378   :  { %v3696_v16 = vpop.f32.mrf.mxu0  ;;  %v10288_v40 = vor.u32 %v11352_v0, %v10287_v36 }
 0x379   :  { %v3655_v59 = vpop.f32.mrf.mxu3  ;;  %v3740_v42 = vpop.f32.mrf.mxu1  ;;  %5351 = vmatpush.bf16.msra.mxu1 %v9968_v34 }
 0x37a   :  { %v13641_v3 = vadd.f32 %v3655_v59, %v3612_v25  ;;  %v13643_v44 = vadd.f32 %v3740_v42, %v3696_v16  ;;  %5308 = vmatpush.bf16.msra.mxu0 %v9824_v4  ;;  %5435 = vmatpush.bf16.msrb.mxu3 %v10288_v40 }
 0x37c   :  { %16239 = vst [vmem:[#allocation102_spill] sm:$0xff] %v13641_v3  ;;  %v10639_v3 = vld [vmem:[#allocation4 + $0x680] sm:$0xf] }
 0x37d   :  { %5352 = vmatpush.bf16.msra.mxu1 %v9952_v48  ;;  %v10143_v48 = vld [vmem:[#allocation4 + $0x2a0] sm:$0xf] }
 0x37e   :  { %v3613_v8 = vpop.f32.mrf.mxu2  ;;  %5309 = vmatpush.bf16.msra.mxu0 %v9808_v17  ;;  %v10271_v17 = vld [vmem:[#allocation4 + $0x3a0] sm:$0xf] }
 0x37f   :  { %v3614_v53 = vadd.f32 %v3613_v8, %v13565_v11  ;;  %v16243_v11 = vld [vmem:[#allocation112_spill] sm:$0xff] }
 0x380   :  { %v3699_v45 = vpop.f32.mrf.mxu0 }
 0x381   :  { %v3657_v57 = vpop.f32.mrf.mxu3  ;;  %v3743_v10 = vpop.f32.mrf.mxu1  ;;  %5353 = vmatpush.bf16.msra.mxu1 %v9936_v47  ;;  %v16251_v47 = vld [vmem:[#allocation127_spill] sm:$0xff] }
 0x382   :  { %v13646_v54 = vadd.f32 %v3657_v57, %v3614_v53  ;;  %v13648_v9 = vadd.f32 %v3743_v10, %v3699_v45  ;;  %v16248_v53 = vld [vmem:[#allocation125_spill] sm:$0xff]  ;;  %v16249_v57 = vld [vmem:[#allocation126_spill] sm:$0xff]  ;;  %v309_v45 = vmul.f32 %v16250_v26, %v163_v33  ;;  %v16252_v10 = vld [vmem:[#allocation128_spill] sm:$0xff] }
 0x383   :  { %3796 = vmatmul.bf16.gmra.mxu2 %v16241_v1  ;;  %3879 = vmatmul.bf16.gmra.mxu0 %v16242_v56  ;;  %v16253_v1 = vld [vmem:[#allocation15_spill] sm:$0xff] }
 0x384   :  { %16240 = vst [vmem:[#allocation103_spill] sm:$0xff] %v13646_v54  ;;  %3923 = vmatmul.bf16.gmra.mxu1 %v16244_v49  ;;  %v454_v56 = vadd.f32 %v16253_v1, %v308_v29  ;;  %v16254_v49 = vld [vmem:[#allocation16_spill] sm:$0xff] }
 0x385   :  { %v455_v36 = vadd.f32 %v16254_v49, %v309_v45 }
 0x386   :  { %3840 = vmatmul.bf16.gmra.mxu3 %v16243_v11  ;;  %v3616_v27 = vpop.f32.mrf.mxu2 }
 0x387   :  { %v3617_v7 = vadd.f32 %v3616_v27, %v13568_v38  ;;  %v11316_v38 = vld [vmem:[#allocation4 + $0x2ac] sm:$0xf0] }
 0x388   :  { %v3701_v25 = vpop.f32.mrf.mxu0  ;;  %v10144_v20 = vor.u32 %v11316_v38, %v10143_v48  ;;  %v16259_v48 = vld [vmem:[#allocation21_spill] sm:$0xff] }
 0x389   :  { %v3660_v6 = vpop.f32.mrf.mxu3  ;;  %v3745_v50 = vpop.f32.mrf.mxu1  ;;  %v16260_v38 = vmax.f32 %v16259_v48, 0.0 }
 0x38a   :  { %v13655_v59 = vadd.f32 %v3660_v6, %v3617_v7  ;;  %v13657_v63 = vadd.f32 %v3745_v50, %v3701_v25  ;;  %5392 = vmatpush.bf16.msrb.mxu2 %v10144_v20  ;;  %v582_v6 = vmax.f32 %v454_v56, 0.0  ;;  %v10127_v25 = vld [vmem:[#allocation4 + $0x280] sm:$0xf]  ;;  %v11312_v50 = vld [vmem:[#allocation4 + $0x28c] sm:$0xf0] }
 0x38c   :  { %16245 = vst [vmem:[#allocation104_spill] sm:$0xff] %v13655_v59 }
 0x38e   :  { %v3618_v16 = vpop.f32.mrf.mxu2 }
 0x38f   :  { %v3619_v34 = vadd.f32 %v3618_v16, %v13575_v24  ;;  %v11348_v24 = vld [vmem:[#allocation4 + $0x3ac] sm:$0xf0]  ;;  %v583_v16 = vmax.f32 %v455_v36, 0.0 }
 0x390   :  { %v3704_v19 = vpop.f32.mrf.mxu0  ;;  %v10272_v37 = vor.u32 %v11348_v24, %v10271_v17  ;;  %v10255_v17 = vld [vmem:[#allocation4 + $0x380] sm:$0xf]  ;;  %v11344_v24 = vld [vmem:[#allocation4 + $0x38c] sm:$0xf0] }
 0x391   :  { %v3662_v42 = vpop.f32.mrf.mxu3  ;;  %v3748_v30 = vpop.f32.mrf.mxu1  ;;  %v13684_v20 = vpack.c.bf16 %v16260_v38, %v583_v16  ;;  %v11340_v16 = vld [vmem:[#allocation4 + $0x36c] sm:$0xf0] }
 0x392   :  { %v13660_v4 = vadd.f32 %v3662_v42, %v3619_v34  ;;  %v13662_v8 = vadd.f32 %v3748_v30, %v3704_v19  ;;  %5436 = vmatpush.bf16.msrb.mxu3 %v10272_v37  ;;  %v10128_v34 = vor.u32 %v11312_v50, %v10127_v25  ;;  %v16257_v19 = vmax.f32 %v16256_v2, 0.0  ;;  %v16264_v37 = vld [vmem:[#allocation134_spill] sm:$0xff]  ;;  %v10239_v25 = vld [vmem:[#allocation4 + $0x360] sm:$0xf] }
 0x393   :  { %3884 = vmatmul.bf16.gmra.mxu0 %v16248_v53  ;;  %3942 = vmatmul.bf16.vlgmr.msra.gmra.mxu2 %v16249_v57  ;;  %16261 = vst [vmem:[#allocation115_spill] sm:$0xff] %v13684_v20 }
 0x394   :  { %16246 = vst [vmem:[#allocation111_spill] sm:$0xff] %v13660_v4  ;;  %3928 = vmatmul.bf16.gmra.mxu1 %v16251_v47  ;;  %5393 = vmatpush.bf16.msrb.mxu2 %v10128_v34  ;;  %v13679_v33 = vpack.c.bf16 %v16257_v19, %v582_v6  ;;  %v10256_v47 = vor.u32 %v11344_v24, %v10255_v17  ;;  %v11308_v6 = vld [vmem:[#allocation4 + $0x26c] sm:$0xf0] }
 0x395   :  { %v10240_v34 = vor.u32 %v11340_v16, %v10239_v25  ;;  %v16271_v24 = vld [vmem:[#allocation31_spill] sm:$0xff] }
 0x396   :  { %3986 = vmatmul.bf16.vlgmr.msra.gmra.mxu3 %v16252_v10  ;;  %v3621_v51 = vpop.f32.mrf.mxu2  ;;  %16258 = vst [vmem:[#allocation112_spill] sm:$0xff] %v13679_v33  ;;  %v16263_v10 = vld [vmem:[#allocation133_spill] sm:$0xff] }
 0x397   :  { %v3622_v12 = vadd.f32 %v3621_v51, %v13578_v46  ;;  %5437 = vmatpush.bf16.msrb.mxu3 %v10256_v47  ;;  %v16272_v47 = vmax.f32 %v16271_v24, 0.0  ;;  %v16278_v24 = vld [vmem:[#allocation37_spill] sm:$0xff] }
 0x398   :  { %v3706_v0 = vpop.f32.mrf.mxu0 }
 0x399   :  { %v3665_v11 = vpop.f32.mrf.mxu3  ;;  %v3750_v27 = vpop.f32.mrf.mxu1 }
 0x39a   :  { %v13673_v40 = vadd.f32 %v3665_v11, %v3622_v12  ;;  %v13675_v7 = vadd.f32 %v3750_v27, %v3706_v0  ;;  %v10111_v27 = vld [vmem:[#allocation4 + $0x260] sm:$0xf] }
 0x39b   :  { %v10112_v50 = vor.u32 %v11308_v6, %v10111_v27  ;;  %5438 = vmatpush.bf16.msrb.mxu3 %v10240_v34 }
 0x39c   :  { %16255 = vst [vmem:[#allocation113_spill] sm:$0xff] %v13673_v40  ;;  %v10655_v40 = vld [vmem:[#allocation4 + $0x6a0] sm:$0xf] }
 0x39d   :  { %5394 = vmatpush.bf16.msrb.mxu2 %v10112_v50 }
 0x39e   :  { %v3623_v42 = vpop.f32.mrf.mxu2 }
 0x39f   :  { %v3624_v46 = vadd.f32 %v3623_v42, %v13587_v52 }
 0x3a0   :  { %v3709_v29 = vpop.f32.mrf.mxu0 }
 0x3a1   :  { %v3667_v30 = vpop.f32.mrf.mxu3  ;;  %v3753_v57 = vpop.f32.mrf.mxu1 }
 0x3a2   :  { %v13686_v53 = vadd.f32 %v3667_v30, %v3624_v46  ;;  %v13688_v45 = vadd.f32 %v3753_v57, %v3709_v29  ;;  %v16265_v46 = vld [vmem:[#allocation18_spill] sm:$0xff] }
 0x3a3   :  { %3947 = vmatmul.bf16.gmra.mxu2 %v16263_v10  ;;  %5310 = vmatmul.bf16.vlgmr.msra.gmra.mxu0 %v13679_v33  ;;  %v16266_v30 = vmax.f32 %v16265_v46, 0.0  ;;  %v16269_v57 = vld [vmem:[#allocation22_spill] sm:$0xff] }
 0x3a4   :  { %16262 = vst [vmem:[#allocation13_spill] sm:$0xff] %v13686_v53  ;;  %5354 = vmatmul.bf16.vlgmr.msra.gmra.mxu1 %v13684_v20  ;;  %v16270_v17 = vmax.f32 %v16269_v57, 0.0 }
 0x3a6   :  { %3991 = vmatmul.bf16.gmra.mxu3 %v16264_v37  ;;  %v3767_v52 = vpop.f32.mrf.mxu2  ;;  %v13708_v10 = vpack.c.bf16 %v16272_v47, %v16270_v17  ;;  %v16276_v17 = vld [vmem:[#allocation28_spill] sm:$0xff]  ;;  %v16279_v47 = vmax.f32 %v16278_v24, 0.0 }
 0x3a7   :  { %v3768_v51 = vadd.f32 %v3767_v52, %v13592_v62  ;;  %v16267_v62 = vld [vmem:[#allocation27_spill] sm:$0xff] }
 0x3a8   :  { %v3711_v12 = vpop.f32.mrf.mxu0  ;;  %v16268_v48 = vmax.f32 %v16267_v62, 0.0  ;;  %16273 = vst [vmem:[#allocation125_spill] sm:$0xff] %v13708_v10 }
 0x3a9   :  { %v3811_v56 = vpop.f32.mrf.mxu3  ;;  %v3755_v36 = vpop.f32.mrf.mxu1 }
 0x3aa   :  { %v3812_v11 = vadd.f32 %v3811_v56, %v3768_v51  ;;  %v13695_v0 = vadd.f32 %v3755_v36, %v3711_v12  ;;  %v13702_v38 = vpack.c.bf16 %v16268_v48, %v16266_v30  ;;  %v16275_v12 = vld [vmem:[#allocation140_spill] sm:$0xff]  ;;  %v11336_v30 = vld [vmem:[#allocation4 + $0x34c] sm:$0xf0] }
 0x3ae   :  { %v3769_v42 = vpop.f32.mrf.mxu2 }
 0x3af   :  { %v3770_v2 = vadd.f32 %v3769_v42, %v13601_v15  ;;  %v16274_v15 = vld [vmem:[#allocation139_spill] sm:$0xff]  ;;  %v10095_v42 = vld [vmem:[#allocation4 + $0x240] sm:$0xf] }
 0x3b0   :  { %v3855_v29 = vpop.f32.mrf.mxu0 }
 0x3b1   :  { %v3813_v19 = vpop.f32.mrf.mxu3  ;;  %v3856_v52 = vadd.f32 %v3855_v29, %v3812_v11  ;;  %v3899_v51 = vpop.f32.mrf.mxu1 }
 0x3b2   :  { %v3814_v37 = vadd.f32 %v3813_v19, %v3770_v2  ;;  %v11304_v2 = vld [vmem:[#allocation4 + $0x24c] sm:$0xf0]  ;;  %v10223_v19 = vld [vmem:[#allocation4 + $0x340] sm:$0xf] }
 0x3b3   :  { %v13710_v56 = vadd.f32 %v3899_v51, %v3856_v52  ;;  %3952 = vmatmul.bf16.gmra.mxu2 %v16274_v15  ;;  %5315 = vmatmul.bf16.gmra.mxu0 %v13702_v38  ;;  %v10096_v46 = vor.u32 %v11304_v2, %v10095_v42  ;;  %v10224_v62 = vor.u32 %v11336_v30, %v10223_v19  ;;  %v16281_v51 = vld [vmem:[#allocation32_spill] sm:$0xff]  ;;  %v16286_v2 = vld [vmem:[#allocation143_spill] sm:$0xff] }
 0x3b4   :  { %5359 = vmatmul.bf16.gmra.mxu1 %v13708_v10  ;;  %v16282_v15 = vmax.f32 %v16281_v51, 0.0 }
 0x3b5   :  { %5395 = vmatpush.bf16.msrb.mxu2 %v10096_v46  ;;  %5439 = vmatpush.bf16.msrb.mxu3 %v10224_v62  ;;  %v16287_v46 = vld [vmem:[#allocation144_spill] sm:$0xff] }
 0x3b6   :  { %3996 = vmatmul.bf16.gmra.mxu3 %v16275_v12  ;;  %v3772_v36 = vpop.f32.mrf.mxu2  ;;  %v16283_v12 = vld [vmem:[#allocation40_spill] sm:$0xff] }
 0x3b7   :  { %v3773_v27 = vadd.f32 %v3772_v36, %v13606_v55  ;;  %v16277_v55 = vmax.f32 %v16276_v17, 0.0  ;;  %v16284_v36 = vmax.f32 %v16283_v12, 0.0 }
 0x3b8   :  { %v3857_v25 = vpop.f32.mrf.mxu0 }
 0x3b9   :  { %v3816_v6 = vpop.f32.mrf.mxu3  ;;  %v3858_v16 = vadd.f32 %v3857_v25, %v3814_v37  ;;  %v3901_v34 = vpop.f32.mrf.mxu1  ;;  %v13724_v52 = vpack.c.bf16 %v16279_v47, %v16277_v55 }
 0x3ba   :  { %v3817_v50 = vadd.f32 %v3816_v6, %v3773_v27  ;;  %v13730_v27 = vpack.c.bf16 %v16284_v36, %v16282_v15  ;;  %v226_v6 = vld [vmem:[#allocation2 + $0x200] sm:$0xff] }
 0x3bb   :  { %v13717_v11 = vadd.f32 %v3901_v34, %v3858_v16  ;;  %16280 = vst [vmem:[#allocation126_spill] sm:$0xff] %v13724_v52  ;;  %v372_v19 = vmul.f32 %v16247_v28, %v226_v6  ;;  %v11300_v28 = vld [vmem:[#allocation4 + $0x22c] sm:$0xf0]  ;;  %v10207_v36 = vld [vmem:[#allocation4 + $0x320] sm:$0xf] }
 0x3bc   :  { %16285 = vst [vmem:[#allocation14_spill] sm:$0xff] %v13730_v27 }
 0x3be   :  { %v3774_v48 = vpop.f32.mrf.mxu2 }
 0x3bf   :  { %v3775_v29 = vadd.f32 %v3774_v48, %v13615_v60  ;;  %v227_v60 = vld [vmem:[#allocation2 + $0x208] sm:$0xff] }
 0x3c0   :  { %v3860_v37 = vpop.f32.mrf.mxu0  ;;  %v373_v30 = vmul.f32 %v16250_v26, %v227_v60  ;;  %v11332_v26 = vld [vmem:[#allocation4 + $0x32c] sm:$0xf0] }
 0x3c1   :  { %v3818_v57 = vpop.f32.mrf.mxu3  ;;  %v3861_v16 = vadd.f32 %v3860_v37, %v3817_v50  ;;  %v3904_v34 = vpop.f32.mrf.mxu1  ;;  %v10079_v37 = vld [vmem:[#allocation4 + $0x220] sm:$0xf] }
 0x3c2   :  { %v3819_v25 = vadd.f32 %v3818_v57, %v3775_v29  ;;  %v518_v29 = vadd.f32 %v16253_v1, %v372_v19  ;;  %v519_v17 = vadd.f32 %v16254_v49, %v373_v30  ;;  %v10080_v51 = vor.u32 %v11300_v28, %v10079_v37  ;;  %v16288_v49 = vld [vmem:[#allocation38_spill] sm:$0xff]  ;;  %v16291_v19 = vld [vmem:[#allocation41_spill] sm:$0xff]  ;;  %v11420_v37 = vld [vmem:[#allocation4 + $0x5ec] sm:$0xf0] }
 0x3c3   :  { %v13732_v42 = vadd.f32 %v3904_v34, %v3861_v16  ;;  %3957 = vmatmul.bf16.gmra.mxu2 %v16286_v2  ;;  %5320 = vmatmul.bf16.gmra.mxu0 %v13724_v52  ;;  %v16289_v60 = vmax.f32 %v16288_v49, 0.0  ;;  %v16295_v28 = vld [vmem:[#allocation150_spill] sm:$0xff] }
 0x3c4   :  { %5364 = vmatmul.bf16.gmra.mxu1 %v13730_v27  ;;  %v646_v12 = vmax.f32 %v518_v29, 0.0  ;;  %v647_v6 = vmax.f32 %v519_v17, 0.0  ;;  %5396 = vmatpush.bf16.msrb.mxu2 %v10080_v51  ;;  %v10431_v29 = vld [vmem:[#allocation4 + $0x4e0] sm:$0xf] }
 0x3c5   :  { %v10559_v17 = vld [vmem:[#allocation4 + $0x5e0] sm:$0xf] }
 0x3c6   :  { %4001 = vmatmul.bf16.gmra.mxu3 %v16287_v46  ;;  %v3777_v62 = vpop.f32.mrf.mxu2  ;;  %v16292_v46 = vmax.f32 %v16291_v19, 0.0  ;;  %v10560_v51 = vor.u32 %v11420_v37, %v10559_v17  ;;  %v10527_v37 = vld [vmem:[#allocation4 + $0x5a0] sm:$0xf] }
 0x3c7   :  { %v3778_v48 = vadd.f32 %v3777_v62, %v13620_v39  ;;  %v10208_v39 = vor.u32 %v11332_v26, %v10207_v36  ;;  %v11296_v36 = vld [vmem:[#allocation4 + $0x20c] sm:$0xf0] }
 0x3c8   :  { %v3862_v57 = vpop.f32.mrf.mxu0  ;;  %v13752_v30 = vpack.c.bf16 %v647_v6, %v16292_v46  ;;  %5522 = vmatpush.bf16.msrb.mxu1 %v10560_v51  ;;  %v10415_v6 = vld [vmem:[#allocation4 + $0x4c0] sm:$0xf]  ;;  %v11412_v51 = vld [vmem:[#allocation4 + $0x5ac] sm:$0xf0] }
 0x3c9   :  { %v3821_v50 = vpop.f32.mrf.mxu3  ;;  %v3863_v24 = vadd.f32 %v3862_v57, %v3819_v25  ;;  %v3906_v47 = vpop.f32.mrf.mxu1  ;;  %5440 = vmatpush.bf16.msrb.mxu3 %v10208_v39  ;;  %v13748_v25 = vpack.c.bf16 %v646_v12, %v16289_v60  ;;  %v11388_v57 = vld [vmem:[#allocation4 + $0x4ec] sm:$0xf0]  ;;  %v10063_v12 = vld [vmem:[#allocation4 + $0x200] sm:$0xf] }
 0x3ca   :  { %v3822_v55 = vadd.f32 %v3821_v50, %v3778_v48  ;;  %16293 = vst [vmem:[#allocation128_spill] sm:$0xff] %v13752_v30  ;;  %v11384_v39 = vld [vmem:[#allocation4 + $0x4cc] sm:$0xf0] }
 0x3cb   :  { %v13743_v15 = vadd.f32 %v3906_v47, %v3863_v24  ;;  %16290 = vst [vmem:[#allocation127_spill] sm:$0xff] %v13748_v25  ;;  %v16294_v47 = vld [vmem:[#allocation149_spill] sm:$0xff]  ;;  %v10416_v49 = vor.u32 %v11384_v39, %v10415_v6  ;;  %v11416_v60 = vld [vmem:[#allocation4 + $0x5cc] sm:$0xf0] }
 0x3ce   :  { %v3779_v16 = vpop.f32.mrf.mxu2 }
 0x3cf   :  { %v3780_v1 = vadd.f32 %v3779_v16, %v13629_v13  ;;  %v10432_v13 = vor.u32 %v11388_v57, %v10431_v29  ;;  %v10543_v16 = vld [vmem:[#allocation4 + $0x5c0] sm:$0xf]  ;;  %v11328_v57 = vld [vmem:[#allocation4 + $0x30c] sm:$0xf0] }
 0x3d0   :  { %v3865_v2 = vpop.f32.mrf.mxu0  ;;  %v10544_v19 = vor.u32 %v11416_v60, %v10543_v16  ;;  %v10191_v29 = vld [vmem:[#allocation4 + $0x300] sm:$0xf] }
 0x3d1   :  { %v3823_v34 = vpop.f32.mrf.mxu3  ;;  %v3866_v48 = vadd.f32 %v3865_v2, %v3822_v55  ;;  %v3909_v50 = vpop.f32.mrf.mxu1  ;;  %5478 = vmatpush.bf16.msrb.mxu0 %v10432_v13  ;;  %v10064_v55 = vor.u32 %v11296_v36, %v10063_v12  ;;  %v10192_v17 = vor.u32 %v11328_v57, %v10191_v29  ;;  %v11380_v13 = vld [vmem:[#allocation4 + $0x4ac] sm:$0xf0]  ;;  %v10528_v12 = vor.u32 %v11412_v51, %v10527_v37  ;;  %v16296_v16 = vld [vmem:[#allocation49_spill] sm:$0xff] }
 0x3d2   :  { %v3824_v62 = vadd.f32 %v3823_v34, %v3780_v1  ;;  %5523 = vmatpush.bf16.msrb.mxu1 %v10544_v19  ;;  %v11408_v19 = vld [vmem:[#allocation4 + $0x58c] sm:$0xf0]  ;;  %v10367_v51 = vld [vmem:[#allocation4 + $0x460] sm:$0xf] }
 0x3d3   :  { %v13754_v24 = vadd.f32 %v3909_v50, %v3866_v48  ;;  %3962 = vmatmul.bf16.gmra.mxu2 %v16294_v47  ;;  %5325 = vmatmul.bf16.gmra.mxu0 %v13748_v25  ;;  %v10399_v47 = vld [vmem:[#allocation4 + $0x4a0] sm:$0xf]  ;;  %v16302_v57 = vld [vmem:[#allocation23_spill] sm:$0xff] }
 0x3d4   :  { %5369 = vmatmul.bf16.gmra.mxu1 %v13752_v30  ;;  %5397 = vmatpush.bf16.msrb.mxu2 %v10064_v55  ;;  %v10383_v55 = vld [vmem:[#allocation4 + $0x480] sm:$0xf] }
 0x3d5   :  { %5479 = vmatpush.bf16.msrb.mxu0 %v10416_v49  ;;  %5441 = vmatpush.bf16.msrb.mxu3 %v10192_v17  ;;  %v16303_v17 = vmax.f32 %v16302_v57, 0.0  ;;  %v11400_v57 = vld [vmem:[#allocation4 + $0x54c] sm:$0xf0] }
 0x3d6   :  { %4006 = vmatmul.bf16.gmra.mxu3 %v16295_v28  ;;  %v3782_v26 = vpop.f32.mrf.mxu2  ;;  %5524 = vmatpush.bf16.msrb.mxu1 %v10528_v12  ;;  %v11372_v12 = vld [vmem:[#allocation4 + $0x46c] sm:$0xf0] }
 0x3d7   :  { %v3783_v1 = vadd.f32 %v3782_v26, %v13634_v5  ;;  %v10400_v5 = vor.u32 %v11380_v13, %v10399_v47  ;;  %v10511_v26 = vld [vmem:[#allocation4 + $0x580] sm:$0xf] }
 0x3d8   :  { %v3867_v2 = vpop.f32.mrf.mxu0  ;;  %v10512_v13 = vor.u32 %v11408_v19, %v10511_v26  ;;  %v10687_v26 = vld [vmem:[#allocation4 + $0x6e0] sm:$0xf] }
 0x3d9   :  { %v3826_v34 = vpop.f32.mrf.mxu3  ;;  %v3868_v48 = vadd.f32 %v3867_v2, %v3824_v62  ;;  %v3911_v50 = vpop.f32.mrf.mxu1  ;;  %5480 = vmatpush.bf16.msrb.mxu0 %v10400_v5  ;;  %v11376_v62 = vld [vmem:[#allocation4 + $0x48c] sm:$0xf0]  ;;  %v10351_v19 = vld [vmem:[#allocation4 + $0x440] sm:$0xf] }
 0x3da   :  { %v3827_v46 = vadd.f32 %v3826_v34, %v3783_v1  ;;  %v16297_v1 = vmax.f32 %v16296_v16, 0.0  ;;  %v16298_v34 = vld [vmem:[#allocation19_spill] sm:$0xff]  ;;  %v10384_v2 = vor.u32 %v11376_v62, %v10383_v55  ;;  %5525 = vmatpush.bf16.msrb.mxu1 %v10512_v13  ;;  %v10368_v55 = vor.u32 %v11372_v12, %v10367_v51  ;;  %v10335_v12 = vld [vmem:[#allocation4 + $0x420] sm:$0xf] }
 0x3db   :  { %v13761_v28 = vadd.f32 %v3911_v50, %v3868_v48  ;;  %v16299_v49 = vmax.f32 %v16298_v34, 0.0  ;;  %v16300_v50 = vld [vmem:[#allocation52_spill] sm:$0xff]  ;;  %v11404_v62 = vld [vmem:[#allocation4 + $0x56c] sm:$0xf0] }
 0x3dc   :  { %v16301_v29 = vmax.f32 %v16300_v50, 0.0  ;;  %v11484_v34 = vld [vmem:[#allocation4 + $0x7ec] sm:$0xf0] }
 0x3dd   :  { %v13768_v60 = vpack.c.bf16 %v16299_v49, %v16297_v1  ;;  %5481 = vmatpush.bf16.msrb.mxu0 %v10384_v2 }
 0x3de   :  { %v3784_v36 = vpop.f32.mrf.mxu2  ;;  %v13774_v47 = vpack.c.bf16 %v16303_v17, %v16301_v29 }
 0x3df   :  { %v3785_v6 = vadd.f32 %v3784_v36, %v13643_v44  ;;  %v10495_v36 = vld [vmem:[#allocation4 + $0x560] sm:$0xf] }
 0x3e0   :  { %v3870_v48 = vpop.f32.mrf.mxu0  ;;  %16304 = vst [vmem:[#allocation15_spill] sm:$0xff] %v13774_v47 }
 0x3e1   :  { %v3828_v39 = vpop.f32.mrf.mxu3  ;;  %v3871_v5 = vadd.f32 %v3870_v48, %v3827_v46  ;;  %v3914_v44 = vpop.f32.mrf.mxu1  ;;  %v11452_v46 = vld [vmem:[#allocation4 + $0x6ec] sm:$0xf0]  ;;  %5482 = vmatpush.bf16.msrb.mxu0 %v10368_v55  ;;  %v10479_v48 = vld [vmem:[#allocation4 + $0x540] sm:$0xf] }
 0x3e2   :  { %v3829_v37 = vadd.f32 %v3828_v39, %v3785_v6  ;;  %v10496_v6 = vor.u32 %v11404_v62, %v10495_v36  ;;  %v10815_v39 = vld [vmem:[#allocation4 + $0x7e0] sm:$0xf]  ;;  %v10688_v1 = vor.u32 %v11452_v46, %v10687_v26  ;;  %v10480_v13 = vor.u32 %v11400_v57, %v10479_v48  ;;  %v11364_v36 = vld [vmem:[#allocation4 + $0x42c] sm:$0xf0] }
 0x3e3   :  { %v13776_v16 = vadd.f32 %v3914_v44, %v3871_v5  ;;  %3967 = vmatmul.bf16.gmra.mxu2 %v13182_v18  ;;  %5330 = vmatmul.bf16.gmra.mxu0 %v13768_v60  ;;  %v10816_v2 = vor.u32 %v11484_v34, %v10815_v39  ;;  %v11368_v18 = vld [vmem:[#allocation4 + $0x44c] sm:$0xf0]  ;;  %v10463_v55 = vld [vmem:[#allocation4 + $0x520] sm:$0xf]  ;;  %v10336_v26 = vor.u32 %v11364_v36, %v10335_v12 }
 0x3e4   :  { %5374 = vmatmul.bf16.gmra.mxu1 %v13774_v47  ;;  %5566 = vmatpush.bf16.msra.mxu2 %v10688_v1  ;;  %v11396_v46 = vld [vmem:[#allocation4 + $0x52c] sm:$0xf0]  ;;  %v10319_v39 = vld [vmem:[#allocation4 + $0x400] sm:$0xf] }
 0x3e5   :  { %5526 = vmatpush.bf16.msrb.mxu1 %v10496_v6  ;;  %5610 = vmatpush.bf16.msra.mxu3 %v10816_v2  ;;  %v11360_v1 = vld [vmem:[#allocation4 + $0x40c] sm:$0xf0]  ;;  %v10447_v34 = vld [vmem:[#allocation4 + $0x500] sm:$0xf]  ;;  %v16305_v2 = vld [vmem:[#allocation20_spill] sm:$0xff] }
 0x3e6   :  { %4011 = vmatmul.bf16.gmra.mxu3 %v13188_v61  ;;  %v3787_v49 = vpop.f32.mrf.mxu2  ;;  %v10352_v61 = vor.u32 %v11368_v18, %v10351_v19  ;;  %v16306_v19 = vmax.f32 %v16305_v2, 0.0  ;;  %v16307_v18 = vld [vmem:[#allocation29_spill] sm:$0xff]  ;;  %v164_v57 = vld [vmem:[#allocation2 + $0x10] sm:$0xff] }
 0x3e7   :  { %v3788_v50 = vadd.f32 %v3787_v49, %v13648_v9  ;;  %v10464_v9 = vor.u32 %v11396_v46, %v10463_v55  ;;  %v16308_v48 = vmax.f32 %v16307_v18, 0.0  ;;  %v16314_v18 = vld [vmem:[#allocation46_spill] sm:$0xff] }
 0x3e8   :  { %v3872_v17 = vpop.f32.mrf.mxu0  ;;  %5483 = vmatpush.bf16.msrb.mxu0 %v10352_v61  ;;  %v11392_v61 = vld [vmem:[#allocation4 + $0x50c] sm:$0xf0] }
 0x3e9   :  { %v3831_v29 = vpop.f32.mrf.mxu3  ;;  %v3873_v44 = vadd.f32 %v3872_v17, %v3829_v37  ;;  %v3916_v51 = vpop.f32.mrf.mxu1  ;;  %5527 = vmatpush.bf16.msrb.mxu1 %v10480_v13  ;;  %v16309_v13 = vld [vmem:[#allocation24_spill] sm:$0xff]  ;;  %v10448_v55 = vor.u32 %v11392_v61, %v10447_v34  ;;  %v10799_v34 = vld [vmem:[#allocation4 + $0x7c0] sm:$0xf]  ;;  %v16315_v61 = vld [vmem:[#allocation47_spill] sm:$0xff] }
 0x3ea   :  { %v3832_v5 = vadd.f32 %v3831_v29, %v3788_v50  ;;  %v13790_v50 = vpack.c.bf16 %v16308_v48, %v16306_v19  ;;  %v10320_v29 = vor.u32 %v11360_v1, %v10319_v39  ;;  %v10671_v39 = vld [vmem:[#allocation4 + $0x6c0] sm:$0xf]  ;;  %v11448_v1 = vld [vmem:[#allocation4 + $0x6cc] sm:$0xf0] }
 0x3eb   :  { %v13783_v62 = vadd.f32 %v3916_v51, %v3873_v44  ;;  %v16310_v44 = vmax.f32 %v16309_v13, 0.0  ;;  %v16311_v51 = vld [vmem:[#allocation33_spill] sm:$0xff]  ;;  %v16316_v13 = vld [vmem:[#allocation48_spill] sm:$0xff] }
 0x3ec   :  { %5484 = vmatpush.bf16.msrb.mxu0 %v10336_v26  ;;  %v16312_v12 = vmax.f32 %v16311_v51, 0.0  ;;  %v165_v26 = vld [vmem:[#allocation2 + $0x18] sm:$0xff] }
 0x3ed   :  { %5528 = vmatpush.bf16.msrb.mxu1 %v10464_v9  ;;  %v311_v48 = vmul.f32 %v16314_v18, %v165_v26 }
 0x3ee   :  { %v3789_v6 = vpop.f32.mrf.mxu2  ;;  %v13796_v36 = vpack.c.bf16 %v16312_v12, %v16310_v44 }
 0x3ef   :  { %v3790_v49 = vadd.f32 %v3789_v6, %v13657_v63  ;;  %v16313_v6 = vld [vmem:[#allocation44_spill] sm:$0xff]  ;;  %v457_v44 = vadd.f32 %v16316_v13, %v311_v48 }
 0x3f0   :  { %v3875_v17 = vpop.f32.mrf.mxu0  ;;  %5485 = vmatpush.bf16.msrb.mxu0 %v10320_v29  ;;  %v310_v2 = vmul.f32 %v16313_v6, %v164_v57 }
 0x3f1   :  { %v3833_v37 = vpop.f32.mrf.mxu3  ;;  %v3876_v46 = vadd.f32 %v3875_v17, %v3832_v5  ;;  %v3919_v9 = vpop.f32.mrf.mxu1  ;;  %5529 = vmatpush.bf16.msrb.mxu1 %v10448_v55  ;;  %v10672_v5 = vor.u32 %v11448_v1, %v10671_v39  ;;  %v16317_v1 = vld [vmem:[#allocation50_spill] sm:$0xff] }
 0x3f2   :  { %v3834_v63 = vadd.f32 %v3833_v37, %v3790_v49  ;;  %v11480_v49 = vld [vmem:[#allocation4 + $0x7cc] sm:$0xf0]  ;;  %v456_v57 = vadd.f32 %v16315_v61, %v310_v2 }
 0x3f3   :  { %v13799_v19 = vadd.f32 %v3919_v9, %v3876_v46  ;;  %3972 = vmatmul.bf16.gmra.mxu2 %v13216_v43  ;;  %5335 = vmatmul.bf16.gmra.mxu0 %v13790_v50  ;;  %v10800_v37 = vor.u32 %v11480_v49, %v10799_v34  ;;  %v585_v9 = vmax.f32 %v457_v44, 0.0  ;;  %v16318_v34 = vmax.f32 %v16317_v1, 0.0  ;;  %v16319_v49 = vld [vmem:[#allocation30_spill] sm:$0xff] }
 0x3f4   :  { %5379 = vmatmul.bf16.gmra.mxu1 %v13796_v36  ;;  %5567 = vmatpush.bf16.msra.mxu2 %v10672_v5  ;;  %v584_v26 = vmax.f32 %v456_v57, 0.0 }
 0x3f5   :  { %5611 = vmatpush.bf16.msra.mxu3 %v10800_v37  ;;  %v16320_v37 = vmax.f32 %v16319_v49, 0.0 }
 0x3f6   :  { %4016 = vmatmul.bf16.gmra.mxu3 %v13220_v32  ;;  %v3792_v29 = vpop.f32.mrf.mxu2  ;;  %v13813_v5 = vpack.c.bf16 %v16318_v34, %v584_v26 }
 0x3f7   :  { %v3793_v43 = vadd.f32 %v3792_v29, %v13662_v8  ;;  %v16321_v29 = vld [vmem:[#allocation39_spill] sm:$0xff] }
 0x3f8   :  { %v3877_v51 = vpop.f32.mrf.mxu0  ;;  %v16322_v48 = vmax.f32 %v16321_v29, 0.0  ;;  %v11444_v29 = vld [vmem:[#allocation4 + $0x6ac] sm:$0xf0] }
 0x3f9   :  { %v3836_v17 = vpop.f32.mrf.mxu3  ;;  %v3878_v55 = vadd.f32 %v3877_v51, %v3834_v63  ;;  %v3921_v32 = vpop.f32.mrf.mxu1  ;;  %v16323_v63 = vld [vmem:[#allocation53_spill] sm:$0xff]  ;;  %v16326_v51 = vld [vmem:[#allocation34_spill] sm:$0xff] }
 0x3fa   :  { %v3837_v12 = vadd.f32 %v3836_v17, %v3793_v43  ;;  %v13820_v53 = vpack.c.bf16 %v16322_v48, %v16320_v37  ;;  %v16324_v43 = vmax.f32 %v16323_v63, 0.0  ;;  %v166_v17 = vld [vmem:[#allocation2 + $0x20] sm:$0xff]  ;;  %v10656_v37 = vor.u32 %v11444_v29, %v10655_v40  ;;  %v16330_v48 = vld [vmem:[#allocation56_spill] sm:$0xff]  ;;  %v16332_v40 = vld [vmem:[#allocation59_spill] sm:$0xff] }
 0x3fb   :  { %v13809_v46 = vadd.f32 %v3921_v32, %v3878_v55  ;;  %v16327_v55 = vmax.f32 %v16326_v51, 0.0  ;;  %v16328_v32 = vld [vmem:[#allocation42_spill] sm:$0xff]  ;;  %v312_v4 = vmul.f32 %v16330_v48, %v166_v17 }
 0x3fc   :  { %v13824_v57 = vpack.c.bf16 %v16324_v43, %v585_v9  ;;  %v16329_v26 = vmax.f32 %v16328_v32, 0.0  ;;  %v10783_v9 = vld [vmem:[#allocation4 + $0x7a0] sm:$0xf]  ;;  %v11476_v43 = vld [vmem:[#allocation4 + $0x7ac] sm:$0xf0]  ;;  %v16331_v51 = vld [vmem:[#allocation58_spill] sm:$0xff]  ;;  %5568 = vmatpush.bf16.msra.mxu2 %v10656_v37  ;;  %v10640_v37 = vor.u32 %v11440_v31, %v10639_v3 }
 0x3fd   :  { %v16333_v32 = vld [vmem:[#allocation60_spill] sm:$0xff]  ;;  %v16345_v3 = vld [vmem:[#allocation54_spill] sm:$0xff] }
 0x3fe   :  { %v3794_v39 = vpop.f32.mrf.mxu2  ;;  %16325 = vst [vmem:[#allocation16_spill] sm:$0xff] %v13824_v57  ;;  %v13830_v1 = vpack.c.bf16 %v16329_v26, %v16327_v55 }
 0x3ff   :  { %v3795_v2 = vadd.f32 %v3794_v39, %v13675_v7  ;;  %v167_v7 = vld [vmem:[#allocation2 + $0x28] sm:$0xff] }
 0x400   :  { %v3880_v44 = vpop.f32.mrf.mxu0  ;;  %v313_v55 = vmul.f32 %v16331_v51, %v167_v7  ;;  %5569 = vmatpush.bf16.msra.mxu2 %v10640_v37  ;;  %v16347_v37 = vld [vmem:[#allocation65_spill] sm:$0xff] }
 0x401   :  { %v3838_v8 = vpop.f32.mrf.mxu3  ;;  %v3881_v34 = vadd.f32 %v3880_v44, %v3837_v12  ;;  %v3924_v49 = vpop.f32.mrf.mxu1  ;;  %v10784_v12 = vor.u32 %v11476_v43, %v10783_v9 }
 0x402   :  { %v3839_v39 = vadd.f32 %v3838_v8, %v3795_v2  ;;  %v458_v8 = vadd.f32 %v16332_v40, %v312_v4  ;;  %v459_v26 = vadd.f32 %v16333_v32, %v313_v55 }
 0x403   :  { %v13833_v63 = vadd.f32 %v3924_v49, %v3881_v34  ;;  %5340 = vmatmul.bf16.gmra.mxu0 %v13820_v53  ;;  %5398 = vmatmul.bf16.vlgmr.msrb.gmra.mxu2 %v13813_v5 }
 0x404   :  { %5384 = vmatmul.bf16.gmra.mxu1 %v13830_v1  ;;  %5612 = vmatpush.bf16.msra.mxu3 %v10784_v12  ;;  %v586_v7 = vmax.f32 %v458_v8, 0.0  ;;  %v587_v9 = vmax.f32 %v459_v26, 0.0  ;;  %v16334_v12 = vld [vmem:[#allocation63_spill] sm:$0xff]  ;;  %v16346_v26 = vmax.f32 %v16345_v3, 0.0  ;;  %v10751_v3 = vld [vmem:[#allocation4 + $0x760] sm:$0xf] }
 0x405   :  { %v16335_v4 = vmax.f32 %v16334_v12, 0.0  ;;  %v16348_v12 = vmax.f32 %v16347_v37, 0.0  ;;  %v11468_v37 = vld [vmem:[#allocation4 + $0x76c] sm:$0xf0] }
 0x406   :  { %5442 = vmatmul.bf16.vlgmr.msrb.gmra.mxu3 %v13824_v57  ;;  %v3797_v2 = vpop.f32.mrf.mxu2 }
 0x407   :  { %v3798_v17 = vadd.f32 %v3797_v2, %v13688_v45  ;;  %v13847_v14 = vpack.c.bf16 %v16335_v4, %v586_v7  ;;  %v16337_v2 = vld [vmem:[#allocation51_spill] sm:$0xff]  ;;  %v13864_v7 = vpack.c.bf16 %v16348_v12, %v16346_v26  ;;  %v10752_v12 = vor.u32 %v11468_v37, %v10751_v3  ;;  %v16361_v3 = vld [vmem:[#allocation66_spill] sm:$0xff]  ;;  %v16363_v37 = vld [vmem:[#allocation73_spill] sm:$0xff] }
 0x408   :  { %v3882_v34 = vpop.f32.mrf.mxu0 }
 0x409   :  { %v3841_v44 = vpop.f32.mrf.mxu3  ;;  %v3883_v29 = vadd.f32 %v3882_v34, %v3839_v39  ;;  %v3926_v59 = vpop.f32.mrf.mxu1  ;;  %16336 = vst [vmem:[#allocation17_spill] sm:$0xff] %v13847_v14  ;;  %v16339_v39 = vld [vmem:[#allocation61_spill] sm:$0xff] }
 0x40a   :  { %v3842_v49 = vadd.f32 %v3841_v44, %v3798_v17  ;;  %v16338_v17 = vmax.f32 %v16337_v2, 0.0  ;;  %v16340_v44 = vmax.f32 %v16339_v39, 0.0  ;;  %16349 = vst [vmem:[#allocation134_spill] sm:$0xff] %v13864_v7  ;;  %v11472_v2 = vld [vmem:[#allocation4 + $0x78c] sm:$0xf0] }
 0x40b   :  { %v13843_v54 = vadd.f32 %v3926_v59, %v3883_v29  ;;  %v16342_v59 = vld [vmem:[#allocation67_spill] sm:$0xff]  ;;  %v10768_v35 = vor.u32 %v11472_v2, %v10767_v22 }
 0x40c   :  { %v13854_v8 = vpack.c.bf16 %v16340_v44, %v16338_v17  ;;  %v16343_v34 = vmax.f32 %v16342_v59, 0.0 }
 0x40d   :  { %5613 = vmatpush.bf16.msra.mxu3 %v10768_v35 }
 0x40e   :  { %v3799_v43 = vpop.f32.mrf.mxu2  ;;  %16341 = vst [vmem:[#allocation21_spill] sm:$0xff] %v13854_v8  ;;  %v13858_v29 = vpack.c.bf16 %v16343_v34, %v587_v9  ;;  %v10623_v34 = vld [vmem:[#allocation4 + $0x660] sm:$0xf] }
 0x40f   :  { %v3800_v45 = vadd.f32 %v3799_v43, %v13695_v0 }
 0x410   :  { %16344 = vst [vmem:[#allocation133_spill] sm:$0xff] %v13858_v29  ;;  %v3885_v31 = vpop.f32.mrf.mxu0 }
 0x411   :  { %v3843_v55 = vpop.f32.mrf.mxu3  ;;  %v3886_v0 = vadd.f32 %v3885_v31, %v3842_v49  ;;  %v3929_v43 = vpop.f32.mrf.mxu1  ;;  %v11436_v31 = vld [vmem:[#allocation4 + $0x66c] sm:$0xf0]  ;;  %5614 = vmatpush.bf16.msra.mxu3 %v10752_v12 }
 0x412   :  { %v3844_v4 = vadd.f32 %v3843_v55, %v3800_v45  ;;  %v10624_v26 = vor.u32 %v11436_v31, %v10623_v34  ;;  %v228_v34 = vld [vmem:[#allocation2 + $0x210] sm:$0xff] }
 0x413   :  { %v13866_v39 = vadd.f32 %v3929_v43, %v3886_v0  ;;  %5403 = vmatmul.bf16.gmra.mxu2 %v13854_v8  ;;  %5486 = vmatmul.bf16.vlgmr.msrb.gmra.mxu0 %v13847_v14  ;;  %v374_v12 = vmul.f32 %v16313_v6, %v228_v34 }
 0x414   :  { %5530 = vmatmul.bf16.vlgmr.msrb.gmra.mxu1 %v13858_v29  ;;  %5570 = vmatpush.bf16.msra.mxu2 %v10624_v26  ;;  %v16362_v26 = vmax.f32 %v16361_v3, 0.0 }
 0x416   :  { %5447 = vmatmul.bf16.gmra.mxu3 %v13864_v7  ;;  %v3943_v9 = vpop.f32.mrf.mxu2 }
 0x417   :  { %v3944_v17 = vadd.f32 %v3943_v9, %v13710_v56  ;;  %v16351_v56 = vld [vmem:[#allocation62_spill] sm:$0xff]  ;;  %v16353_v9 = vld [vmem:[#allocation69_spill] sm:$0xff] }
 0x418   :  { %v3887_v49 = vpop.f32.mrf.mxu0  ;;  %v16352_v2 = vmax.f32 %v16351_v56, 0.0  ;;  %v16366_v56 = vld [vmem:[#allocation68_spill] sm:$0xff] }
 0x419   :  { %v3987_v45 = vpop.f32.mrf.mxu3  ;;  %v3888_v44 = vadd.f32 %v3887_v49, %v3844_v4  ;;  %v3931_v22 = vpop.f32.mrf.mxu1  ;;  %v16356_v4 = vld [vmem:[#allocation64_spill] sm:$0xff]  ;;  %v16367_v21 = vmax.f32 %v16366_v56, 0.0 }
 0x41a   :  { %v13873_v55 = vadd.f32 %v3987_v45, %v3944_v17  ;;  %v16354_v17 = vmax.f32 %v16353_v9, 0.0  ;;  %v16357_v49 = vmax.f32 %v16356_v4, 0.0  ;;  %v16368_v9 = vld [vmem:[#allocation75_spill] sm:$0xff] }
 0x41b   :  { %v13875_v59 = vadd.f32 %v3931_v22, %v3888_v44  ;;  %v16358_v44 = vld [vmem:[#allocation71_spill] sm:$0xff] }
 0x41c   :  { %16350 = vst [vmem:[#allocation18_spill] sm:$0xff] %v13873_v55  ;;  %v13882_v45 = vpack.c.bf16 %v16354_v17, %v16352_v2  ;;  %v16359_v22 = vmax.f32 %v16358_v44, 0.0  ;;  %v16369_v2 = vmax.f32 %v16368_v9, 0.0  ;;  %v16372_v44 = vld [vmem:[#allocation157_spill] sm:$0xff] }
 0x41e   :  { %v3945_v0 = vpop.f32.mrf.mxu2  ;;  %16355 = vst [vmem:[#allocation27_spill] sm:$0xff] %v13882_v45  ;;  %v13888_v55 = vpack.c.bf16 %v16359_v22, %v16357_v49  ;;  %v13900_v17 = vpack.c.bf16 %v16369_v2, %v16367_v21  ;;  %v375_v21 = vmul.f32 %v16314_v18, %v229_v58  ;;  %v10735_v58 = vld [vmem:[#allocation4 + $0x740] sm:$0xf] }
 0x41f   :  { %v3946_v35 = vadd.f32 %v3945_v0, %v13717_v11  ;;  %v16364_v11 = vmax.f32 %v16363_v37, 0.0  ;;  %v16374_v37 = vld [vmem:[#allocation158_spill] sm:$0xff] }
 0x420   :  { %16360 = vst [vmem:[#allocation22_spill] sm:$0xff] %v13888_v55  ;;  %v5311_v31 = vpop.f32.mrf.mxu0  ;;  %v521_v6 = vadd.f32 %v16316_v13, %v375_v21  ;;  %v16375_v21 = vld [vmem:[#allocation70_spill] sm:$0xff] }
 0x421   :  { %v3989_v43 = vpop.f32.mrf.mxu3  ;;  %v13894_v0 = vpack.c.bf16 %v16364_v11, %v16362_v26  ;;  %16370 = vst [vmem:[#allocation139_spill] sm:$0xff] %v13900_v17  ;;  %v5312_v49 = vadd.f32 %v5311_v31, %v16372_v44  ;;  %v5355_v22 = vpop.f32.mrf.mxu1  ;;  %v10607_v44 = vld [vmem:[#allocation4 + $0x640] sm:$0xf] }
 0x422   :  { %v13902_v4 = vadd.f32 %v3989_v43, %v3946_v35  ;;  %v520_v43 = vadd.f32 %v16315_v61, %v374_v12  ;;  %v649_v18 = vmax.f32 %v521_v6, 0.0  ;;  %v11464_v61 = vld [vmem:[#allocation4 + $0x74c] sm:$0xf0] }
 0x423   :  { %16365 = vst [vmem:[#allocation31_spill] sm:$0xff] %v13894_v0  ;;  %v13906_v23 = vadd.f32 %v5355_v22, %v5312_v49  ;;  %5408 = vmatmul.bf16.gmra.mxu2 %v13882_v45  ;;  %5491 = vmatmul.bf16.gmra.mxu0 %v13888_v55  ;;  %v11432_v49 = vld [vmem:[#allocation4 + $0x64c] sm:$0xf0]  ;;  %v10736_v12 = vor.u32 %v11464_v61, %v10735_v58 }
 0x424   :  { %16371 = vst [vmem:[#allocation140_spill] sm:$0xff] %v13902_v4  ;;  %5535 = vmatmul.bf16.gmra.mxu1 %v13900_v17  ;;  %v648_v9 = vmax.f32 %v520_v43, 0.0  ;;  %v10608_v22 = vor.u32 %v11432_v49, %v10607_v44  ;;  %v16383_v44 = vld [vmem:[#allocation74_spill] sm:$0xff] }
 0x425   :  { %5615 = vmatpush.bf16.msra.mxu3 %v10736_v12  ;;  %v16384_v49 = vmax.f32 %v16383_v44, 0.0 }
 0x426   :  { %5452 = vmatmul.bf16.gmra.mxu3 %v13894_v0  ;;  %v3948_v35 = vpop.f32.mrf.mxu2  ;;  %5571 = vmatpush.bf16.msra.mxu2 %v10608_v22  ;;  %v16386_v22 = vld [vmem:[#allocation76_spill] sm:$0xff] }
 0x427   :  { %v3949_v31 = vadd.f32 %v3948_v35, %v13732_v42  ;;  %v13934_v58 = vpack.c.bf16 %v649_v18, %v16384_v49  ;;  %v16387_v61 = vmax.f32 %v16386_v22, 0.0 }
 0x428   :  { %v5313_v26 = vpop.f32.mrf.mxu0 }
 0x429   :  { %v3992_v3 = vpop.f32.mrf.mxu3  ;;  %v5314_v11 = vadd.f32 %v5313_v26, %v16374_v37  ;;  %v5357_v56 = vpop.f32.mrf.mxu1  ;;  %v16378_v26 = vld [vmem:[#allocation72_spill] sm:$0xff]  ;;  %v16380_v37 = vld [vmem:[#allocation78_spill] sm:$0xff]  ;;  %16385 = vst [vmem:[#allocation40_spill] sm:$0xff] %v13934_v58 }
 0x42a   :  { %v13916_v34 = vadd.f32 %v3992_v3, %v3949_v31  ;;  %v16376_v31 = vmax.f32 %v16375_v21, 0.0  ;;  %v16379_v43 = vmax.f32 %v16378_v26, 0.0 }
 0x42b   :  { %v13919_v2 = vadd.f32 %v5357_v56, %v5314_v11  ;;  %v16381_v11 = vmax.f32 %v16380_v37, 0.0 }
 0x42c   :  { %16373 = vst [vmem:[#allocation28_spill] sm:$0xff] %v13916_v34  ;;  %v13924_v3 = vpack.c.bf16 %v648_v9, %v16376_v31  ;;  %v230_v9 = vld [vmem:[#allocation2 + $0x220] sm:$0xff]  ;;  %v16392_v31 = vld [vmem:[#allocation159_spill] sm:$0xff] }
 0x42d   :  { %v13930_v56 = vpack.c.bf16 %v16381_v11, %v16379_v43  ;;  %v231_v43 = vld [vmem:[#allocation2 + $0x228] sm:$0xff]  ;;  %v376_v18 = vmul.f32 %v16330_v48, %v230_v9  ;;  %v10591_v9 = vld [vmem:[#allocation4 + $0x620] sm:$0xf] }
 0x42e   :  { %v3950_v42 = vpop.f32.mrf.mxu2  ;;  %16377 = vst [vmem:[#allocation37_spill] sm:$0xff] %v13924_v3  ;;  %v377_v12 = vmul.f32 %v16331_v51, %v231_v43  ;;  %v10719_v43 = vld [vmem:[#allocation4 + $0x720] sm:$0xf] }
 0x42f   :  { %v3951_v35 = vadd.f32 %v3950_v42, %v13743_v15  ;;  %16382 = vst [vmem:[#allocation32_spill] sm:$0xff] %v13930_v56  ;;  %v16388_v15 = vld [vmem:[#allocation81_spill] sm:$0xff]  ;;  %v522_v44 = vadd.f32 %v16332_v40, %v376_v18 }
 0x430   :  { %v5316_v6 = vpop.f32.mrf.mxu0  ;;  %v16389_v42 = vmax.f32 %v16388_v15, 0.0  ;;  %v523_v22 = vadd.f32 %v16333_v32, %v377_v12  ;;  %v16394_v15 = vld [vmem:[#allocation160_spill] sm:$0xff]  ;;  %v16395_v12 = vld [vmem:[#allocation77_spill] sm:$0xff] }
 0x431   :  { %v3994_v13 = vpop.f32.mrf.mxu3  ;;  %v5317_v26 = vadd.f32 %v5316_v6, %v16392_v31  ;;  %v5360_v37 = vpop.f32.mrf.mxu1  ;;  %v11428_v31 = vld [vmem:[#allocation4 + $0x62c] sm:$0xf0]  ;;  %v650_v51 = vmax.f32 %v522_v44, 0.0 }
 0x432   :  { %v13940_v34 = vpack.c.bf16 %v16389_v42, %v16387_v61  ;;  %v13942_v21 = vadd.f32 %v3994_v13, %v3951_v35 }
 0x433   :  { %v13945_v11 = vadd.f32 %v5360_v37, %v5317_v26  ;;  %5413 = vmatmul.bf16.gmra.mxu2 %v13924_v3  ;;  %5496 = vmatmul.bf16.gmra.mxu0 %v13930_v56  ;;  %v10592_v26 = vor.u32 %v11428_v31, %v10591_v9  ;;  %v16400_v9 = vld [vmem:[#allocation79_spill] sm:$0xff]  ;;  %v16403_v31 = vld [vmem:[#allocation80_spill] sm:$0xff] }
 0x434   :  { %16390 = vst [vmem:[#allocation143_spill] sm:$0xff] %v13940_v34  ;;  %5540 = vmatmul.bf16.gmra.mxu1 %v13940_v34 }
 0x435   :  { %16391 = vst [vmem:[#allocation144_spill] sm:$0xff] %v13942_v21  ;;  %v11460_v21 = vld [vmem:[#allocation4 + $0x72c] sm:$0xf0]  ;;  %5572 = vmatpush.bf16.msra.mxu2 %v10592_v26  ;;  %v16405_v26 = vld [vmem:[#allocation86_spill] sm:$0xff] }
 0x436   :  { %5457 = vmatmul.bf16.gmra.mxu3 %v13934_v58  ;;  %v3953_v35 = vpop.f32.mrf.mxu2 }
 0x437   :  { %v3954_v13 = vadd.f32 %v3953_v35, %v13754_v24  ;;  %v651_v24 = vmax.f32 %v523_v22, 0.0  ;;  %v10720_v35 = vor.u32 %v11460_v21, %v10719_v43  ;;  %v16404_v22 = vmax.f32 %v16403_v31, 0.0 }
 0x438   :  { %v5318_v49 = vpop.f32.mrf.mxu0  ;;  %v16406_v21 = vmax.f32 %v16405_v26, 0.0 }
 0x439   :  { %v3997_v6 = vpop.f32.mrf.mxu3  ;;  %v5319_v42 = vadd.f32 %v5318_v49, %v16394_v15  ;;  %v5362_v48 = vpop.f32.mrf.mxu1  ;;  %5616 = vmatpush.bf16.msra.mxu3 %v10720_v35  ;;  %v16408_v35 = vld [vmem:[#allocation82_spill] sm:$0xff] }
 0x43a   :  { %v13956_v61 = vadd.f32 %v3997_v6, %v3954_v13  ;;  %v16396_v13 = vmax.f32 %v16395_v12, 0.0  ;;  %v16397_v6 = vld [vmem:[#allocation83_spill] sm:$0xff]  ;;  %v13976_v43 = vpack.c.bf16 %v16406_v21, %v16404_v22  ;;  %v11254_v21 = vld [vmem:[#allocation4 + $0xc4] sm:$0xf] }
 0x43b   :  { %v13959_v37 = vadd.f32 %v5362_v48, %v5319_v42  ;;  %v16398_v49 = vmax.f32 %v16397_v6, 0.0  ;;  %v16401_v42 = vmax.f32 %v16400_v9, 0.0  ;;  %v16412_v6 = vld [vmem:[#allocation161_spill] sm:$0xff]  ;;  %v9921_v9 = vld [vmem:[#allocation4 + $0xf0] sm:$0xf0] }
 0x43c   :  { %16393 = vst [vmem:[#allocation38_spill] sm:$0xff] %v13956_v61  ;;  %v11258_v61 = vld [vmem:[#allocation4 + $0xe4] sm:$0xf]  ;;  %v10049_v22 = vld [vmem:[#allocation4 + $0x1f0] sm:$0xf0] }
 0x43d   :  { %v13966_v15 = vpack.c.bf16 %v16398_v49, %v16396_v13  ;;  %v13970_v48 = vpack.c.bf16 %v650_v51, %v16401_v42  ;;  %16407 = vst [vmem:[#allocation150_spill] sm:$0xff] %v13976_v43  ;;  %v11290_v51 = vld [vmem:[#allocation4 + $0x1e4] sm:$0xf]  ;;  %v9924_v31 = vor.u32 %v11258_v61, %v9921_v9 }
 0x43e   :  { %v3955_v40 = vpop.f32.mrf.mxu2 }
 0x43f   :  { %v3956_v32 = vadd.f32 %v3955_v40, %v13761_v28  ;;  %16399 = vst [vmem:[#allocation41_spill] sm:$0xff] %v13966_v15  ;;  %v16409_v28 = vmax.f32 %v16408_v35, 0.0  ;;  %5654 = vmatpush.bf16.msra.mxu0 %v9924_v31  ;;  %v9905_v35 = vld [vmem:[#allocation4 + $0xd0] sm:$0xf0]  ;;  %v10703_v31 = vld [vmem:[#allocation4 + $0x700] sm:$0xf] }
 0x440   :  { %16402 = vst [vmem:[#allocation149_spill] sm:$0xff] %v13970_v48  ;;  %v5321_v44 = vpop.f32.mrf.mxu0  ;;  %v9908_v61 = vor.u32 %v11254_v21, %v9905_v35 }
 0x441   :  { %v3999_v18 = vpop.f32.mrf.mxu3  ;;  %v13980_v40 = vpack.c.bf16 %v651_v24, %v16409_v28  ;;  %v5322_v13 = vadd.f32 %v5321_v44, %v16412_v6  ;;  %v5365_v49 = vpop.f32.mrf.mxu1  ;;  %v10052_v24 = vor.u32 %v11290_v51, %v10049_v22  ;;  %v11286_v28 = vld [vmem:[#allocation4 + $0x1c4] sm:$0xf]  ;;  %v16414_v51 = vld [vmem:[#allocation162_spill] sm:$0xff] }
 0x442   :  { %v13982_v12 = vadd.f32 %v3999_v18, %v3956_v32  ;;  %v10575_v32 = vld [vmem:[#allocation4 + $0x600] sm:$0xf]  ;;  %v11424_v18 = vld [vmem:[#allocation4 + $0x60c] sm:$0xf0] }
 0x443   :  { %16410 = vst [vmem:[#allocation49_spill] sm:$0xff] %v13980_v40  ;;  %v13985_v42 = vadd.f32 %v5365_v49, %v5322_v13  ;;  %5418 = vmatmul.bf16.gmra.mxu2 %v13966_v15  ;;  %5501 = vmatmul.bf16.gmra.mxu0 %v13970_v48  ;;  %v10576_v44 = vor.u32 %v11424_v18, %v10575_v32  ;;  %v10033_v49 = vld [vmem:[#allocation4 + $0x1d0] sm:$0xf0]  ;;  %v11456_v32 = vld [vmem:[#allocation4 + $0x70c] sm:$0xf0] }
 0x444   :  { %16411 = vst [vmem:[#allocation19_spill] sm:$0xff] %v13982_v12  ;;  %5545 = vmatmul.bf16.gmra.mxu1 %v13980_v40  ;;  %v10036_v12 = vor.u32 %v11286_v28, %v10033_v49  ;;  %5655 = vmatpush.bf16.msra.mxu0 %v9908_v61  ;;  %v11250_v18 = vld [vmem:[#allocation4 + $0xa4] sm:$0xf]  ;;  %v9889_v40 = vld [vmem:[#allocation4 + $0xb0] sm:$0xf0] }
 0x445   :  { %5698 = vmatpush.bf16.msra.mxu1 %v10052_v24  ;;  %5573 = vmatpush.bf16.msra.mxu2 %v10576_v44  ;;  %v10704_v24 = vor.u32 %v11456_v32, %v10703_v31  ;;  %v9892_v44 = vor.u32 %v11250_v18, %v9889_v40  ;;  %v11246_v28 = vld [vmem:[#allocation4 + $0x84] sm:$0xf]  ;;  %v16427_v48 = vld [vmem:[#allocation95_spill] sm:$0xff] }
 0x446   :  { %5462 = vmatmul.bf16.gmra.mxu3 %v13976_v43  ;;  %v3958_v26 = vpop.f32.mrf.mxu2  ;;  %v11282_v43 = vld [vmem:[#allocation4 + $0x1a4] sm:$0xf] }
 0x447   :  { %v3959_v6 = vadd.f32 %v3958_v26, %v13776_v16  ;;  %v10017_v26 = vld [vmem:[#allocation4 + $0x1b0] sm:$0xf0]  ;;  %5617 = vmatpush.bf16.msra.mxu3 %v10704_v24 }
 0x448   :  { %v5323_v9 = vpop.f32.mrf.mxu0  ;;  %v10020_v21 = vor.u32 %v11282_v43, %v10017_v26  ;;  %5656 = vmatpush.bf16.msra.mxu0 %v9892_v44  ;;  %v10001_v44 = vld [vmem:[#allocation4 + $0x190] sm:$0xf0] }
 0x449   :  { %v4002_v13 = vpop.f32.mrf.mxu3  ;;  %v5324_v22 = vadd.f32 %v5323_v9, %v16414_v51  ;;  %v5367_v41 = vpop.f32.mrf.mxu1  ;;  %5699 = vmatpush.bf16.msra.mxu1 %v10036_v12  ;;  %v16415_v9 = vld [vmem:[#allocation84_spill] sm:$0xff]  ;;  %v16417_v51 = vld [vmem:[#allocation93_spill] sm:$0xff] }
 0x44a   :  { %v13992_v4 = vadd.f32 %v4002_v13, %v3959_v6  ;;  %v9873_v6 = vld [vmem:[#allocation4 + $0x90] sm:$0xf0]  ;;  %v11278_v13 = vld [vmem:[#allocation4 + $0x184] sm:$0xf]  ;;  %v16416_v12 = vmax.f32 %v16415_v9, 0.0  ;;  %v16418_v31 = vmax.f32 %v16417_v51, 0.0 }
 0x44b   :  { %v13995_v16 = vadd.f32 %v5367_v41, %v5324_v22  ;;  %v16420_v41 = vld [vmem:[#allocation85_spill] sm:$0xff]  ;;  %v16422_v22 = vld [vmem:[#allocation96_spill] sm:$0xff]  ;;  %v9876_v18 = vor.u32 %v11246_v28, %v9873_v6  ;;  %v16432_v51 = vld [vmem:[#allocation99_spill] sm:$0xff] }
 0x44c   :  { %16413 = vst [vmem:[#allocation52_spill] sm:$0xff] %v13992_v4  ;;  %v14002_v32 = vpack.c.bf16 %v16418_v31, %v16416_v12  ;;  %v16421_v40 = vmax.f32 %v16420_v41, 0.0  ;;  %v16423_v24 = vmax.f32 %v16422_v22, 0.0  ;;  %v16430_v9 = vld [vmem:[#allocation88_spill] sm:$0xff]  ;;  %v16433_v12 = vmax.f32 %v16432_v51, 0.0 }
 0x44d   :  { %5700 = vmatpush.bf16.msra.mxu1 %v10020_v21  ;;  %v16425_v21 = vld [vmem:[#allocation87_spill] sm:$0xff]  ;;  %v16431_v15 = vmax.f32 %v16430_v9, 0.0  ;;  %v10004_v41 = vor.u32 %v11278_v13, %v10001_v44  ;;  %5657 = vmatpush.bf16.msra.mxu0 %v9876_v18  ;;  %v11242_v6 = vld [vmem:[#allocation4 + $0x64] sm:$0xf] }
 0x44e   :  { %v3960_v35 = vpop.f32.mrf.mxu2  ;;  %16419 = vst [vmem:[#allocation23_spill] sm:$0xff] %v14002_v32  ;;  %v14008_v43 = vpack.c.bf16 %v16423_v24, %v16421_v40  ;;  %v16426_v4 = vmax.f32 %v16425_v21, 0.0  ;;  %v16436_v40 = vld [vmem:[#allocation89_spill] sm:$0xff]  ;;  %v9857_v24 = vld [vmem:[#allocation4 + $0x70] sm:$0xf0] }
 0x44f   :  { %v3961_v49 = vadd.f32 %v3960_v35, %v13783_v62  ;;  %v16428_v62 = vmax.f32 %v16427_v48, 0.0  ;;  %v14020_v31 = vpack.c.bf16 %v16433_v12, %v16431_v15  ;;  %v11274_v21 = vld [vmem:[#allocation4 + $0x164] sm:$0xf]  ;;  %v9985_v15 = vld [vmem:[#allocation4 + $0x170] sm:$0xf0] }
 0x450   :  { %16424 = vst [vmem:[#allocation20_spill] sm:$0xff] %v14008_v43  ;;  %v5326_v26 = vpop.f32.mrf.mxu0  ;;  %v11322_v13 = vld [vmem:[#allocation4 + $0x2e4] sm:$0xf]  ;;  %v9841_v12 = vld [vmem:[#allocation4 + $0x50] sm:$0xf0] }
 0x451   :  { %v4004_v61 = vpop.f32.mrf.mxu3  ;;  %v14014_v35 = vpack.c.bf16 %v16428_v62, %v16426_v4  ;;  %16434 = vst [vmem:[#allocation24_spill] sm:$0xff] %v14020_v31  ;;  %v5327_v22 = vadd.f32 %v5326_v26, %v16436_v40  ;;  %v5370_v28 = vpop.f32.mrf.mxu1  ;;  %5701 = vmatpush.bf16.msra.mxu1 %v10004_v41  ;;  %v9860_v4 = vor.u32 %v11242_v6, %v9857_v24  ;;  %v11354_v18 = vld [vmem:[#allocation4 + $0x3e4] sm:$0xf]  ;;  %v10305_v26 = vld [vmem:[#allocation4 + $0x3f0] sm:$0xf0] }
 0x452   :  { %v14022_v34 = vadd.f32 %v4004_v61, %v3961_v49  ;;  %v10177_v49 = vld [vmem:[#allocation4 + $0x2f0] sm:$0xf0]  ;;  %v9988_v61 = vor.u32 %v11274_v21, %v9985_v15  ;;  %v10308_v9 = vor.u32 %v11354_v18, %v10305_v26  ;;  %v11238_v51 = vld [vmem:[#allocation4 + $0x44] sm:$0xf]  ;;  %v16438_v15 = vld [vmem:[#allocation90_spill] sm:$0xff] }
 0x453   :  { %16429 = vst [vmem:[#allocation29_spill] sm:$0xff] %v14014_v35  ;;  %v14025_v48 = vadd.f32 %v5370_v28, %v5327_v22  ;;  %5423 = vmatmul.bf16.gmra.mxu2 %v14002_v32  ;;  %5506 = vmatmul.bf16.gmra.mxu0 %v14008_v43  ;;  %v10180_v44 = vor.u32 %v11322_v13, %v10177_v49  ;;  %v11270_v41 = vld [vmem:[#allocation4 + $0x144] sm:$0xf]  ;;  %v9969_v6 = vld [vmem:[#allocation4 + $0x150] sm:$0xf0] }
 0x454   :  { %16435 = vst [vmem:[#allocation33_spill] sm:$0xff] %v14022_v34  ;;  %5550 = vmatmul.bf16.gmra.mxu1 %v14020_v31  ;;  %5658 = vmatpush.bf16.msra.mxu0 %v9860_v4  ;;  %v9844_v28 = vor.u32 %v11238_v51, %v9841_v12  ;;  %v9972_v34 = vor.u32 %v11270_v41, %v9969_v6  ;;  %v11234_v49 = vld [vmem:[#allocation4 + $0x24] sm:$0xf]  ;;  %v9809_v12 = vld [vmem:[#allocation4 + $0x10] sm:$0xf0]  ;;  %v16439_v6 = vld [vmem:[#allocation94_spill] sm:$0xff] }
 0x455   :  { %5702 = vmatpush.bf16.msra.mxu1 %v9988_v61  ;;  %5742 = vmatpush.bf16.msrb.mxu2 %v10180_v44  ;;  %v9825_v61 = vld [vmem:[#allocation4 + $0x30] sm:$0xf0]  ;;  %v11266_v18 = vld [vmem:[#allocation4 + $0x124] sm:$0xf]  ;;  %v16449_v31 = vld [vmem:[#allocation98_spill] sm:$0xff] }
 0x456   :  { %5467 = vmatmul.bf16.gmra.mxu3 %v14014_v35  ;;  %v3963_v62 = vpop.f32.mrf.mxu2  ;;  %v11262_v41 = vld [vmem:[#allocation4 + $0x104] sm:$0xf]  ;;  %v16450_v35 = vmax.f32 %v16449_v31, 0.0  ;;  %v16461_v31 = vld [vmem:[#allocation114_spill] sm:$0xff] }
 0x457   :  { %v3964_v40 = vadd.f32 %v3963_v62, %v13799_v19  ;;  %5786 = vmatpush.bf16.msrb.mxu3 %v10308_v9  ;;  %v9828_v19 = vor.u32 %v11234_v49, %v9825_v61  ;;  %v9953_v62 = vld [vmem:[#allocation4 + $0x130] sm:$0xf0]  ;;  %v11230_v9 = vld [vmem:[#allocation4 + $0x4] sm:$0xf] }
 0x458   :  { %v5328_v24 = vpop.f32.mrf.mxu0  ;;  %5659 = vmatpush.bf16.msra.mxu0 %v9844_v28  ;;  %v9956_v44 = vor.u32 %v11266_v18, %v9953_v62  ;;  %v16440_v28 = vmax.f32 %v16439_v6, 0.0  ;;  %v16446_v49 = vld [vmem:[#allocation107_spill] sm:$0xff]  ;;  %v16454_v6 = vld [vmem:[#allocation100_spill] sm:$0xff] }
 0x459   :  { %v4007_v22 = vpop.f32.mrf.mxu3  ;;  %v5329_v4 = vadd.f32 %v5328_v24, %v16438_v15  ;;  %v5372_v13 = vpop.f32.mrf.mxu1  ;;  %5703 = vmatpush.bf16.msra.mxu1 %v9972_v34  ;;  %v16441_v34 = vld [vmem:[#allocation105_spill] sm:$0xff]  ;;  %v16447_v61 = vmax.f32 %v16446_v49, 0.0  ;;  %v9937_v62 = vld [vmem:[#allocation4 + $0x110] sm:$0xf0]  ;;  %v169_v49 = vld [vmem:[#allocation2 + $0x38] sm:$0xff] }
 0x45a   :  { %v14032_v21 = vadd.f32 %v4007_v22, %v3964_v40  ;;  %v16442_v24 = vmax.f32 %v16441_v34, 0.0  ;;  %v16455_v34 = vmax.f32 %v16454_v6, 0.0  ;;  %v16462_v6 = vld [vmem:[#allocation116_spill] sm:$0xff] }
 0x45b   :  { %v14035_v26 = vadd.f32 %v5372_v13, %v5329_v4  ;;  %v16444_v4 = vld [vmem:[#allocation97_spill] sm:$0xff] }
 0x45c   :  { %16437 = vst [vmem:[#allocation44_spill] sm:$0xff] %v14032_v21  ;;  %5660 = vmatpush.bf16.msra.mxu0 %v9828_v19  ;;  %v14042_v15 = vpack.c.bf16 %v16442_v24, %v16440_v28  ;;  %v16445_v13 = vmax.f32 %v16444_v4, 0.0  ;;  %v9812_v19 = vor.u32 %v11230_v9, %v9809_v12  ;;  %v16456_v28 = vld [vmem:[#allocation109_spill] sm:$0xff]  ;;  %v9940_v4 = vor.u32 %v11262_v41, %v9937_v62  ;;  %v16460_v9 = vld [vmem:[#allocation91_spill] sm:$0xff] }
 0x45d   :  { %5704 = vmatpush.bf16.msra.mxu1 %v9956_v44  ;;  %v168_v44 = vld [vmem:[#allocation2 + $0x30] sm:$0xff]  ;;  %v16457_v24 = vmax.f32 %v16456_v28, 0.0  ;;  %v315_v41 = vmul.f32 %v16462_v6, %v169_v49 }
 0x45e   :  { %v3965_v51 = vpop.f32.mrf.mxu2  ;;  %16443 = vst [vmem:[#allocation46_spill] sm:$0xff] %v14042_v15  ;;  %v14048_v18 = vpack.c.bf16 %v16447_v61, %v16445_v13  ;;  %v314_v58 = vmul.f32 %v16461_v31, %v168_v44  ;;  %v16463_v44 = vld [vmem:[#allocation117_spill] sm:$0xff] }
 0x45f   :  { %v3966_v40 = vadd.f32 %v3965_v51, %v13809_v46  ;;  %v16451_v46 = vld [vmem:[#allocation106_spill] sm:$0xff]  ;;  %v14060_v32 = vpack.c.bf16 %v16457_v24, %v16455_v34 }
 0x460   :  { %16448 = vst [vmem:[#allocation47_spill] sm:$0xff] %v14048_v18  ;;  %v5331_v21 = vpop.f32.mrf.mxu0  ;;  %v16452_v51 = vmax.f32 %v16451_v46, 0.0  ;;  %5661 = vmatpush.bf16.msra.mxu0 %v9812_v19  ;;  %v460_v34 = vadd.f32 %v16463_v44, %v314_v58 }
 0x461   :  { %v4009_v22 = vpop.f32.mrf.mxu3  ;;  %16458 = vst [vmem:[#allocation50_spill] sm:$0xff] %v14060_v32  ;;  %v5332_v12 = vadd.f32 %v5331_v21, %v16460_v9  ;;  %v5375_v61 = vpop.f32.mrf.mxu1  ;;  %5705 = vmatpush.bf16.msra.mxu1 %v9940_v4  ;;  %v16464_v4 = vld [vmem:[#allocation118_spill] sm:$0xff] }
 0x462   :  { %v14054_v43 = vpack.c.bf16 %v16452_v51, %v16450_v35  ;;  %v14062_v13 = vadd.f32 %v4009_v22, %v3966_v40  ;;  %v11318_v35 = vld [vmem:[#allocation4 + $0x2c4] sm:$0xf]  ;;  %v10161_v51 = vld [vmem:[#allocation4 + $0x2d0] sm:$0xf0]  ;;  %v461_v9 = vadd.f32 %v16464_v4, %v315_v41 }
 0x463   :  { %v14066_v46 = vadd.f32 %v5375_v61, %v5332_v12  ;;  %5428 = vmatmul.bf16.gmra.mxu2 %v14042_v15  ;;  %5511 = vmatmul.bf16.gmra.mxu0 %v14048_v18  ;;  %v10164_v21 = vor.u32 %v11318_v35, %v10161_v51  ;;  %v11350_v40 = vld [vmem:[#allocation4 + $0x3c4] sm:$0xf]  ;;  %v10289_v22 = vld [vmem:[#allocation4 + $0x3d0] sm:$0xf0]  ;;  %v16466_v61 = vld [vmem:[#allocation92_spill] sm:$0xff]  ;;  %v588_v35 = vmax.f32 %v460_v34, 0.0 }
 0x464   :  { %16453 = vst [vmem:[#allocation48_spill] sm:$0xff] %v14054_v43  ;;  %5555 = vmatmul.bf16.gmra.mxu1 %v14060_v32  ;;  %v10292_v19 = vor.u32 %v11350_v40, %v10289_v22  ;;  %v589_v40 = vmax.f32 %v461_v9, 0.0  ;;  %v16471_v18 = vld [vmem:[#allocation119_spill] sm:$0xff]  ;;  %v11314_v15 = vld [vmem:[#allocation4 + $0x2a4] sm:$0xf] }
 0x465   :  { %16459 = vst [vmem:[#allocation30_spill] sm:$0xff] %v14062_v13  ;;  %5743 = vmatpush.bf16.msrb.mxu2 %v10164_v21  ;;  %v16467_v21 = vld [vmem:[#allocation121_spill] sm:$0xff] }
 0x466   :  { %5472 = vmatmul.bf16.gmra.mxu3 %v14054_v43  ;;  %v3968_v62 = vpop.f32.mrf.mxu2  ;;  %v16468_v43 = vmax.f32 %v16467_v21, 0.0 }
 0x467   :  { %v3969_v28 = vadd.f32 %v3968_v62, %v13833_v63  ;;  %5787 = vmatpush.bf16.msrb.mxu3 %v10292_v19  ;;  %v16469_v62 = vld [vmem:[#allocation108_spill] sm:$0xff] }
 0x468   :  { %v5333_v12 = vpop.f32.mrf.mxu0  ;;  %v14083_v58 = vpack.c.bf16 %v16468_v43, %v588_v35  ;;  %v16470_v41 = vmax.f32 %v16469_v62, 0.0 }
 0x469   :  { %v4012_v24 = vpop.f32.mrf.mxu3  ;;  %v5334_v13 = vadd.f32 %v5333_v12, %v16466_v61  ;;  %v5377_v32 = vpop.f32.mrf.mxu1  ;;  %v16473_v12 = vld [vmem:[#allocation123_spill] sm:$0xff] }
 0x46a   :  { %v14076_v49 = vadd.f32 %v4012_v24, %v3969_v28  ;;  %v16472_v28 = vmax.f32 %v16471_v18, 0.0  ;;  %v16474_v61 = vmax.f32 %v16473_v12, 0.0  ;;  %v10145_v18 = vld [vmem:[#allocation4 + $0x2b0] sm:$0xf0] }
 0x46b   :  { %v14079_v51 = vadd.f32 %v5377_v32, %v5334_v13  ;;  %v16476_v13 = vld [vmem:[#allocation110_spill] sm:$0xff]  ;;  %v10273_v12 = vld [vmem:[#allocation4 + $0x3b0] sm:$0xf0] }
 0x46c   :  { %16465 = vst [vmem:[#allocation39_spill] sm:$0xff] %v14076_v49  ;;  %v14090_v24 = vpack.c.bf16 %v16472_v28, %v16470_v41  ;;  %v14094_v34 = vpack.c.bf16 %v16474_v61, %v589_v40  ;;  %v16477_v9 = vmax.f32 %v16476_v13, 0.0  ;;  %v16478_v49 = vld [vmem:[#allocation120_spill] sm:$0xff]  ;;  %v10148_v41 = vor.u32 %v11314_v15, %v10145_v18  ;;  %v11346_v40 = vld [vmem:[#allocation4 + $0x3a4] sm:$0xf]  ;;  %v16484_v13 = vld [vmem:[#allocation163_spill] sm:$0xff] }
 0x46d   :  { %v16479_v21 = vmax.f32 %v16478_v49, 0.0  ;;  %v10276_v49 = vor.u32 %v11346_v40, %v10273_v12  ;;  %v16485_v12 = vld [vmem:[#allocation122_spill] sm:$0xff] }
 0x46e   :  { %v3970_v22 = vpop.f32.mrf.mxu2  ;;  %16475 = vst [vmem:[#allocation53_spill] sm:$0xff] %v14094_v34  ;;  %5744 = vmatpush.bf16.msrb.mxu2 %v10148_v41 }
 0x46f   :  { %v3971_v63 = vadd.f32 %v3970_v22, %v13843_v54  ;;  %v14100_v43 = vpack.c.bf16 %v16479_v21, %v16477_v9  ;;  %v16482_v54 = vld [vmem:[#allocation101_spill] sm:$0xff]  ;;  %5788 = vmatpush.bf16.msrb.mxu3 %v10276_v49  ;;  %v16486_v49 = vmax.f32 %v16485_v12, 0.0 }
 0x470   :  { %v5336_v32 = vpop.f32.mrf.mxu0 }
 0x471   :  { %v4014_v19 = vpop.f32.mrf.mxu3  ;;  %16480 = vst [vmem:[#allocation34_spill] sm:$0xff] %v14100_v43  ;;  %v5337_v22 = vadd.f32 %v5336_v32, %v16482_v54  ;;  %v5380_v62 = vpop.f32.mrf.mxu1 }
 0x472   :  { %v14102_v35 = vadd.f32 %v4014_v19, %v3971_v63 }
 0x473   :  { %v14105_v28 = vadd.f32 %v5380_v62, %v5337_v22  ;;  %5516 = vmatmul.bf16.gmra.mxu0 %v14090_v24  ;;  %5574 = vmatmul.bf16.vlgmr.msra.gmra.mxu2 %v14083_v58  ;;  %v11310_v22 = vld [vmem:[#allocation4 + $0x284] sm:$0xf]  ;;  %v10129_v62 = vld [vmem:[#allocation4 + $0x290] sm:$0xf0] }
 0x474   :  { %16481 = vst [vmem:[#allocation42_spill] sm:$0xff] %v14102_v35  ;;  %5560 = vmatmul.bf16.gmra.mxu1 %v14100_v43  ;;  %v10132_v18 = vor.u32 %v11310_v22, %v10129_v62  ;;  %v16495_v22 = vld [vmem:[#allocation164_spill] sm:$0xff] }
 0x476   :  { %5618 = vmatmul.bf16.vlgmr.msra.gmra.mxu3 %v14094_v34  ;;  %v3973_v63 = vpop.f32.mrf.mxu2  ;;  %5745 = vmatpush.bf16.msrb.mxu2 %v10132_v18 }
 0x477   :  { %v3974_v19 = vadd.f32 %v3973_v63, %v13866_v39  ;;  %v16487_v39 = vld [vmem:[#allocation129_spill] sm:$0xff] }
 0x478   :  { %v5338_v15 = vpop.f32.mrf.mxu0  ;;  %v16488_v63 = vmax.f32 %v16487_v39, 0.0 }
 0x479   :  { %v4017_v61 = vpop.f32.mrf.mxu3  ;;  %v5339_v9 = vadd.f32 %v5338_v15, %v16484_v13  ;;  %v5382_v21 = vpop.f32.mrf.mxu1  ;;  %v16491_v13 = vld [vmem:[#allocation131_spill] sm:$0xff] }
 0x47a   :  { %v14112_v32 = vadd.f32 %v4017_v61, %v3974_v19  ;;  %v14122_v34 = vpack.c.bf16 %v16488_v63, %v16486_v49  ;;  %v16489_v61 = vld [vmem:[#allocation124_spill] sm:$0xff] }
 0x47b   :  { %v14115_v54 = vadd.f32 %v5382_v21, %v5339_v9  ;;  %v16490_v15 = vmax.f32 %v16489_v61, 0.0  ;;  %v16492_v9 = vmax.f32 %v16491_v13, 0.0 }
 0x47c   :  { %16483 = vst [vmem:[#allocation56_spill] sm:$0xff] %v14112_v32 }
 0x47d   :  { %v14128_v21 = vpack.c.bf16 %v16492_v9, %v16490_v15  ;;  %v11306_v9 = vld [vmem:[#allocation4 + $0x264] sm:$0xf] }
 0x47e   :  { %v3975_v35 = vpop.f32.mrf.mxu2 }
 0x47f   :  { %v3976_v41 = vadd.f32 %v3975_v35, %v13875_v59  ;;  %16493 = vst [vmem:[#allocation58_spill] sm:$0xff] %v14128_v21  ;;  %v11342_v59 = vld [vmem:[#allocation4 + $0x384] sm:$0xf]  ;;  %v10257_v35 = vld [vmem:[#allocation4 + $0x390] sm:$0xf0] }
 0x480   :  { %v5341_v19 = vpop.f32.mrf.mxu0  ;;  %v10260_v43 = vor.u32 %v11342_v59, %v10257_v35  ;;  %v10241_v59 = vld [vmem:[#allocation4 + $0x370] sm:$0xf0] }
 0x481   :  { %v4019_v40 = vpop.f32.mrf.mxu3  ;;  %v5342_v62 = vadd.f32 %v5341_v19, %v16495_v22  ;;  %v5385_v18 = vpop.f32.mrf.mxu1  ;;  %v16496_v19 = vld [vmem:[#allocation165_spill] sm:$0xff]  ;;  %v10113_v22 = vld [vmem:[#allocation4 + $0x270] sm:$0xf0] }
 0x482   :  { %v14130_v32 = vadd.f32 %v4019_v40, %v3976_v41  ;;  %5789 = vmatpush.bf16.msrb.mxu3 %v10260_v43 }
 0x483   :  { %v14133_v12 = vadd.f32 %v5385_v18, %v5342_v62  ;;  %5579 = vmatmul.bf16.gmra.mxu2 %v14122_v34  ;;  %5662 = vmatmul.bf16.vlgmr.msra.gmra.mxu0 %v13679_v33  ;;  %v11338_v62 = vld [vmem:[#allocation4 + $0x364] sm:$0xf]  ;;  %v10116_v18 = vor.u32 %v11306_v9, %v10113_v22 }
 0x484   :  { %16494 = vst [vmem:[#allocation59_spill] sm:$0xff] %v14130_v32  ;;  %5706 = vmatmul.bf16.vlgmr.msra.gmra.mxu1 %v13684_v20  ;;  %v10244_v35 = vor.u32 %v11338_v62, %v10241_v59  ;;  %v16503_v33 = vld [vmem:[#allocation137_spill] sm:$0xff] }
 0x485   :  { %5746 = vmatpush.bf16.msrb.mxu2 %v10116_v18  ;;  %v16504_v9 = vmax.f32 %v16503_v33, 0.0 }
 0x486   :  { %5623 = vmatmul.bf16.gmra.mxu3 %v14128_v21  ;;  %v5399_v49 = vpop.f32.mrf.mxu2  ;;  %v16499_v21 = vld [vmem:[#allocation135_spill] sm:$0xff] }
 0x487   :  { %v5400_v41 = vadd.f32 %v5399_v49, %v13906_v23  ;;  %v16497_v23 = vld [vmem:[#allocation130_spill] sm:$0xff]  ;;  %5790 = vmatpush.bf16.msrb.mxu3 %v10244_v35 }
 0x488   :  { %v5343_v39 = vpop.f32.mrf.mxu0  ;;  %v16498_v49 = vmax.f32 %v16497_v23, 0.0 }
 0x489   :  { %v5443_v40 = vpop.f32.mrf.mxu3  ;;  %v5344_v61 = vadd.f32 %v5343_v39, %v16496_v19  ;;  %v5387_v15 = vpop.f32.mrf.mxu1  ;;  %v232_v39 = vld [vmem:[#allocation2 + $0x230] sm:$0xff] }
 0x48a   :  { %v5444_v63 = vadd.f32 %v5443_v40, %v5400_v41  ;;  %v16500_v41 = vmax.f32 %v16499_v21, 0.0 }
 0x48b   :  { %v14141_v13 = vadd.f32 %v5387_v15, %v5344_v61  ;;  %v16501_v61 = vld [vmem:[#allocation132_spill] sm:$0xff] }
 0x48c   :  { %v14148_v40 = vpack.c.bf16 %v16500_v41, %v16498_v49  ;;  %v16502_v15 = vmax.f32 %v16501_v61, 0.0 }
 0x48e   :  { %v5401_v32 = vpop.f32.mrf.mxu2  ;;  %v14154_v22 = vpack.c.bf16 %v16504_v9, %v16502_v15  ;;  %v11302_v15 = vld [vmem:[#allocation4 + $0x244] sm:$0xf]  ;;  %v10097_v9 = vld [vmem:[#allocation4 + $0x250] sm:$0xf0] }
 0x48f   :  { %v5402_v43 = vadd.f32 %v5401_v32, %v13919_v2  ;;  %v233_v2 = vld [vmem:[#allocation2 + $0x238] sm:$0xff]  ;;  %v378_v32 = vmul.f32 %v16461_v31, %v232_v39 }
 0x490   :  { %v5487_v19 = vpop.f32.mrf.mxu0  ;;  %v379_v33 = vmul.f32 %v16462_v6, %v233_v2  ;;  %v10100_v6 = vor.u32 %v11302_v15, %v10097_v9  ;;  %v10225_v2 = vld [vmem:[#allocation4 + $0x350] sm:$0xf0] }
 0x491   :  { %v5445_v20 = vpop.f32.mrf.mxu3  ;;  %v5488_v18 = vadd.f32 %v5487_v19, %v5444_v63  ;;  %v5531_v59 = vpop.f32.mrf.mxu1 }
 0x492   :  { %v5446_v62 = vadd.f32 %v5445_v20, %v5402_v43  ;;  %v524_v20 = vadd.f32 %v16463_v44, %v378_v32  ;;  %v525_v31 = vadd.f32 %v16464_v4, %v379_v33  ;;  %5747 = vmatpush.bf16.msrb.mxu2 %v10100_v6  ;;  %v10081_v6 = vld [vmem:[#allocation4 + $0x230] sm:$0xf0] }
 0x493   :  { %v14157_v23 = vadd.f32 %v5531_v59, %v5488_v18  ;;  %5584 = vmatmul.bf16.gmra.mxu2 %v14148_v40  ;;  %5667 = vmatmul.bf16.gmra.mxu0 %v13702_v38  ;;  %v11334_v18 = vld [vmem:[#allocation4 + $0x344] sm:$0xf] }
 0x494   :  { %5711 = vmatmul.bf16.gmra.mxu1 %v13708_v10  ;;  %v652_v19 = vmax.f32 %v524_v20, 0.0  ;;  %v653_v59 = vmax.f32 %v525_v31, 0.0  ;;  %v10228_v10 = vor.u32 %v11334_v18, %v10225_v2  ;;  %v16507_v20 = vld [vmem:[#allocation138_spill] sm:$0xff] }
 0x496   :  { %5628 = vmatmul.bf16.gmra.mxu3 %v14154_v22  ;;  %v5404_v21 = vpop.f32.mrf.mxu2 }
 0x497   :  { %v5405_v63 = vadd.f32 %v5404_v21, %v13945_v11  ;;  %v16505_v21 = vld [vmem:[#allocation136_spill] sm:$0xff]  ;;  %5791 = vmatpush.bf16.msrb.mxu3 %v10228_v10 }
 0x498   :  { %v5489_v43 = vpop.f32.mrf.mxu0  ;;  %v16506_v4 = vmax.f32 %v16505_v21, 0.0 }
 0x499   :  { %v5448_v35 = vpop.f32.mrf.mxu3  ;;  %v5490_v41 = vadd.f32 %v5489_v43, %v5446_v62  ;;  %v5533_v39 = vpop.f32.mrf.mxu1 }
 0x49a   :  { %v5449_v49 = vadd.f32 %v5448_v35, %v5405_v63  ;;  %v14172_v33 = vpack.c.bf16 %v652_v19, %v16506_v4  ;;  %v16508_v63 = vmax.f32 %v16507_v20, 0.0 }
 0x49b   :  { %v14167_v61 = vadd.f32 %v5533_v39, %v5490_v41 }
 0x49c   :  { %v14176_v35 = vpack.c.bf16 %v653_v59, %v16508_v63 }
 0x49e   :  { %v5406_v44 = vpop.f32.mrf.mxu2  ;;  %16509 = vst [vmem:[#allocation60_spill] sm:$0xff] %v14176_v35 }
 0x49f   :  { %v5407_v11 = vadd.f32 %v5406_v44, %v13959_v37 }
 0x4a0   :  { %v5492_v62 = vpop.f32.mrf.mxu0 }
 0x4a1   :  { %v5450_v32 = vpop.f32.mrf.mxu3  ;;  %v5493_v31 = vadd.f32 %v5492_v62, %v5449_v49  ;;  %v5536_v41 = vpop.f32.mrf.mxu1  ;;  %v11298_v49 = vld [vmem:[#allocation4 + $0x224] sm:$0xf] }
 0x4a2   :  { %v5451_v43 = vadd.f32 %v5450_v32, %v5407_v11  ;;  %v10084_v2 = vor.u32 %v11298_v49, %v10081_v6  ;;  %v11330_v11 = vld [vmem:[#allocation4 + $0x324] sm:$0xf]  ;;  %v10209_v32 = vld [vmem:[#allocation4 + $0x330] sm:$0xf0] }
 0x4a3   :  { %v14178_v39 = vadd.f32 %v5536_v41, %v5493_v31  ;;  %5589 = vmatmul.bf16.gmra.mxu2 %v14172_v33  ;;  %5672 = vmatmul.bf16.gmra.mxu0 %v13724_v52  ;;  %v10212_v21 = vor.u32 %v11330_v11, %v10209_v32  ;;  %v16512_v31 = vld [vmem:[#allocation145_spill] sm:$0xff]  ;;  %v10433_v32 = vld [vmem:[#allocation4 + $0x4f0] sm:$0xf0] }
 0x4a4   :  { %5716 = vmatmul.bf16.gmra.mxu1 %v13730_v27  ;;  %5748 = vmatpush.bf16.msrb.mxu2 %v10084_v2  ;;  %v16513_v41 = vmax.f32 %v16512_v31, 0.0  ;;  %v11386_v11 = vld [vmem:[#allocation4 + $0x4e4] sm:$0xf] }
 0x4a5   :  { %5792 = vmatpush.bf16.msrb.mxu3 %v10212_v21  ;;  %v11294_v31 = vld [vmem:[#allocation4 + $0x204] sm:$0xf] }
 0x4a6   :  { %5633 = vmatmul.bf16.gmra.mxu3 %v14176_v35  ;;  %v5409_v37 = vpop.f32.mrf.mxu2 }
 0x4a7   :  { %v5410_v10 = vadd.f32 %v5409_v37, %v13985_v42  ;;  %v16510_v42 = vld [vmem:[#allocation141_spill] sm:$0xff] }
 0x4a8   :  { %v5494_v15 = vpop.f32.mrf.mxu0  ;;  %v16511_v63 = vmax.f32 %v16510_v42, 0.0  ;;  %v10561_v42 = vld [vmem:[#allocation4 + $0x5f0] sm:$0xf0] }
 0x4a9   :  { %v5453_v19 = vpop.f32.mrf.mxu3  ;;  %v5495_v18 = vadd.f32 %v5494_v15, %v5451_v43  ;;  %v5538_v59 = vpop.f32.mrf.mxu1  ;;  %v16517_v15 = vld [vmem:[#allocation147_spill] sm:$0xff] }
 0x4aa   :  { %v5454_v9 = vadd.f32 %v5453_v19, %v5410_v10  ;;  %v14192_v43 = vpack.c.bf16 %v16513_v41, %v16511_v63  ;;  %v16515_v10 = vld [vmem:[#allocation142_spill] sm:$0xff]  ;;  %v11382_v41 = vld [vmem:[#allocation4 + $0x4c4] sm:$0xf] }
 0x4ab   :  { %v14185_v44 = vadd.f32 %v5538_v59, %v5495_v18  ;;  %v16516_v19 = vmax.f32 %v16515_v10, 0.0  ;;  %v16518_v18 = vmax.f32 %v16517_v15, 0.0  ;;  %v11414_v10 = vld [vmem:[#allocation4 + $0x5c4] sm:$0xf] }
 0x4ac   :  { %16514 = vst [vmem:[#allocation63_spill] sm:$0xff] %v14192_v43 }
 0x4ad   :  { %v14198_v59 = vpack.c.bf16 %v16518_v18, %v16516_v19 }
 0x4ae   :  { %v5411_v4 = vpop.f32.mrf.mxu2 }
 0x4af   :  { %v5412_v62 = vadd.f32 %v5411_v4, %v13995_v16  ;;  %16519 = vst [vmem:[#allocation51_spill] sm:$0xff] %v14198_v59  ;;  %v11418_v16 = vld [vmem:[#allocation4 + $0x5e4] sm:$0xf]  ;;  %v10436_v4 = vor.u32 %v11386_v11, %v10433_v32 }
 0x4b0   :  { %v5497_v37 = vpop.f32.mrf.mxu0  ;;  %v10564_v63 = vor.u32 %v11418_v16, %v10561_v42  ;;  %v11326_v42 = vld [vmem:[#allocation4 + $0x304] sm:$0xf] }
 0x4b1   :  { %v5455_v20 = vpop.f32.mrf.mxu3  ;;  %v5498_v6 = vadd.f32 %v5497_v37, %v5454_v9  ;;  %v5541_v2 = vpop.f32.mrf.mxu1  ;;  %5830 = vmatpush.bf16.msrb.mxu0 %v10436_v4  ;;  %v10417_v37 = vld [vmem:[#allocation4 + $0x4d0] sm:$0xf0] }
 0x4b2   :  { %v5456_v49 = vadd.f32 %v5455_v20, %v5412_v62  ;;  %v10065_v62 = vld [vmem:[#allocation4 + $0x210] sm:$0xf0]  ;;  %5874 = vmatpush.bf16.msrb.mxu1 %v10564_v63  ;;  %v10420_v18 = vor.u32 %v11382_v41, %v10417_v37  ;;  %v11378_v63 = vld [vmem:[#allocation4 + $0x4a4] sm:$0xf] }
 0x4b3   :  { %v14200_v21 = vadd.f32 %v5541_v2, %v5498_v6  ;;  %5594 = vmatmul.bf16.gmra.mxu2 %v14192_v43  ;;  %5677 = vmatmul.bf16.gmra.mxu0 %v13748_v25  ;;  %v10068_v9 = vor.u32 %v11294_v31, %v10065_v62  ;;  %v10545_v6 = vld [vmem:[#allocation4 + $0x5d0] sm:$0xf0]  ;;  %v11410_v62 = vld [vmem:[#allocation4 + $0x5a4] sm:$0xf] }
 0x4b4   :  { %5721 = vmatmul.bf16.gmra.mxu1 %v13752_v30  ;;  %v10548_v11 = vor.u32 %v11414_v10, %v10545_v6  ;;  %v10401_v31 = vld [vmem:[#allocation4 + $0x4b0] sm:$0xf0]  ;;  %v11374_v37 = vld [vmem:[#allocation4 + $0x484] sm:$0xf] }
 0x4b5   :  { %5749 = vmatpush.bf16.msrb.mxu2 %v10068_v9  ;;  %5831 = vmatpush.bf16.msrb.mxu0 %v10420_v18  ;;  %v11406_v10 = vld [vmem:[#allocation4 + $0x584] sm:$0xf]  ;;  %v16522_v6 = vld [vmem:[#allocation151_spill] sm:$0xff] }
 0x4b6   :  { %5638 = vmatmul.bf16.gmra.mxu3 %v14198_v59  ;;  %v5414_v20 = vpop.f32.mrf.mxu2  ;;  %v10193_v59 = vld [vmem:[#allocation4 + $0x310] sm:$0xf0]  ;;  %5875 = vmatpush.bf16.msrb.mxu1 %v10548_v11 }
 0x4b7   :  { %v5415_v19 = vadd.f32 %v5414_v20, %v14025_v48  ;;  %v10196_v4 = vor.u32 %v11326_v42, %v10193_v59  ;;  %v10404_v48 = vor.u32 %v11378_v63, %v10401_v31  ;;  %v10529_v20 = vld [vmem:[#allocation4 + $0x5b0] sm:$0xf0]  ;;  %v16520_v59 = vld [vmem:[#allocation146_spill] sm:$0xff]  ;;  %v16526_v31 = vld [vmem:[#allocation153_spill] sm:$0xff] }
 0x4b8   :  { %v5499_v2 = vpop.f32.mrf.mxu0  ;;  %v10532_v9 = vor.u32 %v11410_v62, %v10529_v20  ;;  %v16521_v18 = vmax.f32 %v16520_v59, 0.0  ;;  %v16527_v62 = vmax.f32 %v16526_v31, 0.0  ;;  %v10369_v59 = vld [vmem:[#allocation4 + $0x470] sm:$0xf0] }
 0x4b9   :  { %v5458_v15 = vpop.f32.mrf.mxu3  ;;  %v5500_v30 = vadd.f32 %v5499_v2, %v5456_v49  ;;  %v5543_v16 = vpop.f32.mrf.mxu1  ;;  %5793 = vmatpush.bf16.msrb.mxu3 %v10196_v4  ;;  %5832 = vmatpush.bf16.msrb.mxu0 %v10404_v48  ;;  %v10385_v49 = vld [vmem:[#allocation4 + $0x490] sm:$0xf0]  ;;  %v16523_v2 = vmax.f32 %v16522_v6, 0.0  ;;  %v16524_v4 = vld [vmem:[#allocation148_spill] sm:$0xff]  ;;  %v11402_v6 = vld [vmem:[#allocation4 + $0x564] sm:$0xf] }
 0x4ba   :  { %v5459_v32 = vadd.f32 %v5458_v15, %v5415_v19  ;;  %5876 = vmatpush.bf16.msrb.mxu1 %v10532_v9  ;;  %v16525_v63 = vmax.f32 %v16524_v4, 0.0  ;;  %v10353_v4 = vld [vmem:[#allocation4 + $0x450] sm:$0xf0] }
 0x4bb   :  { %v14207_v25 = vadd.f32 %v5543_v16, %v5500_v30  ;;  %v14214_v11 = vpack.c.bf16 %v16523_v2, %v16521_v18  ;;  %v10388_v30 = vor.u32 %v11374_v37, %v10385_v49  ;;  %v10513_v16 = vld [vmem:[#allocation4 + $0x590] sm:$0xf0] }
 0x4bc   :  { %v14220_v48 = vpack.c.bf16 %v16527_v62, %v16525_v63  ;;  %v10516_v20 = vor.u32 %v11406_v10, %v10513_v16  ;;  %v10497_v49 = vld [vmem:[#allocation4 + $0x570] sm:$0xf0]  ;;  %v11450_v10 = vld [vmem:[#allocation4 + $0x6e4] sm:$0xf] }
 0x4bd   :  { %5833 = vmatpush.bf16.msrb.mxu0 %v10388_v30  ;;  %v10817_v30 = vld [vmem:[#allocation4 + $0x7f0] sm:$0xf0]  ;;  %v11398_v63 = vld [vmem:[#allocation4 + $0x544] sm:$0xf] }
 0x4be   :  { %v5416_v41 = vpop.f32.mrf.mxu2  ;;  %16528 = vst [vmem:[#allocation61_spill] sm:$0xff] %v14220_v48  ;;  %5877 = vmatpush.bf16.msrb.mxu1 %v10516_v20 }
 0x4bf   :  { %v5417_v19 = vadd.f32 %v5416_v41, %v14035_v26  ;;  %v11370_v41 = vld [vmem:[#allocation4 + $0x464] sm:$0xf] }
 0x4c0   :  { %v5502_v42 = vpop.f32.mrf.mxu0  ;;  %v10372_v37 = vor.u32 %v11370_v41, %v10369_v59 }
 0x4c1   :  { %v5460_v15 = vpop.f32.mrf.mxu3  ;;  %v5503_v43 = vadd.f32 %v5502_v42, %v5459_v32  ;;  %v5546_v26 = vpop.f32.mrf.mxu1  ;;  %v10689_v32 = vld [vmem:[#allocation4 + $0x6f0] sm:$0xf0]  ;;  %v11366_v42 = vld [vmem:[#allocation4 + $0x444] sm:$0xf] }
 0x4c2   :  { %v5461_v9 = vadd.f32 %v5460_v15, %v5417_v19  ;;  %v10500_v19 = vor.u32 %v11402_v6, %v10497_v49  ;;  %v11482_v15 = vld [vmem:[#allocation4 + $0x7e4] sm:$0xf]  ;;  %v10692_v2 = vor.u32 %v11450_v10, %v10689_v32  ;;  %5834 = vmatpush.bf16.msrb.mxu0 %v10372_v37  ;;  %v10356_v20 = vor.u32 %v11366_v42, %v10353_v4  ;;  %v10337_v32 = vld [vmem:[#allocation4 + $0x430] sm:$0xf0] }
 0x4c3   :  { %v14222_v18 = vadd.f32 %v5546_v26, %v5503_v43  ;;  %5599 = vmatmul.bf16.gmra.mxu2 %v14214_v11  ;;  %5682 = vmatmul.bf16.gmra.mxu0 %v13768_v60  ;;  %v10820_v43 = vor.u32 %v11482_v15, %v10817_v30  ;;  %v10481_v26 = vld [vmem:[#allocation4 + $0x550] sm:$0xf0]  ;;  %v11362_v37 = vld [vmem:[#allocation4 + $0x424] sm:$0xf] }
 0x4c4   :  { %5726 = vmatmul.bf16.gmra.mxu1 %v13774_v47  ;;  %5918 = vmatpush.bf16.msra.mxu2 %v10692_v2  ;;  %v10484_v59 = vor.u32 %v11398_v63, %v10481_v26  ;;  %v10340_v30 = vor.u32 %v11362_v37, %v10337_v32  ;;  %v10465_v47 = vld [vmem:[#allocation4 + $0x530] sm:$0xf0]  ;;  %v16529_v63 = vld [vmem:[#allocation152_spill] sm:$0xff] }
 0x4c5   :  { %5878 = vmatpush.bf16.msrb.mxu1 %v10500_v19  ;;  %5962 = vmatpush.bf16.msra.mxu3 %v10820_v43  ;;  %v11394_v19 = vld [vmem:[#allocation4 + $0x524] sm:$0xf]  ;;  %v10321_v42 = vld [vmem:[#allocation4 + $0x410] sm:$0xf0]  ;;  %v16535_v37 = vld [vmem:[#allocation156_spill] sm:$0xff] }
 0x4c6   :  { %5643 = vmatmul.bf16.gmra.mxu3 %v14220_v48  ;;  %v5419_v16 = vpop.f32.mrf.mxu2  ;;  %5835 = vmatpush.bf16.msrb.mxu0 %v10356_v20  ;;  %v11390_v43 = vld [vmem:[#allocation4 + $0x504] sm:$0xf]  ;;  %v16536_v32 = vmax.f32 %v16535_v37, 0.0 }
 0x4c7   :  { %v5420_v31 = vadd.f32 %v5419_v16, %v14066_v46  ;;  %v10468_v46 = vor.u32 %v11394_v19, %v10465_v47  ;;  %v11358_v16 = vld [vmem:[#allocation4 + $0x404] sm:$0xf] }
 0x4c8   :  { %v5504_v41 = vpop.f32.mrf.mxu0 }
 0x4c9   :  { %v5463_v62 = vpop.f32.mrf.mxu3  ;;  %v5505_v49 = vadd.f32 %v5504_v41, %v5461_v9  ;;  %v5548_v10 = vpop.f32.mrf.mxu1  ;;  %5879 = vmatpush.bf16.msrb.mxu1 %v10484_v59  ;;  %v10324_v41 = vor.u32 %v11358_v16, %v10321_v42  ;;  %v10449_v59 = vld [vmem:[#allocation4 + $0x510] sm:$0xf0]  ;;  %v11446_v16 = vld [vmem:[#allocation4 + $0x6c4] sm:$0xf] }
 0x4ca   :  { %v5464_v6 = vadd.f32 %v5463_v62, %v5420_v31  ;;  %5836 = vmatpush.bf16.msrb.mxu0 %v10340_v30  ;;  %v16530_v31 = vmax.f32 %v16529_v63, 0.0  ;;  %v16531_v62 = vld [vmem:[#allocation155_spill] sm:$0xff]  ;;  %v10452_v30 = vor.u32 %v11390_v43, %v10449_v59 }
 0x4cb   :  { %v14229_v15 = vadd.f32 %v5548_v10, %v5505_v49  ;;  %v16532_v20 = vmax.f32 %v16531_v62, 0.0  ;;  %v16533_v10 = vld [vmem:[#allocation154_spill] sm:$0xff]  ;;  %v10673_v42 = vld [vmem:[#allocation4 + $0x6d0] sm:$0xf0] }
 0x4cc   :  { %v16534_v47 = vmax.f32 %v16533_v10, 0.0  ;;  %v10676_v63 = vor.u32 %v11446_v16, %v10673_v42  ;;  %v10801_v43 = vld [vmem:[#allocation4 + $0x7d0] sm:$0xf0] }
 0x4cd   :  { %5880 = vmatpush.bf16.msrb.mxu1 %v10468_v46  ;;  %v14236_v26 = vpack.c.bf16 %v16532_v20, %v16530_v31  ;;  %v11478_v31 = vld [vmem:[#allocation4 + $0x7c4] sm:$0xf] }
 0x4ce   :  { %v5421_v2 = vpop.f32.mrf.mxu2  ;;  %v14242_v19 = vpack.c.bf16 %v16536_v32, %v16534_v47  ;;  %5837 = vmatpush.bf16.msrb.mxu0 %v10324_v41  ;;  %5919 = vmatpush.bf16.msra.mxu2 %v10676_v63 }
 0x4cf   :  { %v5422_v4 = vadd.f32 %v5421_v2, %v14079_v51 }
 0x4d0   :  { %v5507_v49 = vpop.f32.mrf.mxu0 }
 0x4d1   :  { %v5465_v9 = vpop.f32.mrf.mxu3  ;;  %v5508_v48 = vadd.f32 %v5507_v49, %v5464_v6  ;;  %v5551_v51 = vpop.f32.mrf.mxu1  ;;  %5881 = vmatpush.bf16.msrb.mxu1 %v10452_v30 }
 0x4d2   :  { %v5466_v46 = vadd.f32 %v5465_v9, %v5422_v4  ;;  %v10804_v4 = vor.u32 %v11478_v31, %v10801_v43 }
 0x4d3   :  { %v14244_v2 = vadd.f32 %v5551_v51, %v5508_v48  ;;  %5604 = vmatmul.bf16.gmra.mxu2 %v14236_v26  ;;  %5687 = vmatmul.bf16.gmra.mxu0 %v13790_v50 }
 0x4d4   :  { %5731 = vmatmul.bf16.gmra.mxu1 %v13796_v36  ;;  %5963 = vmatpush.bf16.msra.mxu3 %v10804_v4 }
 0x4d6   :  { %5648 = vmatmul.bf16.gmra.mxu3 %v14242_v19  ;;  %v5424_v6 = vpop.f32.mrf.mxu2 }
 0x4d7   :  { %v5425_v9 = vadd.f32 %v5424_v6, %v14105_v28  ;;  %v11442_v6 = vld [vmem:[#allocation4 + $0x6a4] sm:$0xf] }
 0x4d8   :  { %v5509_v62 = vpop.f32.mrf.mxu0 }
 0x4d9   :  { %v5468_v48 = vpop.f32.mrf.mxu3  ;;  %v5510_v41 = vadd.f32 %v5509_v62, %v5466_v46  ;;  %v5553_v59 = vpop.f32.mrf.mxu1 }
 0x4da   :  { %v5469_v20 = vadd.f32 %v5468_v48, %v5425_v9  ;;  %v10657_v9 = vld [vmem:[#allocation4 + $0x6b0] sm:$0xf0]  ;;  %v11474_v48 = vld [vmem:[#allocation4 + $0x7a4] sm:$0xf] }
 0x4db   :  { %v14251_v49 = vadd.f32 %v5553_v59, %v5510_v41  ;;  %v10660_v62 = vor.u32 %v11442_v6, %v10657_v9 }
 0x4dd   :  { %5920 = vmatpush.bf16.msra.mxu2 %v10660_v62 }
 0x4de   :  { %v5426_v10 = vpop.f32.mrf.mxu2 }
 0x4df   :  { %v5427_v47 = vadd.f32 %v5426_v10, %v14115_v54 }
 0x4e0   :  { %v5512_v32 = vpop.f32.mrf.mxu0 }
 0x4e1   :  { %v5470_v37 = vpop.f32.mrf.mxu3  ;;  %v5513_v51 = vadd.f32 %v5512_v32, %v5469_v20  ;;  %v5556_v16 = vpop.f32.mrf.mxu1  ;;  %v10785_v20 = vld [vmem:[#allocation4 + $0x7b0] sm:$0xf0] }
 0x4e2   :  { %v5471_v30 = vadd.f32 %v5470_v37, %v5427_v47  ;;  %v10788_v59 = vor.u32 %v11474_v48, %v10785_v20  ;;  %v10641_v32 = vld [vmem:[#allocation4 + $0x690] sm:$0xf0] }
 0x4e3   :  { %v14254_v42 = vadd.f32 %v5556_v16, %v5513_v51  ;;  %5692 = vmatmul.bf16.gmra.mxu0 %v13820_v53  ;;  %5750 = vmatmul.bf16.vlgmr.msrb.gmra.mxu2 %v13813_v5 }
 0x4e4   :  { %5736 = vmatmul.bf16.gmra.mxu1 %v13830_v1  ;;  %5964 = vmatpush.bf16.msra.mxu3 %v10788_v59 }
 0x4e6   :  { %5794 = vmatmul.bf16.vlgmr.msrb.gmra.mxu3 %v13824_v57  ;;  %v5429_v28 = vpop.f32.mrf.mxu2 }
 0x4e7   :  { %v5430_v46 = vadd.f32 %v5429_v28, %v14133_v12  ;;  %v11438_v12 = vld [vmem:[#allocation4 + $0x684] sm:$0xf] }
 0x4e8   :  { %v5514_v54 = vpop.f32.mrf.mxu0  ;;  %v10644_v16 = vor.u32 %v11438_v12, %v10641_v32 }
 0x4e9   :  { %v5473_v63 = vpop.f32.mrf.mxu3  ;;  %v5515_v43 = vadd.f32 %v5514_v54, %v5471_v30  ;;  %v5558_v4 = vpop.f32.mrf.mxu1  ;;  %v10769_v54 = vld [vmem:[#allocation4 + $0x790] sm:$0xf0] }
 0x4ea   :  { %v5474_v31 = vadd.f32 %v5473_v63, %v5430_v46  ;;  %5921 = vmatpush.bf16.msra.mxu2 %v10644_v16 }
 0x4eb   :  { %v14261_v41 = vadd.f32 %v5558_v4, %v5515_v43 }
 0x4ee   :  { %v5431_v10 = vpop.f32.mrf.mxu2 }
 0x4ef   :  { %v5432_v47 = vadd.f32 %v5431_v10, %v14141_v13  ;;  %v11470_v13 = vld [vmem:[#allocation4 + $0x784] sm:$0xf] }
 0x4f0   :  { %v5517_v51 = vpop.f32.mrf.mxu0  ;;  %v10772_v4 = vor.u32 %v11470_v13, %v10769_v54  ;;  %v11466_v54 = vld [vmem:[#allocation4 + $0x764] sm:$0xf] }
 0x4f1   :  { %v5475_v37 = vpop.f32.mrf.mxu3  ;;  %v5518_v28 = vadd.f32 %v5517_v51, %v5474_v31  ;;  %v5561_v46 = vpop.f32.mrf.mxu1  ;;  %v6710_v31 = vld [vmem:[%s16537_s28] sm:$0xf] }
 0x4f2   :  { %v5476_v30 = vadd.f32 %v5475_v37, %v5432_v47  ;;  %5965 = vmatpush.bf16.msra.mxu3 %v10772_v4  ;;  %v14274_v10 = vperm.slane %v6710_v31, 0  ;;  %v6776_v37 = vld [vmem:[%s16538_s26] sm:$0xf] }
 0x4f3   :  { %v14264_v63 = vadd.f32 %v5561_v46, %v5518_v28  ;;  %5755 = vmatmul.bf16.gmra.mxu2 %v13854_v8  ;;  %5838 = vmatmul.bf16.vlgmr.msrb.gmra.mxu0 %v13847_v14  ;;  %v14282_v32 = vperm.slane %v6776_v37, 0  ;;  %v11434_v28 = vld [vmem:[#allocation4 + $0x664] sm:$0xf]  ;;  %v10625_v46 = vld [vmem:[#allocation4 + $0x670] sm:$0xf0] }
 0x4f4   :  { %5882 = vmatmul.bf16.vlgmr.msrb.gmra.mxu1 %v13858_v29  ;;  %v10628_v13 = vor.u32 %v11434_v28, %v10625_v46 }
 0x4f6   :  { %5799 = vmatmul.bf16.gmra.mxu3 %v13864_v7  ;;  %v5575_v43 = vpop.f32.mrf.mxu2  ;;  %5922 = vmatpush.bf16.msra.mxu2 %v10628_v13  ;;  %v16541_v13 = vld [vmem:[#allocation167_spill] sm:$0xff] }
 0x4f7   :  { %v5576_v6 = vadd.f32 %v5575_v43, %v14157_v23  ;;  %v10753_v43 = vld [vmem:[#allocation4 + $0x770] sm:$0xf0] }
 0x4f8   :  { %v5519_v48 = vpop.f32.mrf.mxu0 }
 0x4f9   :  { %v5619_v9 = vpop.f32.mrf.mxu3  ;;  %v5520_v20 = vadd.f32 %v5519_v48, %v5476_v30  ;;  %v5563_v59 = vpop.f32.mrf.mxu1  ;;  %v10756_v48 = vor.u32 %v11466_v54, %v10753_v43 }
 0x4fa   :  { %v5620_v62 = vadd.f32 %v5619_v9, %v5576_v6  ;;  %v16539_v6 = vld [vmem:[#allocation166_spill] sm:$0xff] }
 0x4fb   :  { %v14276_v47 = vadd.f32 %v5563_v59, %v5520_v20  ;;  %5966 = vmatpush.bf16.msra.mxu3 %v10756_v48 }
 0x4fc   :  { %v6720_v23 = vmul.f32 %v14274_v10, %v5620_v62 }
 0x4fe   :  { %v5577_v12 = vpop.f32.mrf.mxu2  ;;  %v6786_v20 = vadd.f32 %v14282_v32, %v6720_v23 }
 0x4ff   :  { %v5578_v51 = vadd.f32 %v5577_v12, %v14167_v61 }
 0x500   :  { %v5663_v30 = vpop.f32.mrf.mxu0  ;;  %v6842_v12 = vmax.f32 %v6786_v20, 0.0  ;;  %v11430_v20 = vld [vmem:[#allocation4 + $0x644] sm:$0xf] }
 0x501   :  { %v5621_v16 = vpop.f32.mrf.mxu3  ;;  %v5664_v9 = vadd.f32 %v5663_v30, %v16539_v6  ;;  %v5707_v31 = vpop.f32.mrf.mxu1 }
 0x502   :  { %v5622_v4 = vadd.f32 %v5621_v16, %v5578_v51 }
 0x503   :  { %v14288_v59 = vadd.f32 %v5707_v31, %v5664_v9  ;;  %5760 = vmatmul.bf16.gmra.mxu2 %v13882_v45  ;;  %5843 = vmatmul.bf16.gmra.mxu0 %v13888_v55 }
 0x504   :  { %v6724_v62 = vmul.f32 %v14274_v10, %v5622_v4  ;;  %5887 = vmatmul.bf16.gmra.mxu1 %v13900_v17  ;;  %v10737_v17 = vld [vmem:[#allocation4 + $0x750] sm:$0xf0] }
 0x506   :  { %5804 = vmatmul.bf16.gmra.mxu3 %v13894_v0  ;;  %v6790_v61 = vadd.f32 %v14282_v32, %v6724_v62  ;;  %v5580_v37 = vpop.f32.mrf.mxu2  ;;  %v10609_v62 = vld [vmem:[#allocation4 + $0x650] sm:$0xf0] }
 0x507   :  { %v5581_v23 = vadd.f32 %v5580_v37, %v14178_v39  ;;  %v10612_v39 = vor.u32 %v11430_v20, %v10609_v62  ;;  %v11462_v37 = vld [vmem:[#allocation4 + $0x744] sm:$0xf] }
 0x508   :  { %v6846_v51 = vmax.f32 %v6790_v61, 0.0  ;;  %v5665_v28 = vpop.f32.mrf.mxu0 }
 0x509   :  { %v5624_v16 = vpop.f32.mrf.mxu3  ;;  %v5666_v54 = vadd.f32 %v5665_v28, %v16541_v13  ;;  %v5709_v43 = vpop.f32.mrf.mxu1  ;;  %v10740_v28 = vor.u32 %v11462_v37, %v10737_v17  ;;  %5923 = vmatpush.bf16.msra.mxu2 %v10612_v39  ;;  %v16545_v39 = vld [vmem:[#allocation169_spill] sm:$0xff] }
 0x50a   :  { %v14296_v46 = vpack.c.bf16 %v6846_v51, %v6842_v12  ;;  %v5625_v30 = vadd.f32 %v5624_v16, %v5581_v23  ;;  %v16542_v51 = vld [vmem:[#allocation168_spill] sm:$0xff] }
 0x50b   :  { %v14299_v4 = vadd.f32 %v5709_v43, %v5666_v54  ;;  %v16544_v43 = vld [vmem:[#allocation143_spill] sm:$0xff]  ;;  %5967 = vmatpush.bf16.msra.mxu3 %v10740_v28 }
 0x50c   :  { %16540 = vst [vmem:[#allocation67_spill] sm:$0xff] %v14296_v46  ;;  %v6728_v9 = vmul.f32 %v14274_v10, %v5625_v30 }
 0x50e   :  { %v5582_v6 = vpop.f32.mrf.mxu2  ;;  %v6794_v13 = vadd.f32 %v14282_v32, %v6728_v9 }
 0x50f   :  { %v5583_v31 = vadd.f32 %v5582_v6, %v14185_v44  ;;  %v16543_v44 = vld [vmem:[#allocation40_spill] sm:$0xff] }
 0x510   :  { %v5668_v61 = vpop.f32.mrf.mxu0  ;;  %v6850_v17 = vmax.f32 %v6794_v13, 0.0  ;;  %v11426_v13 = vld [vmem:[#allocation4 + $0x624] sm:$0xf] }
 0x511   :  { %v5626_v48 = vpop.f32.mrf.mxu3  ;;  %v5669_v23 = vadd.f32 %v5668_v61, %v16542_v51  ;;  %v5712_v16 = vpop.f32.mrf.mxu1 }
 0x512   :  { %v5627_v12 = vadd.f32 %v5626_v48, %v5583_v31 }
 0x513   :  { %v14306_v30 = vadd.f32 %v5712_v16, %v5669_v23  ;;  %5765 = vmatmul.bf16.gmra.mxu2 %v13924_v3  ;;  %5848 = vmatmul.bf16.gmra.mxu0 %v13930_v56  ;;  %v11289_v56 = vld [vmem:[#allocation4 + $0x1d4] sm:$0xf0] }
 0x514   :  { %v6732_v54 = vmul.f32 %v14274_v10, %v5627_v12  ;;  %5892 = vmatmul.bf16.gmra.mxu1 %v16544_v43  ;;  %v10593_v43 = vld [vmem:[#allocation4 + $0x630] sm:$0xf0] }
 0x516   :  { %5809 = vmatmul.bf16.gmra.mxu3 %v16543_v44  ;;  %v6798_v6 = vadd.f32 %v14282_v32, %v6732_v54  ;;  %v5585_v31 = vpop.f32.mrf.mxu2  ;;  %v10721_v44 = vld [vmem:[#allocation4 + $0x730] sm:$0xf0] }
 0x517   :  { %v5586_v48 = vadd.f32 %v5585_v31, %v14200_v21  ;;  %v10596_v31 = vor.u32 %v11426_v13, %v10593_v43  ;;  %v16549_v43 = vld [vmem:[#allocation149_spill] sm:$0xff] }
 0x518   :  { %v6854_v20 = vmax.f32 %v6798_v6, 0.0  ;;  %v5670_v62 = vpop.f32.mrf.mxu0  ;;  %v11458_v6 = vld [vmem:[#allocation4 + $0x724] sm:$0xf] }
 0x519   :  { %v5629_v9 = vpop.f32.mrf.mxu3  ;;  %v5671_v37 = vadd.f32 %v5670_v62, %v16545_v39  ;;  %v5714_v12 = vpop.f32.mrf.mxu1  ;;  %5924 = vmatpush.bf16.msra.mxu2 %v10596_v31  ;;  %v11422_v31 = vld [vmem:[#allocation4 + $0x604] sm:$0xf] }
 0x51a   :  { %v5630_v61 = vadd.f32 %v5629_v9, %v5586_v48  ;;  %v14315_v51 = vpack.c.bf16 %v6854_v20, %v6850_v17  ;;  %v16547_v9 = vld [vmem:[#allocation170_spill] sm:$0xff]  ;;  %v10724_v17 = vor.u32 %v11458_v6, %v10721_v44  ;;  %v10577_v6 = vld [vmem:[#allocation4 + $0x610] sm:$0xf0] }
 0x51b   :  { %v14317_v23 = vadd.f32 %v5714_v12, %v5671_v37  ;;  %v9927_v37 = vld [vmem:[#allocation4 + $0xe8] sm:$0xf] }
 0x51c   :  { %16546 = vst [vmem:[#allocation54_spill] sm:$0xff] %v14315_v51  ;;  %v6736_v16 = vmul.f32 %v14274_v10, %v5630_v61  ;;  %v11261_v61 = vld [vmem:[#allocation4 + $0xf4] sm:$0xf0]  ;;  %v10055_v12 = vld [vmem:[#allocation4 + $0x1e8] sm:$0xf]  ;;  %v16548_v51 = vld [vmem:[#allocation41_spill] sm:$0xff]  ;;  %5968 = vmatpush.bf16.msra.mxu3 %v10724_v17 }
 0x51d   :  { %v9928_v13 = vor.u32 %v11261_v61, %v9927_v37 }
 0x51e   :  { %v5587_v46 = vpop.f32.mrf.mxu2  ;;  %v6802_v20 = vadd.f32 %v14282_v32, %v6736_v16 }
 0x51f   :  { %v5588_v28 = vadd.f32 %v5587_v46, %v14207_v25  ;;  %6006 = vmatpush.bf16.msra.mxu0 %v9928_v13  ;;  %v16552_v13 = vld [vmem:[#allocation171_spill] sm:$0xff] }
 0x520   :  { %v5673_v21 = vpop.f32.mrf.mxu0 }
 0x521   :  { %v5631_v54 = vpop.f32.mrf.mxu3  ;;  %v5674_v62 = vadd.f32 %v5673_v21, %v16547_v9  ;;  %v5717_v39 = vpop.f32.mrf.mxu1  ;;  %v16551_v21 = vld [vmem:[#allocation49_spill] sm:$0xff]  ;;  %v10580_v9 = vor.u32 %v11422_v31, %v10577_v6  ;;  %v9895_v31 = vld [vmem:[#allocation4 + $0xa8] sm:$0xf]  ;;  %v11253_v6 = vld [vmem:[#allocation4 + $0xb4] sm:$0xf0] }
 0x522   :  { %v5632_v48 = vadd.f32 %v5631_v54, %v5588_v28  ;;  %v11293_v28 = vld [vmem:[#allocation4 + $0x1f4] sm:$0xf0]  ;;  %v16550_v54 = vld [vmem:[#allocation150_spill] sm:$0xff] }
 0x523   :  { %v14324_v46 = vadd.f32 %v5717_v39, %v5674_v62  ;;  %5770 = vmatmul.bf16.gmra.mxu2 %v16548_v51  ;;  %5853 = vmatmul.bf16.gmra.mxu0 %v16549_v43  ;;  %v10056_v44 = vor.u32 %v11293_v28, %v10055_v12  ;;  %v9911_v62 = vld [vmem:[#allocation4 + $0xc8] sm:$0xf]  ;;  %v11257_v39 = vld [vmem:[#allocation4 + $0xd4] sm:$0xf0]  ;;  %v6858_v43 = vmax.f32 %v6802_v20, 0.0 }
 0x524   :  { %v6740_v25 = vmul.f32 %v14274_v10, %v5632_v48  ;;  %5897 = vmatmul.bf16.gmra.mxu1 %v16551_v21  ;;  %v10039_v51 = vld [vmem:[#allocation4 + $0x1c8] sm:$0xf]  ;;  %5925 = vmatpush.bf16.msra.mxu2 %v10580_v9  ;;  %v10705_v9 = vld [vmem:[#allocation4 + $0x710] sm:$0xf0] }
 0x525   :  { %6050 = vmatpush.bf16.msra.mxu1 %v10056_v44  ;;  %v10023_v20 = vld [vmem:[#allocation4 + $0x1a8] sm:$0xf] }
 0x526   :  { %5814 = vmatmul.bf16.gmra.mxu3 %v16550_v54  ;;  %v6806_v16 = vadd.f32 %v14282_v32, %v6740_v25  ;;  %v5590_v48 = vpop.f32.mrf.mxu2  ;;  %v9912_v54 = vor.u32 %v11257_v39, %v9911_v62  ;;  %v10040_v25 = vor.u32 %v11289_v56, %v10039_v51  ;;  %v11454_v51 = vld [vmem:[#allocation4 + $0x704] sm:$0xf]  ;;  %v9879_v39 = vld [vmem:[#allocation4 + $0x88] sm:$0xf] }
 0x527   :  { %v5591_v37 = vadd.f32 %v5590_v48, %v14222_v18  ;;  %v9896_v18 = vor.u32 %v11253_v6, %v9895_v31  ;;  %v11285_v48 = vld [vmem:[#allocation4 + $0x1b4] sm:$0xf0] }
 0x528   :  { %v6862_v21 = vmax.f32 %v6806_v16, 0.0  ;;  %v5675_v12 = vpop.f32.mrf.mxu0  ;;  %6007 = vmatpush.bf16.msra.mxu0 %v9912_v54  ;;  %v10024_v62 = vor.u32 %v11285_v48, %v10023_v20  ;;  %v11245_v48 = vld [vmem:[#allocation4 + $0x74] sm:$0xf0] }
 0x529   :  { %v5634_v61 = vpop.f32.mrf.mxu3  ;;  %v5676_v28 = vadd.f32 %v5675_v12, %v16552_v13  ;;  %v5719_v3 = vpop.f32.mrf.mxu1  ;;  %6051 = vmatpush.bf16.msra.mxu1 %v10040_v25  ;;  %v11281_v13 = vld [vmem:[#allocation4 + $0x194] sm:$0xf0] }
 0x52a   :  { %v5635_v17 = vadd.f32 %v5634_v61, %v5591_v37  ;;  %v14333_v44 = vpack.c.bf16 %v6862_v21, %v6858_v43  ;;  %v10708_v21 = vor.u32 %v11454_v51, %v10705_v9  ;;  %v11249_v37 = vld [vmem:[#allocation4 + $0x94] sm:$0xf0]  ;;  %v10007_v61 = vld [vmem:[#allocation4 + $0x188] sm:$0xf]  ;;  %v16555_v51 = vld [vmem:[#allocation23_spill] sm:$0xff] }
 0x52b   :  { %v14335_v0 = vadd.f32 %v5719_v3, %v5676_v28  ;;  %v9880_v25 = vor.u32 %v11249_v37, %v9879_v39  ;;  %v10008_v20 = vor.u32 %v11281_v13, %v10007_v61  ;;  %v11277_v39 = vld [vmem:[#allocation4 + $0x174] sm:$0xf0]  ;;  %v10183_v61 = vld [vmem:[#allocation4 + $0x2e8] sm:$0xf] }
 0x52c   :  { %16553 = vst [vmem:[#allocation65_spill] sm:$0xff] %v14333_v44  ;;  %v6744_v16 = vmul.f32 %v14274_v10, %v5635_v17  ;;  %6008 = vmatpush.bf16.msra.mxu0 %v9896_v18  ;;  %v16554_v17 = vld [vmem:[#allocation172_spill] sm:$0xff]  ;;  %5969 = vmatpush.bf16.msra.mxu3 %v10708_v21  ;;  %v9863_v18 = vld [vmem:[#allocation4 + $0x68] sm:$0xf] }
 0x52d   :  { %6052 = vmatpush.bf16.msra.mxu1 %v10024_v62  ;;  %v9991_v62 = vld [vmem:[#allocation4 + $0x168] sm:$0xf]  ;;  %v9864_v9 = vor.u32 %v11245_v48, %v9863_v18  ;;  %v16558_v37 = vld [vmem:[#allocation24_spill] sm:$0xff] }
 0x52e   :  { %v5592_v56 = vpop.f32.mrf.mxu2  ;;  %v6810_v3 = vadd.f32 %v14282_v32, %v6744_v16  ;;  %v16556_v16 = vld [vmem:[#allocation20_spill] sm:$0xff]  ;;  %v10311_v13 = vld [vmem:[#allocation4 + $0x3e8] sm:$0xf] }
 0x52f   :  { %v5593_v43 = vadd.f32 %v5592_v56, %v14229_v15  ;;  %v11241_v44 = vld [vmem:[#allocation4 + $0x54] sm:$0xf0] }
 0x530   :  { %v5678_v12 = vpop.f32.mrf.mxu0  ;;  %6009 = vmatpush.bf16.msra.mxu0 %v9880_v25  ;;  %v9992_v25 = vor.u32 %v11277_v39, %v9991_v62  ;;  %v16559_v62 = vld [vmem:[#allocation173_spill] sm:$0xff] }
 0x531   :  { %v5636_v54 = vpop.f32.mrf.mxu3  ;;  %v5679_v31 = vadd.f32 %v5678_v12, %v16554_v17  ;;  %v5722_v6 = vpop.f32.mrf.mxu1  ;;  %6053 = vmatpush.bf16.msra.mxu1 %v10008_v20  ;;  %v11325_v12 = vld [vmem:[#allocation4 + $0x2f4] sm:$0xf0] }
 0x532   :  { %v5637_v28 = vadd.f32 %v5636_v54, %v5593_v43  ;;  %v6866_v43 = vmax.f32 %v6810_v3, 0.0  ;;  %v16557_v54 = vld [vmem:[#allocation29_spill] sm:$0xff]  ;;  %v10184_v17 = vor.u32 %v11325_v12, %v10183_v61  ;;  %v9831_v61 = vld [vmem:[#allocation4 + $0x28] sm:$0xf] }
 0x533   :  { %v14342_v56 = vadd.f32 %v5722_v6, %v5679_v31  ;;  %5775 = vmatmul.bf16.gmra.mxu2 %v16555_v51  ;;  %5858 = vmatmul.bf16.gmra.mxu0 %v16556_v16  ;;  %v11357_v31 = vld [vmem:[#allocation4 + $0x3f4] sm:$0xf0]  ;;  %v9847_v6 = vld [vmem:[#allocation4 + $0x48] sm:$0xf] }
 0x534   :  { %v6748_v15 = vmul.f32 %v14274_v10, %v5637_v28  ;;  %5902 = vmatmul.bf16.gmra.mxu1 %v16558_v37  ;;  %6010 = vmatpush.bf16.msra.mxu0 %v9864_v9  ;;  %v10312_v48 = vor.u32 %v11357_v31, %v10311_v13  ;;  %v9975_v16 = vld [vmem:[#allocation4 + $0x148] sm:$0xf]  ;;  %v11273_v37 = vld [vmem:[#allocation4 + $0x154] sm:$0xf0] }
 0x535   :  { %6094 = vmatpush.bf16.msrb.mxu2 %v10184_v17  ;;  %v9976_v20 = vor.u32 %v11273_v37, %v9975_v16  ;;  %6054 = vmatpush.bf16.msra.mxu1 %v9992_v25  ;;  %v9959_v12 = vld [vmem:[#allocation4 + $0x128] sm:$0xf]  ;;  %v11233_v37 = vld [vmem:[#allocation4 + $0x14] sm:$0xf0] }
 0x536   :  { %5819 = vmatmul.bf16.gmra.mxu3 %v16557_v54  ;;  %v6814_v21 = vadd.f32 %v14282_v32, %v6748_v15  ;;  %v5595_v28 = vpop.f32.mrf.mxu2  ;;  %v9848_v54 = vor.u32 %v11241_v44, %v9847_v6  ;;  %v9815_v16 = vld [vmem:[#allocation4 + $0x8] sm:$0xf]  ;;  %v11265_v6 = vld [vmem:[#allocation4 + $0x114] sm:$0xf0] }
 0x537   :  { %v5596_v18 = vadd.f32 %v5595_v28, %v14244_v2  ;;  %6138 = vmatpush.bf16.msrb.mxu3 %v10312_v48  ;;  %v11237_v2 = vld [vmem:[#allocation4 + $0x34] sm:$0xf0]  ;;  %v9943_v31 = vld [vmem:[#allocation4 + $0x108] sm:$0xf] }
 0x538   :  { %v6870_v51 = vmax.f32 %v6814_v21, 0.0  ;;  %v5680_v15 = vpop.f32.mrf.mxu0  ;;  %6011 = vmatpush.bf16.msra.mxu0 %v9848_v54  ;;  %v9832_v44 = vor.u32 %v11237_v2, %v9831_v61  ;;  %v11269_v28 = vld [vmem:[#allocation4 + $0x134] sm:$0xf0]  ;;  %v9816_v54 = vor.u32 %v11233_v37, %v9815_v16 }
 0x539   :  { %v5639_v3 = vpop.f32.mrf.mxu3  ;;  %v5681_v39 = vadd.f32 %v5680_v15, %v16559_v62  ;;  %v5724_v45 = vpop.f32.mrf.mxu1  ;;  %6055 = vmatpush.bf16.msra.mxu1 %v9976_v20  ;;  %v9960_v21 = vor.u32 %v11269_v28, %v9959_v12  ;;  %v9944_v20 = vor.u32 %v11265_v6, %v9943_v31  ;;  %v16564_v2 = vld [vmem:[#allocation48_spill] sm:$0xff]  ;;  %v16565_v12 = vld [vmem:[#allocation50_spill] sm:$0xff] }
 0x53a   :  { %v5640_v55 = vadd.f32 %v5639_v3, %v5596_v18  ;;  %v14351_v9 = vpack.c.bf16 %v6870_v51, %v6866_v43  ;;  %v10167_v28 = vld [vmem:[#allocation4 + $0x2c8] sm:$0xf]  ;;  %v11353_v31 = vld [vmem:[#allocation4 + $0x3d4] sm:$0xf0] }
 0x53b   :  { %v14353_v13 = vadd.f32 %v5724_v45, %v5681_v39  ;;  %v16561_v45 = vld [vmem:[#allocation174_spill] sm:$0xff] }
 0x53c   :  { %16560 = vst [vmem:[#allocation62_spill] sm:$0xff] %v14351_v9  ;;  %6012 = vmatpush.bf16.msra.mxu0 %v9832_v44  ;;  %v6752_v25 = vmul.f32 %v14274_v10, %v5640_v55  ;;  %v16562_v55 = vld [vmem:[#allocation46_spill] sm:$0xff] }
 0x53d   :  { %6056 = vmatpush.bf16.msra.mxu1 %v9960_v21  ;;  %v11321_v21 = vld [vmem:[#allocation4 + $0x2d4] sm:$0xf0] }
 0x53e   :  { %v5597_v17 = vpop.f32.mrf.mxu2  ;;  %v6818_v62 = vadd.f32 %v14282_v32, %v6752_v25  ;;  %v10168_v37 = vor.u32 %v11321_v21, %v10167_v28 }
 0x53f   :  { %v5598_v51 = vadd.f32 %v5597_v17, %v14251_v49  ;;  %v16563_v49 = vld [vmem:[#allocation47_spill] sm:$0xff]  ;;  %v10295_v17 = vld [vmem:[#allocation4 + $0x3c8] sm:$0xf] }
 0x540   :  { %v5683_v18 = vpop.f32.mrf.mxu0  ;;  %6013 = vmatpush.bf16.msra.mxu0 %v9816_v54  ;;  %v6874_v25 = vmax.f32 %v6818_v62, 0.0  ;;  %v10296_v54 = vor.u32 %v11353_v31, %v10295_v17  ;;  %6095 = vmatpush.bf16.msrb.mxu2 %v10168_v37  ;;  %v10151_v31 = vld [vmem:[#allocation4 + $0x2a8] sm:$0xf] }
 0x541   :  { %v5641_v43 = vpop.f32.mrf.mxu3  ;;  %v5684_v48 = vadd.f32 %v5683_v18, %v16561_v45  ;;  %v5727_v15 = vpop.f32.mrf.mxu1  ;;  %6057 = vmatpush.bf16.msra.mxu1 %v9944_v20  ;;  %v16566_v45 = vld [vmem:[#allocation175_spill] sm:$0xff] }
 0x542   :  { %v5642_v3 = vadd.f32 %v5641_v43, %v5598_v51  ;;  %6139 = vmatpush.bf16.msrb.mxu3 %v10296_v54 }
 0x543   :  { %v14360_v61 = vadd.f32 %v5727_v15, %v5684_v48  ;;  %5780 = vmatmul.bf16.gmra.mxu2 %v16562_v55  ;;  %5863 = vmatmul.bf16.gmra.mxu0 %v16563_v49 }
 0x544   :  { %v6756_v39 = vmul.f32 %v14274_v10, %v5642_v3  ;;  %5907 = vmatmul.bf16.gmra.mxu1 %v16565_v12 }
 0x546   :  { %5824 = vmatmul.bf16.gmra.mxu3 %v16564_v2  ;;  %v6822_v44 = vadd.f32 %v14282_v32, %v6756_v39  ;;  %v5600_v16 = vpop.f32.mrf.mxu2 }
 0x547   :  { %v5601_v51 = vadd.f32 %v5600_v16, %v14254_v42 }
 0x548   :  { %v6878_v6 = vmax.f32 %v6822_v44, 0.0  ;;  %v5685_v18 = vpop.f32.mrf.mxu0  ;;  %v16568_v44 = vld [vmem:[#allocation176_spill] sm:$0xff] }
 0x549   :  { %v5644_v43 = vpop.f32.mrf.mxu3  ;;  %v5686_v48 = vadd.f32 %v5685_v18, %v16566_v45  ;;  %v5729_v15 = vpop.f32.mrf.mxu1  ;;  %v16569_v18 = vld [vmem:[#allocation34_spill] sm:$0xff] }
 0x54a   :  { %v5645_v3 = vadd.f32 %v5644_v43, %v5601_v51  ;;  %v14369_v20 = vpack.c.bf16 %v6878_v6, %v6874_v25  ;;  %v11317_v51 = vld [vmem:[#allocation4 + $0x2b4] sm:$0xf0] }
 0x54b   :  { %v14371_v39 = vadd.f32 %v5729_v15, %v5686_v48  ;;  %v10152_v43 = vor.u32 %v11317_v51, %v10151_v31 }
 0x54c   :  { %16567 = vst [vmem:[#allocation69_spill] sm:$0xff] %v14369_v20  ;;  %v6760_v28 = vmul.f32 %v14274_v10, %v5645_v3  ;;  %v16570_v3 = vld [vmem:[#allocation53_spill] sm:$0xff] }
 0x54d   :  { %6096 = vmatpush.bf16.msrb.mxu2 %v10152_v43 }
 0x54e   :  { %v5602_v9 = vpop.f32.mrf.mxu2  ;;  %v6826_v54 = vadd.f32 %v14282_v32, %v6760_v28 }
 0x54f   :  { %v5603_v62 = vadd.f32 %v5602_v9, %v14261_v41  ;;  %v10279_v41 = vld [vmem:[#allocation4 + $0x3a8] sm:$0xf]  ;;  %v11349_v9 = vld [vmem:[#allocation4 + $0x3b4] sm:$0xf0] }
 0x550   :  { %v5688_v21 = vpop.f32.mrf.mxu0  ;;  %v10280_v45 = vor.u32 %v11349_v9, %v10279_v41  ;;  %v6882_v28 = vmax.f32 %v6826_v54, 0.0  ;;  %v10135_v41 = vld [vmem:[#allocation4 + $0x288] sm:$0xf]  ;;  %v11313_v9 = vld [vmem:[#allocation4 + $0x294] sm:$0xf0] }
 0x551   :  { %v5646_v42 = vpop.f32.mrf.mxu3  ;;  %v5689_v16 = vadd.f32 %v5688_v21, %v16568_v44  ;;  %v5732_v37 = vpop.f32.mrf.mxu1 }
 0x552   :  { %v5647_v17 = vadd.f32 %v5646_v42, %v5603_v62  ;;  %6140 = vmatpush.bf16.msrb.mxu3 %v10280_v45 }
 0x553   :  { %v14378_v6 = vadd.f32 %v5732_v37, %v5689_v16  ;;  %5868 = vmatmul.bf16.gmra.mxu0 %v14090_v24  ;;  %5926 = vmatmul.bf16.vlgmr.msra.gmra.mxu2 %v14083_v58  ;;  %v16571_v16 = vld [vmem:[#allocation177_spill] sm:$0xff] }
 0x554   :  { %v6764_v25 = vmul.f32 %v14274_v10, %v5647_v17  ;;  %5912 = vmatmul.bf16.gmra.mxu1 %v16569_v18 }
 0x556   :  { %5970 = vmatmul.bf16.vlgmr.msra.gmra.mxu3 %v16570_v3  ;;  %v6830_v48 = vadd.f32 %v14282_v32, %v6764_v25  ;;  %v5605_v15 = vpop.f32.mrf.mxu2  ;;  %v10136_v25 = vor.u32 %v11313_v9, %v10135_v41  ;;  %v16576_v9 = vld [vmem:[#allocation115_spill] sm:$0xff] }
 0x557   :  { %v5606_v62 = vadd.f32 %v5605_v15, %v14264_v63 }
 0x558   :  { %v6886_v21 = vmax.f32 %v6830_v48, 0.0  ;;  %v5690_v17 = vpop.f32.mrf.mxu0  ;;  %6097 = vmatpush.bf16.msrb.mxu2 %v10136_v25 }
 0x559   :  { %v5649_v42 = vpop.f32.mrf.mxu3  ;;  %v5691_v37 = vadd.f32 %v5690_v17, %v16571_v16  ;;  %v5734_v31 = vpop.f32.mrf.mxu1  ;;  %v10263_v16 = vld [vmem:[#allocation4 + $0x388] sm:$0xf] }
 0x55a   :  { %v5650_v44 = vadd.f32 %v5649_v42, %v5606_v62  ;;  %v14387_v51 = vpack.c.bf16 %v6886_v21, %v6882_v28  ;;  %v16573_v62 = vld [vmem:[#allocation178_spill] sm:$0xff]  ;;  %v11345_v28 = vld [vmem:[#allocation4 + $0x394] sm:$0xf0] }
 0x55b   :  { %v14389_v20 = vadd.f32 %v5734_v31, %v5691_v37  ;;  %v10264_v21 = vor.u32 %v11345_v28, %v10263_v16 }
 0x55c   :  { %16572 = vst [vmem:[#allocation64_spill] sm:$0xff] %v14387_v51  ;;  %v6768_v54 = vmul.f32 %v14274_v10, %v5650_v44  ;;  %v16574_v44 = vld [vmem:[#allocation112_spill] sm:$0xff]  ;;  %v10119_v51 = vld [vmem:[#allocation4 + $0x268] sm:$0xf] }
 0x55d   :  { %6141 = vmatpush.bf16.msrb.mxu3 %v10264_v21  ;;  %v11341_v21 = vld [vmem:[#allocation4 + $0x374] sm:$0xf0] }
 0x55e   :  { %v5607_v43 = vpop.f32.mrf.mxu2  ;;  %v6834_v37 = vadd.f32 %v14282_v32, %v6768_v54 }
 0x55f   :  { %v5608_v63 = vadd.f32 %v5607_v43, %v14276_v47  ;;  %v16575_v47 = vld [vmem:[#allocation58_spill] sm:$0xff] }
 0x560   :  { %v5693_v48 = vpop.f32.mrf.mxu0 }
 0x561   :  { %v5651_v45 = vpop.f32.mrf.mxu3  ;;  %v5694_v42 = vadd.f32 %v5693_v48, %v16573_v62  ;;  %v5737_v17 = vpop.f32.mrf.mxu1  ;;  %v16577_v62 = vld [vmem:[#allocation179_spill] sm:$0xff] }
 0x562   :  { %v5652_v15 = vadd.f32 %v5651_v45, %v5608_v63  ;;  %v6890_v63 = vmax.f32 %v6834_v37, 0.0 }
 0x563   :  { %v14396_v41 = vadd.f32 %v5737_v17, %v5694_v42  ;;  %5931 = vmatmul.bf16.gmra.mxu2 %v14122_v34  ;;  %6014 = vmatmul.bf16.vlgmr.msra.gmra.mxu0 %v16574_v44 }
 0x564   :  { %v6772_v31 = vmul.f32 %v14274_v10, %v5652_v15  ;;  %6058 = vmatmul.bf16.vlgmr.msra.gmra.mxu1 %v16576_v9  ;;  %v11309_v9 = vld [vmem:[#allocation4 + $0x274] sm:$0xf0] }
 0x566   :  { %5975 = vmatmul.bf16.gmra.mxu3 %v16575_v47  ;;  %v6838_v25 = vadd.f32 %v14282_v32, %v6772_v31  ;;  %v5751_v43 = vpop.f32.mrf.mxu2  ;;  %v10247_v47 = vld [vmem:[#allocation4 + $0x368] sm:$0xf]  ;;  %v10120_v32 = vor.u32 %v11309_v9, %v10119_v51  ;;  %v16579_v51 = vld [vmem:[#allocation125_spill] sm:$0xff] }
 0x567   :  { %v5752_v45 = vadd.f32 %v5751_v43, %v14288_v59  ;;  %v10248_v31 = vor.u32 %v11341_v21, %v10247_v47  ;;  %v11305_v21 = vld [vmem:[#allocation4 + $0x254] sm:$0xf0] }
 0x568   :  { %v6894_v48 = vmax.f32 %v6838_v25, 0.0  ;;  %v5695_v10 = vpop.f32.mrf.mxu0  ;;  %6098 = vmatpush.bf16.msrb.mxu2 %v10120_v32  ;;  %v10103_v32 = vld [vmem:[#allocation4 + $0x248] sm:$0xf] }
 0x569   :  { %v5795_v54 = vpop.f32.mrf.mxu3  ;;  %v5696_v42 = vadd.f32 %v5695_v10, %v16577_v62  ;;  %v5739_v17 = vpop.f32.mrf.mxu1  ;;  %6142 = vmatpush.bf16.msrb.mxu3 %v10248_v31  ;;  %v10231_v31 = vld [vmem:[#allocation4 + $0x348] sm:$0xf] }
 0x56a   :  { %v5796_v15 = vadd.f32 %v5795_v54, %v5752_v45  ;;  %v14405_v16 = vpack.c.bf16 %v6894_v48, %v6890_v63 }
 0x56b   :  { %v14407_v28 = vadd.f32 %v5739_v17, %v5696_v42 }
 0x56c   :  { %16578 = vst [vmem:[#allocation71_spill] sm:$0xff] %v14405_v16 }
 0x56e   :  { %v5753_v37 = vpop.f32.mrf.mxu2 }
 0x56f   :  { %v5754_v59 = vadd.f32 %v5753_v37, %v14299_v4  ;;  %v10104_v37 = vor.u32 %v11305_v21, %v10103_v32 }
 0x570   :  { %v5839_v43 = vpop.f32.mrf.mxu0 }
 0x571   :  { %v5797_v25 = vpop.f32.mrf.mxu3  ;;  %v5840_v54 = vadd.f32 %v5839_v43, %v5796_v15  ;;  %v5883_v10 = vpop.f32.mrf.mxu1  ;;  %6099 = vmatpush.bf16.msrb.mxu2 %v10104_v37 }
 0x572   :  { %v5798_v45 = vadd.f32 %v5797_v25, %v5754_v59  ;;  %v11337_v59 = vld [vmem:[#allocation4 + $0x354] sm:$0xf0] }
 0x573   :  { %v14410_v63 = vadd.f32 %v5883_v10, %v5840_v54  ;;  %5936 = vmatmul.bf16.gmra.mxu2 %v14148_v40  ;;  %6019 = vmatmul.bf16.gmra.mxu0 %v13702_v38  ;;  %v10232_v25 = vor.u32 %v11337_v59, %v10231_v31  ;;  %v11301_v31 = vld [vmem:[#allocation4 + $0x234] sm:$0xf0]  ;;  %v10215_v59 = vld [vmem:[#allocation4 + $0x328] sm:$0xf] }
 0x574   :  { %6063 = vmatmul.bf16.gmra.mxu1 %v16579_v51 }
 0x575   :  { %6143 = vmatpush.bf16.msrb.mxu3 %v10232_v25  ;;  %v11333_v25 = vld [vmem:[#allocation4 + $0x334] sm:$0xf0] }
 0x576   :  { %5980 = vmatmul.bf16.gmra.mxu3 %v14154_v22  ;;  %v5756_v47 = vpop.f32.mrf.mxu2 }
 0x577   :  { %v5757_v9 = vadd.f32 %v5756_v47, %v14306_v30 }
 0x578   :  { %v5841_v48 = vpop.f32.mrf.mxu0 }
 0x579   :  { %v5800_v4 = vpop.f32.mrf.mxu3  ;;  %v5842_v42 = vadd.f32 %v5841_v48, %v5798_v45  ;;  %v5885_v17 = vpop.f32.mrf.mxu1 }
 0x57a   :  { %v5801_v62 = vadd.f32 %v5800_v4, %v5757_v9 }
 0x57b   :  { %v14417_v15 = vadd.f32 %v5885_v17, %v5842_v42 }
 0x57e   :  { %v5758_v43 = vpop.f32.mrf.mxu2 }
 0x57f   :  { %v5759_v54 = vadd.f32 %v5758_v43, %v14317_v23  ;;  %v10216_v43 = vor.u32 %v11333_v25, %v10215_v59  ;;  %v16583_v59 = vld [vmem:[#allocation128_spill] sm:$0xff]  ;;  %v10071_v25 = vld [vmem:[#allocation4 + $0x208] sm:$0xf] }
 0x580   :  { %v5844_v30 = vpop.f32.mrf.mxu0 }
 0x581   :  { %v5802_v10 = vpop.f32.mrf.mxu3  ;;  %v5845_v16 = vadd.f32 %v5844_v30, %v5801_v62  ;;  %v5888_v9 = vpop.f32.mrf.mxu1  ;;  %v10087_v62 = vld [vmem:[#allocation4 + $0x228] sm:$0xf]  ;;  %6144 = vmatpush.bf16.msrb.mxu3 %v10216_v43  ;;  %v11297_v43 = vld [vmem:[#allocation4 + $0x214] sm:$0xf0] }
 0x582   :  { %v5803_v47 = vadd.f32 %v5802_v10, %v5759_v54 }
 0x583   :  { %v14420_v45 = vadd.f32 %v5888_v9, %v5845_v16  ;;  %5941 = vmatmul.bf16.gmra.mxu2 %v14172_v33  ;;  %6024 = vmatmul.bf16.gmra.mxu0 %v13724_v52  ;;  %v10088_v16 = vor.u32 %v11301_v31, %v10087_v62  ;;  %v11421_v31 = vld [vmem:[#allocation4 + $0x5f4] sm:$0xf0] }
 0x584   :  { %6068 = vmatmul.bf16.gmra.mxu1 %v13730_v27 }
 0x585   :  { %6100 = vmatpush.bf16.msrb.mxu2 %v10088_v16  ;;  %v16582_v16 = vld [vmem:[#allocation51_spill] sm:$0xff] }
 0x586   :  { %5985 = vmatmul.bf16.gmra.mxu3 %v14176_v35  ;;  %v5761_v4 = vpop.f32.mrf.mxu2  ;;  %v11329_v35 = vld [vmem:[#allocation4 + $0x314] sm:$0xf0] }
 0x587   :  { %v5762_v48 = vadd.f32 %v5761_v4, %v14324_v46 }
 0x588   :  { %v5846_v42 = vpop.f32.mrf.mxu0 }
 0x589   :  { %v5805_v23 = vpop.f32.mrf.mxu3  ;;  %v5847_v32 = vadd.f32 %v5846_v42, %v5803_v47  ;;  %v5890_v21 = vpop.f32.mrf.mxu1  ;;  %v10439_v47 = vld [vmem:[#allocation4 + $0x4e8] sm:$0xf] }
 0x58a   :  { %v5806_v17 = vadd.f32 %v5805_v23, %v5762_v48  ;;  %v11389_v23 = vld [vmem:[#allocation4 + $0x4f4] sm:$0xf0]  ;;  %v10567_v42 = vld [vmem:[#allocation4 + $0x5e8] sm:$0xf] }
 0x58b   :  { %v14427_v37 = vadd.f32 %v5890_v21, %v5847_v32  ;;  %v16580_v32 = vld [vmem:[#allocation63_spill] sm:$0xff]  ;;  %v10440_v62 = vor.u32 %v11389_v23, %v10439_v47  ;;  %v11417_v23 = vld [vmem:[#allocation4 + $0x5d4] sm:$0xf0] }
 0x58c   :  { %v16581_v21 = vld [vmem:[#allocation127_spill] sm:$0xff] }
 0x58d   :  { %6182 = vmatpush.bf16.msrb.mxu0 %v10440_v62 }
 0x58e   :  { %v5763_v54 = vpop.f32.mrf.mxu2 }
 0x58f   :  { %v5764_v10 = vadd.f32 %v5763_v54, %v14335_v0  ;;  %v10568_v0 = vor.u32 %v11421_v31, %v10567_v42  ;;  %v10199_v31 = vld [vmem:[#allocation4 + $0x308] sm:$0xf] }
 0x590   :  { %v5849_v46 = vpop.f32.mrf.mxu0  ;;  %v10200_v62 = vor.u32 %v11329_v35, %v10199_v31  ;;  %v10375_v31 = vld [vmem:[#allocation4 + $0x468] sm:$0xf] }
 0x591   :  { %v5807_v30 = vpop.f32.mrf.mxu3  ;;  %v5850_v4 = vadd.f32 %v5849_v46, %v5806_v17  ;;  %v5893_v48 = vpop.f32.mrf.mxu1  ;;  %v10072_v17 = vor.u32 %v11297_v43, %v10071_v25  ;;  %6226 = vmatpush.bf16.msrb.mxu1 %v10568_v0  ;;  %v10551_v46 = vld [vmem:[#allocation4 + $0x5c8] sm:$0xf]  ;;  %v11381_v25 = vld [vmem:[#allocation4 + $0x4b4] sm:$0xf0] }
 0x592   :  { %v5808_v9 = vadd.f32 %v5807_v30, %v5764_v10  ;;  %v10423_v10 = vld [vmem:[#allocation4 + $0x4c8] sm:$0xf]  ;;  %v11385_v30 = vld [vmem:[#allocation4 + $0x4d4] sm:$0xf0]  ;;  %6145 = vmatpush.bf16.msrb.mxu3 %v10200_v62 }
 0x593   :  { %v14430_v27 = vadd.f32 %v5893_v48, %v5850_v4  ;;  %5946 = vmatmul.bf16.gmra.mxu2 %v16580_v32  ;;  %6029 = vmatmul.bf16.gmra.mxu0 %v16581_v21  ;;  %v10424_v47 = vor.u32 %v11385_v30, %v10423_v10  ;;  %v10407_v0 = vld [vmem:[#allocation4 + $0x4a8] sm:$0xf]  ;;  %v11373_v62 = vld [vmem:[#allocation4 + $0x474] sm:$0xf0] }
 0x594   :  { %6073 = vmatmul.bf16.gmra.mxu1 %v16583_v59  ;;  %6101 = vmatpush.bf16.msrb.mxu2 %v10072_v17  ;;  %v10535_v43 = vld [vmem:[#allocation4 + $0x5a8] sm:$0xf] }
 0x595   :  { %6183 = vmatpush.bf16.msrb.mxu0 %v10424_v47  ;;  %v10391_v30 = vld [vmem:[#allocation4 + $0x488] sm:$0xf] }
 0x596   :  { %5990 = vmatmul.bf16.gmra.mxu3 %v16582_v16  ;;  %v5766_v54 = vpop.f32.mrf.mxu2  ;;  %v10552_v16 = vor.u32 %v11417_v23, %v10551_v46 }
 0x597   :  { %v5767_v4 = vadd.f32 %v5766_v54, %v14342_v56  ;;  %v10408_v56 = vor.u32 %v11381_v25, %v10407_v0  ;;  %v11413_v54 = vld [vmem:[#allocation4 + $0x5b4] sm:$0xf0]  ;;  %v10503_v0 = vld [vmem:[#allocation4 + $0x568] sm:$0xf] }
 0x598   :  { %v5851_v21 = vpop.f32.mrf.mxu0  ;;  %6227 = vmatpush.bf16.msrb.mxu1 %v10552_v16  ;;  %v10536_v17 = vor.u32 %v11413_v54, %v10535_v43  ;;  %v11409_v16 = vld [vmem:[#allocation4 + $0x594] sm:$0xf0]  ;;  %v16585_v54 = vld [vmem:[#allocation15_spill] sm:$0xff] }
 0x599   :  { %v5810_v48 = vpop.f32.mrf.mxu3  ;;  %v5852_v59 = vadd.f32 %v5851_v21, %v5808_v9  ;;  %v5895_v42 = vpop.f32.mrf.mxu1  ;;  %6184 = vmatpush.bf16.msrb.mxu0 %v10408_v56  ;;  %v11377_v9 = vld [vmem:[#allocation4 + $0x494] sm:$0xf0]  ;;  %v10519_v21 = vld [vmem:[#allocation4 + $0x588] sm:$0xf]  ;;  %v16584_v56 = vld [vmem:[#allocation61_spill] sm:$0xff] }
 0x59a   :  { %v5811_v32 = vadd.f32 %v5810_v48, %v5767_v4  ;;  %v10392_v35 = vor.u32 %v11377_v9, %v10391_v30  ;;  %v10520_v47 = vor.u32 %v11409_v16, %v10519_v21  ;;  %v11405_v43 = vld [vmem:[#allocation4 + $0x574] sm:$0xf0]  ;;  %v10823_v30 = vld [vmem:[#allocation4 + $0x7e8] sm:$0xf] }
 0x59b   :  { %v14437_v52 = vadd.f32 %v5895_v42, %v5852_v59  ;;  %v11485_v21 = vld [vmem:[#allocation4 + $0x7f4] sm:$0xf0] }
 0x59c   :  { %6228 = vmatpush.bf16.msrb.mxu1 %v10536_v17  ;;  %v10695_v17 = vld [vmem:[#allocation4 + $0x6e8] sm:$0xf]  ;;  %v11369_v16 = vld [vmem:[#allocation4 + $0x454] sm:$0xf0] }
 0x59d   :  { %6185 = vmatpush.bf16.msrb.mxu0 %v10392_v35  ;;  %v10359_v35 = vld [vmem:[#allocation4 + $0x448] sm:$0xf] }
 0x59e   :  { %v5768_v10 = vpop.f32.mrf.mxu2 }
 0x59f   :  { %v5769_v46 = vadd.f32 %v5768_v10, %v14353_v13  ;;  %v10376_v13 = vor.u32 %v11373_v62, %v10375_v31  ;;  %v10504_v10 = vor.u32 %v11405_v43, %v10503_v0  ;;  %v11401_v31 = vld [vmem:[#allocation4 + $0x554] sm:$0xf0] }
 0x5a0   :  { %v5854_v48 = vpop.f32.mrf.mxu0  ;;  %6229 = vmatpush.bf16.msrb.mxu1 %v10520_v47 }
 0x5a1   :  { %v5812_v4 = vpop.f32.mrf.mxu3  ;;  %v5855_v59 = vadd.f32 %v5854_v48, %v5811_v32  ;;  %v5898_v42 = vpop.f32.mrf.mxu1  ;;  %v11453_v32 = vld [vmem:[#allocation4 + $0x6f4] sm:$0xf0]  ;;  %6186 = vmatpush.bf16.msrb.mxu0 %v10376_v13  ;;  %v10487_v48 = vld [vmem:[#allocation4 + $0x548] sm:$0xf] }
 0x5a2   :  { %v5813_v23 = vadd.f32 %v5812_v4, %v5769_v46  ;;  %v10696_v9 = vor.u32 %v11453_v32, %v10695_v17  ;;  %v10824_v4 = vor.u32 %v11485_v21, %v10823_v30  ;;  %v10343_v13 = vld [vmem:[#allocation4 + $0x428] sm:$0xf]  ;;  %v11365_v32 = vld [vmem:[#allocation4 + $0x434] sm:$0xf0] }
 0x5a3   :  { %v14440_v25 = vadd.f32 %v5898_v42, %v5855_v59  ;;  %5951 = vmatmul.bf16.gmra.mxu2 %v14214_v11  ;;  %6034 = vmatmul.bf16.gmra.mxu0 %v13768_v60  ;;  %v10360_v42 = vor.u32 %v11369_v16, %v10359_v35  ;;  %v10344_v21 = vor.u32 %v11365_v32, %v10343_v13  ;;  %v11361_v35 = vld [vmem:[#allocation4 + $0x414] sm:$0xf0]  ;;  %v10807_v13 = vld [vmem:[#allocation4 + $0x7c8] sm:$0xf] }
 0x5a4   :  { %6078 = vmatmul.bf16.gmra.mxu1 %v16585_v54  ;;  %6270 = vmatpush.bf16.msra.mxu2 %v10696_v9  ;;  %v10488_v54 = vor.u32 %v11401_v31, %v10487_v48  ;;  %v11481_v32 = vld [vmem:[#allocation4 + $0x7d4] sm:$0xf0] }
 0x5a5   :  { %6230 = vmatpush.bf16.msrb.mxu1 %v10504_v10  ;;  %6314 = vmatpush.bf16.msra.mxu3 %v10824_v4  ;;  %v10471_v10 = vld [vmem:[#allocation4 + $0x528] sm:$0xf] }
 0x5a6   :  { %5995 = vmatmul.bf16.gmra.mxu3 %v16584_v56  ;;  %v5771_v46 = vpop.f32.mrf.mxu2  ;;  %6187 = vmatpush.bf16.msrb.mxu0 %v10360_v42  ;;  %v11397_v56 = vld [vmem:[#allocation4 + $0x534] sm:$0xf0]  ;;  %v10455_v4 = vld [vmem:[#allocation4 + $0x508] sm:$0xf] }
 0x5a7   :  { %v5772_v47 = vadd.f32 %v5771_v46, %v14360_v61  ;;  %v10472_v61 = vor.u32 %v11397_v56, %v10471_v10  ;;  %v10327_v46 = vld [vmem:[#allocation4 + $0x408] sm:$0xf]  ;;  %v10808_v10 = vor.u32 %v11481_v32, %v10807_v13 }
 0x5a8   :  { %v5856_v62 = vpop.f32.mrf.mxu0  ;;  %v10328_v48 = vor.u32 %v11361_v35, %v10327_v46  ;;  %v10679_v56 = vld [vmem:[#allocation4 + $0x6c8] sm:$0xf] }
 0x5a9   :  { %v5815_v59 = vpop.f32.mrf.mxu3  ;;  %v5857_v43 = vadd.f32 %v5856_v62, %v5813_v23  ;;  %v5900_v17 = vpop.f32.mrf.mxu1  ;;  %6231 = vmatpush.bf16.msrb.mxu1 %v10488_v54  ;;  %6315 = vmatpush.bf16.msra.mxu3 %v10808_v10  ;;  %v10663_v10 = vld [vmem:[#allocation4 + $0x6a8] sm:$0xf] }
 0x5aa   :  { %v5816_v0 = vadd.f32 %v5815_v59, %v5772_v47  ;;  %6188 = vmatpush.bf16.msrb.mxu0 %v10344_v21  ;;  %v11393_v47 = vld [vmem:[#allocation4 + $0x514] sm:$0xf0] }
 0x5ab   :  { %v14447_v30 = vadd.f32 %v5900_v17, %v5857_v43  ;;  %v10456_v59 = vor.u32 %v11393_v47, %v10455_v4  ;;  %v11449_v17 = vld [vmem:[#allocation4 + $0x6d4] sm:$0xf0] }
 0x5ad   :  { %6232 = vmatpush.bf16.msrb.mxu1 %v10472_v61 }
 0x5ae   :  { %v5773_v9 = vpop.f32.mrf.mxu2  ;;  %6189 = vmatpush.bf16.msrb.mxu0 %v10328_v48 }
 0x5af   :  { %v5774_v16 = vadd.f32 %v5773_v9, %v14371_v39  ;;  %v10680_v39 = vor.u32 %v11449_v17, %v10679_v56 }
 0x5b0   :  { %v5859_v54 = vpop.f32.mrf.mxu0 }
 0x5b1   :  { %v5817_v23 = vpop.f32.mrf.mxu3  ;;  %v5860_v31 = vadd.f32 %v5859_v54, %v5816_v0  ;;  %v5903_v62 = vpop.f32.mrf.mxu1  ;;  %6233 = vmatpush.bf16.msrb.mxu1 %v10456_v59  ;;  %6271 = vmatpush.bf16.msra.mxu2 %v10680_v39 }
 0x5b2   :  { %v5818_v42 = vadd.f32 %v5817_v23, %v5774_v16 }
 0x5b3   :  { %v14450_v43 = vadd.f32 %v5903_v62, %v5860_v31  ;;  %5956 = vmatmul.bf16.gmra.mxu2 %v14236_v26  ;;  %6039 = vmatmul.bf16.gmra.mxu0 %v13790_v50 }
 0x5b4   :  { %6083 = vmatmul.bf16.gmra.mxu1 %v13796_v36 }
 0x5b6   :  { %6000 = vmatmul.bf16.gmra.mxu3 %v14242_v19  ;;  %v5776_v0 = vpop.f32.mrf.mxu2 }
 0x5b7   :  { %v5777_v21 = vadd.f32 %v5776_v0, %v14378_v6  ;;  %v11445_v0 = vld [vmem:[#allocation4 + $0x6b4] sm:$0xf0] }
 0x5b8   :  { %v5861_v9 = vpop.f32.mrf.mxu0 }
 0x5b9   :  { %v5820_v61 = vpop.f32.mrf.mxu3  ;;  %v5862_v35 = vadd.f32 %v5861_v9, %v5818_v42  ;;  %v5905_v4 = vpop.f32.mrf.mxu1  ;;  %v11477_v9 = vld [vmem:[#allocation4 + $0x7b4] sm:$0xf0] }
 0x5ba   :  { %v5821_v46 = vadd.f32 %v5820_v61, %v5777_v21  ;;  %v10791_v21 = vld [vmem:[#allocation4 + $0x7a8] sm:$0xf]  ;;  %v10664_v61 = vor.u32 %v11445_v0, %v10663_v10 }
 0x5bb   :  { %v14457_v16 = vadd.f32 %v5905_v4, %v5862_v35  ;;  %v10792_v35 = vor.u32 %v11477_v9, %v10791_v21  ;;  %v11934_v9 = vld [vmem:[%s16537_s28] sm:$0xf] }
 0x5bc   :  { %6272 = vmatpush.bf16.msra.mxu2 %v10664_v61 }
 0x5bd   :  { %6316 = vmatpush.bf16.msra.mxu3 %v10792_v35  ;;  %v14480_v35 = vperm.slane %v11934_v9, 1  ;;  %v16588_v9 = vld [vmem:[#allocation22_spill] sm:$0xff] }
 0x5be   :  { %v5778_v23 = vpop.f32.mrf.mxu2 }
 0x5bf   :  { %v5779_v48 = vadd.f32 %v5778_v23, %v14389_v20 }
 0x5c0   :  { %v5864_v54 = vpop.f32.mrf.mxu0 }
 0x5c1   :  { %v5822_v47 = vpop.f32.mrf.mxu3  ;;  %v5865_v31 = vadd.f32 %v5864_v54, %v5821_v46  ;;  %v5908_v62 = vpop.f32.mrf.mxu1 }
 0x5c2   :  { %v5823_v59 = vadd.f32 %v5822_v47, %v5779_v48  ;;  %v11441_v47 = vld [vmem:[#allocation4 + $0x694] sm:$0xf0] }
 0x5c3   :  { %v14460_v56 = vadd.f32 %v5908_v62, %v5865_v31  ;;  %6044 = vmatmul.bf16.gmra.mxu0 %v13820_v53  ;;  %6102 = vmatmul.bf16.vlgmr.msrb.gmra.mxu2 %v13813_v5 }
 0x5c4   :  { %6088 = vmatmul.bf16.gmra.mxu1 %v13830_v1 }
 0x5c6   :  { %6146 = vmatmul.bf16.vlgmr.msrb.gmra.mxu3 %v13824_v57  ;;  %v5781_v6 = vpop.f32.mrf.mxu2 }
 0x5c7   :  { %v5782_v42 = vadd.f32 %v5781_v6, %v14396_v41  ;;  %v10647_v41 = vld [vmem:[#allocation4 + $0x688] sm:$0xf] }
 0x5c8   :  { %v5866_v20 = vpop.f32.mrf.mxu0  ;;  %v10648_v31 = vor.u32 %v11441_v47, %v10647_v41 }
 0x5c9   :  { %v5825_v17 = vpop.f32.mrf.mxu3  ;;  %v5867_v13 = vadd.f32 %v5866_v20, %v5823_v59  ;;  %v5910_v32 = vpop.f32.mrf.mxu1 }
 0x5ca   :  { %v5826_v39 = vadd.f32 %v5825_v17, %v5782_v42  ;;  %6273 = vmatpush.bf16.msra.mxu2 %v10648_v31  ;;  %v11473_v17 = vld [vmem:[#allocation4 + $0x794] sm:$0xf0]  ;;  %v10631_v31 = vld [vmem:[#allocation4 + $0x668] sm:$0xf] }
 0x5cb   :  { %v14467_v46 = vadd.f32 %v5910_v32, %v5867_v13 }
 0x5ce   :  { %v5783_v4 = vpop.f32.mrf.mxu2 }
 0x5cf   :  { %v5784_v23 = vadd.f32 %v5783_v4, %v14407_v28  ;;  %v10775_v28 = vld [vmem:[#allocation4 + $0x788] sm:$0xf] }
 0x5d0   :  { %v5869_v54 = vpop.f32.mrf.mxu0  ;;  %v10776_v13 = vor.u32 %v11473_v17, %v10775_v28  ;;  %v10759_v28 = vld [vmem:[#allocation4 + $0x768] sm:$0xf]  ;;  %v11469_v17 = vld [vmem:[#allocation4 + $0x774] sm:$0xf0] }
 0x5d1   :  { %v5827_v48 = vpop.f32.mrf.mxu3  ;;  %v5870_v62 = vadd.f32 %v5869_v54, %v5826_v39  ;;  %v5913_v6 = vpop.f32.mrf.mxu1 }
 0x5d2   :  { %v5828_v59 = vadd.f32 %v5827_v48, %v5784_v23  ;;  %6317 = vmatpush.bf16.msra.mxu3 %v10776_v13  ;;  %v16586_v13 = vld [vmem:[#allocation25_spill] sm:$0xff] }
 0x5d3   :  { %v14470_v42 = vadd.f32 %v5913_v6, %v5870_v62  ;;  %6107 = vmatmul.bf16.gmra.mxu2 %v13854_v8  ;;  %6190 = vmatmul.bf16.vlgmr.msrb.gmra.mxu0 %v13847_v14 }
 0x5d4   :  { %6234 = vmatmul.bf16.vlgmr.msrb.gmra.mxu1 %v13858_v29  ;;  %v10041_v29 = vld [vmem:[#allocation4 + $0x1d8] sm:$0xf0] }
 0x5d6   :  { %6151 = vmatmul.bf16.gmra.mxu3 %v13864_v7  ;;  %v5927_v20 = vpop.f32.mrf.mxu2 }
 0x5d7   :  { %v5928_v32 = vadd.f32 %v5927_v20, %v14410_v63  ;;  %v11935_v63 = vld [vmem:[%s16538_s26] sm:$0xf] }
 0x5d8   :  { %v5871_v39 = vpop.f32.mrf.mxu0  ;;  %v14488_v41 = vperm.slane %v11935_v63, 1  ;;  %v16590_v63 = vld [vmem:[#allocation139_spill] sm:$0xff] }
 0x5d9   :  { %v5971_v10 = vpop.f32.mrf.mxu3  ;;  %v5872_v21 = vadd.f32 %v5871_v39, %v5828_v59  ;;  %v5915_v61 = vpop.f32.mrf.mxu1  ;;  %v11437_v59 = vld [vmem:[#allocation4 + $0x674] sm:$0xf0]  ;;  %v10760_v39 = vor.u32 %v11469_v17, %v10759_v28 }
 0x5da   :  { %v5972_v0 = vadd.f32 %v5971_v10, %v5928_v32  ;;  %v10632_v6 = vor.u32 %v11437_v59, %v10631_v31 }
 0x5db   :  { %v14482_v4 = vadd.f32 %v5915_v61, %v5872_v21  ;;  %6318 = vmatpush.bf16.msra.mxu3 %v10760_v39 }
 0x5dc   :  { %v6721_v48 = vmul.f32 %v14480_v35, %v5972_v0  ;;  %6274 = vmatpush.bf16.msra.mxu2 %v10632_v6 }
 0x5de   :  { %v5929_v23 = vpop.f32.mrf.mxu2  ;;  %v6787_v0 = vadd.f32 %v14488_v41, %v6721_v48 }
 0x5df   :  { %v5930_v47 = vadd.f32 %v5929_v23, %v14417_v15  ;;  %v16587_v15 = vld [vmem:[#allocation27_spill] sm:$0xff] }
 0x5e0   :  { %v6015_v62 = vpop.f32.mrf.mxu0  ;;  %v16589_v23 = vld [vmem:[#allocation31_spill] sm:$0xff]  ;;  %v6843_v31 = vmax.f32 %v6787_v0, 0.0  ;;  %v10615_v0 = vld [vmem:[#allocation4 + $0x648] sm:$0xf] }
 0x5e1   :  { %v5973_v54 = vpop.f32.mrf.mxu3  ;;  %v6016_v32 = vadd.f32 %v6015_v62, %v16586_v13  ;;  %v6059_v10 = vpop.f32.mrf.mxu1 }
 0x5e2   :  { %v5974_v20 = vadd.f32 %v5973_v54, %v5930_v47 }
 0x5e3   :  { %v14494_v61 = vadd.f32 %v6059_v10, %v6016_v32  ;;  %6112 = vmatmul.bf16.gmra.mxu2 %v16587_v15  ;;  %6195 = vmatmul.bf16.gmra.mxu0 %v16588_v9  ;;  %v11465_v15 = vld [vmem:[#allocation4 + $0x754] sm:$0xf0] }
 0x5e4   :  { %v6725_v21 = vmul.f32 %v14480_v35, %v5974_v20  ;;  %6239 = vmatmul.bf16.gmra.mxu1 %v16590_v63  ;;  %v16592_v20 = vld [vmem:[#allocation26_spill] sm:$0xff] }
 0x5e6   :  { %6156 = vmatmul.bf16.gmra.mxu3 %v16589_v23  ;;  %v6791_v47 = vadd.f32 %v14488_v41, %v6725_v21  ;;  %v5932_v54 = vpop.f32.mrf.mxu2 }
 0x5e7   :  { %v5933_v48 = vadd.f32 %v5932_v54, %v14420_v45  ;;  %v10743_v54 = vld [vmem:[#allocation4 + $0x748] sm:$0xf] }
 0x5e8   :  { %v6847_v59 = vmax.f32 %v6791_v47, 0.0  ;;  %v6017_v6 = vpop.f32.mrf.mxu0  ;;  %v11433_v47 = vld [vmem:[#allocation4 + $0x654] sm:$0xf0] }
 0x5e9   :  { %v5976_v62 = vpop.f32.mrf.mxu3  ;;  %v6018_v13 = vadd.f32 %v6017_v6, %v16592_v20  ;;  %v6061_v32 = vpop.f32.mrf.mxu1  ;;  %v10616_v45 = vor.u32 %v11433_v47, %v10615_v0  ;;  %v10744_v6 = vor.u32 %v11465_v15, %v10743_v54  ;;  %v16597_v0 = vld [vmem:[#allocation143_spill] sm:$0xff] }
 0x5ea   :  { %v14502_v28 = vpack.c.bf16 %v6847_v59, %v6843_v31  ;;  %v5977_v17 = vadd.f32 %v5976_v62, %v5933_v48  ;;  %v16593_v59 = vld [vmem:[#allocation35_spill] sm:$0xff] }
 0x5eb   :  { %v14505_v10 = vadd.f32 %v6061_v32, %v6018_v13  ;;  %6275 = vmatpush.bf16.msra.mxu2 %v10616_v45  ;;  %v16596_v32 = vld [vmem:[#allocation40_spill] sm:$0xff]  ;;  %6319 = vmatpush.bf16.msra.mxu3 %v10744_v6 }
 0x5ec   :  { %16591 = vst [vmem:[#allocation66_spill] sm:$0xff] %v14502_v28  ;;  %v6729_v63 = vmul.f32 %v14480_v35, %v5977_v17 }
 0x5ee   :  { %v5934_v23 = vpop.f32.mrf.mxu2  ;;  %v6795_v20 = vadd.f32 %v14488_v41, %v6729_v63 }
 0x5ef   :  { %v5935_v39 = vadd.f32 %v5934_v23, %v14427_v37  ;;  %v16594_v37 = vld [vmem:[#allocation37_spill] sm:$0xff]  ;;  %v16595_v23 = vld [vmem:[#allocation32_spill] sm:$0xff] }
 0x5f0   :  { %v6020_v9 = vpop.f32.mrf.mxu0  ;;  %v6851_v15 = vmax.f32 %v6795_v20, 0.0  ;;  %v10599_v20 = vld [vmem:[#allocation4 + $0x628] sm:$0xf] }
 0x5f1   :  { %v5978_v21 = vpop.f32.mrf.mxu3  ;;  %v6021_v48 = vadd.f32 %v6020_v9, %v16593_v59  ;;  %v6064_v62 = vpop.f32.mrf.mxu1 }
 0x5f2   :  { %v5979_v31 = vadd.f32 %v5978_v21, %v5935_v39 }
 0x5f3   :  { %v14512_v17 = vadd.f32 %v6064_v62, %v6021_v48  ;;  %6117 = vmatmul.bf16.gmra.mxu2 %v16594_v37  ;;  %6200 = vmatmul.bf16.gmra.mxu0 %v16595_v23  ;;  %v11429_v23 = vld [vmem:[#allocation4 + $0x634] sm:$0xf0] }
 0x5f4   :  { %v6733_v13 = vmul.f32 %v14480_v35, %v5979_v31  ;;  %6244 = vmatmul.bf16.gmra.mxu1 %v16597_v0  ;;  %v16598_v31 = vld [vmem:[#allocation36_spill] sm:$0xff] }
 0x5f5   :  { %v11461_v37 = vld [vmem:[#allocation4 + $0x734] sm:$0xf0] }
 0x5f6   :  { %6161 = vmatmul.bf16.gmra.mxu3 %v16596_v32  ;;  %v6799_v39 = vadd.f32 %v14488_v41, %v6733_v13  ;;  %v5937_v9 = vpop.f32.mrf.mxu2 }
 0x5f7   :  { %v5938_v21 = vadd.f32 %v5937_v9, %v14430_v27  ;;  %v10600_v9 = vor.u32 %v11429_v23, %v10599_v20  ;;  %v16602_v23 = vld [vmem:[#allocation149_spill] sm:$0xff] }
 0x5f8   :  { %v6855_v47 = vmax.f32 %v6799_v39, 0.0  ;;  %v6022_v45 = vpop.f32.mrf.mxu0  ;;  %v10727_v39 = vld [vmem:[#allocation4 + $0x728] sm:$0xf] }
 0x5f9   :  { %v5981_v63 = vpop.f32.mrf.mxu3  ;;  %v6023_v59 = vadd.f32 %v6022_v45, %v16598_v31  ;;  %v6066_v48 = vpop.f32.mrf.mxu1  ;;  %6276 = vmatpush.bf16.msra.mxu2 %v10600_v9  ;;  %v10583_v9 = vld [vmem:[#allocation4 + $0x608] sm:$0xf] }
 0x5fa   :  { %v5982_v54 = vadd.f32 %v5981_v63, %v5938_v21  ;;  %v14521_v62 = vpack.c.bf16 %v6855_v47, %v6851_v15  ;;  %v16600_v63 = vld [vmem:[#allocation43_spill] sm:$0xff]  ;;  %v10728_v15 = vor.u32 %v11461_v37, %v10727_v39  ;;  %v11425_v39 = vld [vmem:[#allocation4 + $0x614] sm:$0xf0] }
 0x5fb   :  { %v14523_v28 = vadd.f32 %v6066_v48, %v6023_v59  ;;  %v11259_v59 = vld [vmem:[#allocation4 + $0xec] sm:$0xf] }
 0x5fc   :  { %16599 = vst [vmem:[#allocation73_spill] sm:$0xff] %v14521_v62  ;;  %v6737_v0 = vmul.f32 %v14480_v35, %v5982_v54  ;;  %v9929_v54 = vld [vmem:[#allocation4 + $0xf8] sm:$0xf0]  ;;  %v11291_v48 = vld [vmem:[#allocation4 + $0x1ec] sm:$0xf]  ;;  %v16601_v62 = vld [vmem:[#allocation41_spill] sm:$0xff]  ;;  %6320 = vmatpush.bf16.msra.mxu3 %v10728_v15 }
 0x5fd   :  { %v9932_v20 = vor.u32 %v11259_v59, %v9929_v54 }
 0x5fe   :  { %v5939_v32 = vpop.f32.mrf.mxu2  ;;  %v6803_v47 = vadd.f32 %v14488_v41, %v6737_v0 }
 0x5ff   :  { %v5940_v6 = vadd.f32 %v5939_v32, %v14437_v52  ;;  %6358 = vmatpush.bf16.msra.mxu0 %v9932_v20  ;;  %v16605_v20 = vld [vmem:[#allocation45_spill] sm:$0xff] }
 0x600   :  { %v6025_v27 = vpop.f32.mrf.mxu0 }
 0x601   :  { %v5983_v13 = vpop.f32.mrf.mxu3  ;;  %v6026_v45 = vadd.f32 %v6025_v27, %v16600_v63  ;;  %v6069_v31 = vpop.f32.mrf.mxu1  ;;  %v16604_v27 = vld [vmem:[#allocation49_spill] sm:$0xff]  ;;  %v10584_v63 = vor.u32 %v11425_v39, %v10583_v9  ;;  %v11251_v9 = vld [vmem:[#allocation4 + $0xac] sm:$0xf]  ;;  %v9897_v39 = vld [vmem:[#allocation4 + $0xb8] sm:$0xf0] }
 0x602   :  { %v5984_v21 = vadd.f32 %v5983_v13, %v5940_v6  ;;  %v10057_v6 = vld [vmem:[#allocation4 + $0x1f8] sm:$0xf0]  ;;  %v16603_v13 = vld [vmem:[#allocation150_spill] sm:$0xff] }
 0x603   :  { %v14530_v32 = vadd.f32 %v6069_v31, %v6026_v45  ;;  %6122 = vmatmul.bf16.gmra.mxu2 %v16601_v62  ;;  %6205 = vmatmul.bf16.gmra.mxu0 %v16602_v23  ;;  %v10060_v37 = vor.u32 %v11291_v48, %v10057_v6  ;;  %v11255_v45 = vld [vmem:[#allocation4 + $0xcc] sm:$0xf]  ;;  %v9913_v31 = vld [vmem:[#allocation4 + $0xd8] sm:$0xf0]  ;;  %v6859_v23 = vmax.f32 %v6803_v47, 0.0 }
 0x604   :  { %v6741_v52 = vmul.f32 %v14480_v35, %v5984_v21  ;;  %6249 = vmatmul.bf16.gmra.mxu1 %v16604_v27  ;;  %v11287_v62 = vld [vmem:[#allocation4 + $0x1cc] sm:$0xf]  ;;  %6277 = vmatpush.bf16.msra.mxu2 %v10584_v63  ;;  %v11457_v63 = vld [vmem:[#allocation4 + $0x714] sm:$0xf0] }
 0x605   :  { %6402 = vmatpush.bf16.msra.mxu1 %v10060_v37  ;;  %v11283_v47 = vld [vmem:[#allocation4 + $0x1ac] sm:$0xf] }
 0x606   :  { %6166 = vmatmul.bf16.gmra.mxu3 %v16603_v13  ;;  %v6807_v0 = vadd.f32 %v14488_v41, %v6741_v52  ;;  %v5942_v21 = vpop.f32.mrf.mxu2  ;;  %v9916_v13 = vor.u32 %v11255_v45, %v9913_v31  ;;  %v10044_v52 = vor.u32 %v11287_v62, %v10041_v29  ;;  %v10711_v62 = vld [vmem:[#allocation4 + $0x708] sm:$0xf]  ;;  %v11247_v31 = vld [vmem:[#allocation4 + $0x8c] sm:$0xf] }
 0x607   :  { %v5943_v59 = vadd.f32 %v5942_v21, %v14440_v25  ;;  %v9900_v25 = vor.u32 %v11251_v9, %v9897_v39  ;;  %v10025_v21 = vld [vmem:[#allocation4 + $0x1b8] sm:$0xf0] }
 0x608   :  { %v6863_v27 = vmax.f32 %v6807_v0, 0.0  ;;  %v6027_v48 = vpop.f32.mrf.mxu0  ;;  %6359 = vmatpush.bf16.msra.mxu0 %v9916_v13  ;;  %v10028_v45 = vor.u32 %v11283_v47, %v10025_v21  ;;  %v9865_v21 = vld [vmem:[#allocation4 + $0x78] sm:$0xf0] }
 0x609   :  { %v5986_v54 = vpop.f32.mrf.mxu3  ;;  %v6028_v6 = vadd.f32 %v6027_v48, %v16605_v20  ;;  %v6071_v7 = vpop.f32.mrf.mxu1  ;;  %6403 = vmatpush.bf16.msra.mxu1 %v10044_v52  ;;  %v10009_v20 = vld [vmem:[#allocation4 + $0x198] sm:$0xf0] }
 0x60a   :  { %v5987_v15 = vadd.f32 %v5986_v54, %v5943_v59  ;;  %v14539_v37 = vpack.c.bf16 %v6863_v27, %v6859_v23  ;;  %v10712_v27 = vor.u32 %v11457_v63, %v10711_v62  ;;  %v9881_v59 = vld [vmem:[#allocation4 + $0x98] sm:$0xf0]  ;;  %v11279_v54 = vld [vmem:[#allocation4 + $0x18c] sm:$0xf]  ;;  %v16608_v62 = vld [vmem:[#allocation23_spill] sm:$0xff] }
 0x60b   :  { %v14541_v14 = vadd.f32 %v6071_v7, %v6028_v6  ;;  %v9884_v52 = vor.u32 %v11247_v31, %v9881_v59  ;;  %v10012_v47 = vor.u32 %v11279_v54, %v10009_v20  ;;  %v9993_v31 = vld [vmem:[#allocation4 + $0x178] sm:$0xf0]  ;;  %v11323_v54 = vld [vmem:[#allocation4 + $0x2ec] sm:$0xf] }
 0x60c   :  { %16606 = vst [vmem:[#allocation68_spill] sm:$0xff] %v14539_v37  ;;  %v6745_v0 = vmul.f32 %v14480_v35, %v5987_v15  ;;  %6360 = vmatpush.bf16.msra.mxu0 %v9900_v25  ;;  %v16607_v15 = vld [vmem:[#allocation55_spill] sm:$0xff]  ;;  %6321 = vmatpush.bf16.msra.mxu3 %v10712_v27  ;;  %v11243_v25 = vld [vmem:[#allocation4 + $0x6c] sm:$0xf]  ;;  %v16611_v59 = vld [vmem:[#allocation24_spill] sm:$0xff] }
 0x60d   :  { %6404 = vmatpush.bf16.msra.mxu1 %v10028_v45  ;;  %v11275_v45 = vld [vmem:[#allocation4 + $0x16c] sm:$0xf]  ;;  %v9868_v63 = vor.u32 %v11243_v25, %v9865_v21  ;;  %v9849_v37 = vld [vmem:[#allocation4 + $0x58] sm:$0xf0] }
 0x60e   :  { %v5944_v29 = vpop.f32.mrf.mxu2  ;;  %v6811_v7 = vadd.f32 %v14488_v41, %v6745_v0  ;;  %v16609_v0 = vld [vmem:[#allocation20_spill] sm:$0xff]  ;;  %v11355_v20 = vld [vmem:[#allocation4 + $0x3ec] sm:$0xf] }
 0x60f   :  { %v5945_v23 = vadd.f32 %v5944_v29, %v14447_v30 }
 0x610   :  { %v6030_v48 = vpop.f32.mrf.mxu0  ;;  %6361 = vmatpush.bf16.msra.mxu0 %v9884_v52  ;;  %v9996_v52 = vor.u32 %v11275_v45, %v9993_v31  ;;  %v16612_v45 = vld [vmem:[#allocation57_spill] sm:$0xff] }
 0x611   :  { %v5988_v13 = vpop.f32.mrf.mxu3  ;;  %v6031_v9 = vadd.f32 %v6030_v48, %v16607_v15  ;;  %v6074_v39 = vpop.f32.mrf.mxu1  ;;  %6405 = vmatpush.bf16.msra.mxu1 %v10012_v47  ;;  %v10185_v48 = vld [vmem:[#allocation4 + $0x2f8] sm:$0xf0] }
 0x612   :  { %v5989_v6 = vadd.f32 %v5988_v13, %v5945_v23  ;;  %v6867_v23 = vmax.f32 %v6811_v7, 0.0  ;;  %v16610_v13 = vld [vmem:[#allocation29_spill] sm:$0xff]  ;;  %v10188_v15 = vor.u32 %v11323_v54, %v10185_v48  ;;  %v11235_v54 = vld [vmem:[#allocation4 + $0x2c] sm:$0xf] }
 0x613   :  { %v14548_v29 = vadd.f32 %v6074_v39, %v6031_v9  ;;  %6127 = vmatmul.bf16.gmra.mxu2 %v16608_v62  ;;  %6210 = vmatmul.bf16.gmra.mxu0 %v16609_v0  ;;  %v10313_v9 = vld [vmem:[#allocation4 + $0x3f8] sm:$0xf0]  ;;  %v11239_v39 = vld [vmem:[#allocation4 + $0x4c] sm:$0xf] }
 0x614   :  { %v6749_v30 = vmul.f32 %v14480_v35, %v5989_v6  ;;  %6254 = vmatmul.bf16.gmra.mxu1 %v16611_v59  ;;  %6362 = vmatpush.bf16.msra.mxu0 %v9868_v63  ;;  %v10316_v21 = vor.u32 %v11355_v20, %v10313_v9  ;;  %v11271_v0 = vld [vmem:[#allocation4 + $0x14c] sm:$0xf]  ;;  %v9977_v59 = vld [vmem:[#allocation4 + $0x158] sm:$0xf0] }
 0x615   :  { %6446 = vmatpush.bf16.msrb.mxu2 %v10188_v15  ;;  %v9980_v47 = vor.u32 %v11271_v0, %v9977_v59  ;;  %6406 = vmatpush.bf16.msra.mxu1 %v9996_v52  ;;  %v11267_v48 = vld [vmem:[#allocation4 + $0x12c] sm:$0xf]  ;;  %v9817_v59 = vld [vmem:[#allocation4 + $0x18] sm:$0xf0] }
 0x616   :  { %6171 = vmatmul.bf16.gmra.mxu3 %v16610_v13  ;;  %v6815_v27 = vadd.f32 %v14488_v41, %v6749_v30  ;;  %v5947_v6 = vpop.f32.mrf.mxu2  ;;  %v9852_v13 = vor.u32 %v11239_v39, %v9849_v37  ;;  %v11231_v0 = vld [vmem:[#allocation4 + $0xc] sm:$0xf]  ;;  %v9945_v39 = vld [vmem:[#allocation4 + $0x118] sm:$0xf0] }
 0x617   :  { %v5948_v25 = vadd.f32 %v5947_v6, %v14450_v43  ;;  %6490 = vmatpush.bf16.msrb.mxu3 %v10316_v21  ;;  %v9833_v43 = vld [vmem:[#allocation4 + $0x38] sm:$0xf0]  ;;  %v11263_v9 = vld [vmem:[#allocation4 + $0x10c] sm:$0xf] }
 0x618   :  { %v6871_v62 = vmax.f32 %v6815_v27, 0.0  ;;  %v6032_v30 = vpop.f32.mrf.mxu0  ;;  %6363 = vmatpush.bf16.msra.mxu0 %v9852_v13  ;;  %v9836_v37 = vor.u32 %v11235_v54, %v9833_v43  ;;  %v9961_v6 = vld [vmem:[#allocation4 + $0x138] sm:$0xf0]  ;;  %v9820_v13 = vor.u32 %v11231_v0, %v9817_v59 }
 0x619   :  { %v5991_v7 = vpop.f32.mrf.mxu3  ;;  %v6033_v31 = vadd.f32 %v6032_v30, %v16612_v45  ;;  %v6076_v57 = vpop.f32.mrf.mxu1  ;;  %6407 = vmatpush.bf16.msra.mxu1 %v9980_v47  ;;  %v9964_v27 = vor.u32 %v11267_v48, %v9961_v6  ;;  %v9948_v47 = vor.u32 %v11263_v9, %v9945_v39  ;;  %v10169_v43 = vld [vmem:[#allocation4 + $0x2d8] sm:$0xf0]  ;;  %v11351_v48 = vld [vmem:[#allocation4 + $0x3cc] sm:$0xf] }
 0x61a   :  { %v5992_v8 = vadd.f32 %v5991_v7, %v5948_v25  ;;  %v14557_v63 = vpack.c.bf16 %v6871_v62, %v6867_v23 }
 0x61b   :  { %v14559_v20 = vadd.f32 %v6076_v57, %v6033_v31  ;;  %v16614_v57 = vld [vmem:[#allocation102_spill] sm:$0xff] }
 0x61c   :  { %16613 = vst [vmem:[#allocation75_spill] sm:$0xff] %v14557_v63  ;;  %6364 = vmatpush.bf16.msra.mxu0 %v9836_v37  ;;  %v6753_v52 = vmul.f32 %v14480_v35, %v5992_v8 }
 0x61d   :  { %6408 = vmatpush.bf16.msra.mxu1 %v9964_v27  ;;  %v10297_v27 = vld [vmem:[#allocation4 + $0x3d8] sm:$0xf0] }
 0x61e   :  { %v5949_v15 = vpop.f32.mrf.mxu2  ;;  %v6819_v45 = vadd.f32 %v14488_v41, %v6753_v52  ;;  %v10300_v9 = vor.u32 %v11351_v48, %v10297_v27  ;;  %v11315_v48 = vld [vmem:[#allocation4 + $0x2ac] sm:$0xf] }
 0x61f   :  { %v5950_v62 = vadd.f32 %v5949_v15, %v14457_v16  ;;  %v11319_v16 = vld [vmem:[#allocation4 + $0x2cc] sm:$0xf] }
 0x620   :  { %v6035_v25 = vpop.f32.mrf.mxu0  ;;  %6365 = vmatpush.bf16.msra.mxu0 %v9820_v13  ;;  %v10172_v6 = vor.u32 %v11319_v16, %v10169_v43  ;;  %v6875_v15 = vmax.f32 %v6819_v45, 0.0  ;;  %v16615_v13 = vld [vmem:[#allocation103_spill] sm:$0xff]  ;;  %6491 = vmatpush.bf16.msrb.mxu3 %v10300_v9 }
 0x621   :  { %v5993_v23 = vpop.f32.mrf.mxu3  ;;  %v6036_v21 = vadd.f32 %v6035_v25, %v16614_v57  ;;  %v6079_v30 = vpop.f32.mrf.mxu1  ;;  %6409 = vmatpush.bf16.msra.mxu1 %v9948_v47 }
 0x622   :  { %v5994_v7 = vadd.f32 %v5993_v23, %v5950_v62  ;;  %6447 = vmatpush.bf16.msrb.mxu2 %v10172_v6 }
 0x623   :  { %v14566_v54 = vadd.f32 %v6079_v30, %v6036_v21  ;;  %6132 = vmatmul.bf16.gmra.mxu2 %v16562_v55  ;;  %6215 = vmatmul.bf16.gmra.mxu0 %v16563_v49 }
 0x624   :  { %v6757_v31 = vmul.f32 %v14480_v35, %v5994_v7  ;;  %6259 = vmatmul.bf16.gmra.mxu1 %v16565_v12 }
 0x626   :  { %6176 = vmatmul.bf16.gmra.mxu3 %v16564_v2  ;;  %v6823_v8 = vadd.f32 %v14488_v41, %v6757_v31  ;;  %v5952_v37 = vpop.f32.mrf.mxu2 }
 0x627   :  { %v5953_v0 = vadd.f32 %v5952_v37, %v14460_v56  ;;  %v10153_v37 = vld [vmem:[#allocation4 + $0x2b8] sm:$0xf0] }
 0x628   :  { %v6879_v52 = vmax.f32 %v6823_v8, 0.0  ;;  %v6037_v62 = vpop.f32.mrf.mxu0  ;;  %v16617_v8 = vld [vmem:[#allocation104_spill] sm:$0xff]  ;;  %v10156_v6 = vor.u32 %v11315_v48, %v10153_v37 }
 0x629   :  { %v5996_v59 = vpop.f32.mrf.mxu3  ;;  %v6038_v39 = vadd.f32 %v6037_v62, %v16615_v13  ;;  %v6081_v25 = vpop.f32.mrf.mxu1 }
 0x62a   :  { %v5997_v23 = vadd.f32 %v5996_v59, %v5953_v0  ;;  %v14575_v7 = vpack.c.bf16 %v6879_v52, %v6875_v15  ;;  %v10281_v59 = vld [vmem:[#allocation4 + $0x3b8] sm:$0xf0]  ;;  %6448 = vmatpush.bf16.msrb.mxu2 %v10156_v6 }
 0x62b   :  { %v14577_v57 = vadd.f32 %v6081_v25, %v6038_v39 }
 0x62c   :  { %16616 = vst [vmem:[#allocation157_spill] sm:$0xff] %v14575_v7  ;;  %v6761_v30 = vmul.f32 %v14480_v35, %v5997_v23 }
 0x62e   :  { %v5954_v21 = vpop.f32.mrf.mxu2  ;;  %v6827_v27 = vadd.f32 %v14488_v41, %v6761_v30 }
 0x62f   :  { %v5955_v47 = vadd.f32 %v5954_v21, %v14467_v46  ;;  %v11347_v46 = vld [vmem:[#allocation4 + $0x3ac] sm:$0xf] }
 0x630   :  { %v6040_v45 = vpop.f32.mrf.mxu0  ;;  %v10284_v9 = vor.u32 %v11347_v46, %v10281_v59  ;;  %v6883_v23 = vmax.f32 %v6827_v27, 0.0  ;;  %v16619_v59 = vld [vmem:[#allocation113_spill] sm:$0xff] }
 0x631   :  { %v5998_v56 = vpop.f32.mrf.mxu3  ;;  %v6041_v16 = vadd.f32 %v6040_v45, %v16617_v8  ;;  %v6084_v43 = vpop.f32.mrf.mxu1 }
 0x632   :  { %v5999_v31 = vadd.f32 %v5998_v56, %v5955_v47  ;;  %6492 = vmatpush.bf16.msrb.mxu3 %v10284_v9  ;;  %v16618_v47 = vld [vmem:[#allocation111_spill] sm:$0xff] }
 0x633   :  { %v14584_v0 = vadd.f32 %v6084_v43, %v6041_v16  ;;  %6220 = vmatmul.bf16.gmra.mxu0 %v14090_v24  ;;  %6278 = vmatmul.bf16.vlgmr.msra.gmra.mxu2 %v14083_v58  ;;  %v11311_v16 = vld [vmem:[#allocation4 + $0x28c] sm:$0xf]  ;;  %v10137_v43 = vld [vmem:[#allocation4 + $0x298] sm:$0xf0] }
 0x634   :  { %v6765_v15 = vmul.f32 %v14480_v35, %v5999_v31  ;;  %6264 = vmatmul.bf16.gmra.mxu1 %v16569_v18  ;;  %v10140_v48 = vor.u32 %v11311_v16, %v10137_v43 }
 0x636   :  { %6322 = vmatmul.bf16.vlgmr.msra.gmra.mxu3 %v16570_v3  ;;  %v6831_v52 = vadd.f32 %v14488_v41, %v6765_v15  ;;  %v5957_v62 = vpop.f32.mrf.mxu2  ;;  %6449 = vmatpush.bf16.msrb.mxu2 %v10140_v48 }
 0x637   :  { %v5958_v13 = vadd.f32 %v5957_v62, %v14470_v42  ;;  %v11343_v62 = vld [vmem:[#allocation4 + $0x38c] sm:$0xf] }
 0x638   :  { %v6887_v25 = vmax.f32 %v6831_v52, 0.0  ;;  %v6042_v21 = vpop.f32.mrf.mxu0 }
 0x639   :  { %v6001_v39 = vpop.f32.mrf.mxu3  ;;  %v6043_v56 = vadd.f32 %v6042_v21, %v16618_v47  ;;  %v6086_v45 = vpop.f32.mrf.mxu1 }
 0x63a   :  { %v6002_v30 = vadd.f32 %v6001_v39, %v5958_v13  ;;  %v14593_v31 = vpack.c.bf16 %v6887_v25, %v6883_v23  ;;  %v10265_v23 = vld [vmem:[#allocation4 + $0x398] sm:$0xf0] }
 0x63b   :  { %v14595_v8 = vadd.f32 %v6086_v45, %v6043_v56  ;;  %v10268_v13 = vor.u32 %v11343_v62, %v10265_v23 }
 0x63c   :  { %v6769_v6 = vmul.f32 %v14480_v35, %v6002_v30  ;;  %v16621_v30 = vld [vmem:[#allocation115_spill] sm:$0xff] }
 0x63d   :  { %6493 = vmatpush.bf16.msrb.mxu3 %v10268_v13 }
 0x63e   :  { %v5959_v37 = vpop.f32.mrf.mxu2  ;;  %v6835_v39 = vadd.f32 %v14488_v41, %v6769_v6  ;;  %v16622_v6 = vld [vmem:[#allocation13_spill] sm:$0xff] }
 0x63f   :  { %v5960_v42 = vadd.f32 %v5959_v37, %v14482_v4  ;;  %v16620_v4 = vld [vmem:[#allocation58_spill] sm:$0xff] }
 0x640   :  { %v6045_v15 = vpop.f32.mrf.mxu0  ;;  %v6891_v45 = vmax.f32 %v6835_v39, 0.0 }
 0x641   :  { %v6003_v27 = vpop.f32.mrf.mxu3  ;;  %v6046_v9 = vadd.f32 %v6045_v15, %v16619_v59  ;;  %v6089_v52 = vpop.f32.mrf.mxu1  ;;  %v10121_v59 = vld [vmem:[#allocation4 + $0x278] sm:$0xf0] }
 0x642   :  { %v6004_v46 = vadd.f32 %v6003_v27, %v5960_v42 }
 0x643   :  { %v14602_v21 = vadd.f32 %v6089_v52, %v6046_v9  ;;  %6283 = vmatmul.bf16.gmra.mxu2 %v14122_v34  ;;  %6366 = vmatmul.bf16.vlgmr.msra.gmra.mxu0 %v16574_v44  ;;  %v11339_v9 = vld [vmem:[#allocation4 + $0x36c] sm:$0xf]  ;;  %v10249_v52 = vld [vmem:[#allocation4 + $0x378] sm:$0xf0] }
 0x644   :  { %v6773_v25 = vmul.f32 %v14480_v35, %v6004_v46  ;;  %6410 = vmatmul.bf16.vlgmr.msra.gmra.mxu1 %v16621_v30  ;;  %v11307_v46 = vld [vmem:[#allocation4 + $0x26c] sm:$0xf]  ;;  %v10252_v62 = vor.u32 %v11339_v9, %v10249_v52  ;;  %v10233_v9 = vld [vmem:[#allocation4 + $0x358] sm:$0xf0] }
 0x646   :  { %6327 = vmatmul.bf16.gmra.mxu3 %v16620_v4  ;;  %v6839_v47 = vadd.f32 %v14488_v41, %v6773_v25  ;;  %v6103_v56 = vpop.f32.mrf.mxu2  ;;  %v10124_v41 = vor.u32 %v11307_v46, %v10121_v59  ;;  %v11335_v46 = vld [vmem:[#allocation4 + $0x34c] sm:$0xf] }
 0x647   :  { %v6104_v16 = vadd.f32 %v6103_v56, %v14494_v61  ;;  %6494 = vmatpush.bf16.msrb.mxu3 %v10252_v62 }
 0x648   :  { %v6895_v48 = vmax.f32 %v6839_v47, 0.0  ;;  %v6047_v35 = vpop.f32.mrf.mxu0  ;;  %6450 = vmatpush.bf16.msrb.mxu2 %v10124_v41 }
 0x649   :  { %v6147_v43 = vpop.f32.mrf.mxu3  ;;  %v6048_v42 = vadd.f32 %v6047_v35, %v16622_v6  ;;  %v6091_v27 = vpop.f32.mrf.mxu1 }
 0x64a   :  { %v6148_v37 = vadd.f32 %v6147_v43, %v6104_v16  ;;  %v14611_v15 = vpack.c.bf16 %v6895_v48, %v6891_v45 }
 0x64b   :  { %v14613_v44 = vadd.f32 %v6091_v27, %v6048_v42  ;;  %v11303_v42 = vld [vmem:[#allocation4 + $0x24c] sm:$0xf]  ;;  %v10105_v27 = vld [vmem:[#allocation4 + $0x258] sm:$0xf0] }
 0x64c   :  { %16623 = vst [vmem:[#allocation158_spill] sm:$0xff] %v14611_v15  ;;  %v10108_v59 = vor.u32 %v11303_v42, %v10105_v27 }
 0x64e   :  { %v6105_v23 = vpop.f32.mrf.mxu2  ;;  %6451 = vmatpush.bf16.msrb.mxu2 %v10108_v59  ;;  %v10217_v59 = vld [vmem:[#allocation4 + $0x338] sm:$0xf0] }
 0x64f   :  { %v6106_v61 = vadd.f32 %v6105_v23, %v14505_v10 }
 0x650   :  { %v6191_v39 = vpop.f32.mrf.mxu0 }
 0x651   :  { %v6149_v13 = vpop.f32.mrf.mxu3  ;;  %v6192_v30 = vadd.f32 %v6191_v39, %v6148_v37  ;;  %v6235_v47 = vpop.f32.mrf.mxu1  ;;  %v16624_v39 = vld [vmem:[#allocation126_spill] sm:$0xff] }
 0x652   :  { %v6150_v25 = vadd.f32 %v6149_v13, %v6106_v61 }
 0x653   :  { %v14616_v56 = vadd.f32 %v6235_v47, %v6192_v30  ;;  %6288 = vmatmul.bf16.gmra.mxu2 %v14148_v40  ;;  %6371 = vmatmul.bf16.gmra.mxu0 %v13702_v38  ;;  %v10236_v38 = vor.u32 %v11335_v46, %v10233_v9  ;;  %v16626_v30 = vld [vmem:[#allocation14_spill] sm:$0xff] }
 0x654   :  { %6415 = vmatmul.bf16.gmra.mxu1 %v16579_v51  ;;  %v11331_v46 = vld [vmem:[#allocation4 + $0x32c] sm:$0xf] }
 0x655   :  { %6495 = vmatpush.bf16.msrb.mxu3 %v10236_v38  ;;  %v10220_v9 = vor.u32 %v11331_v46, %v10217_v59  ;;  %v11383_v46 = vld [vmem:[#allocation4 + $0x4cc] sm:$0xf]  ;;  %v10425_v59 = vld [vmem:[#allocation4 + $0x4d8] sm:$0xf0] }
 0x656   :  { %6332 = vmatmul.bf16.gmra.mxu3 %v14154_v22  ;;  %v6108_v45 = vpop.f32.mrf.mxu2 }
 0x657   :  { %v6109_v16 = vadd.f32 %v6108_v45, %v14512_v17 }
 0x658   :  { %v6193_v43 = vpop.f32.mrf.mxu0 }
 0x659   :  { %v6152_v10 = vpop.f32.mrf.mxu3  ;;  %v6194_v35 = vadd.f32 %v6193_v43, %v6150_v25  ;;  %v6237_v6 = vpop.f32.mrf.mxu1  ;;  %v16625_v25 = vld [vmem:[#allocation60_spill] sm:$0xff]  ;;  %6496 = vmatpush.bf16.msrb.mxu3 %v10220_v9  ;;  %v11415_v9 = vld [vmem:[#allocation4 + $0x5cc] sm:$0xf] }
 0x65a   :  { %v6153_v48 = vadd.f32 %v6152_v10, %v6109_v16 }
 0x65b   :  { %v14623_v37 = vadd.f32 %v6237_v6, %v6194_v35  ;;  %v10089_v6 = vld [vmem:[#allocation4 + $0x238] sm:$0xf0] }
 0x65e   :  { %v6110_v41 = vpop.f32.mrf.mxu2 }
 0x65f   :  { %v6111_v51 = vadd.f32 %v6110_v41, %v14523_v28 }
 0x660   :  { %v6196_v17 = vpop.f32.mrf.mxu0 }
 0x661   :  { %v6154_v52 = vpop.f32.mrf.mxu3  ;;  %v6197_v23 = vadd.f32 %v6196_v17, %v6153_v48  ;;  %v6240_v61 = vpop.f32.mrf.mxu1  ;;  %v11299_v48 = vld [vmem:[#allocation4 + $0x22c] sm:$0xf] }
 0x662   :  { %v6155_v62 = vadd.f32 %v6154_v52, %v6111_v51  ;;  %v10092_v42 = vor.u32 %v11299_v48, %v10089_v6  ;;  %v11295_v48 = vld [vmem:[#allocation4 + $0x20c] sm:$0xf]  ;;  %v10073_v6 = vld [vmem:[#allocation4 + $0x218] sm:$0xf0] }
 0x663   :  { %v14626_v13 = vadd.f32 %v6240_v61, %v6197_v23  ;;  %6293 = vmatmul.bf16.gmra.mxu2 %v14172_v33  ;;  %6376 = vmatmul.bf16.gmra.mxu0 %v16624_v39  ;;  %v10441_v61 = vld [vmem:[#allocation4 + $0x4f8] sm:$0xf0]  ;;  %v11419_v39 = vld [vmem:[#allocation4 + $0x5ec] sm:$0xf] }
 0x664   :  { %6420 = vmatmul.bf16.gmra.mxu1 %v16626_v30  ;;  %6452 = vmatpush.bf16.msrb.mxu2 %v10092_v42 }
 0x666   :  { %6337 = vmatmul.bf16.gmra.mxu3 %v16625_v25  ;;  %v6113_v47 = vpop.f32.mrf.mxu2 }
 0x667   :  { %v6114_v45 = vadd.f32 %v6113_v47, %v14530_v32  ;;  %v16627_v47 = vld [vmem:[#allocation63_spill] sm:$0xff] }
 0x668   :  { %v6198_v16 = vpop.f32.mrf.mxu0 }
 0x669   :  { %v6157_v28 = vpop.f32.mrf.mxu3  ;;  %v6199_v43 = vadd.f32 %v6198_v16, %v6155_v62  ;;  %v6242_v35 = vpop.f32.mrf.mxu1  ;;  %v11387_v62 = vld [vmem:[#allocation4 + $0x4ec] sm:$0xf]  ;;  %v10569_v16 = vld [vmem:[#allocation4 + $0x5f8] sm:$0xf0] }
 0x66a   :  { %v6158_v10 = vadd.f32 %v6157_v28, %v6114_v45  ;;  %v16628_v45 = vld [vmem:[#allocation127_spill] sm:$0xff]  ;;  %v10444_v28 = vor.u32 %v11387_v62, %v10441_v61 }
 0x66b   :  { %v14633_v27 = vadd.f32 %v6242_v35, %v6199_v43  ;;  %v16629_v43 = vld [vmem:[#allocation51_spill] sm:$0xff]  ;;  %v16630_v35 = vld [vmem:[#allocation128_spill] sm:$0xff] }
 0x66c   :  { %6534 = vmatpush.bf16.msrb.mxu0 %v10444_v28 }
 0x66e   :  { %v6115_v38 = vpop.f32.mrf.mxu2 }
 0x66f   :  { %v6116_v41 = vadd.f32 %v6115_v38, %v14541_v14  ;;  %v10572_v14 = vor.u32 %v11419_v39, %v10569_v16  ;;  %v10201_v16 = vld [vmem:[#allocation4 + $0x318] sm:$0xf0] }
 0x670   :  { %v6201_v32 = vpop.f32.mrf.mxu0 }
 0x671   :  { %v6159_v51 = vpop.f32.mrf.mxu3  ;;  %v6202_v17 = vadd.f32 %v6201_v32, %v6158_v10  ;;  %v6245_v23 = vpop.f32.mrf.mxu1  ;;  %v10076_v10 = vor.u32 %v11295_v48, %v10073_v6  ;;  %6578 = vmatpush.bf16.msrb.mxu1 %v10572_v14  ;;  %v10553_v32 = vld [vmem:[#allocation4 + $0x5d8] sm:$0xf0]  ;;  %v11411_v48 = vld [vmem:[#allocation4 + $0x5ac] sm:$0xf] }
 0x672   :  { %v6160_v52 = vadd.f32 %v6159_v51, %v6116_v41  ;;  %v10428_v51 = vor.u32 %v11383_v46, %v10425_v59  ;;  %v10409_v14 = vld [vmem:[#allocation4 + $0x4b8] sm:$0xf0]  ;;  %v11375_v59 = vld [vmem:[#allocation4 + $0x48c] sm:$0xf] }
 0x673   :  { %v14636_v30 = vadd.f32 %v6245_v23, %v6202_v17  ;;  %6298 = vmatmul.bf16.gmra.mxu2 %v16627_v47  ;;  %6381 = vmatmul.bf16.gmra.mxu0 %v16628_v45  ;;  %v10556_v23 = vor.u32 %v11415_v9, %v10553_v32  ;;  %v11327_v45 = vld [vmem:[#allocation4 + $0x30c] sm:$0xf]  ;;  %v10521_v32 = vld [vmem:[#allocation4 + $0x598] sm:$0xf0] }
 0x674   :  { %6425 = vmatmul.bf16.gmra.mxu1 %v16630_v35  ;;  %6453 = vmatpush.bf16.msrb.mxu2 %v10076_v10  ;;  %v10204_v28 = vor.u32 %v11327_v45, %v10201_v16  ;;  %v11379_v35 = vld [vmem:[#allocation4 + $0x4ac] sm:$0xf] }
 0x675   :  { %6535 = vmatpush.bf16.msrb.mxu0 %v10428_v51  ;;  %6579 = vmatpush.bf16.msrb.mxu1 %v10556_v23  ;;  %v11407_v9 = vld [vmem:[#allocation4 + $0x58c] sm:$0xf] }
 0x676   :  { %6342 = vmatmul.bf16.gmra.mxu3 %v16629_v43  ;;  %v6118_v42 = vpop.f32.mrf.mxu2  ;;  %v10524_v23 = vor.u32 %v11407_v9, %v10521_v32  ;;  %v11371_v16 = vld [vmem:[#allocation4 + $0x46c] sm:$0xf]  ;;  %v10825_v9 = vld [vmem:[#allocation4 + $0x7f8] sm:$0xf0] }
 0x677   :  { %v6119_v38 = vadd.f32 %v6118_v42, %v14548_v29  ;;  %v10412_v29 = vor.u32 %v11379_v35, %v10409_v14  ;;  %v10537_v42 = vld [vmem:[#allocation4 + $0x5b8] sm:$0xf0]  ;;  %6497 = vmatpush.bf16.msrb.mxu3 %v10204_v28  ;;  %v11403_v35 = vld [vmem:[#allocation4 + $0x56c] sm:$0xf] }
 0x678   :  { %v6203_v17 = vpop.f32.mrf.mxu0  ;;  %v10540_v10 = vor.u32 %v11411_v48, %v10537_v42  ;;  %v10377_v28 = vld [vmem:[#allocation4 + $0x478] sm:$0xf0]  ;;  %v16632_v42 = vld [vmem:[#allocation15_spill] sm:$0xff] }
 0x679   :  { %v6162_v41 = vpop.f32.mrf.mxu3  ;;  %v6204_v61 = vadd.f32 %v6203_v17, %v6160_v52  ;;  %v6247_v39 = vpop.f32.mrf.mxu1  ;;  %6536 = vmatpush.bf16.msrb.mxu0 %v10412_v29  ;;  %v10393_v52 = vld [vmem:[#allocation4 + $0x498] sm:$0xf0]  ;;  %v16631_v29 = vld [vmem:[#allocation61_spill] sm:$0xff] }
 0x67a   :  { %v6163_v62 = vadd.f32 %v6162_v41, %v6119_v38  ;;  %6580 = vmatpush.bf16.msrb.mxu1 %v10540_v10  ;;  %v10396_v51 = vor.u32 %v11375_v59, %v10393_v52  ;;  %v10505_v48 = vld [vmem:[#allocation4 + $0x578] sm:$0xf0]  ;;  %v11451_v10 = vld [vmem:[#allocation4 + $0x6ec] sm:$0xf] }
 0x67b   :  { %v14643_v6 = vadd.f32 %v6247_v39, %v6204_v61  ;;  %v11483_v59 = vld [vmem:[#allocation4 + $0x7ec] sm:$0xf]  ;;  %v10361_v32 = vld [vmem:[#allocation4 + $0x458] sm:$0xf0] }
 0x67d   :  { %6537 = vmatpush.bf16.msrb.mxu0 %v10396_v51  ;;  %v11367_v51 = vld [vmem:[#allocation4 + $0x44c] sm:$0xf] }
 0x67e   :  { %v6120_v46 = vpop.f32.mrf.mxu2  ;;  %6581 = vmatpush.bf16.msrb.mxu1 %v10524_v23 }
 0x67f   :  { %v6121_v38 = vadd.f32 %v6120_v46, %v14559_v20  ;;  %v10380_v20 = vor.u32 %v11371_v16, %v10377_v28  ;;  %v10508_v46 = vor.u32 %v11403_v35, %v10505_v48 }
 0x680   :  { %v6206_v17 = vpop.f32.mrf.mxu0 }
 0x681   :  { %v6164_v41 = vpop.f32.mrf.mxu3  ;;  %v6207_v61 = vadd.f32 %v6206_v17, %v6163_v62  ;;  %v6250_v39 = vpop.f32.mrf.mxu1  ;;  %v10697_v62 = vld [vmem:[#allocation4 + $0x6f8] sm:$0xf0]  ;;  %6538 = vmatpush.bf16.msrb.mxu0 %v10380_v20  ;;  %v11399_v17 = vld [vmem:[#allocation4 + $0x54c] sm:$0xf] }
 0x682   :  { %v6165_v45 = vadd.f32 %v6164_v41, %v6121_v38  ;;  %v10700_v52 = vor.u32 %v11451_v10, %v10697_v62  ;;  %6582 = vmatpush.bf16.msrb.mxu1 %v10508_v46  ;;  %v10828_v41 = vor.u32 %v11483_v59, %v10825_v9  ;;  %v11363_v20 = vld [vmem:[#allocation4 + $0x42c] sm:$0xf]  ;;  %v10345_v10 = vld [vmem:[#allocation4 + $0x438] sm:$0xf0] }
 0x683   :  { %v14646_v14 = vadd.f32 %v6250_v39, %v6207_v61  ;;  %6303 = vmatmul.bf16.gmra.mxu2 %v14214_v11  ;;  %6386 = vmatmul.bf16.gmra.mxu0 %v13768_v60  ;;  %v10364_v61 = vor.u32 %v11367_v51, %v10361_v32  ;;  %v10489_v39 = vld [vmem:[#allocation4 + $0x558] sm:$0xf0]  ;;  %v11395_v62 = vld [vmem:[#allocation4 + $0x52c] sm:$0xf]  ;;  %v10348_v59 = vor.u32 %v11363_v20, %v10345_v10 }
 0x684   :  { %6430 = vmatmul.bf16.gmra.mxu1 %v16632_v42  ;;  %6622 = vmatpush.bf16.msra.mxu2 %v10700_v52  ;;  %v10492_v28 = vor.u32 %v11399_v17, %v10489_v39  ;;  %v10473_v9 = vld [vmem:[#allocation4 + $0x538] sm:$0xf0]  ;;  %v11479_v10 = vld [vmem:[#allocation4 + $0x7cc] sm:$0xf] }
 0x685   :  { %6666 = vmatpush.bf16.msra.mxu3 %v10828_v41  ;;  %6539 = vmatpush.bf16.msrb.mxu0 %v10364_v61  ;;  %v10329_v51 = vld [vmem:[#allocation4 + $0x418] sm:$0xf0]  ;;  %v11391_v41 = vld [vmem:[#allocation4 + $0x50c] sm:$0xf] }
 0x686   :  { %6347 = vmatmul.bf16.gmra.mxu3 %v16631_v29  ;;  %v6123_v38 = vpop.f32.mrf.mxu2  ;;  %6583 = vmatpush.bf16.msrb.mxu1 %v10492_v28  ;;  %v10681_v20 = vld [vmem:[#allocation4 + $0x6d8] sm:$0xf0] }
 0x687   :  { %v6124_v60 = vadd.f32 %v6123_v38, %v14566_v54  ;;  %v10476_v54 = vor.u32 %v11395_v62, %v10473_v9  ;;  %v11359_v38 = vld [vmem:[#allocation4 + $0x40c] sm:$0xf]  ;;  %v10809_v62 = vld [vmem:[#allocation4 + $0x7d8] sm:$0xf0] }
 0x688   :  { %v6208_v16 = vpop.f32.mrf.mxu0  ;;  %v10332_v17 = vor.u32 %v11359_v38, %v10329_v51 }
 0x689   :  { %v6167_v23 = vpop.f32.mrf.mxu3  ;;  %v6209_v48 = vadd.f32 %v6208_v16, %v6165_v45  ;;  %v6252_v42 = vpop.f32.mrf.mxu1  ;;  %6540 = vmatpush.bf16.msrb.mxu0 %v10348_v59  ;;  %v10812_v59 = vor.u32 %v11479_v10, %v10809_v62  ;;  %v11443_v62 = vld [vmem:[#allocation4 + $0x6ac] sm:$0xf] }
 0x68a   :  { %v6168_v35 = vadd.f32 %v6167_v23, %v6124_v60  ;;  %6584 = vmatpush.bf16.msrb.mxu1 %v10476_v54  ;;  %v10457_v60 = vld [vmem:[#allocation4 + $0x518] sm:$0xf0] }
 0x68b   :  { %v14653_v46 = vadd.f32 %v6252_v42, %v6209_v48  ;;  %v10460_v61 = vor.u32 %v11391_v41, %v10457_v60  ;;  %v11447_v42 = vld [vmem:[#allocation4 + $0x6cc] sm:$0xf]  ;;  %6667 = vmatpush.bf16.msra.mxu3 %v10812_v59  ;;  %v10665_v59 = vld [vmem:[#allocation4 + $0x6b8] sm:$0xf0] }
 0x68d   :  { %6541 = vmatpush.bf16.msrb.mxu0 %v10332_v17 }
 0x68e   :  { %v6125_v52 = vpop.f32.mrf.mxu2  ;;  %6585 = vmatpush.bf16.msrb.mxu1 %v10460_v61 }
 0x68f   :  { %v6126_v32 = vadd.f32 %v6125_v52, %v14577_v57  ;;  %v10684_v57 = vor.u32 %v11447_v42, %v10681_v20 }
 0x690   :  { %v6211_v23 = vpop.f32.mrf.mxu0 }
 0x691   :  { %v6169_v45 = vpop.f32.mrf.mxu3  ;;  %v6212_v16 = vadd.f32 %v6211_v23, %v6168_v35  ;;  %v6255_v28 = vpop.f32.mrf.mxu1  ;;  %6623 = vmatpush.bf16.msra.mxu2 %v10684_v57 }
 0x692   :  { %v6170_v39 = vadd.f32 %v6169_v45, %v6126_v32 }
 0x693   :  { %v14656_v48 = vadd.f32 %v6255_v28, %v6212_v16  ;;  %6308 = vmatmul.bf16.gmra.mxu2 %v14236_v26  ;;  %6391 = vmatmul.bf16.gmra.mxu0 %v13790_v50 }
 0x694   :  { %6435 = vmatmul.bf16.gmra.mxu1 %v13796_v36 }
 0x696   :  { %6352 = vmatmul.bf16.gmra.mxu3 %v14242_v19  ;;  %v6128_v35 = vpop.f32.mrf.mxu2 }
 0x697   :  { %v6129_v9 = vadd.f32 %v6128_v35, %v14584_v0  ;;  %v16633_v0 = vld [vmem:[#allocation16_spill] sm:$0xff]  ;;  %v11475_v35 = vld [vmem:[#allocation4 + $0x7ac] sm:$0xf] }
 0x698   :  { %v6213_v52 = vpop.f32.mrf.mxu0 }
 0x699   :  { %v6172_v54 = vpop.f32.mrf.mxu3  ;;  %v6214_v51 = vadd.f32 %v6213_v52, %v6170_v39  ;;  %v6257_v50 = vpop.f32.mrf.mxu1 }
 0x69a   :  { %v6173_v38 = vadd.f32 %v6172_v54, %v6129_v9  ;;  %v10668_v9 = vor.u32 %v11443_v62, %v10665_v59  ;;  %v10793_v54 = vld [vmem:[#allocation4 + $0x7b8] sm:$0xf0] }
 0x69b   :  { %v14663_v41 = vadd.f32 %v6257_v50, %v6214_v51  ;;  %v10649_v51 = vld [vmem:[#allocation4 + $0x698] sm:$0xf0] }
 0x69c   :  { %6624 = vmatpush.bf16.msra.mxu2 %v10668_v9  ;;  %v11936_v9 = vld [vmem:[%s16537_s28] sm:$0xf] }
 0x69e   :  { %v6130_v32 = vpop.f32.mrf.mxu2 }
 0x69f   :  { %v6131_v45 = vadd.f32 %v6130_v32, %v14595_v8 }
 0x6a0   :  { %v6216_v17 = vpop.f32.mrf.mxu0 }
 0x6a1   :  { %v6174_v36 = vpop.f32.mrf.mxu3  ;;  %v6217_v23 = vadd.f32 %v6216_v17, %v6173_v38  ;;  %v6260_v61 = vpop.f32.mrf.mxu1 }
 0x6a2   :  { %v6175_v60 = vadd.f32 %v6174_v36, %v6131_v45 }
 0x6a3   :  { %v14666_v16 = vadd.f32 %v6260_v61, %v6217_v23  ;;  %6396 = vmatmul.bf16.gmra.mxu0 %v13820_v53  ;;  %6454 = vmatmul.bf16.vlgmr.msrb.gmra.mxu2 %v13813_v5  ;;  %v10796_v5 = vor.u32 %v11475_v35, %v10793_v54  ;;  %v16634_v23 = vld [vmem:[#allocation21_spill] sm:$0xff]  ;;  %v14686_v54 = vperm.slane %v11936_v9, 2 }
 0x6a4   :  { %6440 = vmatmul.bf16.gmra.mxu1 %v13830_v1  ;;  %v16635_v61 = vld [vmem:[#allocation17_spill] sm:$0xff] }
 0x6a5   :  { %6668 = vmatpush.bf16.msra.mxu3 %v10796_v5 }
 0x6a6   :  { %6498 = vmatmul.bf16.vlgmr.msrb.gmra.mxu3 %v16633_v0  ;;  %v6133_v39 = vpop.f32.mrf.mxu2  ;;  %v16636_v0 = vld [vmem:[#allocation134_spill] sm:$0xff] }
 0x6a7   :  { %v6134_v28 = vadd.f32 %v6133_v39, %v14602_v21  ;;  %v11439_v21 = vld [vmem:[#allocation4 + $0x68c] sm:$0xf]  ;;  %v16637_v39 = vld [vmem:[#allocation133_spill] sm:$0xff] }
 0x6a8   :  { %v6218_v8 = vpop.f32.mrf.mxu0  ;;  %v10652_v32 = vor.u32 %v11439_v21, %v10649_v51 }
 0x6a9   :  { %v6177_v42 = vpop.f32.mrf.mxu3  ;;  %v6219_v57 = vadd.f32 %v6218_v8, %v6175_v60  ;;  %v6262_v10 = vpop.f32.mrf.mxu1 }
 0x6aa   :  { %v6178_v20 = vadd.f32 %v6177_v42, %v6134_v28  ;;  %6625 = vmatpush.bf16.msra.mxu2 %v10652_v32  ;;  %v10777_v28 = vld [vmem:[#allocation4 + $0x798] sm:$0xf0] }
 0x6ab   :  { %v14673_v53 = vadd.f32 %v6262_v10, %v6219_v57  ;;  %v10633_v32 = vld [vmem:[#allocation4 + $0x678] sm:$0xf0] }
 0x6ae   :  { %v6135_v1 = vpop.f32.mrf.mxu2 }
 0x6af   :  { %v6136_v52 = vadd.f32 %v6135_v1, %v14613_v44  ;;  %v11471_v44 = vld [vmem:[#allocation4 + $0x78c] sm:$0xf] }
 0x6b0   :  { %v6221_v50 = vpop.f32.mrf.mxu0  ;;  %v10780_v8 = vor.u32 %v11471_v44, %v10777_v28 }
 0x6b1   :  { %v6179_v38 = vpop.f32.mrf.mxu3  ;;  %v6222_v36 = vadd.f32 %v6221_v50, %v6178_v20  ;;  %v6265_v17 = vpop.f32.mrf.mxu1  ;;  %v11435_v50 = vld [vmem:[#allocation4 + $0x66c] sm:$0xf] }
 0x6b2   :  { %v6180_v45 = vadd.f32 %v6179_v38, %v6136_v52  ;;  %6669 = vmatpush.bf16.msra.mxu3 %v10780_v8 }
 0x6b3   :  { %v14676_v60 = vadd.f32 %v6265_v17, %v6222_v36  ;;  %6459 = vmatmul.bf16.gmra.mxu2 %v16634_v23  ;;  %6542 = vmatmul.bf16.vlgmr.msrb.gmra.mxu0 %v16635_v61  ;;  %v10636_v36 = vor.u32 %v11435_v50, %v10633_v32  ;;  %v11467_v17 = vld [vmem:[#allocation4 + $0x76c] sm:$0xf]  ;;  %v10761_v23 = vld [vmem:[#allocation4 + $0x778] sm:$0xf0] }
 0x6b4   :  { %6586 = vmatmul.bf16.vlgmr.msrb.gmra.mxu1 %v16637_v39  ;;  %v10764_v28 = vor.u32 %v11467_v17, %v10761_v23  ;;  %v16644_v32 = vld [vmem:[#allocation140_spill] sm:$0xff] }
 0x6b5   :  { %6626 = vmatpush.bf16.msra.mxu2 %v10636_v36 }
 0x6b6   :  { %6503 = vmatmul.bf16.gmra.mxu3 %v16636_v0  ;;  %v6279_v42 = vpop.f32.mrf.mxu2  ;;  %v16638_v0 = vld [vmem:[#allocation18_spill] sm:$0xff] }
 0x6b7   :  { %v6280_v57 = vadd.f32 %v6279_v42, %v14616_v56  ;;  %v11937_v56 = vld [vmem:[%s16538_s26] sm:$0xf]  ;;  %6670 = vmatpush.bf16.msra.mxu3 %v10764_v28  ;;  %v10617_v28 = vld [vmem:[#allocation4 + $0x658] sm:$0xf0] }
 0x6b8   :  { %v6223_v20 = vpop.f32.mrf.mxu0  ;;  %v14694_v38 = vperm.slane %v11937_v56, 2 }
 0x6b9   :  { %v6323_v10 = vpop.f32.mrf.mxu3  ;;  %v6224_v59 = vadd.f32 %v6223_v20, %v6180_v45  ;;  %v6267_v35 = vpop.f32.mrf.mxu1  ;;  %v16641_v20 = vld [vmem:[#allocation31_spill] sm:$0xff] }
 0x6ba   :  { %v6324_v62 = vadd.f32 %v6323_v10, %v6280_v57  ;;  %v16640_v10 = vld [vmem:[#allocation22_spill] sm:$0xff] }
 0x6bb   :  { %v14688_v5 = vadd.f32 %v6267_v35, %v6224_v59 }
 0x6bc   :  { %v6722_v52 = vmul.f32 %v14686_v54, %v6324_v62  ;;  %v16642_v62 = vld [vmem:[#allocation139_spill] sm:$0xff] }
 0x6be   :  { %v6281_v1 = vpop.f32.mrf.mxu2  ;;  %v6788_v42 = vadd.f32 %v14694_v38, %v6722_v52 }
 0x6bf   :  { %v6282_v21 = vadd.f32 %v6281_v1, %v14623_v37  ;;  %v16639_v37 = vld [vmem:[#allocation27_spill] sm:$0xff] }
 0x6c0   :  { %v6367_v45 = vpop.f32.mrf.mxu0  ;;  %v6844_v9 = vmax.f32 %v6788_v42, 0.0 }
 0x6c1   :  { %v6325_v51 = vpop.f32.mrf.mxu3  ;;  %v6368_v39 = vadd.f32 %v6367_v45, %v16638_v0  ;;  %v6411_v44 = vpop.f32.mrf.mxu1 }
 0x6c2   :  { %v6326_v61 = vadd.f32 %v6325_v51, %v6282_v21 }
 0x6c3   :  { %v14700_v57 = vadd.f32 %v6411_v44, %v6368_v39  ;;  %6464 = vmatmul.bf16.gmra.mxu2 %v16639_v37  ;;  %6547 = vmatmul.bf16.gmra.mxu0 %v16640_v10  ;;  %v11431_v44 = vld [vmem:[#allocation4 + $0x64c] sm:$0xf]  ;;  %v10745_v37 = vld [vmem:[#allocation4 + $0x758] sm:$0xf0] }
 0x6c4   :  { %v6726_v8 = vmul.f32 %v14686_v54, %v6326_v61  ;;  %6591 = vmatmul.bf16.gmra.mxu1 %v16642_v62 }
 0x6c6   :  { %6508 = vmatmul.bf16.gmra.mxu3 %v16641_v20  ;;  %v6792_v59 = vadd.f32 %v14694_v38, %v6726_v8  ;;  %v6284_v35 = vpop.f32.mrf.mxu2  ;;  %v11463_v8 = vld [vmem:[#allocation4 + $0x74c] sm:$0xf]  ;;  %v16645_v20 = vld [vmem:[#allocation28_spill] sm:$0xff] }
 0x6c7   :  { %v6285_v52 = vadd.f32 %v6284_v35, %v14626_v13  ;;  %v10620_v13 = vor.u32 %v11431_v44, %v10617_v28  ;;  %v10748_v35 = vor.u32 %v11463_v8, %v10745_v37  ;;  %v16650_v28 = vld [vmem:[#allocation144_spill] sm:$0xff] }
 0x6c8   :  { %v6848_v1 = vmax.f32 %v6792_v59, 0.0  ;;  %v6369_v21 = vpop.f32.mrf.mxu0 }
 0x6c9   :  { %v6328_v56 = vpop.f32.mrf.mxu3  ;;  %v6370_v45 = vadd.f32 %v6369_v21, %v16644_v32  ;;  %v6413_v36 = vpop.f32.mrf.mxu1  ;;  %6627 = vmatpush.bf16.msra.mxu2 %v10620_v13  ;;  %v16648_v21 = vld [vmem:[#allocation40_spill] sm:$0xff]  ;;  %6671 = vmatpush.bf16.msra.mxu3 %v10748_v35  ;;  %v11427_v35 = vld [vmem:[#allocation4 + $0x62c] sm:$0xf] }
 0x6ca   :  { %v14708_v51 = vpack.c.bf16 %v6848_v1, %v6844_v9  ;;  %v6329_v50 = vadd.f32 %v6328_v56, %v6285_v52  ;;  %v16647_v56 = vld [vmem:[#allocation32_spill] sm:$0xff] }
 0x6cb   :  { %v14711_v17 = vadd.f32 %v6413_v36, %v6370_v45 }
 0x6cc   :  { %16643 = vst [vmem:[#allocation70_spill] sm:$0xff] %v14708_v51  ;;  %v6730_v61 = vmul.f32 %v14686_v54, %v6329_v50  ;;  %v16649_v50 = vld [vmem:[#allocation143_spill] sm:$0xff] }
 0x6ce   :  { %v6286_v23 = vpop.f32.mrf.mxu2  ;;  %v6796_v9 = vadd.f32 %v14694_v38, %v6730_v61 }
 0x6cf   :  { %v6287_v0 = vadd.f32 %v6286_v23, %v14633_v27  ;;  %v16646_v27 = vld [vmem:[#allocation37_spill] sm:$0xff] }
 0x6d0   :  { %v6372_v42 = vpop.f32.mrf.mxu0  ;;  %v6852_v36 = vmax.f32 %v6796_v9, 0.0  ;;  %v10601_v9 = vld [vmem:[#allocation4 + $0x638] sm:$0xf0] }
 0x6d1   :  { %v6330_v39 = vpop.f32.mrf.mxu3  ;;  %v6373_v62 = vadd.f32 %v6372_v42, %v16645_v20  ;;  %v6416_v59 = vpop.f32.mrf.mxu1 }
 0x6d2   :  { %v6331_v10 = vadd.f32 %v6330_v39, %v6287_v0 }
 0x6d3   :  { %v14718_v52 = vadd.f32 %v6416_v59, %v6373_v62  ;;  %6469 = vmatmul.bf16.gmra.mxu2 %v16646_v27  ;;  %6552 = vmatmul.bf16.gmra.mxu0 %v16647_v56  ;;  %v11459_v27 = vld [vmem:[#allocation4 + $0x72c] sm:$0xf]  ;;  %v10729_v56 = vld [vmem:[#allocation4 + $0x738] sm:$0xf0] }
 0x6d4   :  { %v6734_v1 = vmul.f32 %v14686_v54, %v6331_v10  ;;  %6596 = vmatmul.bf16.gmra.mxu1 %v16649_v50  ;;  %v16652_v50 = vld [vmem:[#allocation38_spill] sm:$0xff] }
 0x6d6   :  { %6513 = vmatmul.bf16.gmra.mxu3 %v16648_v21  ;;  %v6800_v32 = vadd.f32 %v14694_v38, %v6734_v1  ;;  %v6289_v45 = vpop.f32.mrf.mxu2  ;;  %v10604_v1 = vor.u32 %v11427_v35, %v10601_v9  ;;  %v11423_v9 = vld [vmem:[#allocation4 + $0x60c] sm:$0xf] }
 0x6d7   :  { %v6290_v23 = vadd.f32 %v6289_v45, %v14636_v30 }
 0x6d8   :  { %v6856_v0 = vmax.f32 %v6800_v32, 0.0  ;;  %v6374_v39 = vpop.f32.mrf.mxu0  ;;  %6628 = vmatpush.bf16.msra.mxu2 %v10604_v1 }
 0x6d9   :  { %v6333_v61 = vpop.f32.mrf.mxu3  ;;  %v6375_v42 = vadd.f32 %v6374_v39, %v16650_v28  ;;  %v6418_v13 = vpop.f32.mrf.mxu1  ;;  %v10951_v39 = vld [vmem:[#allocation7 + $0xf0] sm:$0xf]  ;;  %v16653_v28 = vld [vmem:[#allocation41_spill] sm:$0xff] }
 0x6da   :  { %v6334_v44 = vadd.f32 %v6333_v61, %v6290_v23  ;;  %v14727_v8 = vpack.c.bf16 %v6856_v0, %v6852_v36  ;;  %v10732_v36 = vor.u32 %v11459_v27, %v10729_v56  ;;  %v10887_v61 = vld [vmem:[#allocation7 + $0x70] sm:$0xf]  ;;  %v11757_v0 = vld [vmem:[#allocation7 + $0x74] sm:$0xf0]  ;;  %v10879_v56 = vld [vmem:[#allocation7 + $0x60] sm:$0xf] }
 0x6db   :  { %v14729_v37 = vadd.f32 %v6418_v13, %v6375_v42  ;;  %v16654_v42 = vld [vmem:[#allocation149_spill] sm:$0xff]  ;;  %v10888_v13 = vor.u32 %v11757_v0, %v10887_v61 }
 0x6dc   :  { %16651 = vst [vmem:[#allocation72_spill] sm:$0xff] %v14727_v8  ;;  %v6738_v10 = vmul.f32 %v14686_v54, %v6334_v44  ;;  %6672 = vmatpush.bf16.msra.mxu3 %v10732_v36 }
 0x6dd   :  { %7310 = vmatpush.bf16.msra.mxu0 %v10888_v13  ;;  %v16657_v13 = vld [vmem:[#allocation19_spill] sm:$0xff] }
 0x6de   :  { %v6291_v20 = vpop.f32.mrf.mxu2  ;;  %v6804_v23 = vadd.f32 %v14694_v38, %v6738_v10 }
 0x6df   :  { %v6292_v62 = vadd.f32 %v6291_v20, %v14643_v6  ;;  %v11773_v20 = vld [vmem:[#allocation7 + $0xf4] sm:$0xf0] }
 0x6e0   :  { %v6377_v30 = vpop.f32.mrf.mxu0  ;;  %v10952_v35 = vor.u32 %v11773_v20, %v10951_v39 }
 0x6e1   :  { %v6335_v59 = vpop.f32.mrf.mxu3  ;;  %v6378_v32 = vadd.f32 %v6377_v30, %v16652_v50  ;;  %v6421_v45 = vpop.f32.mrf.mxu1  ;;  %v10585_v30 = vld [vmem:[#allocation4 + $0x618] sm:$0xf0]  ;;  %v10943_v50 = vld [vmem:[#allocation7 + $0xe0] sm:$0xf] }
 0x6e2   :  { %v6336_v21 = vadd.f32 %v6335_v59, %v6292_v62  ;;  %v16655_v62 = vld [vmem:[#allocation150_spill] sm:$0xff]  ;;  %v16656_v59 = vld [vmem:[#allocation49_spill] sm:$0xff]  ;;  %7354 = vmatpush.bf16.msra.mxu1 %v10952_v35  ;;  %v10588_v27 = vor.u32 %v11423_v9, %v10585_v30  ;;  %v10871_v35 = vld [vmem:[#allocation7 + $0x50] sm:$0xf] }
 0x6e3   :  { %v14736_v44 = vadd.f32 %v6421_v45, %v6378_v32  ;;  %6474 = vmatmul.bf16.gmra.mxu2 %v16653_v28  ;;  %6557 = vmatmul.bf16.gmra.mxu0 %v16654_v42  ;;  %v6860_v32 = vmax.f32 %v6804_v23, 0.0  ;;  %v11771_v28 = vld [vmem:[#allocation7 + $0xe4] sm:$0xf0]  ;;  %v11753_v9 = vld [vmem:[#allocation7 + $0x54] sm:$0xf0] }
 0x6e4   :  { %v6742_v6 = vmul.f32 %v14686_v54, %v6336_v21  ;;  %6601 = vmatmul.bf16.gmra.mxu1 %v16656_v59  ;;  %v11755_v21 = vld [vmem:[#allocation7 + $0x64] sm:$0xf0]  ;;  %6629 = vmatpush.bf16.msra.mxu2 %v10588_v27  ;;  %v10935_v23 = vld [vmem:[#allocation7 + $0xd0] sm:$0xf] }
 0x6e5   :  { %v10880_v0 = vor.u32 %v11755_v21, %v10879_v56  ;;  %v11455_v21 = vld [vmem:[#allocation4 + $0x70c] sm:$0xf] }
 0x6e6   :  { %6518 = vmatmul.bf16.gmra.mxu3 %v16655_v62  ;;  %v6808_v10 = vadd.f32 %v14694_v38, %v6742_v6  ;;  %v6294_v1 = vpop.f32.mrf.mxu2  ;;  %v10944_v6 = vor.u32 %v11771_v28, %v10943_v50  ;;  %v10713_v50 = vld [vmem:[#allocation4 + $0x718] sm:$0xf0]  ;;  %v11751_v28 = vld [vmem:[#allocation7 + $0x44] sm:$0xf0] }
 0x6e7   :  { %v6295_v45 = vadd.f32 %v6294_v1, %v14646_v14  ;;  %7311 = vmatpush.bf16.msra.mxu0 %v10880_v0  ;;  %v10872_v14 = vor.u32 %v11753_v9, %v10871_v35  ;;  %v11769_v1 = vld [vmem:[#allocation7 + $0xd4] sm:$0xf0]  ;;  %v10716_v0 = vor.u32 %v11455_v21, %v10713_v50  ;;  %v16660_v21 = vld [vmem:[#allocation23_spill] sm:$0xff] }
 0x6e8   :  { %v6864_v42 = vmax.f32 %v6808_v10, 0.0  ;;  %v6379_v39 = vpop.f32.mrf.mxu0  ;;  %7355 = vmatpush.bf16.msra.mxu1 %v10944_v6  ;;  %v10936_v56 = vor.u32 %v11769_v1, %v10935_v23  ;;  %v11749_v1 = vld [vmem:[#allocation7 + $0x34] sm:$0xf0] }
 0x6e9   :  { %v6338_v61 = vpop.f32.mrf.mxu3  ;;  %v6380_v20 = vadd.f32 %v6379_v39, %v16657_v13  ;;  %v6423_v62 = vpop.f32.mrf.mxu1  ;;  %v11767_v13 = vld [vmem:[#allocation7 + $0xc4] sm:$0xf0]  ;;  %6673 = vmatpush.bf16.msra.mxu3 %v10716_v0  ;;  %v16661_v50 = vld [vmem:[#allocation20_spill] sm:$0xff] }
 0x6ea   :  { %v6339_v36 = vadd.f32 %v6338_v61, %v6295_v45  ;;  %v14745_v59 = vpack.c.bf16 %v6864_v42, %v6860_v32  ;;  %v10863_v45 = vld [vmem:[#allocation7 + $0x40] sm:$0xf]  ;;  %v16663_v0 = vld [vmem:[#allocation24_spill] sm:$0xff] }
 0x6eb   :  { %v14747_v30 = vadd.f32 %v6423_v62, %v6380_v20  ;;  %7312 = vmatpush.bf16.msra.mxu0 %v10872_v14  ;;  %v10927_v42 = vld [vmem:[#allocation7 + $0xc0] sm:$0xf]  ;;  %v10864_v6 = vor.u32 %v11751_v28, %v10863_v45  ;;  %v16659_v62 = vld [vmem:[#allocation52_spill] sm:$0xff]  ;;  %v10855_v14 = vld [vmem:[#allocation7 + $0x30] sm:$0xf] }
 0x6ec   :  { %16658 = vst [vmem:[#allocation78_spill] sm:$0xff] %v14745_v59  ;;  %v6746_v10 = vmul.f32 %v14686_v54, %v6339_v36  ;;  %7356 = vmatpush.bf16.msra.mxu1 %v10936_v56  ;;  %v10928_v36 = vor.u32 %v11767_v13, %v10927_v42  ;;  %v10919_v56 = vld [vmem:[#allocation7 + $0xb0] sm:$0xf]  ;;  %v10856_v45 = vor.u32 %v11749_v1, %v10855_v14  ;;  %v10911_v13 = vld [vmem:[#allocation7 + $0xa0] sm:$0xf] }
 0x6ed   :  { %v11763_v14 = vld [vmem:[#allocation7 + $0xa4] sm:$0xf0] }
 0x6ee   :  { %v6296_v27 = vpop.f32.mrf.mxu2  ;;  %v6812_v23 = vadd.f32 %v14694_v38, %v6746_v10 }
 0x6ef   :  { %v6297_v32 = vadd.f32 %v6296_v27, %v14653_v46  ;;  %7313 = vmatpush.bf16.msra.mxu0 %v10864_v6  ;;  %v11747_v6 = vld [vmem:[#allocation7 + $0x24] sm:$0xf0] }
 0x6f0   :  { %v6382_v39 = vpop.f32.mrf.mxu0  ;;  %7357 = vmatpush.bf16.msra.mxu1 %v10928_v36  ;;  %v10912_v36 = vor.u32 %v11763_v14, %v10911_v13  ;;  %v11759_v14 = vld [vmem:[#allocation7 + $0x84] sm:$0xf0] }
 0x6f1   :  { %v6340_v61 = vpop.f32.mrf.mxu3  ;;  %v6383_v35 = vadd.f32 %v6382_v39, %v16659_v62  ;;  %v6426_v9 = vpop.f32.mrf.mxu1  ;;  %v10847_v39 = vld [vmem:[#allocation7 + $0x20] sm:$0xf] }
 0x6f2   :  { %v6341_v20 = vadd.f32 %v6340_v61, %v6297_v32  ;;  %v11765_v32 = vld [vmem:[#allocation7 + $0xb4] sm:$0xf0]  ;;  %v16662_v61 = vld [vmem:[#allocation29_spill] sm:$0xff] }
 0x6f3   :  { %v14754_v27 = vadd.f32 %v6426_v9, %v6383_v35  ;;  %6479 = vmatmul.bf16.gmra.mxu2 %v16660_v21  ;;  %6562 = vmatmul.bf16.gmra.mxu0 %v16661_v50  ;;  %v10920_v28 = vor.u32 %v11765_v32, %v10919_v56  ;;  %v10848_v9 = vor.u32 %v11747_v6, %v10847_v39  ;;  %v10903_v32 = vld [vmem:[#allocation7 + $0x90] sm:$0xf]  ;;  %v10831_v6 = vld [vmem:[#allocation7] sm:$0xf] }
 0x6f4   :  { %v6750_v46 = vmul.f32 %v14686_v54, %v6341_v20  ;;  %6606 = vmatmul.bf16.gmra.mxu1 %v16663_v0  ;;  %7314 = vmatpush.bf16.msra.mxu0 %v10856_v45  ;;  %v6868_v20 = vmax.f32 %v6812_v23, 0.0  ;;  %v11745_v45 = vld [vmem:[#allocation7 + $0x14] sm:$0xf0] }
 0x6f5   :  { %7358 = vmatpush.bf16.msra.mxu1 %v10920_v28 }
 0x6f6   :  { %6523 = vmatmul.bf16.gmra.mxu3 %v16662_v61  ;;  %v6816_v10 = vadd.f32 %v14694_v38, %v6750_v46  ;;  %v6299_v42 = vpop.f32.mrf.mxu2  ;;  %v16664_v61 = vld [vmem:[#allocation33_spill] sm:$0xff]  ;;  %v10839_v46 = vld [vmem:[#allocation7 + $0x10] sm:$0xf] }
 0x6f7   :  { %v6300_v62 = vadd.f32 %v6299_v42, %v14656_v48  ;;  %v10840_v48 = vor.u32 %v11745_v45, %v10839_v46  ;;  %v11761_v42 = vld [vmem:[#allocation7 + $0x94] sm:$0xf0] }
 0x6f8   :  { %v6872_v1 = vmax.f32 %v6816_v10, 0.0  ;;  %v6384_v21 = vpop.f32.mrf.mxu0  ;;  %7315 = vmatpush.bf16.msra.mxu0 %v10848_v9  ;;  %v10904_v39 = vor.u32 %v11761_v42, %v10903_v32 }
 0x6f9   :  { %v6343_v35 = vpop.f32.mrf.mxu3  ;;  %v6385_v0 = vadd.f32 %v6384_v21, %v16664_v61  ;;  %v6428_v59 = vpop.f32.mrf.mxu1  ;;  %7359 = vmatpush.bf16.msra.mxu1 %v10912_v36 }
 0x6fa   :  { %v6344_v50 = vadd.f32 %v6343_v35, %v6300_v62  ;;  %v14763_v56 = vpack.c.bf16 %v6872_v1, %v6868_v20  ;;  %v11743_v62 = vld [vmem:[#allocation7 + $0x4] sm:$0xf0]  ;;  %v10895_v35 = vld [vmem:[#allocation7 + $0x80] sm:$0xf] }
 0x6fb   :  { %v14765_v23 = vadd.f32 %v6428_v59, %v6385_v0  ;;  %v10832_v9 = vor.u32 %v11743_v62, %v10831_v6  ;;  %v16665_v59 = vld [vmem:[#allocation44_spill] sm:$0xff]  ;;  %v10896_v36 = vor.u32 %v11759_v14, %v10895_v35  ;;  %v16666_v35 = vld [vmem:[#allocation30_spill] sm:$0xff] }
 0x6fc   :  { %7316 = vmatpush.bf16.msra.mxu0 %v10840_v48  ;;  %v6754_v28 = vmul.f32 %v14686_v54, %v6344_v50 }
 0x6fd   :  { %7360 = vmatpush.bf16.msra.mxu1 %v10904_v39 }
 0x6fe   :  { %v6301_v10 = vpop.f32.mrf.mxu2  ;;  %v6820_v46 = vadd.f32 %v14694_v38, %v6754_v28 }
 0x6ff   :  { %v6302_v13 = vadd.f32 %v6301_v10, %v14663_v41 }
 0x700   :  { %v6387_v1 = vpop.f32.mrf.mxu0  ;;  %7317 = vmatpush.bf16.msra.mxu0 %v10832_v9  ;;  %v6876_v48 = vmax.f32 %v6820_v46, 0.0 }
 0x701   :  { %v6345_v20 = vpop.f32.mrf.mxu3  ;;  %v6388_v61 = vadd.f32 %v6387_v1, %v16665_v59  ;;  %v6431_v0 = vpop.f32.mrf.mxu1  ;;  %7361 = vmatpush.bf16.msra.mxu1 %v10896_v36 }
 0x702   :  { %v6346_v21 = vadd.f32 %v6345_v20, %v6302_v13 }
 0x703   :  { %v14772_v32 = vadd.f32 %v6431_v0, %v6388_v61  ;;  %6484 = vmatmul.bf16.gmra.mxu2 %v16562_v55  ;;  %6567 = vmatmul.bf16.gmra.mxu0 %v16563_v49 }
 0x704   :  { %v6758_v45 = vmul.f32 %v14686_v54, %v6346_v21  ;;  %6611 = vmatmul.bf16.gmra.mxu1 %v16565_v12 }
 0x706   :  { %6528 = vmatmul.bf16.gmra.mxu3 %v16564_v2  ;;  %v6824_v41 = vadd.f32 %v14694_v38, %v6758_v45  ;;  %v6304_v50 = vpop.f32.mrf.mxu2 }
 0x707   :  { %v6305_v42 = vadd.f32 %v6304_v50, %v14666_v16  ;;  %v16667_v16 = vld [vmem:[#allocation39_spill] sm:$0xff] }
 0x708   :  { %v6880_v10 = vmax.f32 %v6824_v41, 0.0  ;;  %v6389_v6 = vpop.f32.mrf.mxu0 }
 0x709   :  { %v6348_v39 = vpop.f32.mrf.mxu3  ;;  %v6390_v28 = vadd.f32 %v6389_v6, %v16666_v35  ;;  %v6433_v55 = vpop.f32.mrf.mxu1  ;;  %v11789_v35 = vld [vmem:[#allocation7 + $0x174] sm:$0xf0] }
 0x70a   :  { %v6349_v62 = vadd.f32 %v6348_v39, %v6305_v42  ;;  %v14781_v13 = vpack.c.bf16 %v6880_v10, %v6876_v48  ;;  %v16668_v10 = vld [vmem:[#allocation42_spill] sm:$0xff] }
 0x70b   :  { %v14783_v49 = vadd.f32 %v6433_v55, %v6390_v28  ;;  %v11805_v55 = vld [vmem:[#allocation7 + $0x1f4] sm:$0xf0] }
 0x70c   :  { %v6762_v12 = vmul.f32 %v14686_v54, %v6349_v62 }
 0x70e   :  { %v6306_v2 = vpop.f32.mrf.mxu2  ;;  %v6828_v61 = vadd.f32 %v14694_v38, %v6762_v12 }
 0x70f   :  { %v6307_v20 = vadd.f32 %v6306_v2, %v14673_v53 }
 0x710   :  { %v6392_v14 = vpop.f32.mrf.mxu0  ;;  %v6884_v45 = vmax.f32 %v6828_v61, 0.0 }
 0x711   :  { %v6350_v9 = vpop.f32.mrf.mxu3  ;;  %v6393_v21 = vadd.f32 %v6392_v14, %v16667_v16  ;;  %v6436_v59 = vpop.f32.mrf.mxu1  ;;  %v16670_v16 = vld [vmem:[#allocation56_spill] sm:$0xff] }
 0x712   :  { %v6351_v1 = vadd.f32 %v6350_v9, %v6307_v20 }
 0x713   :  { %v14790_v36 = vadd.f32 %v6436_v59, %v6393_v21  ;;  %6572 = vmatmul.bf16.gmra.mxu0 %v14090_v24  ;;  %6630 = vmatmul.bf16.vlgmr.msra.gmra.mxu2 %v14083_v58 }
 0x714   :  { %v6766_v0 = vmul.f32 %v14686_v54, %v6351_v1  ;;  %6616 = vmatmul.bf16.gmra.mxu1 %v16569_v18  ;;  %v11015_v18 = vld [vmem:[#allocation7 + $0x170] sm:$0xf] }
 0x715   :  { %v11016_v28 = vor.u32 %v11789_v35, %v11015_v18  ;;  %v11007_v18 = vld [vmem:[#allocation7 + $0x160] sm:$0xf]  ;;  %v11787_v35 = vld [vmem:[#allocation7 + $0x164] sm:$0xf0] }
 0x716   :  { %6674 = vmatmul.bf16.vlgmr.msra.gmra.mxu3 %v16570_v3  ;;  %v6832_v53 = vadd.f32 %v14694_v38, %v6766_v0  ;;  %v6309_v46 = vpop.f32.mrf.mxu2  ;;  %v11079_v3 = vld [vmem:[#allocation7 + $0x1f0] sm:$0xf] }
 0x717   :  { %v6310_v41 = vadd.f32 %v6309_v46, %v14676_v60  ;;  %v11080_v2 = vor.u32 %v11805_v55, %v11079_v3  ;;  %7398 = vmatpush.bf16.msrb.mxu2 %v11016_v28  ;;  %v16671_v46 = vld [vmem:[#allocation67_spill] sm:$0xff]  ;;  %v11803_v55 = vld [vmem:[#allocation7 + $0x1e4] sm:$0xf0] }
 0x718   :  { %v6888_v48 = vmax.f32 %v6832_v53, 0.0  ;;  %v6394_v42 = vpop.f32.mrf.mxu0 }
 0x719   :  { %v6353_v50 = vpop.f32.mrf.mxu3  ;;  %v6395_v6 = vadd.f32 %v6394_v42, %v16668_v10  ;;  %v6438_v62 = vpop.f32.mrf.mxu1  ;;  %7442 = vmatpush.bf16.msrb.mxu3 %v11080_v2 }
 0x71a   :  { %v6354_v39 = vadd.f32 %v6353_v50, %v6310_v41  ;;  %v14799_v24 = vpack.c.bf16 %v6888_v48, %v6884_v45 }
 0x71b   :  { %v14801_v58 = vadd.f32 %v6438_v62, %v6395_v6  ;;  %v16673_v6 = vld [vmem:[#allocation59_spill] sm:$0xff] }
 0x71c   :  { %16669 = vst [vmem:[#allocation74_spill] sm:$0xff] %v14799_v24  ;;  %v6770_v60 = vmul.f32 %v14686_v54, %v6354_v39  ;;  %v10945_v24 = vld [vmem:[#allocation7 + $0xe8] sm:$0xf0] }
 0x71e   :  { %v6311_v12 = vpop.f32.mrf.mxu2  ;;  %v6836_v61 = vadd.f32 %v14694_v38, %v6770_v60 }
 0x71f   :  { %v6312_v20 = vadd.f32 %v6311_v12, %v14688_v5  ;;  %v16672_v5 = vld [vmem:[#allocation66_spill] sm:$0xff] }
 0x720   :  { %v6397_v14 = vpop.f32.mrf.mxu0  ;;  %v6892_v50 = vmax.f32 %v6836_v61, 0.0 }
 0x721   :  { %v6355_v9 = vpop.f32.mrf.mxu3  ;;  %v6398_v21 = vadd.f32 %v6397_v14, %v16670_v16  ;;  %v6441_v59 = vpop.f32.mrf.mxu1  ;;  %v16676_v16 = vld [vmem:[#allocation73_spill] sm:$0xff] }
 0x722   :  { %v6356_v1 = vadd.f32 %v6355_v9, %v6312_v20 }
 0x723   :  { %v14808_v53 = vadd.f32 %v6441_v59, %v6398_v21  ;;  %6635 = vmatmul.bf16.gmra.mxu2 %v14122_v34  ;;  %7318 = vmatmul.bf16.vlgmr.msra.gmra.mxu0 %v16671_v46  ;;  %v10999_v21 = vld [vmem:[#allocation7 + $0x150] sm:$0xf]  ;;  %v11785_v59 = vld [vmem:[#allocation7 + $0x154] sm:$0xf0] }
 0x724   :  { %v6774_v0 = vmul.f32 %v14686_v54, %v6356_v1  ;;  %7362 = vmatmul.bf16.vlgmr.msra.gmra.mxu1 %v16672_v5  ;;  %v16675_v1 = vld [vmem:[#allocation54_spill] sm:$0xff]  ;;  %v11000_v61 = vor.u32 %v11785_v59, %v10999_v21 }
 0x726   :  { %6679 = vmatmul.bf16.gmra.mxu3 %v16620_v4  ;;  %v6840_v45 = vadd.f32 %v14694_v38, %v6774_v0  ;;  %v6455_v41 = vpop.f32.mrf.mxu2  ;;  %v11008_v4 = vor.u32 %v11787_v35, %v11007_v18  ;;  %v11071_v38 = vld [vmem:[#allocation7 + $0x1e0] sm:$0xf]  ;;  %v16678_v35 = vld [vmem:[#allocation68_spill] sm:$0xff] }
 0x727   :  { %v6456_v48 = vadd.f32 %v6455_v41, %v14700_v57  ;;  %v11072_v2 = vor.u32 %v11803_v55, %v11071_v38  ;;  %v16677_v18 = vld [vmem:[#allocation65_spill] sm:$0xff]  ;;  %v11783_v38 = vld [vmem:[#allocation7 + $0x144] sm:$0xf0] }
 0x728   :  { %v6896_v39 = vmax.f32 %v6840_v45, 0.0  ;;  %v6399_v10 = vpop.f32.mrf.mxu0  ;;  %7399 = vmatpush.bf16.msrb.mxu2 %v11008_v4  ;;  %v10991_v4 = vld [vmem:[#allocation7 + $0x140] sm:$0xf] }
 0x729   :  { %v6499_v42 = vpop.f32.mrf.mxu3  ;;  %v6400_v62 = vadd.f32 %v6399_v10, %v16673_v6  ;;  %v6443_v34 = vpop.f32.mrf.mxu1  ;;  %7443 = vmatpush.bf16.msrb.mxu3 %v11072_v2  ;;  %v11055_v55 = vld [vmem:[#allocation7 + $0x1c0] sm:$0xf]  ;;  %v10992_v2 = vor.u32 %v11783_v38, %v10991_v4  ;;  %v11772_v4 = vld [vmem:[#allocation7 + $0xf4] sm:$0xf]  ;;  %v10953_v38 = vld [vmem:[#allocation7 + $0xf8] sm:$0xf0] }
 0x72a   :  { %v14816_v54 = vadd.f32 %v6499_v42, %v6456_v48  ;;  %v14819_v3 = vpack.c.bf16 %v6896_v39, %v6892_v50  ;;  %v11801_v42 = vld [vmem:[#allocation7 + $0x1d4] sm:$0xf0] }
 0x72b   :  { %v14821_v28 = vadd.f32 %v6443_v34, %v6400_v62 }
 0x72c   :  { %16674 = vst [vmem:[#allocation76_spill] sm:$0xff] %v14819_v3  ;;  %7400 = vmatpush.bf16.msrb.mxu2 %v11000_v61  ;;  %v11770_v3 = vld [vmem:[#allocation7 + $0xe4] sm:$0xf] }
 0x72e   :  { %v6457_v57 = vpop.f32.mrf.mxu2 }
 0x72f   :  { %v6458_v12 = vadd.f32 %v6457_v57, %v14711_v17 }
 0x730   :  { %v14824_v20 = vpop.f32.mrf.mxu0  ;;  %7401 = vmatpush.bf16.msrb.mxu2 %v10992_v2 }
 0x731   :  { %v6501_v60 = vpop.f32.mrf.mxu3  ;;  %v14828_v14 = vpop.f32.mrf.mxu1 }
 0x732   :  { %v14826_v9 = vadd.f32 %v6501_v60, %v6458_v12 }
 0x733   :  { %6640 = vmatmul.bf16.gmra.mxu2 %v14148_v40  ;;  %7323 = vmatmul.bf16.gmra.mxu0 %v16675_v1  ;;  %v11063_v40 = vld [vmem:[#allocation7 + $0x1d0] sm:$0xf] }
 0x734   :  { %7367 = vmatmul.bf16.gmra.mxu1 %v16676_v16  ;;  %v11064_v39 = vor.u32 %v11801_v42, %v11063_v40  ;;  %v11781_v42 = vld [vmem:[#allocation7 + $0x134] sm:$0xf0] }
 0x736   :  { %6684 = vmatmul.bf16.gmra.mxu3 %v14154_v22  ;;  %v6460_v0 = vpop.f32.mrf.mxu2 }
 0x737   :  { %v6461_v17 = vadd.f32 %v6460_v0, %v14718_v52  ;;  %7444 = vmatpush.bf16.msrb.mxu3 %v11064_v39  ;;  %v11756_v39 = vld [vmem:[#allocation7 + $0x74] sm:$0xf] }
 0x738   :  { %v14835_v41 = vpop.f32.mrf.mxu0 }
 0x739   :  { %v6504_v45 = vpop.f32.mrf.mxu3  ;;  %v14839_v48 = vpop.f32.mrf.mxu1 }
 0x73a   :  { %v14837_v50 = vadd.f32 %v6504_v45, %v6461_v17 }
 0x73e   :  { %v6462_v22 = vpop.f32.mrf.mxu2 }
 0x73f   :  { %v6463_v10 = vadd.f32 %v6462_v22, %v14729_v37  ;;  %v11799_v37 = vld [vmem:[#allocation7 + $0x1c4] sm:$0xf0] }
 0x740   :  { %v14842_v62 = vpop.f32.mrf.mxu0  ;;  %v11056_v12 = vor.u32 %v11799_v37, %v11055_v55  ;;  %v16679_v22 = vld [vmem:[#allocation62_spill] sm:$0xff]  ;;  %v11797_v55 = vld [vmem:[#allocation7 + $0x1b4] sm:$0xf0]  ;;  %v10956_v37 = vor.u32 %v11772_v4, %v10953_v38  ;;  %v10967_v38 = vld [vmem:[#allocation7 + $0x110] sm:$0xf] }
 0x741   :  { %v6506_v6 = vpop.f32.mrf.mxu3  ;;  %v14846_v52 = vpop.f32.mrf.mxu1 }
 0x742   :  { %v14844_v34 = vadd.f32 %v6506_v6, %v6463_v10  ;;  %7445 = vmatpush.bf16.msrb.mxu3 %v11056_v12  ;;  %v10889_v6 = vld [vmem:[#allocation7 + $0x78] sm:$0xf0]  ;;  %7530 = vmatpush.bf16.msrb.mxu1 %v10956_v37  ;;  %v11768_v37 = vld [vmem:[#allocation7 + $0xd4] sm:$0xf] }
 0x743   :  { %6645 = vmatmul.bf16.gmra.mxu2 %v14172_v33  ;;  %7328 = vmatmul.bf16.gmra.mxu0 %v16677_v18  ;;  %v10892_v2 = vor.u32 %v11756_v39, %v10889_v6  ;;  %v10948_v6 = vor.u32 %v11770_v3, %v10945_v24  ;;  %v10959_v24 = vld [vmem:[#allocation7 + $0x100] sm:$0xf]  ;;  %v11775_v3 = vld [vmem:[#allocation7 + $0x104] sm:$0xf0] }
 0x744   :  { %7372 = vmatmul.bf16.gmra.mxu1 %v16678_v35 }
 0x745   :  { %7486 = vmatpush.bf16.msrb.mxu0 %v10892_v2  ;;  %v10873_v2 = vld [vmem:[#allocation7 + $0x58] sm:$0xf0] }
 0x746   :  { %6689 = vmatmul.bf16.gmra.mxu3 %v16625_v25  ;;  %v6465_v57 = vpop.f32.mrf.mxu2  ;;  %7531 = vmatpush.bf16.msrb.mxu1 %v10948_v6  ;;  %v10929_v6 = vld [vmem:[#allocation7 + $0xc8] sm:$0xf0] }
 0x747   :  { %v6466_v60 = vadd.f32 %v6465_v57, %v14736_v44  ;;  %v10983_v44 = vld [vmem:[#allocation7 + $0x130] sm:$0xf] }
 0x748   :  { %v14853_v59 = vpop.f32.mrf.mxu0  ;;  %v10984_v10 = vor.u32 %v11781_v42, %v10983_v44 }
 0x749   :  { %v6509_v21 = vpop.f32.mrf.mxu3  ;;  %v14857_v61 = vpop.f32.mrf.mxu1 }
 0x74a   :  { %v14855_v33 = vadd.f32 %v6509_v21, %v6466_v60  ;;  %7402 = vmatpush.bf16.msrb.mxu2 %v10984_v10  ;;  %v11779_v60 = vld [vmem:[#allocation7 + $0x124] sm:$0xf0]  ;;  %v11754_v21 = vld [vmem:[#allocation7 + $0x64] sm:$0xf] }
 0x74e   :  { %v6467_v25 = vpop.f32.mrf.mxu2 }
 0x74f   :  { %v14860_v0 = vadd.f32 %v6467_v25, %v14747_v30  ;;  %v11047_v30 = vld [vmem:[#allocation7 + $0x1b0] sm:$0xf] }
 0x750   :  { %v14864_v45 = vpop.f32.mrf.mxu0  ;;  %v11048_v57 = vor.u32 %v11797_v55, %v11047_v30  ;;  %v11777_v30 = vld [vmem:[#allocation7 + $0x114] sm:$0xf0] }
 0x751   :  { %v14862_v17 = vpop.f32.mrf.mxu3  ;;  %v14866_v40 = vpop.f32.mrf.mxu1  ;;  %v10968_v55 = vor.u32 %v11777_v30, %v10967_v38 }
 0x752   :  { %7446 = vmatpush.bf16.msrb.mxu3 %v11048_v57  ;;  %v10937_v57 = vld [vmem:[#allocation7 + $0xd8] sm:$0xf0] }
 0x753   :  { %6650 = vmatmul.bf16.gmra.mxu2 %v16627_v47  ;;  %7333 = vmatmul.bf16.gmra.mxu0 %v16679_v22  ;;  %v10975_v47 = vld [vmem:[#allocation7 + $0x120] sm:$0xf] }
 0x754   :  { %7377 = vmatmul.bf16.gmra.mxu1 %v14557_v63  ;;  %v10976_v42 = vor.u32 %v11779_v60, %v10975_v47  ;;  %v10940_v47 = vor.u32 %v11768_v37, %v10937_v57  ;;  %v10857_v37 = vld [vmem:[#allocation7 + $0x38] sm:$0xf0]  ;;  %v11764_v57 = vld [vmem:[#allocation7 + $0xb4] sm:$0xf] }
 0x756   :  { %6694 = vmatmul.bf16.gmra.mxu3 %v16629_v43  ;;  %v6470_v12 = vpop.f32.mrf.mxu2  ;;  %v10881_v43 = vld [vmem:[#allocation7 + $0x68] sm:$0xf0]  ;;  %7403 = vmatpush.bf16.msrb.mxu2 %v10976_v42  ;;  %v10960_v42 = vor.u32 %v11775_v3, %v10959_v24  ;;  %v10921_v24 = vld [vmem:[#allocation7 + $0xb8] sm:$0xf0] }
 0x757   :  { %v6471_v25 = vadd.f32 %v6470_v12, %v14754_v27  ;;  %v10884_v39 = vor.u32 %v11754_v21, %v10881_v43  ;;  %v11752_v27 = vld [vmem:[#allocation7 + $0x54] sm:$0xf]  ;;  %7532 = vmatpush.bf16.msrb.mxu1 %v10940_v47  ;;  %v11750_v21 = vld [vmem:[#allocation7 + $0x44] sm:$0xf]  ;;  %v10865_v43 = vld [vmem:[#allocation7 + $0x48] sm:$0xf0] }
 0x758   :  { %v14873_v63 = vpop.f32.mrf.mxu0  ;;  %v10876_v12 = vor.u32 %v11752_v27, %v10873_v2  ;;  %v10868_v30 = vor.u32 %v11750_v21, %v10865_v43  ;;  %v11748_v2 = vld [vmem:[#allocation7 + $0x34] sm:$0xf]  ;;  %v11795_v47 = vld [vmem:[#allocation7 + $0x1a4] sm:$0xf0]  ;;  %v10924_v21 = vor.u32 %v11764_v57, %v10921_v24  ;;  %v11746_v43 = vld [vmem:[#allocation7 + $0x24] sm:$0xf] }
 0x759   :  { %v6514_v44 = vpop.f32.mrf.mxu3  ;;  %v14877_v4 = vpop.f32.mrf.mxu1  ;;  %7487 = vmatpush.bf16.msrb.mxu0 %v10884_v39  ;;  %v11766_v39 = vld [vmem:[#allocation7 + $0xc4] sm:$0xf]  ;;  %v11744_v57 = vld [vmem:[#allocation7 + $0x14] sm:$0xf]  ;;  %v10905_v24 = vld [vmem:[#allocation7 + $0x98] sm:$0xf0] }
 0x75a   :  { %v14875_v10 = vadd.f32 %v6514_v44, %v6471_v25  ;;  %7404 = vmatpush.bf16.msrb.mxu2 %v10968_v55  ;;  %v10932_v27 = vor.u32 %v11766_v39, %v10929_v6  ;;  %v10849_v39 = vld [vmem:[#allocation7 + $0x28] sm:$0xf0]  ;;  %v11762_v6 = vld [vmem:[#allocation7 + $0xa4] sm:$0xf] }
 0x75c   :  { %7533 = vmatpush.bf16.msrb.mxu1 %v10932_v27  ;;  %v10852_v27 = vor.u32 %v11746_v43, %v10849_v39  ;;  %v11758_v43 = vld [vmem:[#allocation7 + $0x84] sm:$0xf] }
 0x75d   :  { %7488 = vmatpush.bf16.msrb.mxu0 %v10876_v12  ;;  %v11039_v12 = vld [vmem:[#allocation7 + $0x1a0] sm:$0xf] }
 0x75e   :  { %v6472_v60 = vpop.f32.mrf.mxu2  ;;  %7405 = vmatpush.bf16.msrb.mxu2 %v10960_v42  ;;  %v11040_v3 = vor.u32 %v11795_v47, %v11039_v12  ;;  %v10841_v12 = vld [vmem:[#allocation7 + $0x18] sm:$0xf0]  ;;  %v11760_v47 = vld [vmem:[#allocation7 + $0x94] sm:$0xf] }
 0x75f   :  { %v14880_v25 = vadd.f32 %v6472_v60, %v14765_v23  ;;  %v16680_v23 = vld [vmem:[#allocation69_spill] sm:$0xff]  ;;  %v10860_v60 = vor.u32 %v11748_v2, %v10857_v37 }
 0x760   :  { %v14884_v38 = vpop.f32.mrf.mxu0  ;;  %7447 = vmatpush.bf16.msrb.mxu3 %v11040_v3  ;;  %7534 = vmatpush.bf16.msrb.mxu1 %v10924_v21  ;;  %v10908_v3 = vor.u32 %v11760_v47, %v10905_v24  ;;  %v11742_v21 = vld [vmem:[#allocation7 + $0x4] sm:$0xf] }
 0x761   :  { %v14882_v44 = vpop.f32.mrf.mxu3  ;;  %v14886_v55 = vpop.f32.mrf.mxu1  ;;  %7489 = vmatpush.bf16.msrb.mxu0 %v10868_v30 }
 0x763   :  { %6655 = vmatmul.bf16.gmra.mxu2 %v14214_v11  ;;  %7338 = vmatmul.bf16.gmra.mxu0 %v16680_v23  ;;  %v10913_v23 = vld [vmem:[#allocation7 + $0xa8] sm:$0xf0] }
 0x764   :  { %7382 = vmatmul.bf16.gmra.mxu1 %v14575_v7  ;;  %v10916_v37 = vor.u32 %v11762_v6, %v10913_v23 }
 0x765   :  { %7490 = vmatpush.bf16.msrb.mxu0 %v10860_v60  ;;  %v10844_v60 = vor.u32 %v11744_v57, %v10841_v12  ;;  %v11793_v57 = vld [vmem:[#allocation7 + $0x194] sm:$0xf0] }
 0x766   :  { %6699 = vmatmul.bf16.gmra.mxu3 %v16631_v29  ;;  %v6475_v42 = vpop.f32.mrf.mxu2  ;;  %7535 = vmatpush.bf16.msrb.mxu1 %v10916_v37  ;;  %v11031_v37 = vld [vmem:[#allocation7 + $0x190] sm:$0xf] }
 0x767   :  { %v6476_v11 = vadd.f32 %v6475_v42, %v14772_v32  ;;  %v10833_v42 = vld [vmem:[#allocation7 + $0x8] sm:$0xf0]  ;;  %v11032_v47 = vor.u32 %v11793_v57, %v11031_v37 }
 0x768   :  { %v14893_v2 = vpop.f32.mrf.mxu0  ;;  %v10836_v6 = vor.u32 %v11742_v21, %v10833_v42 }
 0x769   :  { %v6519_v30 = vpop.f32.mrf.mxu3  ;;  %v14897_v7 = vpop.f32.mrf.mxu1  ;;  %7491 = vmatpush.bf16.msrb.mxu0 %v10852_v27  ;;  %7448 = vmatpush.bf16.msrb.mxu3 %v11032_v47 }
 0x76a   :  { %v14895_v29 = vadd.f32 %v6519_v30, %v6476_v11  ;;  %7536 = vmatpush.bf16.msrb.mxu1 %v10908_v3  ;;  %v10897_v11 = vld [vmem:[#allocation7 + $0x88] sm:$0xf0] }
 0x76b   :  { %v10900_v12 = vor.u32 %v11758_v43, %v10897_v11  ;;  %v11791_v11 = vld [vmem:[#allocation7 + $0x184] sm:$0xf0] }
 0x76d   :  { %7492 = vmatpush.bf16.msrb.mxu0 %v10844_v60  ;;  %v16681_v60 = vld [vmem:[#allocation64_spill] sm:$0xff] }
 0x76e   :  { %v6477_v32 = vpop.f32.mrf.mxu2  ;;  %7537 = vmatpush.bf16.msrb.mxu1 %v10900_v12 }
 0x76f   :  { %v14900_v39 = vadd.f32 %v6477_v32, %v14783_v49 }
 0x770   :  { %v14904_v30 = vpop.f32.mrf.mxu0 }
 0x771   :  { %v14902_v23 = vpop.f32.mrf.mxu3  ;;  %v14906_v27 = vpop.f32.mrf.mxu1  ;;  %7493 = vmatpush.bf16.msrb.mxu0 %v10836_v6 }
 0x773   :  { %6660 = vmatmul.bf16.gmra.mxu2 %v14236_v26  ;;  %7343 = vmatmul.bf16.gmra.mxu0 %v16681_v60 }
 0x774   :  { %7387 = vmatmul.bf16.gmra.mxu1 %v14593_v31 }
 0x776   :  { %6704 = vmatmul.bf16.gmra.mxu3 %v14242_v19  ;;  %v6480_v49 = vpop.f32.mrf.mxu2  ;;  %v11023_v19 = vld [vmem:[#allocation7 + $0x180] sm:$0xf] }
 0x777   :  { %v6481_v24 = vadd.f32 %v6480_v49, %v14790_v36  ;;  %v11024_v57 = vor.u32 %v11791_v11, %v11023_v19  ;;  %v16684_v36 = vld [vmem:[#allocation71_spill] sm:$0xff] }
 0x778   :  { %v14913_v32 = vpop.f32.mrf.mxu0 }
 0x779   :  { %v6524_v3 = vpop.f32.mrf.mxu3  ;;  %v14917_v42 = vpop.f32.mrf.mxu1  ;;  %7449 = vmatpush.bf16.msrb.mxu3 %v11024_v57 }
 0x77a   :  { %v14915_v21 = vadd.f32 %v6524_v3, %v6481_v24 }
 0x77e   :  { %v6482_v43 = vpop.f32.mrf.mxu2 }
 0x77f   :  { %v14920_v26 = vadd.f32 %v6482_v43, %v14801_v58 }
 0x780   :  { %v14924_v37 = vpop.f32.mrf.mxu0 }
 0x781   :  { %16682 = vst [vmem:[#allocation81_spill] sm:$0xff] %v14920_v26  ;;  %v14922_v6 = vpop.f32.mrf.mxu3  ;;  %v14926_v12 = vpop.f32.mrf.mxu1 }
 0x782   :  { %16683 = vst [vmem:[#allocation159_spill] sm:$0xff] %v14922_v6  ;;  %v11804_v6 = vld [vmem:[#allocation7 + $0x1f4] sm:$0xf] }
 0x783   :  { %7348 = vmatmul.bf16.gmra.mxu0 %v16684_v36  ;;  %7406 = vmatmul.bf16.vlgmr.msrb.gmra.mxu2 %v14708_v51  ;;  %v11788_v36 = vld [vmem:[#allocation7 + $0x174] sm:$0xf]  ;;  %v11017_v51 = vld [vmem:[#allocation7 + $0x178] sm:$0xf0] }
 0x784   :  { %7392 = vmatmul.bf16.gmra.mxu1 %v14611_v15  ;;  %v11020_v26 = vor.u32 %v11788_v36, %v11017_v51 }
 0x786   :  { %v6485_v47 = vpop.f32.mrf.mxu2  ;;  %7574 = vmatpush.bf16.msra.mxu2 %v11020_v26 }
 0x787   :  { %v6486_v58 = vadd.f32 %v6485_v47, %v14808_v53  ;;  %v11081_v53 = vld [vmem:[#allocation7 + $0x1f8] sm:$0xf0]  ;;  %v6544_v47 = vadd.f32 %v14824_v20, %v14816_v54  ;;  %v6546_v54 = vadd.f32 %v14835_v41, %v14826_v9 }
 0x788   :  { %v14932_v24 = vpop.f32.mrf.mxu0 }
 0x789   :  { %v6529_v49 = vpop.f32.mrf.mxu3  ;;  %v14936_v43 = vpop.f32.mrf.mxu1 }
 0x78a   :  { %v14934_v3 = vadd.f32 %v6529_v49, %v6486_v58  ;;  %v11084_v49 = vor.u32 %v11804_v6, %v11081_v53 }
 0x78c   :  { %7618 = vmatpush.bf16.msra.mxu3 %v11084_v49 }
 0x78e   :  { %v6487_v19 = vpop.f32.mrf.mxu2 }
 0x78f   :  { %v14939_v11 = vadd.f32 %v6487_v19, %v14821_v28  ;;  %v6588_v28 = vadd.f32 %v14828_v14, %v6544_v47  ;;  %v11939_v47 = vld [vmem:[%s16538_s26] sm:$0xf] }
 0x790   :  { %v14943_v15 = vpop.f32.mrf.mxu0  ;;  %v14969_v49 = vperm.slane %v11939_v47, 3 }
 0x791   :  { %v14941_v57 = vpop.f32.mrf.mxu3  ;;  %v14947_v58 = vpop.f32.mrf.mxu1 }
 0x792   :  { %16685 = vst [vmem:[#allocation160_spill] sm:$0xff] %v14941_v57 }
 0x793   :  { %7411 = vmatmul.bf16.gmra.mxu2 %v14727_v8  ;;  %7494 = vmatmul.bf16.vlgmr.msrb.gmra.mxu0 %v16671_v46  ;;  %v11938_v46 = vld [vmem:[%s16537_s28] sm:$0xf]  ;;  %v11802_v8 = vld [vmem:[#allocation7 + $0x1e4] sm:$0xf]  ;;  %s16704_s28 = sld [smem:[#allocation189_spill]] }
 0x794   :  { %7538 = vmatmul.bf16.vlgmr.msrb.gmra.mxu1 %v16672_v5  ;;  %v14962_v6 = vperm.slane %v11938_v46, 3  ;;  %v6590_v5 = vadd.f32 %v14839_v48, %v6546_v54  ;;  %v11073_v46 = vld [vmem:[#allocation7 + $0x1e8] sm:$0xf0]  ;;  %v6549_v48 = vadd.f32 %v14842_v62, %v14837_v50  ;;  %v11784_v62 = vld [vmem:[#allocation7 + $0x154] sm:$0xf] }
 0x796   :  { %v6631_v19 = vpop.f32.mrf.mxu2 }
 0x797   :  { %v6632_v57 = vadd.f32 %v6631_v19, %v6588_v28  ;;  %v11009_v28 = vld [vmem:[#allocation7 + $0x168] sm:$0xf0] }
 0x798   :  { %v14953_v36 = vpop.f32.mrf.mxu0 }
 0x799   :  { %v6675_v51 = vpop.f32.mrf.mxu3  ;;  %16686 = vst [vmem:[#allocation77_spill] sm:$0xff] %v14953_v36  ;;  %v14957_v20 = vpop.f32.mrf.mxu1 }
 0x79a   :  { %16687 = vst [vmem:[#allocation83_spill] sm:$0xff] %v14957_v20  ;;  %v6676_v26 = vadd.f32 %v6675_v51, %v6632_v57  ;;  %v11786_v57 = vld [vmem:[#allocation7 + $0x164] sm:$0xf] }
 0x79b   :  { %v11012_v51 = vor.u32 %v11786_v57, %v11009_v28  ;;  %v6593_v57 = vadd.f32 %v14846_v52, %v6549_v48 }
 0x79c   :  { %v6723_v53 = vmul.f32 %v14962_v6, %v6676_v26  ;;  %v11076_v26 = vor.u32 %v11802_v8, %v11073_v46  ;;  %v11001_v8 = vld [vmem:[#allocation7 + $0x158] sm:$0xf0] }
 0x79d   :  { %7575 = vmatpush.bf16.msra.mxu2 %v11012_v51 }
 0x79e   :  { %v6633_v14 = vpop.f32.mrf.mxu2  ;;  %v6789_v47 = vadd.f32 %v14969_v49, %v6723_v53  ;;  %7619 = vmatpush.bf16.msra.mxu3 %v11076_v26 }
 0x79f   :  { %v6634_v9 = vadd.f32 %v6633_v14, %v6590_v5  ;;  %v16688_v14 = vld [vmem:[#allocation78_spill] sm:$0xff] }
 0x7a0   :  { %v7319_v19 = vpop.f32.mrf.mxu0 }
 0x7a1   :  { %v6677_v41 = vpop.f32.mrf.mxu3  ;;  %v7363_v20 = vpop.f32.mrf.mxu1 }
 0x7a2   :  { %v6678_v54 = vadd.f32 %v6677_v41, %v6634_v9  ;;  %v14973_v36 = vadd.f32 %v7363_v20, %v7319_v19  ;;  %v11004_v9 = vor.u32 %v11784_v62, %v11001_v8  ;;  %v6845_v41 = vmax.f32 %v6789_v47, 0.0  ;;  %v11065_v62 = vld [vmem:[#allocation7 + $0x1d8] sm:$0xf0] }
 0x7a3   :  { %7416 = vmatmul.bf16.gmra.mxu2 %v16688_v14  ;;  %7499 = vmatmul.bf16.gmra.mxu0 %v16675_v1  ;;  %v6551_v1 = vadd.f32 %v14853_v59, %v14844_v34  ;;  %v6554_v34 = vadd.f32 %v14864_v45, %v14855_v33  ;;  %v11782_v33 = vld [vmem:[#allocation7 + $0x144] sm:$0xf]  ;;  %v10993_v45 = vld [vmem:[#allocation7 + $0x148] sm:$0xf0] }
 0x7a4   :  { %v6727_v5 = vmul.f32 %v14962_v6, %v6678_v54  ;;  %7543 = vmatmul.bf16.gmra.mxu1 %v16676_v16  ;;  %7576 = vmatpush.bf16.msra.mxu2 %v11004_v9 }
 0x7a5   :  { %v6595_v48 = vadd.f32 %v14857_v61, %v6551_v1  ;;  %v6512_v1 = vadd.f32 %v14862_v17, %v14860_v0 }
 0x7a6   :  { %v6793_v50 = vadd.f32 %v14969_v49, %v6727_v5  ;;  %v6636_v20 = vpop.f32.mrf.mxu2 }
 0x7a7   :  { %v6637_v53 = vadd.f32 %v6636_v20, %v6593_v57 }
 0x7a8   :  { %v6849_v28 = vmax.f32 %v6793_v50, 0.0  ;;  %v7321_v51 = vpop.f32.mrf.mxu0  ;;  %v11800_v50 = vld [vmem:[#allocation7 + $0x1d4] sm:$0xf] }
 0x7a9   :  { %v6680_v19 = vpop.f32.mrf.mxu3  ;;  %v7365_v16 = vpop.f32.mrf.mxu1  ;;  %v11068_v20 = vor.u32 %v11800_v50, %v11065_v62 }
 0x7aa   :  { %v14984_v46 = vpack.c.bf16 %v6849_v28, %v6845_v41  ;;  %v14986_v54 = vadd.f32 %v7365_v16, %v7321_v51  ;;  %v6681_v52 = vadd.f32 %v6680_v19, %v6637_v53  ;;  %v6598_v53 = vadd.f32 %v14866_v40, %v6554_v34  ;;  %v11798_v51 = vld [vmem:[#allocation7 + $0x1c4] sm:$0xf] }
 0x7ab   :  { %7620 = vmatpush.bf16.msra.mxu3 %v11068_v20 }
 0x7ac   :  { %7450 = vmatmul.bf16.vlgmr.msrb.gmra.mxu3 %v14984_v46  ;;  %v6731_v47 = vmul.f32 %v14962_v6, %v6681_v52  ;;  %v10996_v52 = vor.u32 %v11782_v33, %v10993_v45  ;;  %v16689_v45 = vld [vmem:[#allocation75_spill] sm:$0xff] }
 0x7ae   :  { %v6638_v26 = vpop.f32.mrf.mxu2  ;;  %v6797_v28 = vadd.f32 %v14969_v49, %v6731_v47  ;;  %7577 = vmatpush.bf16.msra.mxu2 %v10996_v52 }
 0x7af   :  { %v6639_v5 = vadd.f32 %v6638_v26, %v6595_v48  ;;  %v11057_v48 = vld [vmem:[#allocation7 + $0x1c8] sm:$0xf0] }
 0x7b0   :  { %v7324_v8 = vpop.f32.mrf.mxu0  ;;  %v6853_v26 = vmax.f32 %v6797_v28, 0.0  ;;  %v6559_v28 = vadd.f32 %v14884_v38, %v14875_v10  ;;  %v11796_v10 = vld [vmem:[#allocation7 + $0x1b4] sm:$0xf]  ;;  %v11049_v38 = vld [vmem:[#allocation7 + $0x1b8] sm:$0xf0] }
 0x7b1   :  { %v6682_v57 = vpop.f32.mrf.mxu3  ;;  %v7368_v9 = vpop.f32.mrf.mxu1 }
 0x7b2   :  { %v6683_v59 = vadd.f32 %v6682_v57, %v6639_v5  ;;  %v14993_v41 = vadd.f32 %v7368_v9, %v7324_v8 }
 0x7b3   :  { %7421 = vmatmul.bf16.gmra.mxu2 %v14763_v56  ;;  %7504 = vmatmul.bf16.gmra.mxu0 %v16677_v18  ;;  %v11060_v18 = vor.u32 %v11798_v51, %v11057_v48  ;;  %v6603_v51 = vadd.f32 %v14886_v55, %v6559_v28  ;;  %v11052_v48 = vor.u32 %v11796_v10, %v11049_v38  ;;  %v11794_v10 = vld [vmem:[#allocation7 + $0x1a4] sm:$0xf]  ;;  %v11041_v38 = vld [vmem:[#allocation7 + $0x1a8] sm:$0xf0] }
 0x7b4   :  { %v6735_v61 = vmul.f32 %v14962_v6, %v6683_v59  ;;  %7548 = vmatmul.bf16.gmra.mxu1 %v16678_v35  ;;  %v6556_v35 = vadd.f32 %v14873_v63, %v6512_v1 }
 0x7b5   :  { %7621 = vmatpush.bf16.msra.mxu3 %v11060_v18 }
 0x7b6   :  { %v6801_v19 = vadd.f32 %v14969_v49, %v6735_v61  ;;  %v6641_v16 = vpop.f32.mrf.mxu2  ;;  %v6600_v0 = vadd.f32 %v14877_v4, %v6556_v35  ;;  %v11780_v61 = vld [vmem:[#allocation7 + $0x134] sm:$0xf] }
 0x7b7   :  { %v6642_v47 = vadd.f32 %v6641_v16, %v6598_v53  ;;  %v10985_v53 = vld [vmem:[#allocation7 + $0x138] sm:$0xf0]  ;;  %v6517_v16 = vadd.f32 %v14882_v44, %v14880_v25 }
 0x7b8   :  { %v6857_v57 = vmax.f32 %v6801_v19, 0.0  ;;  %v7326_v50 = vpop.f32.mrf.mxu0  ;;  %v10988_v4 = vor.u32 %v11780_v61, %v10985_v53  ;;  %v6564_v61 = vadd.f32 %v14904_v30, %v14895_v29  ;;  %v11044_v29 = vor.u32 %v11794_v10, %v11041_v38 }
 0x7b9   :  { %v6685_v5 = vpop.f32.mrf.mxu3  ;;  %v7370_v40 = vpop.f32.mrf.mxu1  ;;  %7622 = vmatpush.bf16.msra.mxu3 %v11052_v48  ;;  %v6561_v55 = vadd.f32 %v14893_v2, %v6517_v16  ;;  %v6522_v30 = vadd.f32 %v14902_v23, %v14900_v39  ;;  %v6569_v39 = vadd.f32 %v14924_v37, %v14915_v21  ;;  %v16694_v21 = vld [vmem:[#allocation81_spill] sm:$0xff]  ;;  %v16695_v37 = vld [vmem:[#allocation159_spill] sm:$0xff]  ;;  %v6574_v38 = vadd.f32 %v14943_v15, %v14934_v3 }
 0x7ba   :  { %v15005_v62 = vpack.c.bf16 %v6857_v57, %v6853_v26  ;;  %v15007_v8 = vadd.f32 %v7370_v40, %v7326_v50  ;;  %v6686_v20 = vadd.f32 %v6685_v5, %v6642_v47  ;;  %7578 = vmatpush.bf16.msra.mxu2 %v10988_v4  ;;  %v11778_v26 = vld [vmem:[#allocation7 + $0x124] sm:$0xf]  ;;  %v10977_v47 = vld [vmem:[#allocation7 + $0x128] sm:$0xf0]  ;;  %v11776_v40 = vld [vmem:[#allocation7 + $0x114] sm:$0xf] }
 0x7bb   :  { %v10980_v50 = vor.u32 %v11778_v26, %v10977_v47  ;;  %v6605_v44 = vadd.f32 %v14897_v7, %v6561_v55  ;;  %v16690_v4 = vld [vmem:[#allocation74_spill] sm:$0xff]  ;;  %v16691_v7 = vld [vmem:[#allocation69_spill] sm:$0xff] }
 0x7bc   :  { %7455 = vmatmul.bf16.gmra.mxu3 %v15005_v62  ;;  %v6739_v34 = vmul.f32 %v14962_v6, %v6686_v20  ;;  %v10969_v20 = vld [vmem:[#allocation7 + $0x118] sm:$0xf0] }
 0x7bd   :  { %v10972_v25 = vor.u32 %v11776_v40, %v10969_v20  ;;  %7623 = vmatpush.bf16.msra.mxu3 %v11044_v29 }
 0x7be   :  { %v6643_v17 = vpop.f32.mrf.mxu2  ;;  %v6805_v19 = vadd.f32 %v14969_v49, %v6739_v34  ;;  %7579 = vmatpush.bf16.msra.mxu2 %v10980_v50  ;;  %v11774_v34 = vld [vmem:[#allocation7 + $0x104] sm:$0xf] }
 0x7bf   :  { %v6644_v59 = vadd.f32 %v6643_v17, %v6600_v0 }
 0x7c0   :  { %v6861_v5 = vmax.f32 %v6805_v19, 0.0 }
 0x7c1   :  { %v6687_v9 = vpop.f32.mrf.mxu3 }
 0x7c2   :  { %v6688_v63 = vadd.f32 %v6687_v9, %v6644_v59  ;;  %7580 = vmatpush.bf16.msra.mxu2 %v10972_v25  ;;  %v10961_v59 = vld [vmem:[#allocation7 + $0x108] sm:$0xf0] }
 0x7c3   :  { %7426 = vmatmul.bf16.gmra.mxu2 %v14781_v13  ;;  %7509 = vmatmul.bf16.gmra.mxu0 %v16679_v22  ;;  %v10964_v2 = vor.u32 %v11774_v34, %v10961_v59 }
 0x7c4   :  { %v6743_v33 = vmul.f32 %v14962_v6, %v6688_v63  ;;  %7553 = vmatmul.bf16.gmra.mxu1 %v16689_v45  ;;  %v16692_v45 = vld [vmem:[#allocation157_spill] sm:$0xff] }
 0x7c6   :  { %v6809_v1 = vadd.f32 %v14969_v49, %v6743_v33  ;;  %v6646_v52 = vpop.f32.mrf.mxu2  ;;  %7581 = vmatpush.bf16.msra.mxu2 %v10964_v2 }
 0x7c7   :  { %v6647_v57 = vadd.f32 %v6646_v52, %v6603_v51  ;;  %v6608_v51 = vadd.f32 %v14906_v27, %v6564_v61 }
 0x7c8   :  { %v6865_v18 = vmax.f32 %v6809_v1, 0.0 }
 0x7c9   :  { %v6690_v22 = vpop.f32.mrf.mxu3 }
 0x7ca   :  { %v15024_v35 = vpack.c.bf16 %v6865_v18, %v6861_v5  ;;  %v6691_v0 = vadd.f32 %v6690_v22, %v6647_v57  ;;  %v6566_v5 = vadd.f32 %v14913_v32, %v6522_v30  ;;  %v16696_v30 = vld [vmem:[#allocation71_spill] sm:$0xff] }
 0x7cc   :  { %7460 = vmatmul.bf16.gmra.mxu3 %v15024_v35  ;;  %v6747_v9 = vmul.f32 %v14962_v6, %v6691_v0  ;;  %v6610_v27 = vadd.f32 %v14917_v42, %v6566_v5  ;;  %v16693_v0 = vld [vmem:[#allocation76_spill] sm:$0xff]  ;;  %v6613_v42 = vadd.f32 %v14926_v12, %v6569_v39  ;;  %v11790_v12 = vld [vmem:[#allocation7 + $0x184] sm:$0xf] }
 0x7cd   :  { %v16699_v5 = vld [vmem:[#allocation160_spill] sm:$0xff] }
 0x7ce   :  { %v6648_v17 = vpop.f32.mrf.mxu2  ;;  %v6813_v19 = vadd.f32 %v14969_v49, %v6747_v9  ;;  %v6527_v9 = vadd.f32 %v16695_v37, %v16694_v21  ;;  %v11812_v37 = vld [vmem:[#allocation9 + $0x30] sm:$0xff] }
 0x7cf   :  { %v6649_v28 = vadd.f32 %v6648_v17, %v6605_v44  ;;  %v11792_v44 = vld [vmem:[#allocation7 + $0x194] sm:$0xf]  ;;  %v11033_v17 = vld [vmem:[#allocation7 + $0x198] sm:$0xf0] }
 0x7d0   :  { %v6869_v52 = vmax.f32 %v6813_v19, 0.0  ;;  %v11036_v59 = vor.u32 %v11792_v44, %v11033_v17  ;;  %v11025_v19 = vld [vmem:[#allocation7 + $0x188] sm:$0xf0] }
 0x7d1   :  { %v6692_v63 = vpop.f32.mrf.mxu3 }
 0x7d2   :  { %v6693_v53 = vadd.f32 %v6692_v63, %v6649_v28  ;;  %7624 = vmatpush.bf16.msra.mxu3 %v11036_v59  ;;  %v16702_v59 = vld [vmem:[#allocation72_spill] sm:$0xff] }
 0x7d3   :  { %7431 = vmatmul.bf16.gmra.mxu2 %v16690_v4  ;;  %7514 = vmatmul.bf16.gmra.mxu0 %v16691_v7 }
 0x7d4   :  { %v6751_v33 = vmul.f32 %v14962_v6, %v6693_v53  ;;  %7558 = vmatmul.bf16.gmra.mxu1 %v16692_v45 }
 0x7d6   :  { %v6817_v1 = vadd.f32 %v14969_v49, %v6751_v33  ;;  %v6651_v16 = vpop.f32.mrf.mxu2  ;;  %v11028_v33 = vor.u32 %v11790_v12, %v11025_v19  ;;  %v11808_v12 = vld [vmem:[#allocation9 + $0x10] sm:$0xff]  ;;  %v15088_v19 = vpop.f32.mrf.mxu0 }
 0x7d7   :  { %v6652_v48 = vadd.f32 %v6651_v16, %v6608_v51 }
 0x7d8   :  { %v6873_v47 = vmax.f32 %v6817_v1, 0.0  ;;  %7625 = vmatpush.bf16.msra.mxu3 %v11028_v33  ;;  %v15090_v33 = vpop.f32.mrf.mxu1 }
 0x7d9   :  { %v6695_v26 = vpop.f32.mrf.mxu3 }
 0x7da   :  { %v15041_v57 = vpack.c.bf16 %v6873_v47, %v6869_v52  ;;  %v6696_v22 = vadd.f32 %v6695_v26, %v6652_v48  ;;  %v16697_v52 = vld [vmem:[#allocation70_spill] sm:$0xff] }
 0x7db   :  { %v16698_v48 = vld [vmem:[#allocation158_spill] sm:$0xff] }
 0x7dc   :  { %7465 = vmatmul.bf16.gmra.mxu3 %v15041_v57  ;;  %v6755_v50 = vmul.f32 %v14962_v6, %v6696_v22  ;;  %v6532_v22 = vadd.f32 %v16699_v5, %v14939_v11  ;;  %v11813_v11 = vld [vmem:[#allocation9 + $0x38] sm:$0xff]  ;;  %v11820_v5 = vld [vmem:[#allocation9 + $0x70] sm:$0xff] }
 0x7dd   :  { %7900 = vmatpush.bf16.msra.mxu0 %v11813_v11 }
 0x7de   :  { %v6653_v18 = vpop.f32.mrf.mxu2  ;;  %v6821_v20 = vadd.f32 %v14969_v49, %v6755_v50  ;;  %v16700_v50 = vld [vmem:[#allocation77_spill] sm:$0xff] }
 0x7df   :  { %v6654_v55 = vadd.f32 %v6653_v18, %v6610_v27 }
 0x7e0   :  { %v6877_v28 = vmax.f32 %v6821_v20, 0.0 }
 0x7e1   :  { %v6697_v40 = vpop.f32.mrf.mxu3  ;;  %7901 = vmatpush.bf16.msra.mxu0 %v11812_v37 }
 0x7e2   :  { %v6698_v23 = vadd.f32 %v6697_v40, %v6654_v55  ;;  %v6576_v55 = vadd.f32 %v16700_v50, %v6532_v22  ;;  %v11819_v50 = vld [vmem:[#allocation9 + $0x68] sm:$0xff] }
 0x7e3   :  { %7436 = vmatmul.bf16.gmra.mxu2 %v16693_v0  ;;  %7519 = vmatmul.bf16.gmra.mxu0 %v16681_v60  ;;  %v6571_v60 = vadd.f32 %v14932_v24, %v6527_v9 }
 0x7e4   :  { %v6759_v32 = vmul.f32 %v14962_v6, %v6698_v23  ;;  %7563 = vmatmul.bf16.gmra.mxu1 %v14593_v31  ;;  %v16701_v23 = vld [vmem:[#allocation83_spill] sm:$0xff] }
 0x7e5   :  { %v6615_v7 = vadd.f32 %v14936_v43, %v6571_v60  ;;  %v6618_v43 = vadd.f32 %v14947_v58, %v6574_v38  ;;  %v6620_v20 = vadd.f32 %v16701_v23, %v6576_v55  ;;  %v11810_v60 = vld [vmem:[#allocation9 + $0x20] sm:$0xff] }
 0x7e6   :  { %v6825_v25 = vadd.f32 %v14969_v49, %v6759_v32  ;;  %v6656_v34 = vpop.f32.mrf.mxu2 }
 0x7e7   :  { %v6657_v63 = vadd.f32 %v6656_v34, %v6613_v42 }
 0x7e8   :  { %v6881_v61 = vmax.f32 %v6825_v25, 0.0 }
 0x7e9   :  { %v6700_v2 = vpop.f32.mrf.mxu3 }
 0x7ea   :  { %v15058_v53 = vpack.c.bf16 %v6881_v61, %v6877_v28  ;;  %v6701_v31 = vadd.f32 %v6700_v2, %v6657_v63  ;;  %v11811_v61 = vld [vmem:[#allocation9 + $0x28] sm:$0xff] }
 0x7eb   :  { %7902 = vmatpush.bf16.msra.mxu0 %v11811_v61 }
 0x7ec   :  { %7470 = vmatmul.bf16.gmra.mxu3 %v15058_v53  ;;  %v6763_v51 = vmul.f32 %v14962_v6, %v6701_v31 }
 0x7ee   :  { %v6658_v45 = vpop.f32.mrf.mxu2  ;;  %v6829_v16 = vadd.f32 %v14969_v49, %v6763_v51 }
 0x7ef   :  { %v6659_v1 = vadd.f32 %v6658_v45, %v6615_v7  ;;  %7903 = vmatpush.bf16.msra.mxu0 %v11810_v60  ;;  %v11807_v7 = vld [vmem:[#allocation9 + $0x8] sm:$0xff]  ;;  %v11806_v45 = vld [vmem:[#allocation9] sm:$0xff] }
 0x7f0   :  { %v6885_v15 = vmax.f32 %v6829_v16, 0.0 }
 0x7f1   :  { %v6702_v10 = vpop.f32.mrf.mxu3 }
 0x7f2   :  { %v6703_v24 = vadd.f32 %v6702_v10, %v6659_v1  ;;  %v15093_v1 = vpop.f32.mrf.mxu0  ;;  %v15095_v10 = vpop.f32.mrf.mxu1 }
 0x7f3   :  { %7524 = vmatmul.bf16.gmra.mxu0 %v16696_v30  ;;  %7582 = vmatmul.bf16.vlgmr.msra.gmra.mxu2 %v16697_v52  ;;  %v15106_v30 = vld [vmem:[%s16703_s29] sm:$0x3] }
 0x7f4   :  { %v6767_v29 = vmul.f32 %v14962_v6, %v6703_v24  ;;  %7568 = vmatmul.bf16.gmra.mxu1 %v16698_v48 }
 0x7f6   :  { %v6833_v26 = vadd.f32 %v14969_v49, %v6767_v29  ;;  %v6661_v47 = vpop.f32.mrf.mxu2 }
 0x7f7   :  { %v6662_v3 = vadd.f32 %v6661_v47, %v6618_v43 }
 0x7f8   :  { %v6889_v18 = vmax.f32 %v6833_v26, 0.0 }
 0x7f9   :  { %v6705_v27 = vpop.f32.mrf.mxu3 }
 0x7fa   :  { %v15075_v40 = vpack.c.bf16 %v6889_v18, %v6885_v15  ;;  %v6706_v39 = vadd.f32 %v6705_v27, %v6662_v3  ;;  %v15099_v24 = vpop.f32.mrf.mxu0  ;;  %v15101_v16 = vpop.f32.mrf.mxu1 }
 0x7fc   :  { %7475 = vmatmul.bf16.gmra.mxu3 %v15075_v40  ;;  %v6771_v32 = vmul.f32 %v14962_v6, %v6706_v39 }
 0x7fe   :  { %v6663_v58 = vpop.f32.mrf.mxu2  ;;  %v6837_v17 = vadd.f32 %v14969_v49, %v6771_v32 }
 0x7ff   :  { %v6664_v42 = vadd.f32 %v6663_v58, %v6620_v20 }
 0x800   :  { %v6893_v28 = vmax.f32 %v6837_v17, 0.0 }
 0x801   :  { %v6707_v25 = vpop.f32.mrf.mxu3 }
 0x802   :  { %v6708_v44 = vadd.f32 %v6707_v25, %v6664_v42  ;;  %v15125_v15 = vpop.f32.mrf.mxu0  ;;  %v15127_v27 = vpop.f32.mrf.mxu1 }
 0x803   :  { %7587 = vmatmul.bf16.gmra.mxu2 %v16702_v59 }
 0x804   :  { %v6775_v34 = vmul.f32 %v14962_v6, %v6708_v44  ;;  %v11809_v6 = vld [vmem:[#allocation9 + $0x18] sm:$0xff] }
 0x805   :  { %7904 = vmatpush.bf16.msra.mxu0 %v11809_v6 }
 0x806   :  { %v6841_v21 = vadd.f32 %v14969_v49, %v6775_v34  ;;  %v7407_v9 = vpop.f32.mrf.mxu2 }
 0x807   :  { %v7408_v52 = vadd.f32 %v7407_v9, %v14973_v36 }
 0x808   :  { %v6897_v63 = vmax.f32 %v6841_v21, 0.0 }
 0x809   :  { %7905 = vmatpush.bf16.msra.mxu0 %v11808_v12 }
 0x80a   :  { %v15084_v2 = vpack.c.bf16 %v6897_v63, %v6893_v28  ;;  %v15134_v42 = vpop.f32.mrf.mxu0  ;;  %v15136_v44 = vpop.f32.mrf.mxu1  ;;  %v11818_v28 = vld [vmem:[#allocation9 + $0x60] sm:$0xff] }
 0x80c   :  { %7480 = vmatmul.bf16.gmra.mxu3 %v15084_v2 }
 0x80d   :  { %7906 = vmatpush.bf16.msra.mxu0 %v11807_v7  ;;  %v7376_v7 = vadd.f32 %v15095_v10, %v15093_v1 }
 0x80e   :  { %v7409_v31 = vpop.f32.mrf.mxu2 }
 0x80f   :  { %v7410_v43 = vadd.f32 %v7409_v31, %v14986_v54 }
 0x811   :  { %7907 = vmatpush.bf16.msra.mxu0 %v11806_v45 }
 0x812   :  { %v15145_v37 = vpop.f32.mrf.mxu0 }
 0x813   :  { %7592 = vmatmul.bf16.gmra.mxu2 %v16688_v14  ;;  %v11821_v14 = vld [vmem:[#allocation9 + $0x78] sm:$0xff] }
 0x814   :  { %7944 = vmatpush.bf16.msra.mxu1 %v11821_v14 }
 0x816   :  { %v7412_v49 = vpop.f32.mrf.mxu2 }
 0x817   :  { %v7413_v58 = vadd.f32 %v7412_v49, %v14993_v41 }
 0x818   :  { %7945 = vmatpush.bf16.msra.mxu1 %v11820_v5 }
 0x81c   :  { %7626 = vmatmul.bf16.vlgmr.msra.gmra.mxu3 %v14984_v46  ;;  %7946 = vmatpush.bf16.msra.mxu1 %v11819_v50 }
 0x81e   :  { %v7414_v51 = vpop.f32.mrf.mxu2 }
 0x81f   :  { %v7415_v11 = vadd.f32 %v7414_v51, %v15007_v8  ;;  %v7374_v8 = vadd.f32 %v15090_v33, %v15088_v19 }
 0x820   :  { %7947 = vmatpush.bf16.msra.mxu1 %v11818_v28 }
 0x823   :  { %7597 = vmatmul.bf16.gmra.mxu2 %v14763_v56  ;;  %v15110_v56 = vperm.slane %v15106_v30, 0 }
 0x826   :  { %v7417_v38 = vpop.f32.mrf.mxu2 }
 0x827   :  { %v7418_v6 = vadd.f32 %v7417_v38, %v7374_v8  ;;  %v11815_v8 = vld [vmem:[#allocation9 + $0x48] sm:$0xff] }
 0x82c   :  { %7631 = vmatmul.bf16.gmra.mxu3 %v15005_v62  ;;  %v15115_v62 = vld [vmem:[%s16704_s28] sm:$0x3] }
 0x82d   :  { %v15121_v47 = vperm.slane %v15115_v62, 0 }
 0x82e   :  { %v7419_v46 = vpop.f32.mrf.mxu2 }
 0x82f   :  { %v7451_v29 = vpop.f32.mrf.mxu3  ;;  %v7420_v45 = vadd.f32 %v7419_v46, %v7376_v7 }
 0x830   :  { %v7452_v48 = vadd.f32 %v7451_v29, %v7408_v52 }
 0x832   :  { %v7668_v26 = vmul.f32 %v15110_v56, %v7452_v48 }
 0x833   :  { %7602 = vmatmul.bf16.gmra.mxu2 %v14781_v13 }
 0x834   :  { %v7702_v18 = vadd.f32 %v15121_v47, %v7668_v26 }
 0x836   :  { %v15123_v36 = vpop.f32.mrf.mxu2  ;;  %v7730_v55 = vmax.f32 %v7702_v18, 0.0 }
 0x837   :  { %v7453_v22 = vpop.f32.mrf.mxu3 }
 0x838   :  { %v7454_v3 = vadd.f32 %v7453_v22, %v7410_v43  ;;  %v11817_v43 = vld [vmem:[#allocation9 + $0x58] sm:$0xff] }
 0x839   :  { %7948 = vmatpush.bf16.msra.mxu1 %v11817_v43 }
 0x83a   :  { %v7670_v13 = vmul.f32 %v15110_v56, %v7454_v3 }
 0x83c   :  { %v7704_v54 = vadd.f32 %v15121_v47, %v7670_v13  ;;  %7636 = vmatmul.bf16.gmra.mxu3 %v15024_v35 }
 0x83e   :  { %v7732_v39 = vmax.f32 %v7704_v54, 0.0  ;;  %v7424_v23 = vpop.f32.mrf.mxu2  ;;  %v7381_v54 = vadd.f32 %v15127_v27, %v15125_v15  ;;  %v7384_v15 = vadd.f32 %v15136_v44, %v15134_v42 }
 0x83f   :  { %v7456_v20 = vpop.f32.mrf.mxu3 }
 0x840   :  { %v7758_v32 = vpack.c.bf16 %v7732_v39, %v7730_v55  ;;  %v7457_v25 = vadd.f32 %v7456_v20, %v7413_v58 }
 0x842   :  { %7908 = vmatmul.bf16.vlgmr.msra.gmra.mxu0 %v7758_v32  ;;  %v7672_v35 = vmul.f32 %v15110_v56, %v7457_v25  ;;  %v11816_v32 = vld [vmem:[#allocation9 + $0x50] sm:$0xff] }
 0x843   :  { %7607 = vmatmul.bf16.gmra.mxu2 %v16690_v4  ;;  %v7385_v4 = vpop.f32.mrf.mxu1  ;;  %7949 = vmatpush.bf16.msra.mxu1 %v11816_v32 }
 0x844   :  { %v7706_v21 = vadd.f32 %v15121_v47, %v7672_v35 }
 0x846   :  { %v15141_v17 = vpop.f32.mrf.mxu2  ;;  %v7734_v63 = vmax.f32 %v7706_v21, 0.0  ;;  %v7386_v21 = vadd.f32 %v7385_v4, %v15145_v37 }
 0x847   :  { %v7458_v34 = vpop.f32.mrf.mxu3  ;;  %v7428_v35 = vadd.f32 %v15141_v17, %v7384_v15  ;;  %7950 = vmatpush.bf16.msra.mxu1 %v11815_v8 }
 0x848   :  { %v7459_v59 = vadd.f32 %v7458_v34, %v7415_v11 }
 0x84a   :  { %v7674_v41 = vmul.f32 %v15110_v56, %v7459_v59 }
 0x84b   :  { %v7388_v14 = vpop.f32.mrf.mxu1 }
 0x84c   :  { %v7708_v9 = vadd.f32 %v15121_v47, %v7674_v41  ;;  %7641 = vmatmul.bf16.gmra.mxu3 %v15041_v57  ;;  %v7344_v57 = vpop.f32.mrf.mxu0 }
 0x84e   :  { %v7736_v61 = vmax.f32 %v7708_v9, 0.0  ;;  %v7429_v60 = vpop.f32.mrf.mxu2 }
 0x84f   :  { %v7461_v31 = vpop.f32.mrf.mxu3  ;;  %v7430_v28 = vadd.f32 %v7429_v60, %v7386_v21 }
 0x850   :  { %v7760_v12 = vpack.c.bf16 %v7736_v61, %v7734_v63  ;;  %v7462_v49 = vadd.f32 %v7461_v31, %v7418_v6  ;;  %v7389_v6 = vadd.f32 %v7388_v14, %v7344_v57 }
 0x852   :  { %7913 = vmatmul.bf16.gmra.mxu0 %v7760_v12  ;;  %v7676_v51 = vmul.f32 %v15110_v56, %v7462_v49 }
 0x853   :  { %7612 = vmatmul.bf16.gmra.mxu2 %v16693_v0  ;;  %v7379_v0 = vadd.f32 %v15101_v16, %v15099_v24  ;;  %v7390_v3 = vpop.f32.mrf.mxu1 }
 0x854   :  { %v7710_v52 = vadd.f32 %v15121_v47, %v7676_v51  ;;  %v7346_v26 = vpop.f32.mrf.mxu0 }
 0x855   :  { %v7423_v5 = vadd.f32 %v15123_v36, %v7379_v0 }
 0x856   :  { %v7432_v29 = vpop.f32.mrf.mxu2  ;;  %v7738_v1 = vmax.f32 %v7710_v52, 0.0 }
 0x857   :  { %v7463_v19 = vpop.f32.mrf.mxu3  ;;  %v7433_v7 = vadd.f32 %v7432_v29, %v7389_v6 }
 0x858   :  { %v7464_v33 = vadd.f32 %v7463_v19, %v7420_v45 }
 0x85a   :  { %v7678_v38 = vmul.f32 %v15110_v56, %v7464_v33  ;;  %v7391_v33 = vadd.f32 %v7390_v3, %v7346_v26 }
 0x85b   :  { %v7393_v58 = vpop.f32.mrf.mxu1 }
 0x85c   :  { %v7712_v48 = vadd.f32 %v15121_v47, %v7678_v38  ;;  %7646 = vmatmul.bf16.gmra.mxu3 %v15058_v53  ;;  %v7425_v53 = vadd.f32 %v7424_v23, %v7381_v54  ;;  %v7349_v16 = vpop.f32.mrf.mxu0 }
 0x85e   :  { %v7740_v10 = vmax.f32 %v7712_v48, 0.0  ;;  %v7434_v13 = vpop.f32.mrf.mxu2  ;;  %v11814_v48 = vld [vmem:[#allocation9 + $0x40] sm:$0xff] }
 0x85f   :  { %v7466_v46 = vpop.f32.mrf.mxu3  ;;  %v7435_v52 = vadd.f32 %v7434_v13, %v7391_v33  ;;  %7951 = vmatpush.bf16.msra.mxu1 %v11814_v48 }
 0x860   :  { %v7762_v22 = vpack.c.bf16 %v7740_v10, %v7738_v1  ;;  %v7467_v18 = vadd.f32 %v7466_v46, %v7423_v5  ;;  %v7394_v46 = vadd.f32 %v7393_v58, %v7349_v16 }
 0x862   :  { %7918 = vmatmul.bf16.gmra.mxu0 %v7762_v22  ;;  %v7680_v50 = vmul.f32 %v15110_v56, %v7467_v18 }
 0x863   :  { %v7395_v9 = vpop.f32.mrf.mxu1 }
 0x864   :  { %v7714_v39 = vadd.f32 %v15121_v47, %v7680_v50  ;;  %v7351_v41 = vpop.f32.mrf.mxu0 }
 0x865   :  { %v7396_v50 = vadd.f32 %v7395_v9, %v7351_v41  ;;  %v15187_v9 = vperm.slane %v15106_v30, 1 }
 0x866   :  { %v7437_v25 = vpop.f32.mrf.mxu2  ;;  %v7742_v27 = vmax.f32 %v7714_v39, 0.0 }
 0x867   :  { %v7468_v55 = vpop.f32.mrf.mxu3  ;;  %v7438_v3 = vadd.f32 %v7437_v25, %v7394_v46 }
 0x868   :  { %v7469_v24 = vadd.f32 %v7468_v55, %v7425_v53 }
 0x86a   :  { %v7682_v20 = vmul.f32 %v15110_v56, %v7469_v24 }
 0x86b   :  { %v7539_v60 = vpop.f32.mrf.mxu1 }
 0x86c   :  { %v7716_v36 = vadd.f32 %v15121_v47, %v7682_v20  ;;  %7651 = vmatmul.bf16.gmra.mxu3 %v15075_v40  ;;  %v7495_v37 = vpop.f32.mrf.mxu0 }
 0x86e   :  { %v7744_v23 = vmax.f32 %v7716_v36, 0.0  ;;  %v7439_v63 = vpop.f32.mrf.mxu2 }
 0x86f   :  { %v7471_v11 = vpop.f32.mrf.mxu3  ;;  %v7440_v24 = vadd.f32 %v7439_v63, %v7396_v50 }
 0x870   :  { %v7764_v34 = vpack.c.bf16 %v7744_v23, %v7742_v27  ;;  %v7472_v59 = vadd.f32 %v7471_v11, %v7428_v35  ;;  %v7540_v27 = vadd.f32 %v7539_v60, %v7495_v37 }
 0x872   :  { %7923 = vmatmul.bf16.gmra.mxu0 %v7764_v34  ;;  %v7684_v40 = vmul.f32 %v15110_v56, %v7472_v59 }
 0x874   :  { %v7718_v44 = vadd.f32 %v15121_v47, %v7684_v40  ;;  %v7497_v0 = vpop.f32.mrf.mxu0 }
 0x876   :  { %v7746_v4 = vmax.f32 %v7718_v44, 0.0  ;;  %v7583_v51 = vpop.f32.mrf.mxu2 }
 0x877   :  { %v7473_v61 = vpop.f32.mrf.mxu3  ;;  %v7584_v59 = vadd.f32 %v7583_v51, %v7540_v27 }
 0x878   :  { %v7474_v42 = vadd.f32 %v7473_v61, %v7430_v28 }
 0x87a   :  { %v7686_v31 = vmul.f32 %v15110_v56, %v7474_v42 }
 0x87c   :  { %v7720_v17 = vadd.f32 %v15121_v47, %v7686_v31  ;;  %7656 = vmatmul.bf16.gmra.mxu3 %v15084_v2  ;;  %v7541_v2 = vpop.f32.mrf.mxu1  ;;  %v7500_v13 = vpop.f32.mrf.mxu0 }
 0x87d   :  { %v7542_v28 = vadd.f32 %v7541_v2, %v7497_v0 }
 0x87e   :  { %v7748_v12 = vmax.f32 %v7720_v17, 0.0  ;;  %v7585_v10 = vpop.f32.mrf.mxu2 }
 0x87f   :  { %v7476_v49 = vpop.f32.mrf.mxu3  ;;  %v7586_v8 = vadd.f32 %v7585_v10, %v7542_v28 }
 0x880   :  { %v7766_v45 = vpack.c.bf16 %v7748_v12, %v7746_v4  ;;  %v7477_v19 = vadd.f32 %v7476_v49, %v7433_v7 }
 0x882   :  { %7928 = vmatmul.bf16.gmra.mxu0 %v7766_v45  ;;  %v7688_v38 = vmul.f32 %v15110_v56, %v7477_v19 }
 0x884   :  { %v7722_v57 = vadd.f32 %v15121_v47, %v7688_v38  ;;  %v7544_v53 = vpop.f32.mrf.mxu1  ;;  %v7502_v58 = vpop.f32.mrf.mxu0  ;;  %v11829_v38 = vld [vmem:[%s15578_s13 + $0x38] sm:$0xff] }
 0x885   :  { %v7545_v6 = vadd.f32 %v7544_v53, %v7500_v13  ;;  %8109 = vmatpush.bf16.msrb.mxu2 %v11829_v38 }
 0x886   :  { %v7750_v5 = vmax.f32 %v7722_v57, 0.0  ;;  %v7588_v55 = vpop.f32.mrf.mxu2 }
 0x887   :  { %v7478_v43 = vpop.f32.mrf.mxu3  ;;  %v7589_v49 = vadd.f32 %v7588_v55, %v7545_v6 }
 0x888   :  { %v7479_v1 = vadd.f32 %v7478_v43, %v7435_v52 }
 0x88a   :  { %v7690_v14 = vmul.f32 %v15110_v56, %v7479_v1 }
 0x88c   :  { %v7724_v29 = vadd.f32 %v15121_v47, %v7690_v14  ;;  %v7546_v25 = vpop.f32.mrf.mxu1  ;;  %v7505_v40 = vpop.f32.mrf.mxu0 }
 0x88d   :  { %v7547_v19 = vadd.f32 %v7546_v25, %v7502_v58 }
 0x88e   :  { %v7752_v22 = vmax.f32 %v7724_v29, 0.0  ;;  %v7590_v35 = vpop.f32.mrf.mxu2 }
 0x88f   :  { %v7481_v26 = vpop.f32.mrf.mxu3  ;;  %v7591_v33 = vadd.f32 %v7590_v35, %v7547_v19 }
 0x890   :  { %v7768_v18 = vpack.c.bf16 %v7752_v22, %v7750_v5  ;;  %v7482_v54 = vadd.f32 %v7481_v26, %v7438_v3 }
 0x892   :  { %7933 = vmatmul.bf16.gmra.mxu0 %v7768_v18  ;;  %v7692_v39 = vmul.f32 %v15110_v56, %v7482_v54 }
 0x894   :  { %v7726_v32 = vadd.f32 %v15121_v47, %v7692_v39  ;;  %v7549_v63 = vpop.f32.mrf.mxu1  ;;  %v7507_v60 = vpop.f32.mrf.mxu0 }
 0x895   :  { %v7550_v29 = vadd.f32 %v7549_v63, %v7505_v40 }
 0x896   :  { %v7754_v23 = vmax.f32 %v7726_v32, 0.0  ;;  %v7593_v44 = vpop.f32.mrf.mxu2 }
 0x897   :  { %v7483_v20 = vpop.f32.mrf.mxu3  ;;  %v7594_v26 = vadd.f32 %v7593_v44, %v7550_v29 }
 0x898   :  { %v7484_v36 = vadd.f32 %v7483_v20, %v7440_v24  ;;  %v11828_v24 = vld [vmem:[%s15578_s13 + $0x30] sm:$0xff] }
 0x899   :  { %8110 = vmatpush.bf16.msrb.mxu2 %v11828_v24 }
 0x89a   :  { %v7694_v16 = vmul.f32 %v15110_v56, %v7484_v36 }
 0x89c   :  { %v7728_v15 = vadd.f32 %v15121_v47, %v7694_v16  ;;  %v15191_v47 = vperm.slane %v15115_v62, 1  ;;  %v7551_v45 = vpop.f32.mrf.mxu1  ;;  %v7510_v0 = vpop.f32.mrf.mxu0 }
 0x89d   :  { %v7552_v13 = vadd.f32 %v7551_v45, %v7507_v60  ;;  %v11826_v60 = vld [vmem:[%s15578_s13 + $0x20] sm:$0xff] }
 0x89e   :  { %v7756_v11 = vmax.f32 %v7728_v15, 0.0  ;;  %v7595_v51 = vpop.f32.mrf.mxu2 }
 0x89f   :  { %v7627_v34 = vpop.f32.mrf.mxu3  ;;  %v7596_v50 = vadd.f32 %v7595_v51, %v7552_v13 }
 0x8a0   :  { %v7770_v21 = vpack.c.bf16 %v7756_v11, %v7754_v23  ;;  %v7628_v41 = vadd.f32 %v7627_v34, %v7584_v59  ;;  %v11827_v11 = vld [vmem:[%s15578_s13 + $0x28] sm:$0xff] }
 0x8a1   :  { %8111 = vmatpush.bf16.msrb.mxu2 %v11827_v11 }
 0x8a2   :  { %7938 = vmatmul.bf16.gmra.mxu0 %v7770_v21  ;;  %v7669_v56 = vmul.f32 %v15187_v9, %v7628_v41 }
 0x8a4   :  { %v7703_v31 = vadd.f32 %v15191_v47, %v7669_v56  ;;  %v7554_v57 = vpop.f32.mrf.mxu1  ;;  %v7512_v54 = vpop.f32.mrf.mxu0 }
 0x8a5   :  { %v7555_v15 = vadd.f32 %v7554_v57, %v7510_v0  ;;  %8112 = vmatpush.bf16.msrb.mxu2 %v11826_v60  ;;  %v11822_v60 = vld [vmem:[%s15578_s13] sm:$0xff] }
 0x8a6   :  { %v7731_v37 = vmax.f32 %v7703_v31, 0.0  ;;  %v7598_v10 = vpop.f32.mrf.mxu2 }
 0x8a7   :  { %v7629_v61 = vpop.f32.mrf.mxu3  ;;  %v7599_v59 = vadd.f32 %v7598_v10, %v7555_v15 }
 0x8a8   :  { %v7630_v42 = vadd.f32 %v7629_v61, %v7586_v8 }
 0x8aa   :  { %v7671_v17 = vmul.f32 %v15187_v9, %v7630_v42 }
 0x8ac   :  { %v7705_v30 = vadd.f32 %v15191_v47, %v7671_v17  ;;  %v7556_v53 = vpop.f32.mrf.mxu1  ;;  %v7515_v25 = vpop.f32.mrf.mxu0 }
 0x8ad   :  { %v7557_v40 = vadd.f32 %v7556_v53, %v7512_v54 }
 0x8ae   :  { %v7733_v4 = vmax.f32 %v7705_v30, 0.0  ;;  %v7600_v39 = vpop.f32.mrf.mxu2 }
 0x8af   :  { %v7632_v12 = vpop.f32.mrf.mxu3  ;;  %v7601_v8 = vadd.f32 %v7600_v39, %v7557_v40 }
 0x8b0   :  { %v7759_v7 = vpack.c.bf16 %v7733_v4, %v7731_v37  ;;  %v7633_v62 = vadd.f32 %v7632_v12, %v7589_v49 }
 0x8b2   :  { %7952 = vmatmul.bf16.vlgmr.msra.gmra.mxu1 %v7759_v7  ;;  %v7673_v52 = vmul.f32 %v15187_v9, %v7633_v62 }
 0x8b4   :  { %v7707_v1 = vadd.f32 %v15191_v47, %v7673_v52  ;;  %v7559_v35 = vpop.f32.mrf.mxu1  ;;  %v7517_v61 = vpop.f32.mrf.mxu0 }
 0x8b5   :  { %v7560_v37 = vadd.f32 %v7559_v35, %v7515_v25 }
 0x8b6   :  { %v7735_v46 = vmax.f32 %v7707_v1, 0.0  ;;  %v7603_v41 = vpop.f32.mrf.mxu2 }
 0x8b7   :  { %v7634_v48 = vpop.f32.mrf.mxu3  ;;  %v7604_v7 = vadd.f32 %v7603_v41, %v7560_v37 }
 0x8b8   :  { %v7635_v43 = vadd.f32 %v7634_v48, %v7591_v33 }
 0x8ba   :  { %v7675_v2 = vmul.f32 %v15187_v9, %v7635_v43 }
 0x8bc   :  { %v7709_v14 = vadd.f32 %v15191_v47, %v7675_v2  ;;  %v7561_v44 = vpop.f32.mrf.mxu1  ;;  %v7520_v62 = vpop.f32.mrf.mxu0 }
 0x8bd   :  { %v7562_v33 = vadd.f32 %v7561_v44, %v7517_v61 }
 0x8be   :  { %v7737_v5 = vmax.f32 %v7709_v14, 0.0  ;;  %v7605_v30 = vpop.f32.mrf.mxu2 }
 0x8bf   :  { %v7637_v22 = vpop.f32.mrf.mxu3  ;;  %v7606_v38 = vadd.f32 %v7605_v30, %v7562_v33 }
 0x8c0   :  { %v7761_v3 = vpack.c.bf16 %v7737_v5, %v7735_v46  ;;  %v7638_v18 = vadd.f32 %v7637_v22, %v7594_v26  ;;  %v11825_v22 = vld [vmem:[%s15578_s13 + $0x18] sm:$0xff] }
 0x8c1   :  { %8113 = vmatpush.bf16.msrb.mxu2 %v11825_v22 }
 0x8c2   :  { %7957 = vmatmul.bf16.gmra.mxu1 %v7761_v3  ;;  %v7677_v55 = vmul.f32 %v15187_v9, %v7638_v18 }
 0x8c4   :  { %v7711_v32 = vadd.f32 %v15191_v47, %v7677_v55  ;;  %v7564_v19 = vpop.f32.mrf.mxu1  ;;  %v7522_v57 = vpop.f32.mrf.mxu0 }
 0x8c5   :  { %v7565_v29 = vadd.f32 %v7564_v19, %v7520_v62  ;;  %v15253_v19 = vld [vmem:[%s15577_s12] ss:$0 sm:$0xff] }
 0x8c6   :  { %v7739_v27 = vmax.f32 %v7711_v32, 0.0  ;;  %v7608_v52 = vpop.f32.mrf.mxu2  ;;  %v11824_v32 = vld [vmem:[%s15578_s13 + $0x10] sm:$0xff] }
 0x8c7   :  { %v7639_v20 = vpop.f32.mrf.mxu3  ;;  %v7609_v18 = vadd.f32 %v7608_v52, %v7565_v29  ;;  %8114 = vmatpush.bf16.msrb.mxu2 %v11824_v32 }
 0x8c8   :  { %v7640_v36 = vadd.f32 %v7639_v20, %v7596_v50 }
 0x8ca   :  { %v7679_v16 = vmul.f32 %v15187_v9, %v7640_v36 }
 0x8cc   :  { %v7713_v58 = vadd.f32 %v15191_v47, %v7679_v16  ;;  %v7566_v10 = vpop.f32.mrf.mxu1  ;;  %v7525_v50 = vpop.f32.mrf.mxu0 }
 0x8cd   :  { %v7567_v53 = vadd.f32 %v7566_v10, %v7522_v57 }
 0x8ce   :  { %v7741_v23 = vmax.f32 %v7713_v58, 0.0  ;;  %v7610_v26 = vpop.f32.mrf.mxu2 }
 0x8cf   :  { %v7642_v34 = vpop.f32.mrf.mxu3  ;;  %v7611_v55 = vadd.f32 %v7610_v26, %v7567_v53 }
 0x8d0   :  { %v7763_v21 = vpack.c.bf16 %v7741_v23, %v7739_v27  ;;  %v7643_v28 = vadd.f32 %v7642_v34, %v7599_v59 }
 0x8d2   :  { %7962 = vmatmul.bf16.gmra.mxu1 %v7763_v21  ;;  %v7681_v56 = vmul.f32 %v15187_v9, %v7643_v28  ;;  %v11823_v21 = vld [vmem:[%s15578_s13 + $0x8] sm:$0xff]  ;;  %s16708_s13 = sld [smem:[#allocation194_spill]] }
 0x8d3   :  { %8115 = vmatpush.bf16.msrb.mxu2 %v11823_v21 }
 0x8d4   :  { %v7715_v31 = vadd.f32 %v15191_v47, %v7681_v56  ;;  %v7569_v39 = vpop.f32.mrf.mxu1  ;;  %v7527_v41 = vpop.f32.mrf.mxu0 }
 0x8d5   :  { %v7570_v27 = vadd.f32 %v7569_v39, %v7525_v50 }
 0x8d6   :  { %v7743_v4 = vmax.f32 %v7715_v31, 0.0  ;;  %v7613_v16 = vpop.f32.mrf.mxu2 }
 0x8d7   :  { %v7644_v63 = vpop.f32.mrf.mxu3  ;;  %v7614_v34 = vadd.f32 %v7613_v16, %v7570_v27  ;;  %8116 = vmatpush.bf16.msrb.mxu2 %v11822_v60 }
 0x8d8   :  { %v7645_v42 = vadd.f32 %v7644_v63, %v7601_v8 }
 0x8da   :  { %v7683_v17 = vmul.f32 %v15187_v9, %v7645_v42 }
 0x8dc   :  { %v7717_v6 = vadd.f32 %v15191_v47, %v7683_v17  ;;  %v7571_v28 = vpop.f32.mrf.mxu1 }
 0x8dd   :  { %v7572_v56 = vadd.f32 %v7571_v28, %v7527_v41  ;;  %v11832_v41 = vld [vmem:[%s15581_s16 + $0x10] sm:$0xff] }
 0x8de   :  { %v7745_v12 = vmax.f32 %v7717_v6, 0.0  ;;  %v7615_v8 = vpop.f32.mrf.mxu2 }
 0x8df   :  { %v7647_v49 = vpop.f32.mrf.mxu3  ;;  %v7616_v63 = vadd.f32 %v7615_v8, %v7572_v56 }
 0x8e0   :  { %v7765_v45 = vpack.c.bf16 %v7745_v12, %v7743_v4  ;;  %v7648_v51 = vadd.f32 %v7647_v49, %v7604_v7  ;;  %v7909_v12 = vpop.f32.mrf.mxu0 }
 0x8e2   :  { %7967 = vmatmul.bf16.gmra.mxu1 %v7765_v45  ;;  %v7685_v48 = vmul.f32 %v15187_v9, %v7648_v51 }
 0x8e4   :  { %v7719_v1 = vadd.f32 %v15191_v47, %v7685_v48 }
 0x8e6   :  { %v7747_v46 = vmax.f32 %v7719_v1, 0.0 }
 0x8e7   :  { %v7649_v43 = vpop.f32.mrf.mxu3 }
 0x8e8   :  { %v7650_v0 = vadd.f32 %v7649_v43, %v7606_v38  ;;  %v7911_v49 = vpop.f32.mrf.mxu0 }
 0x8ea   :  { %v7687_v2 = vmul.f32 %v15187_v9, %v7650_v0 }
 0x8ec   :  { %v7721_v14 = vadd.f32 %v15191_v47, %v7687_v2 }
 0x8ee   :  { %v7749_v5 = vmax.f32 %v7721_v14, 0.0 }
 0x8ef   :  { %v7652_v3 = vpop.f32.mrf.mxu3 }
 0x8f0   :  { %v7767_v13 = vpack.c.bf16 %v7749_v5, %v7747_v46  ;;  %v7653_v54 = vadd.f32 %v7652_v3, %v7609_v18  ;;  %v7914_v7 = vpop.f32.mrf.mxu0  ;;  %v11833_v46 = vld [vmem:[%s15581_s16 + $0x18] sm:$0xff] }
 0x8f1   :  { %8268 = vmatpush.bf16.msrb.mxu3 %v11833_v46 }
 0x8f2   :  { %7972 = vmatmul.bf16.gmra.mxu1 %v7767_v13  ;;  %v7689_v24 = vmul.f32 %v15187_v9, %v7653_v54 }
 0x8f4   :  { %v7723_v58 = vadd.f32 %v15191_v47, %v7689_v24 }
 0x8f5   :  { %8269 = vmatpush.bf16.msrb.mxu3 %v11832_v41 }
 0x8f6   :  { %v7751_v23 = vmax.f32 %v7723_v58, 0.0 }
 0x8f7   :  { %v7654_v20 = vpop.f32.mrf.mxu3 }
 0x8f8   :  { %v7655_v36 = vadd.f32 %v7654_v20, %v7611_v55 }
 0x8fa   :  { %v7691_v15 = vmul.f32 %v15187_v9, %v7655_v36 }
 0x8fc   :  { %v7725_v25 = vadd.f32 %v15191_v47, %v7691_v15 }
 0x8fe   :  { %v7753_v11 = vmax.f32 %v7725_v25, 0.0 }
 0x8ff   :  { %v7657_v35 = vpop.f32.mrf.mxu3 }
 0x900   :  { %v7769_v59 = vpack.c.bf16 %v7753_v11, %v7751_v23  ;;  %v7658_v40 = vadd.f32 %v7657_v35, %v7614_v34 }
 0x902   :  { %7977 = vmatmul.bf16.gmra.mxu1 %v7769_v59  ;;  %v7693_v61 = vmul.f32 %v15187_v9, %v7658_v40 }
 0x904   :  { %v7727_v31 = vadd.f32 %v15191_v47, %v7693_v61 }
 0x906   :  { %v7755_v6 = vmax.f32 %v7727_v31, 0.0 }
 0x907   :  { %v7659_v42 = vpop.f32.mrf.mxu3 }
 0x908   :  { %v7660_v44 = vadd.f32 %v7659_v42, %v7616_v63 }
 0x90a   :  { %v7695_v17 = vmul.f32 %v15187_v9, %v7660_v44  ;;  %v15247_v9 = vld [vmem:[%s15576_s11] ss:$0 sm:$0xff] }
 0x90c   :  { %v7729_v30 = vadd.f32 %v15191_v47, %v7695_v17  ;;  %v7916_v47 = vpop.f32.mrf.mxu0 }
 0x90e   :  { %v7757_v37 = vmax.f32 %v7729_v30, 0.0 }
 0x910   :  { %v7771_v4 = vpack.c.bf16 %v7757_v37, %v7755_v6 }
 0x912   :  { %7982 = vmatmul.bf16.gmra.mxu1 %v7771_v4 }
 0x914   :  { %v7919_v0 = vpop.f32.mrf.mxu0 }
 0x91c   :  { %v7921_v5 = vpop.f32.mrf.mxu0 }
 0x924   :  { %v7924_v24 = vpop.f32.mrf.mxu0 }
 0x92c   :  { %v7926_v15 = vpop.f32.mrf.mxu0 }
 0x92f   :  { %v7953_v45 = vpop.f32.mrf.mxu1 }
 0x930   :  { %v7954_v62 = vadd.f32 %v7953_v45, %v7909_v12 }
 0x932   :  { %v7992_v51 = vmul.f32 %v15247_v9, %v7954_v62 }
 0x934   :  { %v8010_v38 = vadd.f32 %v15253_v19, %v7992_v51  ;;  %v7929_v59 = vpop.f32.mrf.mxu0 }
 0x936   :  { %v8024_v1 = vmax.f32 %v8010_v38, 0.0  ;;  %v11830_v38 = vld [vmem:[%s15581_s16] sm:$0xff] }
 0x937   :  { %v7955_v33 = vpop.f32.mrf.mxu1 }
 0x938   :  { %v7956_v52 = vadd.f32 %v7955_v33, %v7911_v49 }
 0x93a   :  { %v7993_v48 = vmul.f32 %v15247_v9, %v7956_v52 }
 0x93c   :  { %v8011_v43 = vadd.f32 %v15253_v19, %v7993_v48  ;;  %v7931_v44 = vpop.f32.mrf.mxu0 }
 0x93e   :  { %v8025_v2 = vmax.f32 %v8011_v43, 0.0 }
 0x93f   :  { %v7958_v57 = vpop.f32.mrf.mxu1 }
 0x940   :  { %v8038_v14 = vpack.c.bf16 %v8025_v2, %v8024_v1  ;;  %v7959_v10 = vadd.f32 %v7958_v57, %v7914_v7 }
 0x942   :  { %8117 = vmatmul.bf16.vlgmr.msrb.gmra.mxu2 %v8038_v14  ;;  %v7994_v29 = vmul.f32 %v15247_v9, %v7959_v10 }
 0x944   :  { %v8012_v3 = vadd.f32 %v15253_v19, %v7994_v29  ;;  %v7934_v12 = vpop.f32.mrf.mxu0 }
 0x946   :  { %v8026_v54 = vmax.f32 %v8012_v3, 0.0 }
 0x947   :  { %v7960_v22 = vpop.f32.mrf.mxu1 }
 0x948   :  { %v7961_v26 = vadd.f32 %v7960_v22, %v7916_v47  ;;  %v11831_v47 = vld [vmem:[%s15581_s16 + $0x8] sm:$0xff]  ;;  %s16710_s16 = sld [smem:[#allocation196_spill]] }
 0x949   :  { %8270 = vmatpush.bf16.msrb.mxu3 %v11831_v47 }
 0x94a   :  { %v7995_v18 = vmul.f32 %v15247_v9, %v7961_v26 }
 0x94c   :  { %v8013_v13 = vadd.f32 %v15253_v19, %v7995_v18  ;;  %v7936_v48 = vpop.f32.mrf.mxu0 }
 0x94d   :  { %8271 = vmatpush.bf16.msrb.mxu3 %v11830_v38 }
 0x94e   :  { %v8027_v53 = vmax.f32 %v8013_v13, 0.0 }
 0x94f   :  { %v7963_v50 = vpop.f32.mrf.mxu1 }
 0x950   :  { %v8039_v55 = vpack.c.bf16 %v8027_v53, %v8026_v54  ;;  %v7964_v39 = vadd.f32 %v7963_v50, %v7919_v0 }
 0x952   :  { %8122 = vmatmul.bf16.gmra.mxu2 %v8039_v55  ;;  %v7996_v20 = vmul.f32 %v15247_v9, %v7964_v39 }
 0x954   :  { %v8014_v16 = vadd.f32 %v15253_v19, %v7996_v20  ;;  %v7939_v10 = vpop.f32.mrf.mxu0 }
 0x956   :  { %v8028_v27 = vmax.f32 %v8014_v16, 0.0 }
 0x957   :  { %v7965_v36 = vpop.f32.mrf.mxu1 }
 0x958   :  { %v7966_v32 = vadd.f32 %v7965_v36, %v7921_v5 }
 0x95a   :  { %v7997_v58 = vmul.f32 %v15247_v9, %v7966_v32  ;;  %v15297_v32 = vld [vmem:[%s15579_s14] ss:$0 sm:$0xff] }
 0x95c   :  { %v8015_v25 = vadd.f32 %v15253_v19, %v7997_v58  ;;  %v7941_v18 = vpop.f32.mrf.mxu0  ;;  %v15303_v58 = vld [vmem:[%s15580_s15] ss:$0 sm:$0xff] }
 0x95e   :  { %v8029_v23 = vmax.f32 %v8015_v25, 0.0 }
 0x95f   :  { %v7968_v11 = vpop.f32.mrf.mxu1 }
 0x960   :  { %v8040_v35 = vpack.c.bf16 %v8029_v23, %v8028_v27  ;;  %v7969_v34 = vadd.f32 %v7968_v11, %v7924_v24 }
 0x962   :  { %8127 = vmatmul.bf16.gmra.mxu2 %v8040_v35  ;;  %v7998_v21 = vmul.f32 %v15247_v9, %v7969_v34 }
 0x964   :  { %v8016_v8 = vadd.f32 %v15253_v19, %v7998_v21 }
 0x966   :  { %v8030_v61 = vmax.f32 %v8016_v8, 0.0 }
 0x967   :  { %v7970_v28 = vpop.f32.mrf.mxu1 }
 0x968   :  { %v7971_v40 = vadd.f32 %v7970_v28, %v7926_v15 }
 0x96a   :  { %v7999_v56 = vmul.f32 %v15247_v9, %v7971_v40 }
 0x96c   :  { %v8017_v63 = vadd.f32 %v15253_v19, %v7999_v56 }
 0x96e   :  { %v8031_v42 = vmax.f32 %v8017_v63, 0.0 }
 0x96f   :  { %v7973_v31 = vpop.f32.mrf.mxu1 }
 0x970   :  { %v8041_v17 = vpack.c.bf16 %v8031_v42, %v8030_v61  ;;  %v7974_v30 = vadd.f32 %v7973_v31, %v7929_v59  ;;  %v11835_v59 = vld [vmem:[%s15584_s19 + $0x8] sm:$0xff] }
 0x971   :  { %8409 = vmatpush.bf16.msrb.mxu0 %v11835_v59 }
 0x972   :  { %8132 = vmatmul.bf16.gmra.mxu2 %v8041_v17  ;;  %v8000_v6 = vmul.f32 %v15247_v9, %v7974_v30 }
 0x974   :  { %v8018_v60 = vadd.f32 %v15253_v19, %v8000_v6 }
 0x976   :  { %v8032_v45 = vmax.f32 %v8018_v60, 0.0 }
 0x977   :  { %v7975_v37 = vpop.f32.mrf.mxu1 }
 0x978   :  { %v7976_v4 = vadd.f32 %v7975_v37, %v7931_v44 }
 0x97a   :  { %v8001_v49 = vmul.f32 %v15247_v9, %v7976_v4 }
 0x97c   :  { %v8019_v7 = vadd.f32 %v15253_v19, %v8001_v49 }
 0x97e   :  { %v8033_v62 = vmax.f32 %v8019_v7, 0.0 }
 0x97f   :  { %v7978_v51 = vpop.f32.mrf.mxu1 }
 0x980   :  { %v8042_v33 = vpack.c.bf16 %v8033_v62, %v8032_v45  ;;  %v7979_v52 = vadd.f32 %v7978_v51, %v7934_v12 }
 0x982   :  { %8137 = vmatmul.bf16.gmra.mxu2 %v8042_v33  ;;  %v8002_v43 = vmul.f32 %v15247_v9, %v7979_v52 }
 0x984   :  { %v8020_v2 = vadd.f32 %v15253_v19, %v8002_v43 }
 0x986   :  { %v8034_v29 = vmax.f32 %v8020_v2, 0.0 }
 0x987   :  { %v7980_v0 = vpop.f32.mrf.mxu1 }
 0x988   :  { %v7981_v1 = vadd.f32 %v7980_v0, %v7936_v48 }
 0x98a   :  { %v8003_v57 = vmul.f32 %v15247_v9, %v7981_v1 }
 0x98c   :  { %v8021_v14 = vadd.f32 %v15253_v19, %v8003_v57 }
 0x98e   :  { %v8035_v46 = vmax.f32 %v8021_v14, 0.0 }
 0x98f   :  { %v7983_v5 = vpop.f32.mrf.mxu1 }
 0x990   :  { %v8043_v22 = vpack.c.bf16 %v8035_v46, %v8034_v29  ;;  %v7984_v26 = vadd.f32 %v7983_v5, %v7939_v10  ;;  %v11834_v10 = vld [vmem:[%s15584_s19] sm:$0xff] }
 0x991   :  { %8410 = vmatpush.bf16.msrb.mxu0 %v11834_v10 }
 0x992   :  { %8142 = vmatmul.bf16.gmra.mxu2 %v8043_v22  ;;  %v8004_v3 = vmul.f32 %v15247_v9, %v7984_v26 }
 0x994   :  { %v8022_v53 = vadd.f32 %v15253_v19, %v8004_v3 }
 0x996   :  { %v8036_v24 = vmax.f32 %v8022_v53, 0.0 }
 0x997   :  { %v7985_v13 = vpop.f32.mrf.mxu1 }
 0x998   :  { %v7986_v54 = vadd.f32 %v7985_v13, %v7941_v18 }
 0x99a   :  { %v8005_v50 = vmul.f32 %v15247_v9, %v7986_v54 }
 0x99c   :  { %v8023_v55 = vadd.f32 %v15253_v19, %v8005_v50 }
 0x99e   :  { %v8037_v39 = vmax.f32 %v8023_v55, 0.0 }
 0x9a0   :  { %v8044_v20 = vpack.c.bf16 %v8037_v39, %v8036_v24 }
 0x9a2   :  { %8147 = vmatmul.bf16.gmra.mxu2 %v8044_v20 }
 0x9c5   :  { %v8118_v36 = vpop.f32.mrf.mxu2 }
 0x9c6   :  { %v8157_v16 = vmul.f32 %v15297_v32, %v8118_v36 }
 0x9c8   :  { %v8175_v19 = vadd.f32 %v15303_v58, %v8157_v16 }
 0x9ca   :  { %v8189_v27 = vmax.f32 %v8175_v19, 0.0 }
 0x9cd   :  { %v8120_v9 = vpop.f32.mrf.mxu2 }
 0x9ce   :  { %v8158_v15 = vmul.f32 %v15297_v32, %v8120_v9 }
 0x9d0   :  { %v8176_v25 = vadd.f32 %v15303_v58, %v8158_v15  ;;  %v15348_v15 = vld [vmem:[%s15582_s17] ss:$0 sm:$0xff] }
 0x9d2   :  { %v8190_v23 = vmax.f32 %v8176_v25, 0.0 }
 0x9d4   :  { %v8203_v11 = vpack.c.bf16 %v8190_v23, %v8189_v27  ;;  %v15354_v27 = vld [vmem:[%s15583_s18] ss:$0 sm:$0xff] }
 0x9d5   :  { %v8123_v35 = vpop.f32.mrf.mxu2 }
 0x9d6   :  { %11197 = vmatmul.msk.bf16.vlgmr.msrb.gmra.mxu3 %vm8242_vm0, %v8203_v11  ;;  %v8159_v34 = vmul.f32 %v15297_v32, %v8123_v35 }
 0x9d8   :  { %v8177_v41 = vadd.f32 %v15303_v58, %v8159_v34 }
 0x9da   :  { %v8191_v8 = vmax.f32 %v8177_v41, 0.0 }
 0x9dd   :  { %v8125_v21 = vpop.f32.mrf.mxu2 }
 0x9de   :  { %v8160_v28 = vmul.f32 %v15297_v32, %v8125_v21  ;;  %v11836_v21 = vld [vmem:[%s15587_s22] sm:$0xff] }
 0x9df   :  { %8541 = vmatpush.bf16.msrb.mxu1 %v11836_v21 }
 0x9e0   :  { %v8178_v40 = vadd.f32 %v15303_v58, %v8160_v28 }
 0x9e2   :  { %v8192_v56 = vmax.f32 %v8178_v40, 0.0 }
 0x9e4   :  { %v8204_v63 = vpack.c.bf16 %v8192_v56, %v8191_v8 }
 0x9e5   :  { %v8128_v61 = vpop.f32.mrf.mxu2 }
 0x9e6   :  { %11198 = vmatmul.msk.bf16.gmra.mxu3 %vm8242_vm0, %v8204_v63  ;;  %v8161_v42 = vmul.f32 %v15297_v32, %v8128_v61 }
 0x9e8   :  { %v8179_v31 = vadd.f32 %v15303_v58, %v8161_v42 }
 0x9ea   :  { %v8193_v6 = vmax.f32 %v8179_v31, 0.0 }
 0x9ed   :  { %v8130_v44 = vpop.f32.mrf.mxu2 }
 0x9ee   :  { %v8162_v17 = vmul.f32 %v15297_v32, %v8130_v44 }
 0x9f0   :  { %v8180_v30 = vadd.f32 %v15303_v58, %v8162_v17 }
 0x9f2   :  { %v8194_v37 = vmax.f32 %v8180_v30, 0.0 }
 0x9f4   :  { %v8205_v4 = vpack.c.bf16 %v8194_v37, %v8193_v6 }
 0x9f5   :  { %v8133_v12 = vpop.f32.mrf.mxu2 }
 0x9f6   :  { %11199 = vmatmul.msk.bf16.gmra.mxu3 %vm8242_vm0, %v8205_v4  ;;  %v8163_v60 = vmul.f32 %v15297_v32, %v8133_v12 }
 0x9f8   :  { %v8181_v7 = vadd.f32 %v15303_v58, %v8163_v60 }
 0x9fa   :  { %v8195_v47 = vmax.f32 %v8181_v7, 0.0 }
 0x9fd   :  { %v8135_v49 = vpop.f32.mrf.mxu2 }
 0x9fe   :  { %v8164_v45 = vmul.f32 %v15297_v32, %v8135_v49 }
 0xa00   :  { %v8182_v62 = vadd.f32 %v15303_v58, %v8164_v45 }
 0xa02   :  { %v8196_v51 = vmax.f32 %v8182_v62, 0.0 }
 0xa04   :  { %v8206_v33 = vpack.c.bf16 %v8196_v51, %v8195_v47 }
 0xa05   :  { %v8138_v52 = vpop.f32.mrf.mxu2 }
 0xa06   :  { %11200 = vmatmul.msk.bf16.gmra.mxu3 %vm8242_vm0, %v8206_v33  ;;  %v8165_v38 = vmul.f32 %v15297_v32, %v8138_v52 }
 0xa08   :  { %v8183_v43 = vadd.f32 %v15303_v58, %v8165_v38 }
 0xa0a   :  { %v8197_v2 = vmax.f32 %v8183_v43, 0.0 }
 0xa0d   :  { %v8140_v48 = vpop.f32.mrf.mxu2 }
 0xa0e   :  { %v8166_v0 = vmul.f32 %v15297_v32, %v8140_v48 }
 0xa10   :  { %v8184_v1 = vadd.f32 %v15303_v58, %v8166_v0 }
 0xa12   :  { %v8198_v57 = vmax.f32 %v8184_v1, 0.0 }
 0xa14   :  { %v8207_v14 = vpack.c.bf16 %v8198_v57, %v8197_v2 }
 0xa15   :  { %v8143_v29 = vpop.f32.mrf.mxu2 }
 0xa16   :  { %11201 = vmatmul.msk.bf16.gmra.mxu3 %vm8242_vm0, %v8207_v14  ;;  %v8167_v46 = vmul.f32 %v15297_v32, %v8143_v29 }
 0xa18   :  { %v8185_v22 = vadd.f32 %v15303_v58, %v8167_v46 }
 0xa1a   :  { %v8199_v18 = vmax.f32 %v8185_v22, 0.0 }
 0xa1d   :  { %v8145_v5 = vpop.f32.mrf.mxu2 }
 0xa1e   :  { %v8168_v26 = vmul.f32 %v15297_v32, %v8145_v5 }
 0xa20   :  { %v8186_v3 = vadd.f32 %v15303_v58, %v8168_v26 }
 0xa22   :  { %v8200_v13 = vmax.f32 %v8186_v3, 0.0 }
 0xa24   :  { %v8208_v54 = vpack.c.bf16 %v8200_v13, %v8199_v18 }
 0xa25   :  { %v8148_v53 = vpop.f32.mrf.mxu2 }
 0xa26   :  { %11202 = vmatmul.msk.bf16.gmra.mxu3 %vm8242_vm0, %v8208_v54  ;;  %v8169_v50 = vmul.f32 %v15297_v32, %v8148_v53 }
 0xa28   :  { %v8187_v24 = vadd.f32 %v15303_v58, %v8169_v50 }
 0xa2a   :  { %v8201_v36 = vmax.f32 %v8187_v24, 0.0 }
 0xa2d   :  { %v8150_v55 = vpop.f32.mrf.mxu2 }
 0xa2e   :  { %v8170_v39 = vmul.f32 %v15297_v32, %v8150_v55 }
 0xa30   :  { %v8188_v20 = vadd.f32 %v15303_v58, %v8170_v39 }
 0xa32   :  { %v8202_v16 = vmax.f32 %v8188_v20, 0.0 }
 0xa34   :  { %v8209_v9 = vpack.c.bf16 %v8202_v16, %v8201_v36 }
 0xa36   :  { %11203 = vmatmul.msk.bf16.gmra.mxu3 %vm8242_vm0, %v8209_v9 }
 0xa59   :  { %v8273_v19 = vpop.f32.mrf.mxu3 }
 0xa5a   :  { %v8312_v25 = vmul.f32 %v15348_v15, %v8273_v19 }
 0xa5c   :  { %v8330_v58 = vadd.f32 %v15354_v27, %v8312_v25 }
 0xa5e   :  { %v8344_v35 = vmax.f32 %v8330_v58, 0.0  ;;  %v15396_v58 = vld [vmem:[%s16705_s2] ss:$0 sm:$0xff] }
 0xa61   :  { %v8275_v32 = vpop.f32.mrf.mxu3 }
 0xa62   :  { %v8313_v23 = vmul.f32 %v15348_v15, %v8275_v32 }
 0xa64   :  { %v8331_v11 = vadd.f32 %v15354_v27, %v8313_v23 }
 0xa66   :  { %v8345_v34 = vmax.f32 %v8331_v11, 0.0  ;;  %v15402_v11 = vld [vmem:[%s16706_s8] ss:$0 sm:$0xff] }
 0xa68   :  { %v8358_v59 = vpack.c.bf16 %v8345_v34, %v8344_v35 }
 0xa69   :  { %v8278_v41 = vpop.f32.mrf.mxu3 }
 0xa6a   :  { %11212 = vmatmul.msk.bf16.vlgmr.msrb.gmra.mxu0 %vm8381_vm1, %v8358_v59  ;;  %v8314_v28 = vmul.f32 %v15348_v15, %v8278_v41 }
 0xa6c   :  { %v8332_v8 = vadd.f32 %v15354_v27, %v8314_v28 }
 0xa6e   :  { %v8346_v61 = vmax.f32 %v8332_v8, 0.0 }
 0xa71   :  { %v8280_v40 = vpop.f32.mrf.mxu3 }
 0xa72   :  { %v8315_v56 = vmul.f32 %v15348_v15, %v8280_v40 }
 0xa74   :  { %v8333_v63 = vadd.f32 %v15354_v27, %v8315_v56 }
 0xa76   :  { %v8347_v42 = vmax.f32 %v8333_v63, 0.0 }
 0xa78   :  { %v8359_v44 = vpack.c.bf16 %v8347_v42, %v8346_v61 }
 0xa79   :  { %v8283_v31 = vpop.f32.mrf.mxu3 }
 0xa7a   :  { %11213 = vmatmul.msk.bf16.gmra.mxu0 %vm8381_vm1, %v8359_v44  ;;  %v8316_v17 = vmul.f32 %v15348_v15, %v8283_v31 }
 0xa7c   :  { %v8334_v6 = vadd.f32 %v15354_v27, %v8316_v17 }
 0xa7e   :  { %v8348_v12 = vmax.f32 %v8334_v6, 0.0 }
 0xa81   :  { %v8285_v30 = vpop.f32.mrf.mxu3 }
 0xa82   :  { %v8317_v37 = vmul.f32 %v15348_v15, %v8285_v30 }
 0xa84   :  { %v8335_v4 = vadd.f32 %v15354_v27, %v8317_v37 }
 0xa86   :  { %v8349_v60 = vmax.f32 %v8335_v4, 0.0 }
 0xa88   :  { %v8360_v49 = vpack.c.bf16 %v8349_v60, %v8348_v12 }
 0xa89   :  { %v8288_v7 = vpop.f32.mrf.mxu3 }
 0xa8a   :  { %11214 = vmatmul.msk.bf16.gmra.mxu0 %vm8381_vm1, %v8360_v49  ;;  %v8318_v45 = vmul.f32 %v15348_v15, %v8288_v7 }
 0xa8c   :  { %v8336_v47 = vadd.f32 %v15354_v27, %v8318_v45 }
 0xa8e   :  { %v8350_v52 = vmax.f32 %v8336_v47, 0.0 }
 0xa91   :  { %v8290_v62 = vpop.f32.mrf.mxu3 }
 0xa92   :  { %v8319_v51 = vmul.f32 %v15348_v15, %v8290_v62 }
 0xa94   :  { %v8337_v33 = vadd.f32 %v15354_v27, %v8319_v51 }
 0xa96   :  { %v8351_v38 = vmax.f32 %v8337_v33, 0.0 }
 0xa98   :  { %v8361_v48 = vpack.c.bf16 %v8351_v38, %v8350_v52 }
 0xa99   :  { %v8293_v43 = vpop.f32.mrf.mxu3 }
 0xa9a   :  { %11215 = vmatmul.msk.bf16.gmra.mxu0 %vm8381_vm1, %v8361_v48  ;;  %v8320_v0 = vmul.f32 %v15348_v15, %v8293_v43 }
 0xa9c   :  { %v8338_v2 = vadd.f32 %v15354_v27, %v8320_v0 }
 0xa9e   :  { %v8352_v10 = vmax.f32 %v8338_v2, 0.0 }
 0xaa1   :  { %v8295_v1 = vpop.f32.mrf.mxu3 }
 0xaa2   :  { %v8321_v57 = vmul.f32 %v15348_v15, %v8295_v1 }
 0xaa4   :  { %v8339_v14 = vadd.f32 %v15354_v27, %v8321_v57 }
 0xaa6   :  { %v8353_v29 = vmax.f32 %v8339_v14, 0.0 }
 0xaa8   :  { %v8362_v46 = vpack.c.bf16 %v8353_v29, %v8352_v10 }
 0xaa9   :  { %v8298_v5 = vpop.f32.mrf.mxu3 }
 0xaaa   :  { %11216 = vmatmul.msk.bf16.gmra.mxu0 %vm8381_vm1, %v8362_v46  ;;  %v8322_v22 = vmul.f32 %v15348_v15, %v8298_v5 }
 0xaac   :  { %v8340_v3 = vadd.f32 %v15354_v27, %v8322_v22 }
 0xaae   :  { %v8354_v54 = vmax.f32 %v8340_v3, 0.0 }
 0xab1   :  { %v8300_v26 = vpop.f32.mrf.mxu3 }
 0xab2   :  { %v8323_v18 = vmul.f32 %v15348_v15, %v8300_v26 }
 0xab4   :  { %v8341_v13 = vadd.f32 %v15354_v27, %v8323_v18 }
 0xab6   :  { %v8355_v53 = vmax.f32 %v8341_v13, 0.0 }
 0xab8   :  { %v8363_v50 = vpack.c.bf16 %v8355_v53, %v8354_v54 }
 0xab9   :  { %v8303_v55 = vpop.f32.mrf.mxu3 }
 0xaba   :  { %11217 = vmatmul.msk.bf16.gmra.mxu0 %vm8381_vm1, %v8363_v50  ;;  %v8324_v24 = vmul.f32 %v15348_v15, %v8303_v55 }
 0xabc   :  { %v8342_v20 = vadd.f32 %v15354_v27, %v8324_v24 }
 0xabe   :  { %v8356_v9 = vmax.f32 %v8342_v20, 0.0 }
 0xac1   :  { %v8305_v39 = vpop.f32.mrf.mxu3 }
 0xac2   :  { %v8325_v36 = vmul.f32 %v15348_v15, %v8305_v39 }
 0xac4   :  { %v8343_v16 = vadd.f32 %v15354_v27, %v8325_v36 }
 0xac6   :  { %v8357_v19 = vmax.f32 %v8343_v16, 0.0 }
 0xac8   :  { %v8364_v25 = vpack.c.bf16 %v8357_v19, %v8356_v9 }
 0xaca   :  { %11218 = vmatmul.msk.bf16.gmra.mxu0 %vm8381_vm1, %v8364_v25 }
 0xae7   :  { %v8412_v32 = vpop.f32.mrf.mxu0 }
 0xae8   :  { %v8451_v23 = vmul.f32 %v15396_v58, %v8412_v32 }
 0xaea   :  { %v8469_v27 = vadd.f32 %v15402_v11, %v8451_v23  ;;  %v15441_v23 = vld [vmem:[%s16707_s9] ss:$0 sm:$0xff] }
 0xaec   :  { %v8483_v59 = vmax.f32 %v8469_v27, 0.0 }
 0xaef   :  { %v8414_v15 = vpop.f32.mrf.mxu0 }
 0xaf0   :  { %v8452_v35 = vmul.f32 %v15396_v58, %v8414_v15  ;;  %v15446_v15 = vld [vmem:[%s16708_s13] ss:$0 sm:$0xff] }
 0xaf2   :  { %v8470_v34 = vadd.f32 %v15402_v11, %v8452_v35  ;;  %v15453_v35 = vld [vmem:[%s16709_s10] ss:$0 sm:$0xff] }
 0xaf4   :  { %v8484_v21 = vmax.f32 %v8470_v34, 0.0 }
 0xaf6   :  { %v8497_v41 = vpack.c.bf16 %v8484_v21, %v8483_v59 }
 0xaf7   :  { %v8417_v28 = vpop.f32.mrf.mxu0 }
 0xaf8   :  { %11223 = vmatmul.msk.bf16.vlgmr.msrb.gmra.mxu1 %vm8512_vm2, %v8497_v41  ;;  %v8453_v40 = vmul.f32 %v15396_v58, %v8417_v28 }
 0xafa   :  { %v8471_v56 = vadd.f32 %v15402_v11, %v8453_v40 }
 0xafc   :  { %v8485_v42 = vmax.f32 %v8471_v56, 0.0 }
 0xaff   :  { %v8419_v8 = vpop.f32.mrf.mxu0 }
 0xb00   :  { %v8454_v63 = vmul.f32 %v15396_v58, %v8419_v8 }
 0xb02   :  { %v8472_v61 = vadd.f32 %v15402_v11, %v8454_v63 }
 0xb04   :  { %v8486_v44 = vmax.f32 %v8472_v61, 0.0 }
 0xb06   :  { %v8498_v31 = vpack.c.bf16 %v8486_v44, %v8485_v42 }
 0xb07   :  { %v8422_v17 = vpop.f32.mrf.mxu0 }
 0xb08   :  { %11224 = vmatmul.msk.bf16.gmra.mxu1 %vm8512_vm2, %v8498_v31  ;;  %v8455_v30 = vmul.f32 %v15396_v58, %v8422_v17 }
 0xb0a   :  { %v8473_v37 = vadd.f32 %v15402_v11, %v8455_v30 }
 0xb0c   :  { %v8487_v60 = vmax.f32 %v8473_v37, 0.0 }
 0xb0f   :  { %v8424_v6 = vpop.f32.mrf.mxu0 }
 0xb10   :  { %v8456_v4 = vmul.f32 %v15396_v58, %v8424_v6 }
 0xb12   :  { %v8474_v12 = vadd.f32 %v15402_v11, %v8456_v4 }
 0xb14   :  { %v8488_v49 = vmax.f32 %v8474_v12, 0.0 }
 0xb16   :  { %v8499_v7 = vpack.c.bf16 %v8488_v49, %v8487_v60 }
 0xb17   :  { %v8427_v45 = vpop.f32.mrf.mxu0 }
 0xb18   :  { %11225 = vmatmul.msk.bf16.gmra.mxu1 %vm8512_vm2, %v8499_v7  ;;  %v8457_v62 = vmul.f32 %v15396_v58, %v8427_v45 }
 0xb1a   :  { %v8475_v51 = vadd.f32 %v15402_v11, %v8457_v62 }
 0xb1c   :  { %v8489_v38 = vmax.f32 %v8475_v51, 0.0 }
 0xb1f   :  { %v8429_v47 = vpop.f32.mrf.mxu0 }
 0xb20   :  { %v8458_v33 = vmul.f32 %v15396_v58, %v8429_v47 }
 0xb22   :  { %v8476_v52 = vadd.f32 %v15402_v11, %v8458_v33 }
 0xb24   :  { %v8490_v48 = vmax.f32 %v8476_v52, 0.0 }
 0xb26   :  { %v8500_v43 = vpack.c.bf16 %v8490_v48, %v8489_v38 }
 0xb27   :  { %v8432_v0 = vpop.f32.mrf.mxu0 }
 0xb28   :  { %11226 = vmatmul.msk.bf16.gmra.mxu1 %vm8512_vm2, %v8500_v43  ;;  %v8459_v1 = vmul.f32 %v15396_v58, %v8432_v0 }
 0xb2a   :  { %v8477_v57 = vadd.f32 %v15402_v11, %v8459_v1 }
 0xb2c   :  { %v8491_v29 = vmax.f32 %v8477_v57, 0.0 }
 0xb2f   :  { %v8434_v2 = vpop.f32.mrf.mxu0 }
 0xb30   :  { %v8460_v14 = vmul.f32 %v15396_v58, %v8434_v2 }
 0xb32   :  { %v8478_v10 = vadd.f32 %v15402_v11, %v8460_v14 }
 0xb34   :  { %v8492_v46 = vmax.f32 %v8478_v10, 0.0 }
 0xb36   :  { %v8501_v5 = vpack.c.bf16 %v8492_v46, %v8491_v29 }
 0xb37   :  { %v8437_v22 = vpop.f32.mrf.mxu0 }
 0xb38   :  { %11227 = vmatmul.msk.bf16.gmra.mxu1 %vm8512_vm2, %v8501_v5  ;;  %v8461_v26 = vmul.f32 %v15396_v58, %v8437_v22 }
 0xb3a   :  { %v8479_v18 = vadd.f32 %v15402_v11, %v8461_v26 }
 0xb3c   :  { %v8493_v53 = vmax.f32 %v8479_v18, 0.0 }
 0xb3f   :  { %v8439_v3 = vpop.f32.mrf.mxu0 }
 0xb40   :  { %v8462_v13 = vmul.f32 %v15396_v58, %v8439_v3 }
 0xb42   :  { %v8480_v54 = vadd.f32 %v15402_v11, %v8462_v13 }
 0xb44   :  { %v8494_v50 = vmax.f32 %v8480_v54, 0.0 }
 0xb46   :  { %v8502_v55 = vpack.c.bf16 %v8494_v50, %v8493_v53 }
 0xb47   :  { %v8442_v24 = vpop.f32.mrf.mxu0 }
 0xb48   :  { %11228 = vmatmul.msk.bf16.gmra.mxu1 %vm8512_vm2, %v8502_v55  ;;  %v8463_v39 = vmul.f32 %v15396_v58, %v8442_v24 }
 0xb4a   :  { %v8481_v36 = vadd.f32 %v15402_v11, %v8463_v39 }
 0xb4c   :  { %v8495_v19 = vmax.f32 %v8481_v36, 0.0 }
 0xb4f   :  { %v8444_v20 = vpop.f32.mrf.mxu0 }
 0xb50   :  { %v8464_v16 = vmul.f32 %v15396_v58, %v8444_v20 }
 0xb52   :  { %v8482_v9 = vadd.f32 %v15402_v11, %v8464_v16 }
 0xb54   :  { %v8496_v25 = vmax.f32 %v8482_v9, 0.0 }
 0xb56   :  { %v8503_v32 = vpack.c.bf16 %v8496_v25, %v8495_v19 }
 0xb58   :  { %11229 = vmatmul.msk.bf16.gmra.mxu1 %vm8512_vm2, %v8503_v32 }
 0xb75   :  { %v8543_v27 = vpop.f32.mrf.mxu1 }
 0xb76   :  { %v8582_v58 = vmul.f32 %v15441_v23, %v8543_v27 }
 0xb78   :  { %v8600_v11 = vadd.f32 %v15446_v15, %v8582_v58 }
 0xb7a   :  { %v8614_v34 = vmax.f32 %v8600_v11, 0.0 }
 0xb7c   :  { %v8632_v59 = vmul.f32 %v15453_v35, %v8614_v34 }
 0xb7d   :  { %v8545_v21 = vpop.f32.mrf.mxu1 }
 0xb7e   :  { %v8583_v41 = vmul.f32 %v15441_v23, %v8545_v21  ;;  %v8647_v28 = vsel %vm8646_vm3, %v8632_v59, 0.0 }
 0xb7f   :  { %8648 = vadd.xlane.f32.xlu0 %v8647_v28 }
 0xb80   :  { %v8601_v40 = vadd.f32 %v15446_v15, %v8583_v41 }
 0xb82   :  { %v8615_v8 = vmax.f32 %v8601_v40, 0.0 }
 0xb84   :  { %v8633_v56 = vmul.f32 %v15453_v35, %v8615_v8 }
 0xb85   :  { %v8548_v63 = vpop.f32.mrf.mxu1 }
 0xb86   :  { %v8584_v61 = vmul.f32 %v15441_v23, %v8548_v63  ;;  %v8650_v42 = vsel %vm8646_vm3, %v8633_v56, 0.0 }
 0xb87   :  { %8651 = vadd.xlane.f32.xlu0 %v8650_v42 }
 0xb88   :  { %v8602_v44 = vadd.f32 %v15446_v15, %v8584_v61 }
 0xb8a   :  { %v8616_v31 = vmax.f32 %v8602_v44, 0.0 }
 0xb8c   :  { %v8634_v17 = vmul.f32 %v15453_v35, %v8616_v31 }
 0xb8d   :  { %v8550_v30 = vpop.f32.mrf.mxu1 }
 0xb8e   :  { %v8585_v6 = vmul.f32 %v15441_v23, %v8550_v30  ;;  %v8653_v37 = vsel %vm8646_vm3, %v8634_v17, 0.0 }
 0xb8f   :  { %8654 = vadd.xlane.f32.xlu1 %v8653_v37 }
 0xb90   :  { %v8603_v4 = vadd.f32 %v15446_v15, %v8585_v6 }
 0xb92   :  { %v8617_v12 = vmax.f32 %v8603_v4, 0.0 }
 0xb94   :  { %v8635_v60 = vmul.f32 %v15453_v35, %v8617_v12 }
 0xb95   :  { %v8553_v49 = vpop.f32.mrf.mxu1 }
 0xb96   :  { %v8586_v7 = vmul.f32 %v15441_v23, %v8553_v49  ;;  %v8656_v45 = vsel %vm8646_vm3, %v8635_v60, 0.0 }
 0xb97   :  { %8657 = vadd.xlane.f32.xlu1 %v8656_v45 }
 0xb98   :  { %v8604_v62 = vadd.f32 %v15446_v15, %v8586_v7 }
 0xb9a   :  { %v8618_v47 = vmax.f32 %v8604_v62, 0.0 }
 0xb9c   :  { %v8636_v51 = vmul.f32 %v15453_v35, %v8618_v47 }
 0xb9d   :  { %v8555_v33 = vpop.f32.mrf.mxu1 }
 0xb9e   :  { %v8587_v52 = vmul.f32 %v15441_v23, %v8555_v33  ;;  %v8659_v38 = vsel %vm8646_vm3, %v8636_v51, 0.0 }
 0xb9f   :  { %8660 = vadd.xlane.f32.xlu2 %v8659_v38 }
 0xba0   :  { %v8605_v48 = vadd.f32 %v15446_v15, %v8587_v52 }
 0xba2   :  { %v8619_v43 = vmax.f32 %v8605_v48, 0.0 }
 0xba4   :  { %v8637_v0 = vmul.f32 %v15453_v35, %v8619_v43 }
 0xba5   :  { %v8558_v1 = vpop.f32.mrf.mxu1 }
 0xba6   :  { %v8588_v2 = vmul.f32 %v15441_v23, %v8558_v1  ;;  %v8662_v57 = vsel %vm8646_vm3, %v8637_v0, 0.0 }
 0xba7   :  { %8663 = vadd.xlane.f32.xlu2 %v8662_v57 }
 0xba8   :  { %v8606_v14 = vadd.f32 %v15446_v15, %v8588_v2 }
 0xbaa   :  { %v8620_v10 = vmax.f32 %v8606_v14, 0.0 }
 0xbac   :  { %v8638_v29 = vmul.f32 %v15453_v35, %v8620_v10 }
 0xbad   :  { %v8560_v46 = vpop.f32.mrf.mxu1 }
 0xbae   :  { %v8589_v5 = vmul.f32 %v15441_v23, %v8560_v46  ;;  %v8665_v22 = vsel %vm8646_vm3, %v8638_v29, 0.0 }
 0xbaf   :  { %8666 = vadd.xlane.f32.xlu0 %v8665_v22 }
 0xbb0   :  { %v8607_v26 = vadd.f32 %v15446_v15, %v8589_v5 }
 0xbb2   :  { %v8621_v3 = vmax.f32 %v8607_v26, 0.0 }
 0xbb4   :  { %v8639_v18 = vmul.f32 %v15453_v35, %v8621_v3 }
 0xbb5   :  { %v8563_v13 = vpop.f32.mrf.mxu1 }
 0xbb6   :  { %v8590_v54 = vmul.f32 %v15441_v23, %v8563_v13  ;;  %v8668_v53 = vsel %vm8646_vm3, %v8639_v18, 0.0 }
 0xbb7   :  { %8669 = vadd.xlane.f32.xlu1 %v8668_v53 }
 0xbb8   :  { %v8608_v50 = vadd.f32 %v15446_v15, %v8590_v54 }
 0xbba   :  { %v8622_v55 = vmax.f32 %v8608_v50, 0.0 }
 0xbbc   :  { %v8640_v24 = vmul.f32 %v15453_v35, %v8622_v55 }
 0xbbd   :  { %v8565_v39 = vpop.f32.mrf.mxu1 }
 0xbbe   :  { %v8591_v20 = vmul.f32 %v15441_v23, %v8565_v39  ;;  %v8671_v36 = vsel %vm8646_vm3, %v8640_v24, 0.0 }
 0xbbf   :  { %8672 = vadd.xlane.f32.xlu2 %v8671_v36 }
 0xbc0   :  { %v8609_v16 = vadd.f32 %v15446_v15, %v8591_v20 }
 0xbc2   :  { %v8623_v9 = vmax.f32 %v8609_v16, 0.0 }
 0xbc4   :  { %v8641_v19 = vmul.f32 %v15453_v35, %v8623_v9 }
 0xbc5   :  { %v8568_v25 = vpop.f32.mrf.mxu1 }
 0xbc6   :  { %v8592_v32 = vmul.f32 %v15441_v23, %v8568_v25  ;;  %v8674_v27 = vsel %vm8646_vm3, %v8641_v19, 0.0 }
 0xbc7   :  { %8675 = vadd.xlane.f32.xlu0 %v8674_v27 }
 0xbc8   :  { %v8610_v58 = vadd.f32 %v15446_v15, %v8592_v32 }
 0xbca   :  { %v8624_v11 = vmax.f32 %v8610_v58, 0.0 }
 0xbcc   :  { %v8642_v34 = vmul.f32 %v15453_v35, %v8624_v11 }
 0xbcd   :  { %v8570_v59 = vpop.f32.mrf.mxu1 }
 0xbce   :  { %v8593_v21 = vmul.f32 %v15441_v23, %v8570_v59  ;;  %v8677_v41 = vsel %vm8646_vm3, %v8642_v34, 0.0 }
 0xbcf   :  { %8678 = vadd.xlane.f32.xlu1 %v8677_v41 }
 0xbd0   :  { %v8611_v28 = vadd.f32 %v15446_v15, %v8593_v21 }
 0xbd2   :  { %v8625_v40 = vmax.f32 %v8611_v28, 0.0 }
 0xbd4   :  { %v8643_v8 = vmul.f32 %v15453_v35, %v8625_v40 }
 0xbd5   :  { %v8573_v56 = vpop.f32.mrf.mxu1 }
 0xbd6   :  { %v8594_v63 = vmul.f32 %v15441_v23, %v8573_v56  ;;  %v8680_v61 = vsel %vm8646_vm3, %v8643_v8, 0.0 }
 0xbd7   :  { %8681 = vadd.xlane.f32.xlu2 %v8680_v61 }
 0xbd8   :  { %v8612_v42 = vadd.f32 %v15446_v15, %v8594_v63 }
 0xbda   :  { %v8626_v44 = vmax.f32 %v8612_v42, 0.0 }
 0xbdc   :  { %v8644_v31 = vmul.f32 %v15453_v35, %v8626_v44 }
 0xbdd   :  { %v8575_v17 = vpop.f32.mrf.mxu1 }
 0xbde   :  { %v8595_v30 = vmul.f32 %v15441_v23, %v8575_v17  ;;  %v8683_v6 = vsel %vm8646_vm3, %v8644_v31, 0.0 }
 0xbdf   :  { %8684 = vadd.xlane.f32.xlu0 %v8683_v6 }
 0xbe0   :  { %v8613_v37 = vadd.f32 %v15446_v15, %v8595_v30 }
 0xbe2   :  { %v8627_v4 = vmax.f32 %v8613_v37, 0.0 }
 0xbe4   :  { %v8645_v12 = vmul.f32 %v15453_v35, %v8627_v4 }
 0xbe6   :  { %v8686_v60 = vsel %vm8646_vm3, %v8645_v12, 0.0 }
 0xbe7   :  { %8687 = vadd.xlane.f32.xlu1 %v8686_v60 }
 0xbf2   :  { %v8649_v49 = vpop.xlane.xlu0 %8648 }
 0xbf3   :  { %v8689_v7 = vsub.f32 0.0, %v8649_v49 }
 0xbf5   :  { %v8703_v45 = vmul.f32 1.442695, %v8689_v7 }
 0xbf7   :  { %11876 = vpow2.f32 %v8703_v45 }
 0xbfa   :  { %v8652_v62 = vpop.xlane.xlu0 %8651 }
 0xbfb   :  { %v8690_v47 = vsub.f32 0.0, %v8652_v62 }
 0xbfd   :  { %v11877_v51 = vpop.eup %11876  ;;  %v8705_v33 = vmul.f32 1.442695, %v8690_v47 }
 0xbfe   :  { %v8731_v23 = vadd.f32 1.0, %v11877_v51 }
 0xbff   :  { %11878 = vpow2.f32 %v8705_v33 }
 0xc00   :  { %11880 = vrcp.f32 %v8731_v23 }
 0xc02   :  { %v8655_v52 = vpop.xlane.xlu1 %8654 }
 0xc03   :  { %v8691_v38 = vsub.f32 0.0, %v8655_v52 }
 0xc05   :  { %v11879_v15 = vpop.eup %11878  ;;  %v8707_v48 = vmul.f32 1.442695, %v8691_v38 }
 0xc06   :  { %v11881_v35 = vpop.eup %11880  ;;  %v8732_v43 = vadd.f32 1.0, %v11879_v15 }
 0xc07   :  { %8760 = vst.msk [vmem:[%s16710_s16] sm:$0xff] %vm8759_vm4, %v11881_v35  ;;  %11882 = vpow2.f32 %v8707_v48 }
 0xc08   :  { %11884 = vrcp.f32 %v8732_v43 }
 0xc0a   :  { %v8658_v0 = vpop.xlane.xlu1 %8657 }
 0xc0b   :  { %v8692_v1 = vsub.f32 0.0, %v8658_v0 }
 0xc0d   :  { %v11883_v2 = vpop.eup %11882  ;;  %v8709_v57 = vmul.f32 1.442695, %v8692_v1 }
 0xc0e   :  { %v11885_v14 = vpop.eup %11884  ;;  %v8733_v10 = vadd.f32 1.0, %v11883_v2 }
 0xc0f   :  { %8761 = vst.msk [vmem:[%s16710_s16 + $0x8] sm:$0xff] %vm8759_vm4, %v11885_v14  ;;  %11886 = vpow2.f32 %v8709_v57 }
 0xc10   :  { %11888 = vrcp.f32 %v8733_v10 }
 0xc12   :  { %v8661_v29 = vpop.xlane.xlu2 %8660 }
 0xc13   :  { %v8693_v46 = vsub.f32 0.0, %v8661_v29 }
 0xc15   :  { %v11887_v5 = vpop.eup %11886  ;;  %v8711_v22 = vmul.f32 1.442695, %v8693_v46 }
 0xc16   :  { %v11889_v26 = vpop.eup %11888  ;;  %v8734_v3 = vadd.f32 1.0, %v11887_v5 }
 0xc17   :  { %8762 = vst.msk [vmem:[%s16710_s16 + $0x10] sm:$0xff] %vm8759_vm4, %v11889_v26  ;;  %11890 = vpow2.f32 %v8711_v22 }
 0xc18   :  { %11892 = vrcp.f32 %v8734_v3 }
 0xc1a   :  { %v8664_v18 = vpop.xlane.xlu2 %8663 }
 0xc1b   :  { %v8694_v13 = vsub.f32 0.0, %v8664_v18 }
 0xc1d   :  { %v11891_v54 = vpop.eup %11890  ;;  %v8713_v53 = vmul.f32 1.442695, %v8694_v13 }
 0xc1e   :  { %v11893_v50 = vpop.eup %11892  ;;  %v8735_v55 = vadd.f32 1.0, %v11891_v54 }
 0xc1f   :  { %8763 = vst.msk [vmem:[%s16710_s16 + $0x18] sm:$0xff] %vm8759_vm4, %v11893_v50  ;;  %11894 = vpow2.f32 %v8713_v53 }
 0xc20   :  { %11896 = vrcp.f32 %v8735_v55 }
 0xc22   :  { %v8667_v24 = vpop.xlane.xlu0 %8666 }
 0xc23   :  { %v8695_v39 = vsub.f32 0.0, %v8667_v24 }
 0xc25   :  { %v11895_v20 = vpop.eup %11894  ;;  %v8715_v36 = vmul.f32 1.442695, %v8695_v39 }
 0xc26   :  { %v11897_v16 = vpop.eup %11896  ;;  %v8736_v9 = vadd.f32 1.0, %v11895_v20 }
 0xc27   :  { %8764 = vst.msk [vmem:[%s16710_s16 + $0x20] sm:$0xff] %vm8759_vm4, %v11897_v16  ;;  %11898 = vpow2.f32 %v8715_v36 }
 0xc28   :  { %11900 = vrcp.f32 %v8736_v9 }
 0xc2a   :  { %v8670_v19 = vpop.xlane.xlu1 %8669 }
 0xc2b   :  { %v8696_v25 = vsub.f32 0.0, %v8670_v19 }
 0xc2d   :  { %v11899_v32 = vpop.eup %11898  ;;  %v8717_v27 = vmul.f32 1.442695, %v8696_v25 }
 0xc2e   :  { %v11901_v58 = vpop.eup %11900  ;;  %v8737_v11 = vadd.f32 1.0, %v11899_v32 }
 0xc2f   :  { %8765 = vst.msk [vmem:[%s16710_s16 + $0x28] sm:$0xff] %vm8759_vm4, %v11901_v58  ;;  %11902 = vpow2.f32 %v8717_v27 }
 0xc30   :  { %11904 = vrcp.f32 %v8737_v11 }
 0xc32   :  { %v8673_v34 = vpop.xlane.xlu2 %8672 }
 0xc33   :  { %v8697_v59 = vsub.f32 0.0, %v8673_v34 }
 0xc35   :  { %v11903_v21 = vpop.eup %11902  ;;  %v8719_v41 = vmul.f32 1.442695, %v8697_v59 }
 0xc36   :  { %v11905_v28 = vpop.eup %11904  ;;  %v8738_v40 = vadd.f32 1.0, %v11903_v21 }
 0xc37   :  { %8766 = vst.msk [vmem:[%s16710_s16 + $0x30] sm:$0xff] %vm8759_vm4, %v11905_v28  ;;  %11906 = vpow2.f32 %v8719_v41 }
 0xc38   :  { %11908 = vrcp.f32 %v8738_v40 }
 0xc3a   :  { %v8676_v8 = vpop.xlane.xlu0 %8675 }
 0xc3b   :  { %v8698_v56 = vsub.f32 0.0, %v8676_v8 }
 0xc3d   :  { %v11907_v63 = vpop.eup %11906  ;;  %v8721_v61 = vmul.f32 1.442695, %v8698_v56 }
 0xc3e   :  { %v11909_v42 = vpop.eup %11908  ;;  %v8739_v44 = vadd.f32 1.0, %v11907_v63 }
 0xc3f   :  { %8767 = vst.msk [vmem:[%s16710_s16 + $0x38] sm:$0xff] %vm8759_vm4, %v11909_v42  ;;  %11910 = vpow2.f32 %v8721_v61 }
 0xc40   :  { %11912 = vrcp.f32 %v8739_v44 }
 0xc42   :  { %v8679_v31 = vpop.xlane.xlu1 %8678 }
 0xc43   :  { %v8699_v17 = vsub.f32 0.0, %v8679_v31 }
 0xc45   :  { %v11911_v30 = vpop.eup %11910  ;;  %v8723_v6 = vmul.f32 1.442695, %v8699_v17 }
 0xc46   :  { %v11913_v37 = vpop.eup %11912  ;;  %v8740_v4 = vadd.f32 1.0, %v11911_v30 }
 0xc47   :  { %8768 = vst.msk [vmem:[%s16710_s16 + $0x40] sm:$0xff] %vm8759_vm4, %v11913_v37  ;;  %11914 = vpow2.f32 %v8723_v6 }
 0xc48   :  { %11916 = vrcp.f32 %v8740_v4 }
 0xc4a   :  { %v8682_v12 = vpop.xlane.xlu2 %8681 }
 0xc4b   :  { %v8700_v60 = vsub.f32 0.0, %v8682_v12 }
 0xc4d   :  { %v11915_v49 = vpop.eup %11914  ;;  %v8725_v7 = vmul.f32 1.442695, %v8700_v60 }
 0xc4e   :  { %v11917_v45 = vpop.eup %11916  ;;  %v8741_v62 = vadd.f32 1.0, %v11915_v49 }
 0xc4f   :  { %8769 = vst.msk [vmem:[%s16710_s16 + $0x48] sm:$0xff] %vm8759_vm4, %v11917_v45  ;;  %11918 = vpow2.f32 %v8725_v7 }
 0xc50   :  { %11920 = vrcp.f32 %v8741_v62 }
 0xc52   :  { %v8685_v47 = vpop.xlane.xlu0 %8684 }
 0xc53   :  { %v8701_v51 = vsub.f32 0.0, %v8685_v47 }
 0xc55   :  { %v11919_v33 = vpop.eup %11918  ;;  %v8727_v23 = vmul.f32 1.442695, %v8701_v51 }
 0xc56   :  { %v11921_v52 = vpop.eup %11920  ;;  %v8742_v38 = vadd.f32 1.0, %v11919_v33 }
 0xc57   :  { %8770 = vst.msk [vmem:[%s16710_s16 + $0x50] sm:$0xff] %vm8759_vm4, %v11921_v52  ;;  %11922 = vpow2.f32 %v8727_v23 }
 0xc58   :  { %11924 = vrcp.f32 %v8742_v38 }
 0xc5a   :  { %v8688_v15 = vpop.xlane.xlu1 %8687 }
 0xc5b   :  { %v8702_v48 = vsub.f32 0.0, %v8688_v15 }
 0xc5d   :  { %v11923_v35 = vpop.eup %11922  ;;  %v8729_v43 = vmul.f32 1.442695, %v8702_v48 }
 0xc5e   :  { %v11925_v0 = vpop.eup %11924  ;;  %v8743_v1 = vadd.f32 1.0, %v11923_v35 }
 0xc5f   :  { %8771 = vst.msk [vmem:[%s16710_s16 + $0x58] sm:$0xff] %vm8759_vm4, %v11925_v0  ;;  %11926 = vpow2.f32 %v8729_v43 }
 0xc60   :  { %11928 = vrcp.f32 %v8743_v1 }
 0xc65   :  { %v11927_v2 = vpop.eup %11926 }
 0xc66   :  { %v11929_v57 = vpop.eup %11928  ;;  %v8744_v14 = vadd.f32 1.0, %v11927_v2 }
 0xc67   :  { %8772 = vst.msk [vmem:[%s16710_s16 + $0x60] sm:$0xff] %vm8759_vm4, %v11929_v57 }
 0xc68   :  { %11930 = vrcp.f32 %v8744_v14 }
 0xc6e   :  { %v11931_v10 = vpop.eup %11930 }
 0xc6f   :  { %8773 = vst.msk [vmem:[%s16710_s16 + $0x68] sm:$0xff] %vm8759_vm4, %v11931_v10 }
 0xc70   :  { %8778 = vsyncpa [#allocation3], 1 }
 0xc71   :  { %8779 = vsyncpa [#allocation5], 1 }
 0xc72   :  { %8780 = vsyncpa [#allocation8], 1 }

</bundles_post_ra>
